<compile_context>
chip_gen: v5e
topology: v5e:2x2
jax: 0.10.0
libtpu: 0.0.40
codegen_flags: <defaults>
</compile_context>

<pallas_src>
import functools

import jax
import jax.numpy as jnp
from jax.experimental import pallas as pl
from jax.experimental.pallas import tpu as pltpu


_SQRT_2_OVER_PI = 0.7978845608028654


def _gelu_tanh(u):
    return 0.5 * u * (1.0 + jnp.tanh(_SQRT_2_OVER_PI * (u + 0.044715 * (u * u * u))))


# --------------------------------------------------------------------------
# Fully fused kernel: residual + Attn(LN1(x)), then residual + MLP(LN2(.))
# --------------------------------------------------------------------------
def block1_kernel(x_ref, g1_ref, b1_ref, wqkv_ref, wproj_ref, bproj_ref,
                  g2_ref, b2_ref, w1_ref, bb1_ref, w2_ref, bb2_ref,
                  o_ref, *, num_heads, scale, eps):
    # x_ref:    (BT, N, C)
    # g1/b1:    (1, 1, C)     LayerNorm1 affine
    # wqkv:     (C, 3C)       qkv projection (input-dim first; qkv_bias=False)
    # wproj:    (C, C)        attention output projection
    # bproj:    (1, 1, C)
    # g2/b2:    (1, 1, C)     LayerNorm2 affine
    # w1:       (C, Cm)   bb1: (1, Cm)
    # w2:       (Cm, C)   bb2: (1, 1, C)
    x = x_ref[...]
    BT, N, C = x.shape
    D = C // num_heads

    # ---- LayerNorm1 over the channel dim ----
    mean = jnp.mean(x, axis=-1, keepdims=True)
    cen = x - mean
    var = jnp.mean(cen * cen, axis=-1, keepdims=True)
    xn = cen * jax.lax.rsqrt(var + eps) * g1_ref[...] + b1_ref[...]

    # ---- QKV projection: one lane-dense (BT*N, C) @ (C, 3C) matmul ----
    qkv = jnp.dot(xn.reshape(BT * N, C), wqkv_ref[...],
                  preferred_element_type=jnp.float32).reshape(BT, N, 3 * C)

    # ---- Per-head attention (static unroll; batched 3-D einsums over BT) ----
    parts = []
    for h in range(num_heads):
        q = qkv[:, :, h * D:(h + 1) * D] * scale
        k = qkv[:, :, C + h * D:C + (h + 1) * D]
        v = qkv[:, :, 2 * C + h * D:2 * C + (h + 1) * D]
        s = jnp.einsum('bnd,bmd->bnm', q, k,
                       preferred_element_type=jnp.float32)
        s = s - jnp.max(s, axis=-1, keepdims=True)
        p = jnp.exp(s)
        p = p / jnp.sum(p, axis=-1, keepdims=True)
        parts.append(jnp.einsum('bnm,bmd->bnd', p, v,
                                preferred_element_type=jnp.float32))
    ctx = jnp.concatenate(parts, axis=-1)                       # (BT, N, C)

    # ---- Output projection + bias + residual ----
    proj = jnp.dot(ctx.reshape(BT * N, C), wproj_ref[...],
                   preferred_element_type=jnp.float32).reshape(BT, N, C)
    h1 = x + proj + bproj_ref[...]

    # ---- LayerNorm2 ----
    mean2 = jnp.mean(h1, axis=-1, keepdims=True)
    cen2 = h1 - mean2
    var2 = jnp.mean(cen2 * cen2, axis=-1, keepdims=True)
    hn = cen2 * jax.lax.rsqrt(var2 + eps) * g2_ref[...] + b2_ref[...]

    # ---- MLP: FC1 + GELU + FC2 + residual ----
    u = jnp.dot(hn.reshape(BT * N, C), w1_ref[...],
                preferred_element_type=jnp.float32) + bb1_ref[...]
    u = _gelu_tanh(u)
    y = jnp.dot(u, w2_ref[...], preferred_element_type=jnp.float32)
    o_ref[...] = (h1 + y.reshape(BT, N, C) + bb2_ref[...]).astype(o_ref.dtype)


# --------------------------------------------------------------------------
# Wrapper
# --------------------------------------------------------------------------
def block1_forward(x, params, *, num_heads, eps=1e-5):
    """x: (B, T, N, C).  params = (g1, be1, wqkv, wproj, bproj,
                                   g2, be2, w1, b1h, w2, b2h)."""
    B, T, N, C = x.shape
    BT = B * T
    D = C // num_heads
    scale = D ** -0.5
    g1, be1, wqkv, wproj, bproj, g2, be2, w1, b1h, w2, b2h = params
    Cm = w1.shape[1]

    x3 = x.reshape(BT, N, C)
    g1r = g1.reshape(1, 1, C)
    be1r = be1.reshape(1, 1, C)
    bprojr = bproj.reshape(1, 1, C)
    g2r = g2.reshape(1, 1, C)
    be2r = be2.reshape(1, 1, C)
    b1r = b1h.reshape(1, Cm)
    b2r = b2h.reshape(1, 1, C)

    vec3 = pl.BlockSpec((1, 1, C), lambda i: (0, 0, 0))
    full = pl.BlockSpec((BT, N, C), lambda i: (0, 0, 0))

    out = pl.pallas_call(
        functools.partial(block1_kernel, num_heads=num_heads,
                          scale=scale, eps=eps),
        out_shape=jax.ShapeDtypeStruct((BT, N, C), x.dtype),
        grid_spec=pltpu.PrefetchScalarGridSpec(
            num_scalar_prefetch=0,
            grid=(1,),
            in_specs=[
                full,                                        # x
                vec3,                                        # gamma1
                vec3,                                        # beta1
                pl.BlockSpec((C, 3 * C), lambda i: (0, 0)),  # wqkv
                pl.BlockSpec((C, C), lambda i: (0, 0)),      # wproj
                vec3,                                        # bproj
                vec3,                                        # gamma2
                vec3,                                        # beta2
                pl.BlockSpec((C, Cm), lambda i: (0, 0)),     # w1
                pl.BlockSpec((1, Cm), lambda i: (0, 0)),     # b1
                pl.BlockSpec((Cm, C), lambda i: (0, 0)),     # w2
                vec3,                                        # b2
            ],
            out_specs=full,
        ),
        compiler_params=pltpu.CompilerParams(
            dimension_semantics=("arbitrary",)),
    )(x3, g1r, be1r, wqkv, wproj, bprojr, g2r, be2r, w1, b1r, w2, b2r)

    return out.reshape(B, T, N, C)


# --------------------------------------------------------------------------
# Pure-JAX reference reproducing the PyTorch forward (dropout p=0 -> identity)
# --------------------------------------------------------------------------
def block1_reference(x, params, *, num_heads, eps=1e-5):
    B, T, N, C = x.shape
    H = num_heads
    D = C // H
    scale = D ** -0.5
    g1, be1, wqkv, wproj, bproj, g2, be2, w1, b1h, w2, b2h = params

    def ln(z, g, b):
        m = jnp.mean(z, axis=-1, keepdims=True)
        v = jnp.mean((z - m) ** 2, axis=-1, keepdims=True)
        return (z - m) * jax.lax.rsqrt(v + eps) * g + b

    xf = x.reshape(B * T, N, C)
    xn = ln(xf, g1, be1)
    qkv = jnp.einsum('bnc,cf->bnf', xn, wqkv).reshape(B * T, N, 3, H, D)
    q = qkv[:, :, 0] * scale
    k = qkv[:, :, 1]
    v = qkv[:, :, 2]
    s = jnp.einsum('bnhd,bmhd->bhnm', q, k)
    p = jax.nn.softmax(s, axis=-1)
    ctx = jnp.einsum('bhnm,bmhd->bnhd', p, v).reshape(B * T, N, C)
    h = xf + jnp.einsum('bnc,cd->bnd', ctx, wproj) + bproj
    hn = ln(h, g2, be2)
    u = _gelu_tanh(jnp.einsum('bnc,cf->bnf', hn, w1) + b1h)
    out = h + jnp.einsum('bnf,fc->bnc', u, w2) + b2h
    return out.reshape(B, T, N, C)


if __name__ == "__main__":
    # Small shapes consistent with Block1: x is (B, T, N, C);
    # dim=C=256, num_heads=8 (head_dim=32), mlp_ratio=4 -> hidden 1024.
    B, T, N, C = 2, 2, 16, 256
    H = 8
    Cm = int(C * 4.0)

    key = jax.random.PRNGKey(0)
    ks = jax.random.split(key, 12)
    x = jax.random.normal(ks[0], (B, T, N, C), dtype=jnp.float32)

    def unif(k, shape, fan_in):
        b = 1.0 / (fan_in ** 0.5)
        return jax.random.uniform(k, shape, jnp.float32, -b, b)

    g1 = 1.0 + 0.1 * jax.random.normal(ks[1], (C,), jnp.float32)
    be1 = 0.1 * jax.random.normal(ks[2], (C,), jnp.float32)
    wqkv = unif(ks[3], (C, 3 * C), C)          # qkv_bias=False -> no qkv bias
    wproj = unif(ks[4], (C, C), C)
    bproj = unif(ks[5], (C,), C)
    g2 = 1.0 + 0.1 * jax.random.normal(ks[6], (C,), jnp.float32)
    be2 = 0.1 * jax.random.normal(ks[7], (C,), jnp.float32)
    w1 = unif(ks[8], (C, Cm), C)
    b1h = unif(ks[9], (Cm,), C)
    w2 = unif(ks[10], (Cm, C), Cm)
    b2h = unif(ks[11], (C,), Cm)
    params = (g1, be1, wqkv, wproj, bproj, g2, be2, w1, b1h, w2, b2h)

    out = block1_forward(x, params, num_heads=H)
    out = jax.block_until_ready(out)

    ref = block1_reference(x, params, num_heads=H)
    assert out.shape == (B, T, N, C)
    assert jnp.allclose(out, ref, atol=2e-2, rtol=2e-2), "mismatch vs reference"

    print("KERNEL_OK")
</pallas_src>

<mosaic_0001>
module attributes {stable_mosaic.version = 11 : i64} {
  func.func @block1_kernel(%arg0: i32, %arg1: memref<4x16x256xf32, #tpu.memory_space<vmem>>, %arg2: memref<1x1x256xf32, #tpu.memory_space<vmem>>, %arg3: memref<1x1x256xf32, #tpu.memory_space<vmem>>, %arg4: memref<256x768xf32, #tpu.memory_space<vmem>>, %arg5: memref<256x256xf32, #tpu.memory_space<vmem>>, %arg6: memref<1x1x256xf32, #tpu.memory_space<vmem>>, %arg7: memref<1x1x256xf32, #tpu.memory_space<vmem>>, %arg8: memref<1x1x256xf32, #tpu.memory_space<vmem>>, %arg9: memref<256x1024xf32, #tpu.memory_space<vmem>>, %arg10: memref<1x1024xf32, #tpu.memory_space<vmem>>, %arg11: memref<1024x256xf32, #tpu.memory_space<vmem>>, %arg12: memref<1x1x256xf32, #tpu.memory_space<vmem>>, %arg13: memref<4x16x256xf32, #tpu.memory_space<vmem>>) attributes {dimension_semantics = [#tpu.dimension_semantics<arbitrary>], iteration_bounds = array<i64: 1>, scalar_prefetch = 0 : i64, scratch_operands = 0 : i64, tpu.core_type = #tpu.core_type<tc>, window_params = [{pipeline_mode = #tpu.pipeline_mode<synchronous>, transform_indices = @transform_0, window_bounds = array<i64: 4, 16, 256>}, {pipeline_mode = #tpu.pipeline_mode<synchronous>, transform_indices = @transform_1, window_bounds = array<i64: 1, 1, 256>}, {pipeline_mode = #tpu.pipeline_mode<synchronous>, transform_indices = @transform_2, window_bounds = array<i64: 1, 1, 256>}, {pipeline_mode = #tpu.pipeline_mode<synchronous>, transform_indices = @transform_3, window_bounds = array<i64: 256, 768>}, {pipeline_mode = #tpu.pipeline_mode<synchronous>, transform_indices = @transform_4, window_bounds = array<i64: 256, 256>}, {pipeline_mode = #tpu.pipeline_mode<synchronous>, transform_indices = @transform_5, window_bounds = array<i64: 1, 1, 256>}, {pipeline_mode = #tpu.pipeline_mode<synchronous>, transform_indices = @transform_6, window_bounds = array<i64: 1, 1, 256>}, {pipeline_mode = #tpu.pipeline_mode<synchronous>, transform_indices = @transform_7, window_bounds = array<i64: 1, 1, 256>}, {pipeline_mode = #tpu.pipeline_mode<synchronous>, transform_indices = @transform_8, window_bounds = array<i64: 256, 1024>}, {pipeline_mode = #tpu.pipeline_mode<synchronous>, transform_indices = @transform_9, window_bounds = array<i64: 1, 1024>}, {pipeline_mode = #tpu.pipeline_mode<synchronous>, transform_indices = @transform_10, window_bounds = array<i64: 1024, 256>}, {pipeline_mode = #tpu.pipeline_mode<synchronous>, transform_indices = @transform_11, window_bounds = array<i64: 1, 1, 256>}, {pipeline_mode = #tpu.pipeline_mode<synchronous>, transform_indices = @transform_12, window_bounds = array<i64: 4, 16, 256>}]} {
    %c0 = arith.constant 0 : index
    %c0_0 = arith.constant 0 : index
    %c0_1 = arith.constant 0 : index
    %0 = vector.load %arg1[%c0, %c0_0, %c0_1] : memref<4x16x256xf32, #tpu.memory_space<vmem>>, vector<4x16x256xf32>
    %cst = arith.constant dense<0.000000e+00> : vector<4x16xf32>
    %1 = vector.multi_reduction <add>, %0, %cst [2] : vector<4x16x256xf32> to vector<4x16xf32>
    %2 = vector.shape_cast %1 : vector<4x16xf32> to vector<4x16x1xf32>
    %cst_2 = arith.constant 2.560000e+02 : f32
    %3 = vector.broadcast %cst_2 : f32 to vector<4x16x1xf32>
    %4 = arith.divf %2, %3 : vector<4x16x1xf32>
    %5 = vector.broadcast %4 : vector<4x16x1xf32> to vector<4x16x256xf32>
    %6 = arith.subf %0, %5 : vector<4x16x256xf32>
    %7 = arith.mulf %6, %6 : vector<4x16x256xf32>
    %cst_3 = arith.constant dense<0.000000e+00> : vector<4x16xf32>
    %8 = vector.multi_reduction <add>, %7, %cst_3 [2] : vector<4x16x256xf32> to vector<4x16xf32>
    %9 = vector.shape_cast %8 : vector<4x16xf32> to vector<4x16x1xf32>
    %cst_4 = arith.constant 2.560000e+02 : f32
    %10 = vector.broadcast %cst_4 : f32 to vector<4x16x1xf32>
    %11 = arith.divf %9, %10 : vector<4x16x1xf32>
    %cst_5 = arith.constant 9.99999974E-6 : f32
    %12 = vector.broadcast %cst_5 : f32 to vector<4x16x1xf32>
    %13 = arith.addf %11, %12 : vector<4x16x1xf32>
    %14 = math.rsqrt %13 : vector<4x16x1xf32>
    %15 = vector.broadcast %14 : vector<4x16x1xf32> to vector<4x16x256xf32>
    %16 = arith.mulf %6, %15 : vector<4x16x256xf32>
    %c0_6 = arith.constant 0 : index
    %c0_7 = arith.constant 0 : index
    %c0_8 = arith.constant 0 : index
    %17 = vector.load %arg2[%c0_6, %c0_7, %c0_8] : memref<1x1x256xf32, #tpu.memory_space<vmem>>, vector<1x1x256xf32>
    %18 = vector.broadcast %17 : vector<1x1x256xf32> to vector<4x16x256xf32>
    %19 = arith.mulf %16, %18 : vector<4x16x256xf32>
    %c0_9 = arith.constant 0 : index
    %c0_10 = arith.constant 0 : index
    %c0_11 = arith.constant 0 : index
    %20 = vector.load %arg3[%c0_9, %c0_10, %c0_11] : memref<1x1x256xf32, #tpu.memory_space<vmem>>, vector<1x1x256xf32>
    %21 = vector.broadcast %20 : vector<1x1x256xf32> to vector<4x16x256xf32>
    %22 = arith.addf %19, %21 : vector<4x16x256xf32>
    %23 = vector.shape_cast %22 : vector<4x16x256xf32> to vector<64x256xf32>
    %c0_12 = arith.constant 0 : index
    %c0_13 = arith.constant 0 : index
    %24 = vector.load %arg4[%c0_12, %c0_13] : memref<256x768xf32, #tpu.memory_space<vmem>>, vector<256x768xf32>
    %cst_14 = arith.constant dense<0.000000e+00> : vector<64x768xf32>
    %25 = tpu.matmul %23, %24, %cst_14 {dimension_numbers = #tpu.dot_dimension_numbers<[1], [0], [0], [1], [0, 0, 1, 1], [], []>} : vector<64x256xf32>, vector<256x768xf32>, vector<64x768xf32> -> vector<64x768xf32>
    %26 = vector.shape_cast %25 : vector<64x768xf32> to vector<4x16x768xf32>
    %27 = vector.extract_strided_slice %26 {offsets = [0, 0, 0], sizes = [4, 16, 32], strides = [1, 1, 1]} : vector<4x16x768xf32> to vector<4x16x32xf32>
    %cst_15 = arith.constant 0.176776692 : f32
    %28 = vector.broadcast %cst_15 : f32 to vector<4x16x32xf32>
    %29 = arith.mulf %27, %28 : vector<4x16x32xf32>
    %30 = vector.extract_strided_slice %26 {offsets = [0, 0, 256], sizes = [4, 16, 32], strides = [1, 1, 1]} : vector<4x16x768xf32> to vector<4x16x32xf32>
    %31 = vector.extract_strided_slice %26 {offsets = [0, 0, 512], sizes = [4, 16, 32], strides = [1, 1, 1]} : vector<4x16x768xf32> to vector<4x16x32xf32>
    "tpu.trace_start"() <{level = 10 : i32, message = "bnd,bmd->bnm"}> : () -> ()
    %cst_16 = arith.constant dense<0.000000e+00> : vector<4x16x16xf32>
    %32 = tpu.matmul %29, %30, %cst_16 {dimension_numbers = #tpu.dot_dimension_numbers<[2], [2], [1], [1], [0, 0, 0, 1, 1, 1], [0], [0]>} : vector<4x16x32xf32>, vector<4x16x32xf32>, vector<4x16x16xf32> -> vector<4x16x16xf32>
    "tpu.trace_stop"() : () -> ()
    %cst_17 = arith.constant dense<0xFF800000> : vector<4x16xf32>
    %33 = vector.multi_reduction <maximumf>, %32, %cst_17 [2] : vector<4x16x16xf32> to vector<4x16xf32>
    %34 = vector.shape_cast %33 : vector<4x16xf32> to vector<4x16x1xf32>
    %35 = vector.broadcast %34 : vector<4x16x1xf32> to vector<4x16x16xf32>
    %36 = arith.subf %32, %35 : vector<4x16x16xf32>
    %37 = math.exp %36 : vector<4x16x16xf32>
    %cst_18 = arith.constant dense<0.000000e+00> : vector<4x16xf32>
    %38 = vector.multi_reduction <add>, %37, %cst_18 [2] : vector<4x16x16xf32> to vector<4x16xf32>
    %39 = vector.shape_cast %38 : vector<4x16xf32> to vector<4x16x1xf32>
    %40 = vector.broadcast %39 : vector<4x16x1xf32> to vector<4x16x16xf32>
    %41 = arith.divf %37, %40 : vector<4x16x16xf32>
    "tpu.trace_start"() <{level = 10 : i32, message = "bnm,bmd->bnd"}> : () -> ()
    %cst_19 = arith.constant dense<0.000000e+00> : vector<4x16x32xf32>
    %42 = tpu.matmul %41, %31, %cst_19 {dimension_numbers = #tpu.dot_dimension_numbers<[2], [1], [1], [2], [0, 0, 0, 1, 1, 2], [0], [0]>} : vector<4x16x16xf32>, vector<4x16x32xf32>, vector<4x16x32xf32> -> vector<4x16x32xf32>
    "tpu.trace_stop"() : () -> ()
    %43 = vector.extract_strided_slice %26 {offsets = [0, 0, 32], sizes = [4, 16, 32], strides = [1, 1, 1]} : vector<4x16x768xf32> to vector<4x16x32xf32>
    %cst_20 = arith.constant 0.176776692 : f32
    %44 = vector.broadcast %cst_20 : f32 to vector<4x16x32xf32>
    %45 = arith.mulf %43, %44 : vector<4x16x32xf32>
    %46 = vector.extract_strided_slice %26 {offsets = [0, 0, 288], sizes = [4, 16, 32], strides = [1, 1, 1]} : vector<4x16x768xf32> to vector<4x16x32xf32>
    %47 = vector.extract_strided_slice %26 {offsets = [0, 0, 544], sizes = [4, 16, 32], strides = [1, 1, 1]} : vector<4x16x768xf32> to vector<4x16x32xf32>
    "tpu.trace_start"() <{level = 10 : i32, message = "bnd,bmd->bnm"}> : () -> ()
    %cst_21 = arith.constant dense<0.000000e+00> : vector<4x16x16xf32>
    %48 = tpu.matmul %45, %46, %cst_21 {dimension_numbers = #tpu.dot_dimension_numbers<[2], [2], [1], [1], [0, 0, 0, 1, 1, 1], [0], [0]>} : vector<4x16x32xf32>, vector<4x16x32xf32>, vector<4x16x16xf32> -> vector<4x16x16xf32>
    "tpu.trace_stop"() : () -> ()
    %cst_22 = arith.constant dense<0xFF800000> : vector<4x16xf32>
    %49 = vector.multi_reduction <maximumf>, %48, %cst_22 [2] : vector<4x16x16xf32> to vector<4x16xf32>
    %50 = vector.shape_cast %49 : vector<4x16xf32> to vector<4x16x1xf32>
    %51 = vector.broadcast %50 : vector<4x16x1xf32> to vector<4x16x16xf32>
    %52 = arith.subf %48, %51 : vector<4x16x16xf32>
    %53 = math.exp %52 : vector<4x16x16xf32>
    %cst_23 = arith.constant dense<0.000000e+00> : vector<4x16xf32>
    %54 = vector.multi_reduction <add>, %53, %cst_23 [2] : vector<4x16x16xf32> to vector<4x16xf32>
    %55 = vector.shape_cast %54 : vector<4x16xf32> to vector<4x16x1xf32>
    %56 = vector.broadcast %55 : vector<4x16x1xf32> to vector<4x16x16xf32>
    %57 = arith.divf %53, %56 : vector<4x16x16xf32>
    "tpu.trace_start"() <{level = 10 : i32, message = "bnm,bmd->bnd"}> : () -> ()
    %cst_24 = arith.constant dense<0.000000e+00> : vector<4x16x32xf32>
    %58 = tpu.matmul %57, %47, %cst_24 {dimension_numbers = #tpu.dot_dimension_numbers<[2], [1], [1], [2], [0, 0, 0, 1, 1, 2], [0], [0]>} : vector<4x16x16xf32>, vector<4x16x32xf32>, vector<4x16x32xf32> -> vector<4x16x32xf32>
    "tpu.trace_stop"() : () -> ()
    %59 = vector.extract_strided_slice %26 {offsets = [0, 0, 64], sizes = [4, 16, 32], strides = [1, 1, 1]} : vector<4x16x768xf32> to vector<4x16x32xf32>
    %cst_25 = arith.constant 0.176776692 : f32
    %60 = vector.broadcast %cst_25 : f32 to vector<4x16x32xf32>
    %61 = arith.mulf %59, %60 : vector<4x16x32xf32>
    %62 = vector.extract_strided_slice %26 {offsets = [0, 0, 320], sizes = [4, 16, 32], strides = [1, 1, 1]} : vector<4x16x768xf32> to vector<4x16x32xf32>
    %63 = vector.extract_strided_slice %26 {offsets = [0, 0, 576], sizes = [4, 16, 32], strides = [1, 1, 1]} : vector<4x16x768xf32> to vector<4x16x32xf32>
    "tpu.trace_start"() <{level = 10 : i32, message = "bnd,bmd->bnm"}> : () -> ()
    %cst_26 = arith.constant dense<0.000000e+00> : vector<4x16x16xf32>
    %64 = tpu.matmul %61, %62, %cst_26 {dimension_numbers = #tpu.dot_dimension_numbers<[2], [2], [1], [1], [0, 0, 0, 1, 1, 1], [0], [0]>} : vector<4x16x32xf32>, vector<4x16x32xf32>, vector<4x16x16xf32> -> vector<4x16x16xf32>
    "tpu.trace_stop"() : () -> ()
    %cst_27 = arith.constant dense<0xFF800000> : vector<4x16xf32>
    %65 = vector.multi_reduction <maximumf>, %64, %cst_27 [2] : vector<4x16x16xf32> to vector<4x16xf32>
    %66 = vector.shape_cast %65 : vector<4x16xf32> to vector<4x16x1xf32>
    %67 = vector.broadcast %66 : vector<4x16x1xf32> to vector<4x16x16xf32>
    %68 = arith.subf %64, %67 : vector<4x16x16xf32>
    %69 = math.exp %68 : vector<4x16x16xf32>
    %cst_28 = arith.constant dense<0.000000e+00> : vector<4x16xf32>
    %70 = vector.multi_reduction <add>, %69, %cst_28 [2] : vector<4x16x16xf32> to vector<4x16xf32>
    %71 = vector.shape_cast %70 : vector<4x16xf32> to vector<4x16x1xf32>
    %72 = vector.broadcast %71 : vector<4x16x1xf32> to vector<4x16x16xf32>
    %73 = arith.divf %69, %72 : vector<4x16x16xf32>
    "tpu.trace_start"() <{level = 10 : i32, message = "bnm,bmd->bnd"}> : () -> ()
    %cst_29 = arith.constant dense<0.000000e+00> : vector<4x16x32xf32>
    %74 = tpu.matmul %73, %63, %cst_29 {dimension_numbers = #tpu.dot_dimension_numbers<[2], [1], [1], [2], [0, 0, 0, 1, 1, 2], [0], [0]>} : vector<4x16x16xf32>, vector<4x16x32xf32>, vector<4x16x32xf32> -> vector<4x16x32xf32>
    "tpu.trace_stop"() : () -> ()
    %75 = vector.extract_strided_slice %26 {offsets = [0, 0, 96], sizes = [4, 16, 32], strides = [1, 1, 1]} : vector<4x16x768xf32> to vector<4x16x32xf32>
    %cst_30 = arith.constant 0.176776692 : f32
    %76 = vector.broadcast %cst_30 : f32 to vector<4x16x32xf32>
    %77 = arith.mulf %75, %76 : vector<4x16x32xf32>
    %78 = vector.extract_strided_slice %26 {offsets = [0, 0, 352], sizes = [4, 16, 32], strides = [1, 1, 1]} : vector<4x16x768xf32> to vector<4x16x32xf32>
    %79 = vector.extract_strided_slice %26 {offsets = [0, 0, 608], sizes = [4, 16, 32], strides = [1, 1, 1]} : vector<4x16x768xf32> to vector<4x16x32xf32>
    "tpu.trace_start"() <{level = 10 : i32, message = "bnd,bmd->bnm"}> : () -> ()
    %cst_31 = arith.constant dense<0.000000e+00> : vector<4x16x16xf32>
    %80 = tpu.matmul %77, %78, %cst_31 {dimension_numbers = #tpu.dot_dimension_numbers<[2], [2], [1], [1], [0, 0, 0, 1, 1, 1], [0], [0]>} : vector<4x16x32xf32>, vector<4x16x32xf32>, vector<4x16x16xf32> -> vector<4x16x16xf32>
    "tpu.trace_stop"() : () -> ()
    %cst_32 = arith.constant dense<0xFF800000> : vector<4x16xf32>
    %81 = vector.multi_reduction <maximumf>, %80, %cst_32 [2] : vector<4x16x16xf32> to vector<4x16xf32>
    %82 = vector.shape_cast %81 : vector<4x16xf32> to vector<4x16x1xf32>
    %83 = vector.broadcast %82 : vector<4x16x1xf32> to vector<4x16x16xf32>
    %84 = arith.subf %80, %83 : vector<4x16x16xf32>
    %85 = math.exp %84 : vector<4x16x16xf32>
    %cst_33 = arith.constant dense<0.000000e+00> : vector<4x16xf32>
    %86 = vector.multi_reduction <add>, %85, %cst_33 [2] : vector<4x16x16xf32> to vector<4x16xf32>
    %87 = vector.shape_cast %86 : vector<4x16xf32> to vector<4x16x1xf32>
    %88 = vector.broadcast %87 : vector<4x16x1xf32> to vector<4x16x16xf32>
    %89 = arith.divf %85, %88 : vector<4x16x16xf32>
    "tpu.trace_start"() <{level = 10 : i32, message = "bnm,bmd->bnd"}> : () -> ()
    %cst_34 = arith.constant dense<0.000000e+00> : vector<4x16x32xf32>
    %90 = tpu.matmul %89, %79, %cst_34 {dimension_numbers = #tpu.dot_dimension_numbers<[2], [1], [1], [2], [0, 0, 0, 1, 1, 2], [0], [0]>} : vector<4x16x16xf32>, vector<4x16x32xf32>, vector<4x16x32xf32> -> vector<4x16x32xf32>
    "tpu.trace_stop"() : () -> ()
    %91 = vector.extract_strided_slice %26 {offsets = [0, 0, 128], sizes = [4, 16, 32], strides = [1, 1, 1]} : vector<4x16x768xf32> to vector<4x16x32xf32>
    %cst_35 = arith.constant 0.176776692 : f32
    %92 = vector.broadcast %cst_35 : f32 to vector<4x16x32xf32>
    %93 = arith.mulf %91, %92 : vector<4x16x32xf32>
    %94 = vector.extract_strided_slice %26 {offsets = [0, 0, 384], sizes = [4, 16, 32], strides = [1, 1, 1]} : vector<4x16x768xf32> to vector<4x16x32xf32>
    %95 = vector.extract_strided_slice %26 {offsets = [0, 0, 640], sizes = [4, 16, 32], strides = [1, 1, 1]} : vector<4x16x768xf32> to vector<4x16x32xf32>
    "tpu.trace_start"() <{level = 10 : i32, message = "bnd,bmd->bnm"}> : () -> ()
    %cst_36 = arith.constant dense<0.000000e+00> : vector<4x16x16xf32>
    %96 = tpu.matmul %93, %94, %cst_36 {dimension_numbers = #tpu.dot_dimension_numbers<[2], [2], [1], [1], [0, 0, 0, 1, 1, 1], [0], [0]>} : vector<4x16x32xf32>, vector<4x16x32xf32>, vector<4x16x16xf32> -> vector<4x16x16xf32>
    "tpu.trace_stop"() : () -> ()
    %cst_37 = arith.constant dense<0xFF800000> : vector<4x16xf32>
    %97 = vector.multi_reduction <maximumf>, %96, %cst_37 [2] : vector<4x16x16xf32> to vector<4x16xf32>
    %98 = vector.shape_cast %97 : vector<4x16xf32> to vector<4x16x1xf32>
    %99 = vector.broadcast %98 : vector<4x16x1xf32> to vector<4x16x16xf32>
    %100 = arith.subf %96, %99 : vector<4x16x16xf32>
    %101 = math.exp %100 : vector<4x16x16xf32>
    %cst_38 = arith.constant dense<0.000000e+00> : vector<4x16xf32>
    %102 = vector.multi_reduction <add>, %101, %cst_38 [2] : vector<4x16x16xf32> to vector<4x16xf32>
    %103 = vector.shape_cast %102 : vector<4x16xf32> to vector<4x16x1xf32>
    %104 = vector.broadcast %103 : vector<4x16x1xf32> to vector<4x16x16xf32>
    %105 = arith.divf %101, %104 : vector<4x16x16xf32>
    "tpu.trace_start"() <{level = 10 : i32, message = "bnm,bmd->bnd"}> : () -> ()
    %cst_39 = arith.constant dense<0.000000e+00> : vector<4x16x32xf32>
    %106 = tpu.matmul %105, %95, %cst_39 {dimension_numbers = #tpu.dot_dimension_numbers<[2], [1], [1], [2], [0, 0, 0, 1, 1, 2], [0], [0]>} : vector<4x16x16xf32>, vector<4x16x32xf32>, vector<4x16x32xf32> -> vector<4x16x32xf32>
    "tpu.trace_stop"() : () -> ()
    %107 = vector.extract_strided_slice %26 {offsets = [0, 0, 160], sizes = [4, 16, 32], strides = [1, 1, 1]} : vector<4x16x768xf32> to vector<4x16x32xf32>
    %cst_40 = arith.constant 0.176776692 : f32
    %108 = vector.broadcast %cst_40 : f32 to vector<4x16x32xf32>
    %109 = arith.mulf %107, %108 : vector<4x16x32xf32>
    %110 = vector.extract_strided_slice %26 {offsets = [0, 0, 416], sizes = [4, 16, 32], strides = [1, 1, 1]} : vector<4x16x768xf32> to vector<4x16x32xf32>
    %111 = vector.extract_strided_slice %26 {offsets = [0, 0, 672], sizes = [4, 16, 32], strides = [1, 1, 1]} : vector<4x16x768xf32> to vector<4x16x32xf32>
    "tpu.trace_start"() <{level = 10 : i32, message = "bnd,bmd->bnm"}> : () -> ()
    %cst_41 = arith.constant dense<0.000000e+00> : vector<4x16x16xf32>
    %112 = tpu.matmul %109, %110, %cst_41 {dimension_numbers = #tpu.dot_dimension_numbers<[2], [2], [1], [1], [0, 0, 0, 1, 1, 1], [0], [0]>} : vector<4x16x32xf32>, vector<4x16x32xf32>, vector<4x16x16xf32> -> vector<4x16x16xf32>
    "tpu.trace_stop"() : () -> ()
    %cst_42 = arith.constant dense<0xFF800000> : vector<4x16xf32>
    %113 = vector.multi_reduction <maximumf>, %112, %cst_42 [2] : vector<4x16x16xf32> to vector<4x16xf32>
    %114 = vector.shape_cast %113 : vector<4x16xf32> to vector<4x16x1xf32>
    %115 = vector.broadcast %114 : vector<4x16x1xf32> to vector<4x16x16xf32>
    %116 = arith.subf %112, %115 : vector<4x16x16xf32>
    %117 = math.exp %116 : vector<4x16x16xf32>
    %cst_43 = arith.constant dense<0.000000e+00> : vector<4x16xf32>
    %118 = vector.multi_reduction <add>, %117, %cst_43 [2] : vector<4x16x16xf32> to vector<4x16xf32>
    %119 = vector.shape_cast %118 : vector<4x16xf32> to vector<4x16x1xf32>
    %120 = vector.broadcast %119 : vector<4x16x1xf32> to vector<4x16x16xf32>
    %121 = arith.divf %117, %120 : vector<4x16x16xf32>
    "tpu.trace_start"() <{level = 10 : i32, message = "bnm,bmd->bnd"}> : () -> ()
    %cst_44 = arith.constant dense<0.000000e+00> : vector<4x16x32xf32>
    %122 = tpu.matmul %121, %111, %cst_44 {dimension_numbers = #tpu.dot_dimension_numbers<[2], [1], [1], [2], [0, 0, 0, 1, 1, 2], [0], [0]>} : vector<4x16x16xf32>, vector<4x16x32xf32>, vector<4x16x32xf32> -> vector<4x16x32xf32>
    "tpu.trace_stop"() : () -> ()
    %123 = vector.extract_strided_slice %26 {offsets = [0, 0, 192], sizes = [4, 16, 32], strides = [1, 1, 1]} : vector<4x16x768xf32> to vector<4x16x32xf32>
    %cst_45 = arith.constant 0.176776692 : f32
    %124 = vector.broadcast %cst_45 : f32 to vector<4x16x32xf32>
    %125 = arith.mulf %123, %124 : vector<4x16x32xf32>
    %126 = vector.extract_strided_slice %26 {offsets = [0, 0, 448], sizes = [4, 16, 32], strides = [1, 1, 1]} : vector<4x16x768xf32> to vector<4x16x32xf32>
    %127 = vector.extract_strided_slice %26 {offsets = [0, 0, 704], sizes = [4, 16, 32], strides = [1, 1, 1]} : vector<4x16x768xf32> to vector<4x16x32xf32>
    "tpu.trace_start"() <{level = 10 : i32, message = "bnd,bmd->bnm"}> : () -> ()
    %cst_46 = arith.constant dense<0.000000e+00> : vector<4x16x16xf32>
    %128 = tpu.matmul %125, %126, %cst_46 {dimension_numbers = #tpu.dot_dimension_numbers<[2], [2], [1], [1], [0, 0, 0, 1, 1, 1], [0], [0]>} : vector<4x16x32xf32>, vector<4x16x32xf32>, vector<4x16x16xf32> -> vector<4x16x16xf32>
    "tpu.trace_stop"() : () -> ()
    %cst_47 = arith.constant dense<0xFF800000> : vector<4x16xf32>
    %129 = vector.multi_reduction <maximumf>, %128, %cst_47 [2] : vector<4x16x16xf32> to vector<4x16xf32>
    %130 = vector.shape_cast %129 : vector<4x16xf32> to vector<4x16x1xf32>
    %131 = vector.broadcast %130 : vector<4x16x1xf32> to vector<4x16x16xf32>
    %132 = arith.subf %128, %131 : vector<4x16x16xf32>
    %133 = math.exp %132 : vector<4x16x16xf32>
    %cst_48 = arith.constant dense<0.000000e+00> : vector<4x16xf32>
    %134 = vector.multi_reduction <add>, %133, %cst_48 [2] : vector<4x16x16xf32> to vector<4x16xf32>
    %135 = vector.shape_cast %134 : vector<4x16xf32> to vector<4x16x1xf32>
    %136 = vector.broadcast %135 : vector<4x16x1xf32> to vector<4x16x16xf32>
    %137 = arith.divf %133, %136 : vector<4x16x16xf32>
    "tpu.trace_start"() <{level = 10 : i32, message = "bnm,bmd->bnd"}> : () -> ()
    %cst_49 = arith.constant dense<0.000000e+00> : vector<4x16x32xf32>
    %138 = tpu.matmul %137, %127, %cst_49 {dimension_numbers = #tpu.dot_dimension_numbers<[2], [1], [1], [2], [0, 0, 0, 1, 1, 2], [0], [0]>} : vector<4x16x16xf32>, vector<4x16x32xf32>, vector<4x16x32xf32> -> vector<4x16x32xf32>
    "tpu.trace_stop"() : () -> ()
    %139 = vector.extract_strided_slice %26 {offsets = [0, 0, 224], sizes = [4, 16, 32], strides = [1, 1, 1]} : vector<4x16x768xf32> to vector<4x16x32xf32>
    %cst_50 = arith.constant 0.176776692 : f32
    %140 = vector.broadcast %cst_50 : f32 to vector<4x16x32xf32>
    %141 = arith.mulf %139, %140 : vector<4x16x32xf32>
    %142 = vector.extract_strided_slice %26 {offsets = [0, 0, 480], sizes = [4, 16, 32], strides = [1, 1, 1]} : vector<4x16x768xf32> to vector<4x16x32xf32>
    %143 = vector.extract_strided_slice %26 {offsets = [0, 0, 736], sizes = [4, 16, 32], strides = [1, 1, 1]} : vector<4x16x768xf32> to vector<4x16x32xf32>
    "tpu.trace_start"() <{level = 10 : i32, message = "bnd,bmd->bnm"}> : () -> ()
    %cst_51 = arith.constant dense<0.000000e+00> : vector<4x16x16xf32>
    %144 = tpu.matmul %141, %142, %cst_51 {dimension_numbers = #tpu.dot_dimension_numbers<[2], [2], [1], [1], [0, 0, 0, 1, 1, 1], [0], [0]>} : vector<4x16x32xf32>, vector<4x16x32xf32>, vector<4x16x16xf32> -> vector<4x16x16xf32>
    "tpu.trace_stop"() : () -> ()
    %cst_52 = arith.constant dense<0xFF800000> : vector<4x16xf32>
    %145 = vector.multi_reduction <maximumf>, %144, %cst_52 [2] : vector<4x16x16xf32> to vector<4x16xf32>
    %146 = vector.shape_cast %145 : vector<4x16xf32> to vector<4x16x1xf32>
    %147 = vector.broadcast %146 : vector<4x16x1xf32> to vector<4x16x16xf32>
    %148 = arith.subf %144, %147 : vector<4x16x16xf32>
    %149 = math.exp %148 : vector<4x16x16xf32>
    %cst_53 = arith.constant dense<0.000000e+00> : vector<4x16xf32>
    %150 = vector.multi_reduction <add>, %149, %cst_53 [2] : vector<4x16x16xf32> to vector<4x16xf32>
    %151 = vector.shape_cast %150 : vector<4x16xf32> to vector<4x16x1xf32>
    %152 = vector.broadcast %151 : vector<4x16x1xf32> to vector<4x16x16xf32>
    %153 = arith.divf %149, %152 : vector<4x16x16xf32>
    "tpu.trace_start"() <{level = 10 : i32, message = "bnm,bmd->bnd"}> : () -> ()
    %cst_54 = arith.constant dense<0.000000e+00> : vector<4x16x32xf32>
    %154 = tpu.matmul %153, %143, %cst_54 {dimension_numbers = #tpu.dot_dimension_numbers<[2], [1], [1], [2], [0, 0, 0, 1, 1, 2], [0], [0]>} : vector<4x16x16xf32>, vector<4x16x32xf32>, vector<4x16x32xf32> -> vector<4x16x32xf32>
    "tpu.trace_stop"() : () -> ()
    %155 = tpu.concatenate %42, %58, %74, %90, %106, %122, %138, %154 in 2 : vector<4x16x32xf32>, vector<4x16x32xf32>, vector<4x16x32xf32>, vector<4x16x32xf32>, vector<4x16x32xf32>, vector<4x16x32xf32>, vector<4x16x32xf32>, vector<4x16x32xf32> -> vector<4x16x256xf32>
    %156 = vector.shape_cast %155 : vector<4x16x256xf32> to vector<64x256xf32>
    %c0_55 = arith.constant 0 : index
    %c0_56 = arith.constant 0 : index
    %157 = vector.load %arg5[%c0_55, %c0_56] : memref<256x256xf32, #tpu.memory_space<vmem>>, vector<256x256xf32>
    %cst_57 = arith.constant dense<0.000000e+00> : vector<64x256xf32>
    %158 = tpu.matmul %156, %157, %cst_57 {dimension_numbers = #tpu.dot_dimension_numbers<[1], [0], [0], [1], [0, 0, 1, 1], [], []>} : vector<64x256xf32>, vector<256x256xf32>, vector<64x256xf32> -> vector<64x256xf32>
    %159 = vector.shape_cast %158 : vector<64x256xf32> to vector<4x16x256xf32>
    %160 = arith.addf %0, %159 : vector<4x16x256xf32>
    %c0_58 = arith.constant 0 : index
    %c0_59 = arith.constant 0 : index
    %c0_60 = arith.constant 0 : index
    %161 = vector.load %arg6[%c0_58, %c0_59, %c0_60] : memref<1x1x256xf32, #tpu.memory_space<vmem>>, vector<1x1x256xf32>
    %162 = vector.broadcast %161 : vector<1x1x256xf32> to vector<4x16x256xf32>
    %163 = arith.addf %160, %162 : vector<4x16x256xf32>
    %cst_61 = arith.constant dense<0.000000e+00> : vector<4x16xf32>
    %164 = vector.multi_reduction <add>, %163, %cst_61 [2] : vector<4x16x256xf32> to vector<4x16xf32>
    %165 = vector.shape_cast %164 : vector<4x16xf32> to vector<4x16x1xf32>
    %cst_62 = arith.constant 2.560000e+02 : f32
    %166 = vector.broadcast %cst_62 : f32 to vector<4x16x1xf32>
    %167 = arith.divf %165, %166 : vector<4x16x1xf32>
    %168 = vector.broadcast %167 : vector<4x16x1xf32> to vector<4x16x256xf32>
    %169 = arith.subf %163, %168 : vector<4x16x256xf32>
    %170 = arith.mulf %169, %169 : vector<4x16x256xf32>
    %cst_63 = arith.constant dense<0.000000e+00> : vector<4x16xf32>
    %171 = vector.multi_reduction <add>, %170, %cst_63 [2] : vector<4x16x256xf32> to vector<4x16xf32>
    %172 = vector.shape_cast %171 : vector<4x16xf32> to vector<4x16x1xf32>
    %cst_64 = arith.constant 2.560000e+02 : f32
    %173 = vector.broadcast %cst_64 : f32 to vector<4x16x1xf32>
    %174 = arith.divf %172, %173 : vector<4x16x1xf32>
    %cst_65 = arith.constant 9.99999974E-6 : f32
    %175 = vector.broadcast %cst_65 : f32 to vector<4x16x1xf32>
    %176 = arith.addf %174, %175 : vector<4x16x1xf32>
    %177 = math.rsqrt %176 : vector<4x16x1xf32>
    %178 = vector.broadcast %177 : vector<4x16x1xf32> to vector<4x16x256xf32>
    %179 = arith.mulf %169, %178 : vector<4x16x256xf32>
    %c0_66 = arith.constant 0 : index
    %c0_67 = arith.constant 0 : index
    %c0_68 = arith.constant 0 : index
    %180 = vector.load %arg7[%c0_66, %c0_67, %c0_68] : memref<1x1x256xf32, #tpu.memory_space<vmem>>, vector<1x1x256xf32>
    %181 = vector.broadcast %180 : vector<1x1x256xf32> to vector<4x16x256xf32>
    %182 = arith.mulf %179, %181 : vector<4x16x256xf32>
    %c0_69 = arith.constant 0 : index
    %c0_70 = arith.constant 0 : index
    %c0_71 = arith.constant 0 : index
    %183 = vector.load %arg8[%c0_69, %c0_70, %c0_71] : memref<1x1x256xf32, #tpu.memory_space<vmem>>, vector<1x1x256xf32>
    %184 = vector.broadcast %183 : vector<1x1x256xf32> to vector<4x16x256xf32>
    %185 = arith.addf %182, %184 : vector<4x16x256xf32>
    %186 = vector.shape_cast %185 : vector<4x16x256xf32> to vector<64x256xf32>
    %c0_72 = arith.constant 0 : index
    %c0_73 = arith.constant 0 : index
    %187 = vector.load %arg9[%c0_72, %c0_73] : memref<256x1024xf32, #tpu.memory_space<vmem>>, vector<256x1024xf32>
    %cst_74 = arith.constant dense<0.000000e+00> : vector<64x1024xf32>
    %188 = tpu.matmul %186, %187, %cst_74 {dimension_numbers = #tpu.dot_dimension_numbers<[1], [0], [0], [1], [0, 0, 1, 1], [], []>} : vector<64x256xf32>, vector<256x1024xf32>, vector<64x1024xf32> -> vector<64x1024xf32>
    %c0_75 = arith.constant 0 : index
    %c0_76 = arith.constant 0 : index
    %189 = vector.load %arg10[%c0_75, %c0_76] : memref<1x1024xf32, #tpu.memory_space<vmem>>, vector<1x1024xf32>
    %190 = vector.broadcast %189 : vector<1x1024xf32> to vector<64x1024xf32>
    %191 = arith.addf %188, %190 : vector<64x1024xf32>
    %cst_77 = arith.constant 5.000000e-01 : f32
    %192 = vector.broadcast %cst_77 : f32 to vector<64x1024xf32>
    %193 = arith.mulf %192, %191 : vector<64x1024xf32>
    %194 = arith.mulf %191, %191 : vector<64x1024xf32>
    %195 = arith.mulf %194, %191 : vector<64x1024xf32>
    %cst_78 = arith.constant 4.471500e-02 : f32
    %196 = vector.broadcast %cst_78 : f32 to vector<64x1024xf32>
    %197 = arith.mulf %196, %195 : vector<64x1024xf32>
    %198 = arith.addf %191, %197 : vector<64x1024xf32>
    %cst_79 = arith.constant 0.797884583 : f32
    %199 = vector.broadcast %cst_79 : f32 to vector<64x1024xf32>
    %200 = arith.mulf %199, %198 : vector<64x1024xf32>
    %201 = math.tanh %200 : vector<64x1024xf32>
    %cst_80 = arith.constant 1.000000e+00 : f32
    %202 = vector.broadcast %cst_80 : f32 to vector<64x1024xf32>
    %203 = arith.addf %202, %201 : vector<64x1024xf32>
    %204 = arith.mulf %193, %203 : vector<64x1024xf32>
    %c0_81 = arith.constant 0 : index
    %c0_82 = arith.constant 0 : index
    %205 = vector.load %arg11[%c0_81, %c0_82] : memref<1024x256xf32, #tpu.memory_space<vmem>>, vector<1024x256xf32>
    %cst_83 = arith.constant dense<0.000000e+00> : vector<64x256xf32>
    %206 = tpu.matmul %204, %205, %cst_83 {dimension_numbers = #tpu.dot_dimension_numbers<[1], [0], [0], [1], [0, 0, 1, 1], [], []>} : vector<64x1024xf32>, vector<1024x256xf32>, vector<64x256xf32> -> vector<64x256xf32>
    %207 = vector.shape_cast %206 : vector<64x256xf32> to vector<4x16x256xf32>
    %208 = arith.addf %163, %207 : vector<4x16x256xf32>
    %c0_84 = arith.constant 0 : index
    %c0_85 = arith.constant 0 : index
    %c0_86 = arith.constant 0 : index
    %209 = vector.load %arg12[%c0_84, %c0_85, %c0_86] : memref<1x1x256xf32, #tpu.memory_space<vmem>>, vector<1x1x256xf32>
    %210 = vector.broadcast %209 : vector<1x1x256xf32> to vector<4x16x256xf32>
    %211 = arith.addf %208, %210 : vector<4x16x256xf32>
    %c0_87 = arith.constant 0 : index
    %c0_88 = arith.constant 0 : index
    %c0_89 = arith.constant 0 : index
    %212 = vector.load %arg13[%c0_87, %c0_88, %c0_89] : memref<4x16x256xf32, #tpu.memory_space<vmem>>, vector<4x16x256xf32>
    tpu.vector_store %arg13[%c0_87, %c0_88, %c0_89], %211 {strides = array<i32>} : memref<4x16x256xf32, #tpu.memory_space<vmem>>, vector<4x16x256xf32>,
    return
  }
  func.func @transform_0(%arg0: i32) -> (i32, i32, i32) {
    %c0_i32 = arith.constant 0 : i32
    %c0_i32_0 = arith.constant 0 : i32
    %c0_i32_1 = arith.constant 0 : i32
    %c0_i32_2 = arith.constant 0 : i32
    return %c0_i32, %c0_i32_0, %c0_i32_1 : i32, i32, i32
  }
  func.func @transform_1(%arg0: i32) -> (i32, i32, i32) {
    %c0_i32 = arith.constant 0 : i32
    %c0_i32_0 = arith.constant 0 : i32
    %c0_i32_1 = arith.constant 0 : i32
    %c0_i32_2 = arith.constant 0 : i32
    return %c0_i32, %c0_i32_0, %c0_i32_1 : i32, i32, i32
  }
  func.func @transform_2(%arg0: i32) -> (i32, i32, i32) {
    %c0_i32 = arith.constant 0 : i32
    %c0_i32_0 = arith.constant 0 : i32
    %c0_i32_1 = arith.constant 0 : i32
    %c0_i32_2 = arith.constant 0 : i32
    return %c0_i32, %c0_i32_0, %c0_i32_1 : i32, i32, i32
  }
  func.func @transform_3(%arg0: i32) -> (i32, i32) {
    %c0_i32 = arith.constant 0 : i32
    %c0_i32_0 = arith.constant 0 : i32
    %c0_i32_1 = arith.constant 0 : i32
    return %c0_i32, %c0_i32_0 : i32, i32
  }
  func.func @transform_4(%arg0: i32) -> (i32, i32) {
    %c0_i32 = arith.constant 0 : i32
    %c0_i32_0 = arith.constant 0 : i32
    %c0_i32_1 = arith.constant 0 : i32
    return %c0_i32, %c0_i32_0 : i32, i32
  }
  func.func @transform_5(%arg0: i32) -> (i32, i32, i32) {
    %c0_i32 = arith.constant 0 : i32
    %c0_i32_0 = arith.constant 0 : i32
    %c0_i32_1 = arith.constant 0 : i32
    %c0_i32_2 = arith.constant 0 : i32
    return %c0_i32, %c0_i32_0, %c0_i32_1 : i32, i32, i32
  }
  func.func @transform_6(%arg0: i32) -> (i32, i32, i32) {
    %c0_i32 = arith.constant 0 : i32
    %c0_i32_0 = arith.constant 0 : i32
    %c0_i32_1 = arith.constant 0 : i32
    %c0_i32_2 = arith.constant 0 : i32
    return %c0_i32, %c0_i32_0, %c0_i32_1 : i32, i32, i32
  }
  func.func @transform_7(%arg0: i32) -> (i32, i32, i32) {
    %c0_i32 = arith.constant 0 : i32
    %c0_i32_0 = arith.constant 0 : i32
    %c0_i32_1 = arith.constant 0 : i32
    %c0_i32_2 = arith.constant 0 : i32
    return %c0_i32, %c0_i32_0, %c0_i32_1 : i32, i32, i32
  }
  func.func @transform_8(%arg0: i32) -> (i32, i32) {
    %c0_i32 = arith.constant 0 : i32
    %c0_i32_0 = arith.constant 0 : i32
    %c0_i32_1 = arith.constant 0 : i32
    return %c0_i32, %c0_i32_0 : i32, i32
  }
  func.func @transform_9(%arg0: i32) -> (i32, i32) {
    %c0_i32 = arith.constant 0 : i32
    %c0_i32_0 = arith.constant 0 : i32
    %c0_i32_1 = arith.constant 0 : i32
    return %c0_i32, %c0_i32_0 : i32, i32
  }
  func.func @transform_10(%arg0: i32) -> (i32, i32) {
    %c0_i32 = arith.constant 0 : i32
    %c0_i32_0 = arith.constant 0 : i32
    %c0_i32_1 = arith.constant 0 : i32
    return %c0_i32, %c0_i32_0 : i32, i32
  }
  func.func @transform_11(%arg0: i32) -> (i32, i32, i32) {
    %c0_i32 = arith.constant 0 : i32
    %c0_i32_0 = arith.constant 0 : i32
    %c0_i32_1 = arith.constant 0 : i32
    %c0_i32_2 = arith.constant 0 : i32
    return %c0_i32, %c0_i32_0, %c0_i32_1 : i32, i32, i32
  }
  func.func @transform_12(%arg0: i32) -> (i32, i32, i32) {
    %c0_i32 = arith.constant 0 : i32
    %c0_i32_0 = arith.constant 0 : i32
    %c0_i32_1 = arith.constant 0 : i32
    %c0_i32_2 = arith.constant 0 : i32
    return %c0_i32, %c0_i32_0, %c0_i32_1 : i32, i32, i32
  }
}

</mosaic_0001>

<bundles_post_ra>
// kernel: tpu_custom_call.1
= control target key start
LH: loop header
LB: loop body
LE: loop exit
PB: predicated region body
PF: predicated region fallthrough
CT: control target
= control target key end

     0   :  { %17 = vsyncpa [#allocation3], 0  ;;  %s13223_s0 = inlined_call_operand.hbm [shape: f32[4,16,256], index: 0, kind: input, shape index: {}]   ;;  %s13224_s1 = inlined_call_operand.hbm [shape: f32[1,1,256], index: 1, kind: input, shape index: {}]   ;;  %s13225_s2 = inlined_call_operand.hbm [shape: f32[1,1,256], index: 2, kind: input, shape index: {}]   ;;  %s13226_s3 = inlined_call_operand.hbm [shape: f32[256,768], index: 3, kind: input, shape index: {}]   ;;  %s13227_s4 = inlined_call_operand.hbm [shape: f32[256,256], index: 4, kind: input, shape index: {}]   ;;  %s13228_s5 = inlined_call_operand.hbm [shape: f32[1,1,256], index: 5, kind: input, shape index: {}]   ;;  %s13229_s6 = inlined_call_operand.hbm [shape: f32[1,1,256], index: 6, kind: input, shape index: {}]   ;;  %s13230_s7 = inlined_call_operand.hbm [shape: f32[1,1,256], index: 7, kind: input, shape index: {}]   ;;  %s13231_s8 = inlined_call_operand.hbm [shape: f32[256,1024], index: 8, kind: input, shape index: {}]   ;;  %s13232_s9 = inlined_call_operand.vmem [shape: f32[1,1024], index: 9, kind: input, shape index: {}]   ;;  %s13233_s10 = inlined_call_operand.hbm [shape: f32[1024,256], index: 10, kind: input, shape index: {}]   ;;  %s13234_s11 = inlined_call_operand.vmem [shape: f32[1,1,256], index: 11, kind: input, shape index: {}]   ;;  %s13235_s12 = inlined_call_operand.hbm [shape: f32[4,16,256], index: 12, kind: output, shape index: {}]  }
   0x1   :  { %18 = vsyncpa [#allocation6], 0 }
   0x2   :  { %19 = vsyncpa [#allocation9], 0 }
   0x3   :  { %20 = vsyncpa [#allocation12], 0 }
   0x4   :  { %21 = vsyncpa [#allocation15], 0 }
   0x5   :  { %22 = vsyncpa [#allocation18], 0  ;;  %s42_s23 = sshll.u32 %s13224_s1, 4  ;;  %s43_s23 = int_to_ptr.hbm [resolvable:$true] %s42_s23 }
   0x6   :  { %23 = vsyncpa [#allocation4], 0  ;;  %s9410_s24 = smov [#allocation5]   ;;  %s63_s28 = sshll.u32 %s13226_s3, 4  ;;  %s64_s28 = int_to_ptr.hbm [resolvable:$true] %s63_s28 }
   0x7   :  { %s44_s25 = sshll.u32 %s9410_s24, 4  ;;  %s9411_s29 = smov [#allocation8]   ;;  %s45_s25 = int_to_ptr.vmem [resolvable:$true] %s44_s25 }
   0x8   :  { %47 = dma.hbm_to_vmem [thread:$0]  %s43_s23, 32, %s45_s25, [#allocation6]  }
   0x9   :  { %s65_s30 = sshll.u32 %s9411_s29, 4  ;;  %s9412_s13 = smov 768   ;;  %s66_s30 = int_to_ptr.vmem [resolvable:$true] %s65_s30 }
   0xa   :  { %s9413_s14 = smov 48   ;;  %s90_s1 = sshll.u32 %s13228_s5, 4  ;;  %s91_s1 = int_to_ptr.hbm [resolvable:$true] %s90_s1 }
   0xb   :  { %71 = dma.hbm_to_vmem [thread:$0]  %s64_s28, 24576, %s66_s30, [#allocation9], %s9412_s13, %s9412_s13, %s9413_s14  }
   0xc   :  { %s9414_s17 = smov [#allocation11]   ;;  %s112_s3 = sshll.u32 %s13230_s7, 4  ;;  %s113_s3 = int_to_ptr.hbm [resolvable:$true] %s112_s3 }
   0xd   :  { %s92_s18 = sshll.u32 %s9414_s17, 4  ;;  %s9415_s21 = smov [#allocation14]   ;;  %s93_s18 = int_to_ptr.vmem [resolvable:$true] %s92_s18 }
   0xe   :  { %95 = dma.hbm_to_vmem [thread:$0]  %s91_s1, 32, %s93_s18, [#allocation12]  }
   0xf   :  { %s114_s22 = sshll.u32 %s9415_s21, 4  ;;  %s28_s25 = sshll.u32 %s13223_s0, 4  ;;  %s115_s22 = int_to_ptr.vmem [resolvable:$true] %s114_s22  ;;  %s29_s25 = int_to_ptr.hbm [resolvable:$true] %s28_s25 }
  0x10   :  { %117 = dma.hbm_to_vmem [thread:$0]  %s113_s3, 32, %s115_s22, [#allocation15]  }
  0x11   :  { %s9416_s5 = smov [#allocation2]   ;;  %s53_s29 = sshll.u32 %s13225_s2, 4  ;;  %s54_s29 = int_to_ptr.hbm [resolvable:$true] %s53_s29 }
  0x12   :  { %s30_s26 = sshll.u32 %s9416_s5, 4  ;;  %s9417_s30 = smov 256   ;;  %s31_s26 = int_to_ptr.vmem [resolvable:$true] %s30_s26 }
  0x13   :  { %s9418_s7 = smov 16   ;;  %s9419_s13 = smov [#allocation7]  }
  0x14   :  { %36 = dma.hbm_to_vmem [thread:$0]  %s29_s25, 2048, %s31_s26, [#allocation3], %s9417_s30, %s9417_s30, %s9418_s7  }
  0x15   :  { %s55_s14 = sshll.u32 %s9419_s13, 4  ;;  %s76_s16 = sshll.u32 %s13227_s4, 4  ;;  %s56_s14 = int_to_ptr.vmem [resolvable:$true] %s55_s14  ;;  %s77_s16 = int_to_ptr.hbm [resolvable:$true] %s76_s16 }
  0x16   :  { %58 = dma.hbm_to_vmem [thread:$0]  %s54_s29, 32, %s56_s14, [#allocation6]  }
  0x17   :  { %s101_s2 = sshll.u32 %s13229_s6, 4  ;;  %s9420_s18 = smov [#allocation10]   ;;  %s102_s2 = int_to_ptr.hbm [resolvable:$true] %s101_s2 }
  0x18   :  { %s78_s19 = sshll.u32 %s9420_s18, 4  ;;  %s9421_s20 = smov [#allocation13]   ;;  %s79_s19 = int_to_ptr.vmem [resolvable:$true] %s78_s19 }
  0x19   :  { %84 = dma.hbm_to_vmem [thread:$0]  %s77_s16, 8192, %s79_s19, [#allocation9], %s9417_s30, %s9417_s30, %s9418_s7  }
  0x1a   :  { %s103_s3 = sshll.u32 %s9421_s20, 4  ;;  %s122_s4 = sshll.u32 %s13231_s8, 4  ;;  %s104_s3 = int_to_ptr.vmem [resolvable:$true] %s103_s3  ;;  %s123_s4 = int_to_ptr.hbm [resolvable:$true] %s122_s4 }
  0x1b   :  { %106 = dma.hbm_to_vmem [thread:$0]  %s102_s2, 32, %s104_s3, [#allocation12]  }
  0x1c   :  { %s9422_s23 = smov [#allocation16]   ;;  %s137_s5 = sshll.u32 %s13233_s10, 4  ;;  %s138_s5 = int_to_ptr.hbm [resolvable:$true] %s137_s5 }
  0x1d   :  { %s124_s24 = sshll.u32 %s9422_s23, 4  ;;  %s9423_s26 = smov 1024   ;;  %s125_s24 = int_to_ptr.vmem [resolvable:$true] %s124_s24 }
  0x1e   :  { %s9424_s27 = smov 64   ;;  %s9425_s28 = smov [#allocation17]  }
  0x1f   :  { %130 = dma.hbm_to_vmem [thread:$0]  %s123_s4, 32768, %s125_s24, [#allocation15], %s9423_s26, %s9423_s26, %s9424_s27  }
  0x20   :  { %s139_s29 = sshll.u32 %s9425_s28, 4  ;;  %s140_s29 = int_to_ptr.vmem [resolvable:$true] %s139_s29 }
  0x21   :  { %145 = dma.hbm_to_vmem [thread:$0]  %s138_s5, 32768, %s140_s29, [#allocation18], %s9417_s30, %s9417_s30, %s9418_s7  }
  0x22   :  { %9396 = dma.done.wait [#allocation3], 2048  }
  0x23   :  { %9397 = vsyncadd [#allocation3], 4294965248 }
  0x24   :  { %9398 = dma.done.wait [#allocation6], 64  }
  0x25   :  { %9399 = vsyncadd [#allocation6], 4294967232 }
  0x26   :  { %9400 = dma.done.wait [#allocation9], 32768  }
  0x27   :  { %9401 = vsyncadd [#allocation9], 4294934528 }
  0x28   :  { %9402 = dma.done.wait [#allocation12], 64  }
  0x29   :  { %9403 = vsyncadd [#allocation12], 4294967232 }
  0x2a   :  { %9404 = dma.done.wait [#allocation15], 32800  }
  0x2b   :  { %9405 = vsyncadd [#allocation15], 4294934496 }
  0x2c   :  { %9406 = dma.done.wait [#allocation18], 32768  }
  0x2d   :  { %9407 = vsyncadd [#allocation18], 4294934528  ;;  %v192_v0 = vld [vmem:[#allocation2 + $0x20] sm:$0xff]  ;;  %v193_v1 = vld [vmem:[#allocation2 + $0x28] sm:$0xff]  ;;  %v9426_v24 = vmov 256.0   ;;  %s9427_s8 = smov 96  }
  0x2e   :  { %v188_v2 = vld [vmem:[#allocation2] sm:$0xff]  ;;  %v210_v3 = vadd.f32 %v193_v1, %v192_v0  ;;  %v189_v4 = vld [vmem:[#allocation2 + $0x8] sm:$0xff]  ;;  %v9541_v9 = vld [vmem:[#allocation2 + $0x30] sm:$0xff]  ;;  %8697 = vrcp.f32 %v9426_v24  ;;  %s9428_s10 = smov 32   ;;  %s8227_s18 = sshll.u32 %s13235_s12, 4  ;;  %s8228_s18 = int_to_ptr.hbm [resolvable:$true] %s8227_s18 }
  0x2f   :  { %v9535_v5 = vld [vmem:[#allocation2 + $0x40] sm:$0xff]  ;;  %v9537_v6 = vld [vmem:[#allocation2 + $0x48] sm:$0xff]  ;;  %v204_v7 = vadd.f32 %v189_v4, %v188_v2  ;;  %v9543_v10 = vld [vmem:[#allocation2 + $0x38] sm:$0xff] }
  0x30   :  { %v216_v8 = vadd.f32 %v9537_v6, %v9535_v5  ;;  %211 = vadd.xlane.f32.xlu1 %v210_v3  ;;  %v9545_v11 = vld [vmem:[#allocation2 + $0x10] sm:$0xff]  ;;  %v9547_v12 = vld [vmem:[#allocation2 + $0x18] sm:$0xff]  ;;  %v213_v15 = vadd.f32 %v9543_v10, %v9541_v9  ;;  %v9559_v18 = vld [vmem:[#allocation2 + $0x60] sm:$0xff] }
  0x31   :  { %205 = vadd.xlane.f32.xlu0 %v204_v7  ;;  %v9549_v13 = vld [vmem:[#allocation2 + $0x50] sm:$0xff]  ;;  %v9551_v14 = vld [vmem:[#allocation2 + $0x58] sm:$0xff]  ;;  %v207_v16 = vadd.f32 %v9547_v12, %v9545_v11  ;;  %v9561_v19 = vld [vmem:[#allocation2 + $0x68] sm:$0xff] }
  0x32   :  { %217 = vadd.xlane.f32.xlu2 %v216_v8  ;;  %v219_v17 = vadd.f32 %v9551_v14, %v9549_v13  ;;  %v9563_v20 = vld [vmem:[#allocation2 + $0x70] sm:$0xff]  ;;  %v9565_v21 = vld [vmem:[#allocation2 + $0x78] sm:$0xff]  ;;  %v222_v22 = vadd.f32 %v9561_v19, %v9559_v18  ;;  %v539_v40 = vld [vmem:[#allocation8 + $0x2a0] sm:$0xff] }
  0x33   :  { %v225_v23 = vadd.f32 %v9565_v21, %v9563_v20  ;;  %v545_v36 = vld [vmem:[#allocation8 + $0x2d0] sm:$0xff]  ;;  %v546_v38 = vld [vmem:[#allocation8 + $0x2d8] sm:$0xff]  ;;  %v635_v41 = vld [vmem:[#allocation8 + $0x5a0] sm:$0xff] }
  0x34   :  { %v8698_v25 = vpop.eup %8697  ;;  %v641_v37 = vld [vmem:[#allocation8 + $0x5d0] sm:$0xff]  ;;  %647 = vmatpush.msra.mxu0 %v545_v36  ;;  %v642_v39 = vld [vmem:[#allocation8 + $0x5d8] sm:$0xff]  ;;  %729 = vmatpush.msra.mxu2 %v546_v38  ;;  %v540_v44 = vld [vmem:[#allocation8 + $0x2a8] sm:$0xff] }
  0x35   :  { %v229_v26 = vmul.f32 256.0, %v8698_v25  ;;  %vm233_vm0 = vweird.f32 %v8698_v25  ;;  %688 = vmatpush.msra.mxu1 %v641_v37  ;;  %v636_v45 = vld [vmem:[#allocation8 + $0x5a8] sm:$0xff]  ;;  %770 = vmatpush.msra.mxu3 %v642_v39  ;;  %v527_v36 = vld [vmem:[#allocation8 + $0x240] sm:$0xff] }
  0x36   :  { %648 = vmatpush.msra.mxu0 %v539_v40  ;;  %730 = vmatpush.msra.mxu2 %v540_v44  ;;  %v623_v37 = vld [vmem:[#allocation8 + $0x540] sm:$0xff]  ;;  %v528_v38 = vld [vmem:[#allocation8 + $0x248] sm:$0xff]  ;;  %v521_v40 = vld [vmem:[#allocation8 + $0x210] sm:$0xff] }
  0x37   :  { %v230_v27 = vsub.f32 1.0, %v229_v26  ;;  %689 = vmatpush.msra.mxu1 %v635_v41  ;;  %771 = vmatpush.msra.mxu3 %v636_v45  ;;  %v624_v39 = vld [vmem:[#allocation8 + $0x548] sm:$0xff]  ;;  %v617_v41 = vld [vmem:[#allocation8 + $0x510] sm:$0xff]  ;;  %v522_v44 = vld [vmem:[#allocation8 + $0x218] sm:$0xff] }
  0x38   :  { %214 = vadd.xlane.f32.xlu1 %v213_v15  ;;  %v618_v45 = vld [vmem:[#allocation8 + $0x518] sm:$0xff] }
  0x39   :  { %208 = vadd.xlane.f32.xlu0 %v207_v16  ;;  %v231_v28 = vmul.f32 %v8698_v25, %v230_v27 }
  0x3a   :  { %220 = vadd.xlane.f32.xlu2 %v219_v17 }
  0x3b   :  { %v232_v29 = vadd.f32 %v8698_v25, %v231_v28 }
  0x3d   :  { %v9571_v30 = vsel %vm233_vm0, %v8698_v25, %v232_v29 }
  0x3e   :  { %13286 = vst [vmem:[#allocation27_spill] sm:$0xff] %v9571_v30 }
  0x41   :  { %223 = vadd.xlane.f32.xlu0 %v222_v22 }
  0x42   :  { %226 = vadd.xlane.f32.xlu2 %v225_v23 }
  0xa3   :  { %v212_v31 = vpop.xlane.xlu1 %211 }
  0xa4   :  { %v206_v32 = vpop.xlane.xlu0 %205  ;;  %v237_v34 = vmul.f32 %v9571_v30, %v212_v31 }
  0xa5   :  { %v218_v33 = vpop.xlane.xlu2 %217  ;;  %v235_v35 = vmul.f32 %v9571_v30, %v206_v32 }
  0xa6   :  { %v9579_v46 = vsub.f32 %v192_v0, %v237_v34  ;;  %v9581_v47 = vsub.f32 %v193_v1, %v237_v34  ;;  %v239_v50 = vmul.f32 %v9571_v30, %v218_v33  ;;  %v629_v33 = vld [vmem:[#allocation8 + $0x570] sm:$0xff]  ;;  %v534_v34 = vld [vmem:[#allocation8 + $0x278] sm:$0xff] }
  0xa7   :  { %v9575_v42 = vsub.f32 %v188_v2, %v235_v35  ;;  %v9577_v43 = vsub.f32 %v189_v4, %v235_v35  ;;  %690 = vmatpush.msra.mxu1 %v629_v33  ;;  %v630_v35 = vld [vmem:[#allocation8 + $0x578] sm:$0xff]  ;;  %731 = vmatpush.msra.mxu2 %v534_v34  ;;  %v564_v34 = vld [vmem:[#allocation8 + $0x368] sm:$0xff] }
  0xa8   :  { %v263_v58 = vmul.f32 %v9579_v46, %v9579_v46  ;;  %v264_v59 = vmul.f32 %v9581_v47, %v9581_v47  ;;  %v9602_v62 = vsub.f32 %v9535_v5, %v239_v50  ;;  %v9605_v63 = vsub.f32 %v9537_v6, %v239_v50  ;;  %772 = vmatpush.msra.mxu3 %v630_v35  ;;  %v516_v50 = vld [vmem:[#allocation8 + $0x1e8] sm:$0xff]  ;;  %v461_v35 = vld [vmem:[#allocation8 + $0x30] sm:$0xff] }
  0xa9   :  { %v259_v48 = vmul.f32 %v9575_v42, %v9575_v42  ;;  %v260_v49 = vmul.f32 %v9577_v43, %v9577_v43  ;;  %691 = vmatpush.msra.mxu1 %v623_v37  ;;  %732 = vmatpush.msra.mxu2 %v528_v38  ;;  %v462_v37 = vld [vmem:[#allocation8 + $0x38] sm:$0xff] }
  0xaa   :  { %v281_v6 = vadd.f32 %v264_v59, %v263_v58  ;;  %v267_v15 = vmul.f32 %v9602_v62, %v9602_v62  ;;  %v268_v16 = vmul.f32 %v9605_v63, %v9605_v63  ;;  %773 = vmatpush.msra.mxu3 %v624_v39  ;;  %v504_v58 = vld [vmem:[#allocation8 + $0x188] sm:$0xff]  ;;  %v558_v39 = vld [vmem:[#allocation8 + $0x338] sm:$0xff] }
  0xab   :  { %v215_v51 = vpop.xlane.xlu1 %214  ;;  %v275_v52 = vadd.f32 %v260_v49, %v259_v48  ;;  %692 = vmatpush.msra.mxu1 %v617_v41  ;;  %733 = vmatpush.msra.mxu2 %v522_v44  ;;  %v515_v48 = vld [vmem:[#allocation8 + $0x1e0] sm:$0xff]  ;;  %v600_v59 = vld [vmem:[#allocation8 + $0x488] sm:$0xff] }
  0xac   :  { %v238_v53 = vmul.f32 %v9571_v30, %v215_v51  ;;  %v209_v54 = vpop.xlane.xlu0 %208  ;;  %v287_v26 = vadd.f32 %v268_v16, %v267_v15  ;;  %774 = vmatpush.msra.mxu3 %v618_v45  ;;  %v611_v49 = vld [vmem:[#allocation8 + $0x4e0] sm:$0xff]  ;;  %v612_v51 = vld [vmem:[#allocation8 + $0x4e8] sm:$0xff]  ;;  %v582_v15 = vld [vmem:[#allocation8 + $0x3f8] sm:$0xff] }
  0xad   :  { %v221_v55 = vpop.xlane.xlu2 %220  ;;  %v236_v56 = vmul.f32 %v9571_v30, %v209_v54  ;;  %276 = vadd.xlane.f32.xlu1 %v275_v52  ;;  %693 = vmatpush.msra.mxu1 %v611_v49  ;;  %v509_v52 = vld [vmem:[#allocation8 + $0x1b0] sm:$0xff]  ;;  %v510_v54 = vld [vmem:[#allocation8 + $0x1b8] sm:$0xff]  ;;  %v479_v16 = vld [vmem:[#allocation8 + $0xc0] sm:$0xff] }
  0xae   :  { %v240_v57 = vmul.f32 %v9571_v30, %v221_v55  ;;  %v9596_v60 = vsub.f32 %v9541_v9, %v238_v53  ;;  %v9599_v61 = vsub.f32 %v9543_v10, %v238_v53  ;;  %734 = vmatpush.msra.mxu2 %v516_v50  ;;  %775 = vmatpush.msra.mxu3 %v612_v51  ;;  %v605_v53 = vld [vmem:[#allocation8 + $0x4b0] sm:$0xff]  ;;  %v606_v55 = vld [vmem:[#allocation8 + $0x4b8] sm:$0xff]  ;;  %v551_v41 = vld [vmem:[#allocation8 + $0x300] sm:$0xff] }
  0xaf   :  { %v9608_v0 = vsub.f32 %v9545_v11, %v236_v56  ;;  %v9611_v1 = vsub.f32 %v9547_v12, %v236_v56  ;;  %694 = vmatpush.msra.mxu1 %v605_v53  ;;  %v503_v56 = vld [vmem:[#allocation8 + $0x180] sm:$0xff]  ;;  %v456_v44 = vld [vmem:[#allocation8 + $0x8] sm:$0xff] }
  0xb0   :  { %v9614_v2 = vsub.f32 %v9549_v13, %v240_v57  ;;  %v9617_v3 = vsub.f32 %v9551_v14, %v240_v57  ;;  %v265_v4 = vmul.f32 %v9596_v60, %v9596_v60  ;;  %v266_v5 = vmul.f32 %v9599_v61, %v9599_v61  ;;  %735 = vmatpush.msra.mxu2 %v510_v54  ;;  %v599_v57 = vld [vmem:[#allocation8 + $0x480] sm:$0xff]  ;;  %v552_v45 = vld [vmem:[#allocation8 + $0x308] sm:$0xff] }
  0xb1   :  { %v261_v7 = vmul.f32 %v9608_v0, %v9608_v0  ;;  %v262_v8 = vmul.f32 %v9611_v1, %v9611_v1  ;;  %776 = vmatpush.msra.mxu3 %v606_v55  ;;  %695 = vmatpush.msra.mxu1 %v599_v57 }
  0xb2   :  { %v284_v9 = vadd.f32 %v266_v5, %v265_v4  ;;  %v269_v13 = vmul.f32 %v9614_v2, %v9614_v2  ;;  %v270_v14 = vmul.f32 %v9617_v3, %v9617_v3  ;;  %736 = vmatpush.msra.mxu2 %v504_v58  ;;  %v497_v4 = vld [vmem:[#allocation8 + $0x150] sm:$0xff] }
  0xb3   :  { %v278_v10 = vadd.f32 %v262_v8, %v261_v7  ;;  %777 = vmatpush.msra.mxu3 %v600_v59  ;;  %v593_v5 = vld [vmem:[#allocation8 + $0x450] sm:$0xff]  ;;  %v594_v7 = vld [vmem:[#allocation8 + $0x458] sm:$0xff]  ;;  %v491_v8 = vld [vmem:[#allocation8 + $0x120] sm:$0xff] }
  0xb4   :  { %v224_v11 = vpop.xlane.xlu0 %223  ;;  %285 = vadd.xlane.f32.xlu2 %v284_v9  ;;  %v290_v25 = vadd.f32 %v270_v14, %v269_v13  ;;  %696 = vmatpush.msra.mxu1 %v593_v5  ;;  %v587_v9 = vld [vmem:[#allocation8 + $0x420] sm:$0xff]  ;;  %v581_v13 = vld [vmem:[#allocation8 + $0x3f0] sm:$0xff]  ;;  %v486_v14 = vld [vmem:[#allocation8 + $0xf8] sm:$0xff] }
  0xb5   :  { %v227_v12 = vpop.xlane.xlu2 %226  ;;  %v241_v17 = vmul.f32 %v9571_v30, %v224_v11  ;;  %282 = vadd.xlane.f32.xlu1 %v281_v6  ;;  %279 = vadd.xlane.f32.xlu0 %v278_v10  ;;  %v498_v6 = vld [vmem:[#allocation8 + $0x158] sm:$0xff]  ;;  %v492_v10 = vld [vmem:[#allocation8 + $0x128] sm:$0xff] }
  0xb6   :  { %v242_v22 = vmul.f32 %v9571_v30, %v227_v12  ;;  %737 = vmatpush.msra.mxu2 %v498_v6  ;;  %778 = vmatpush.msra.mxu3 %v594_v7  ;;  %v588_v11 = vld [vmem:[#allocation8 + $0x428] sm:$0xff]  ;;  %v485_v12 = vld [vmem:[#allocation8 + $0xf0] sm:$0xff]  ;;  %v411_v7 = vld [vmem:[#allocation5] sm:$0x3] }
  0xb7   :  { %v9638_v23 = vsub.f32 %v9559_v18, %v241_v17  ;;  %v9641_v24 = vsub.f32 %v9561_v19, %v241_v17  ;;  %697 = vmatpush.msra.mxu1 %v587_v9  ;;  %v575_v17 = vld [vmem:[#allocation8 + $0x3c0] sm:$0xff]  ;;  %v433_v9 = vld [vmem:[#allocation7] sm:$0x3] }
  0xb8   :  { %v9644_v27 = vsub.f32 %v9563_v20, %v242_v22  ;;  %v9647_v28 = vsub.f32 %v9565_v21, %v242_v22  ;;  %v533_v21 = vld [vmem:[#allocation8 + $0x270] sm:$0xff]  ;;  %738 = vmatpush.msra.mxu2 %v492_v10  ;;  %779 = vmatpush.msra.mxu3 %v588_v11  ;;  %v480_v22 = vld [vmem:[#allocation8 + $0xc8] sm:$0xff] }
  0xb9   :  { %v271_v29 = vmul.f32 %v9638_v23, %v9638_v23  ;;  %v272_v31 = vmul.f32 %v9641_v24, %v9641_v24  ;;  %649 = vmatpush.msra.mxu0 %v533_v21  ;;  %698 = vmatpush.msra.mxu1 %v581_v13  ;;  %v468_v21 = vld [vmem:[#allocation8 + $0x68] sm:$0xff] }
  0xba   :  { %v273_v18 = vmul.f32 %v9644_v27, %v9644_v27  ;;  %v274_v19 = vmul.f32 %v9647_v28, %v9647_v28  ;;  %739 = vmatpush.msra.mxu2 %v486_v14  ;;  %780 = vmatpush.msra.mxu3 %v582_v15 }
  0xbb   :  { %v293_v32 = vadd.f32 %v272_v31, %v271_v29  ;;  %650 = vmatpush.msra.mxu0 %v527_v36  ;;  %699 = vmatpush.msra.mxu1 %v575_v17  ;;  %v569_v29 = vld [vmem:[#allocation8 + $0x390] sm:$0xff]  ;;  %v474_v31 = vld [vmem:[#allocation8 + $0x98] sm:$0xff] }
  0xbc   :  { %v296_v20 = vadd.f32 %v274_v19, %v273_v18  ;;  %740 = vmatpush.msra.mxu2 %v480_v22  ;;  %v467_v19 = vld [vmem:[#allocation8 + $0x60] sm:$0xff]  ;;  %v557_v36 = vld [vmem:[#allocation8 + $0x330] sm:$0xff] }
  0xbd   :  { %291 = vadd.xlane.f32.xlu1 %v290_v25  ;;  %288 = vadd.xlane.f32.xlu0 %v287_v26  ;;  %v576_v25 = vld [vmem:[#allocation8 + $0x3c8] sm:$0xff]  ;;  %v473_v26 = vld [vmem:[#allocation8 + $0x90] sm:$0xff] }
  0xbe   :  { %294 = vadd.xlane.f32.xlu2 %v293_v32  ;;  %651 = vmatpush.msra.mxu0 %v521_v40  ;;  %v570_v32 = vld [vmem:[#allocation8 + $0x398] sm:$0xff]  ;;  %v455_v40 = vld [vmem:[#allocation8] sm:$0xff] }
  0xbf   :  { %781 = vmatpush.msra.mxu3 %v576_v25  ;;  %700 = vmatpush.msra.mxu1 %v569_v29  ;;  %v9672_v25 = vperm.slane %v411_v7, 1  ;;  %v9676_v29 = vperm.slane %v433_v9, 1 }
  0xc0   :  { %652 = vmatpush.msra.mxu0 %v515_v48  ;;  %741 = vmatpush.msra.mxu2 %v474_v31 }
  0xc1   :  { %782 = vmatpush.msra.mxu3 %v570_v32 }
  0xc2   :  { %653 = vmatpush.msra.mxu0 %v509_v52  ;;  %742 = vmatpush.msra.mxu2 %v468_v21 }
  0xc3   :  { %783 = vmatpush.msra.mxu3 %v564_v34 }
  0xc4   :  { %654 = vmatpush.msra.mxu0 %v503_v56  ;;  %743 = vmatpush.msra.mxu2 %v462_v37 }
  0xc5   :  { %297 = vadd.xlane.f32.xlu0 %v296_v20  ;;  %v563_v20 = vld [vmem:[#allocation8 + $0x360] sm:$0xff]  ;;  %784 = vmatpush.msra.mxu3 %v558_v39 }
  0xc6   :  { %655 = vmatpush.msra.mxu0 %v497_v4  ;;  %701 = vmatpush.msra.mxu1 %v563_v20 }
  0xc7   :  { %744 = vmatpush.msra.mxu2 %v456_v44  ;;  %785 = vmatpush.msra.mxu3 %v552_v45 }
  0xc8   :  { %656 = vmatpush.msra.mxu0 %v491_v8  ;;  %702 = vmatpush.msra.mxu1 %v557_v36 }
  0xca   :  { %657 = vmatpush.msra.mxu0 %v485_v12  ;;  %703 = vmatpush.msra.mxu1 %v551_v41 }
  0xcc   :  { %658 = vmatpush.msra.mxu0 %v479_v16  ;;  %v9670_v16 = vperm.slane %v411_v7, 0 }
  0xce   :  { %659 = vmatpush.msra.mxu0 %v473_v26  ;;  %v9674_v26 = vperm.slane %v433_v9, 0  ;;  %v644_v9 = vld [vmem:[#allocation8 + $0x5e8] sm:$0xff] }
  0xcf   :  { %934 = vmatpush.msrb.mxu3 %v644_v9 }
  0xd0   :  { %660 = vmatpush.msra.mxu0 %v467_v19 }
  0xd2   :  { %661 = vmatpush.msra.mxu0 %v461_v35 }
  0xd4   :  { %662 = vmatpush.msra.mxu0 %v455_v40 }
 0x120   :  { %v277_v18 = vpop.xlane.xlu1 %276 }
 0x121   :  { %v299_v33 = vmul.f32 %v277_v18, %v9571_v30 }
 0x123   :  { %v307_v38 = vadd.f32 1e-05, %v299_v33 }
 0x125   :  { %8699 = vrsqrt.f32 %v307_v38  ;;  %vm321_vm2 = vweird.f32 %v307_v38 }
 0x127   :  { %v286_v48 = vpop.xlane.xlu2 %285 }
 0x128   :  { %v302_v49 = vmul.f32 %v286_v48, %v9571_v30  ;;  %v283_v50 = vpop.xlane.xlu1 %282  ;;  %v280_v51 = vpop.xlane.xlu0 %279 }
 0x129   :  { %v301_v52 = vmul.f32 %v283_v50, %v9571_v30  ;;  %v300_v53 = vmul.f32 %v280_v51, %v9571_v30 }
 0x12a   :  { %v9661_v54 = vadd.f32 1e-05, %v302_v49 }
 0x12b   :  { %v8700_v55 = vpop.eup %8699  ;;  %v309_v56 = vadd.f32 1e-05, %v301_v52  ;;  %v308_v57 = vadd.f32 1e-05, %v300_v53 }
 0x12c   :  { %v316_v58 = vmul.f32 %v8700_v55, %v307_v38  ;;  %8701 = vrsqrt.f32 %v9661_v54  ;;  %vm322_vm1 = vweird.f32 %v8700_v55  ;;  %vm351_vm10 = vweird.f32 %v9661_v54 }
 0x12d   :  { %8703 = vrsqrt.f32 %v309_v56  ;;  %vm323_vm3 = vmor %vm321_vm2, %vm322_vm1  ;;  %vm341_vm4 = vweird.f32 %v309_v56  ;;  %vm331_vm8 = vweird.f32 %v308_v57 }
 0x12e   :  { %v317_v59 = vmul.f32 %v8700_v55, %v316_v58  ;;  %8705 = vrsqrt.f32 %v308_v57 }
 0x130   :  { %v318_v4 = vmul.f32 0.5, %v317_v59  ;;  %v292_v5 = vpop.xlane.xlu1 %291  ;;  %v289_v6 = vpop.xlane.xlu0 %288  ;;  %v643_v59 = vld [vmem:[#allocation8 + $0x5e0] sm:$0xff] }
 0x131   :  { %v304_v11 = vmul.f32 %v292_v5, %v9571_v30  ;;  %v303_v14 = vmul.f32 %v289_v6, %v9571_v30  ;;  %v295_v32 = vpop.xlane.xlu2 %294  ;;  %852 = vmatpush.msrb.mxu1 %v643_v59 }
 0x132   :  { %v9664_v8 = vpop.eup %8701  ;;  %v319_v10 = vsub.f32 1.5, %v318_v4  ;;  %v305_v38 = vmul.f32 %v295_v32, %v9571_v30  ;;  %v548_v4 = vld [vmem:[#allocation8 + $0x2e8] sm:$0xff] }
 0x133   :  { %v8704_v12 = vpop.eup %8703  ;;  %v346_v13 = vmul.f32 %v9664_v8, %v9661_v54  ;;  %v9679_v21 = vadd.f32 1e-05, %v304_v11  ;;  %v9683_v36 = vadd.f32 1e-05, %v303_v14  ;;  %v637_v11 = vld [vmem:[#allocation8 + $0x5b0] sm:$0xff]  ;;  %vm352_vm11 = vweird.f32 %v9664_v8  ;;  %893 = vmatpush.msrb.mxu2 %v548_v4  ;;  %v542_v14 = vld [vmem:[#allocation8 + $0x2b8] sm:$0xff] }
 0x134   :  { %v8706_v15 = vpop.eup %8705  ;;  %v320_v17 = vmul.f32 %v8700_v55, %v319_v10  ;;  %v336_v22 = vmul.f32 %v8704_v12, %v309_v56  ;;  %vm342_vm5 = vweird.f32 %v8704_v12  ;;  %v9701_v52 = vadd.f32 1e-05, %v305_v38  ;;  %v547_v56 = vld [vmem:[#allocation8 + $0x2e0] sm:$0xff]  ;;  %v541_v10 = vld [vmem:[#allocation8 + $0x2b0] sm:$0xff]  ;;  %853 = vmatpush.msrb.mxu1 %v637_v11  ;;  %vm353_vm12 = vmor %vm351_vm10, %vm352_vm11 }
 0x135   :  { %v326_v31 = vmul.f32 %v8706_v15, %v308_v57  ;;  %v347_v19 = vmul.f32 %v9664_v8, %v346_v13  ;;  %vm332_vm6 = vweird.f32 %v8706_v15  ;;  %8707 = vrsqrt.f32 %v9679_v21  ;;  %vm9697_vm7 = vmor %vm341_vm4, %vm342_vm5  ;;  %811 = vmatpush.msrb.mxu0 %v547_v56  ;;  %894 = vmatpush.msrb.mxu2 %v542_v14  ;;  %v625_v54 = vld [vmem:[#allocation8 + $0x550] sm:$0xff]  ;;  %v518_v11 = vld [vmem:[#allocation8 + $0x1f8] sm:$0xff] }
 0x136   :  { %v324_v18 = vsel %vm323_vm3, %v8700_v55, %v320_v17  ;;  %v337_v20 = vmul.f32 %v8704_v12, %v336_v22  ;;  %8709 = vrsqrt.f32 %v9683_v36  ;;  %vm333_vm9 = vmor %vm331_vm8, %vm332_vm6  ;;  %v535_v22 = vld [vmem:[#allocation8 + $0x280] sm:$0xff]  ;;  %vm361_vm13 = vweird.f32 %v9683_v36 }
 0x137   :  { %v395_v33 = vmul.f32 %v324_v18, %v9575_v42  ;;  %v396_v34 = vmul.f32 %v324_v18, %v9577_v43  ;;  %v327_v35 = vmul.f32 %v8706_v15, %v326_v31  ;;  %v348_v44 = vmul.f32 0.5, %v347_v19  ;;  %v631_v31 = vld [vmem:[#allocation8 + $0x580] sm:$0xff]  ;;  %812 = vmatpush.msrb.mxu0 %v541_v10  ;;  %v613_v10 = vld [vmem:[#allocation8 + $0x4f0] sm:$0xff] }
 0x138   :  { %v338_v37 = vmul.f32 0.5, %v337_v20  ;;  %v298_v58 = vpop.xlane.xlu0 %297  ;;  %8711 = vrsqrt.f32 %v9701_v52  ;;  %854 = vmatpush.msrb.mxu1 %v631_v31  ;;  %vm371_vm0 = vweird.f32 %v9679_v21  ;;  %vm381_vm3 = vweird.f32 %v9701_v52 }
 0x139   :  { %v417_v39 = vmul.f32 %v9670_v16, %v395_v33  ;;  %v418_v40 = vmul.f32 %v9672_v25, %v396_v34  ;;  %v328_v41 = vmul.f32 0.5, %v327_v35  ;;  %v349_v53 = vsub.f32 1.5, %v348_v44  ;;  %813 = vmatpush.msrb.mxu0 %v535_v22  ;;  %v632_v35 = vld [vmem:[#allocation8 + $0x588] sm:$0xff] }
 0x13a   :  { %v339_v45 = vsub.f32 1.5, %v338_v37  ;;  %v306_v17 = vmul.f32 %v298_v58, %v9571_v30  ;;  %v529_v37 = vld [vmem:[#allocation8 + $0x250] sm:$0xff]  ;;  %855 = vmatpush.msrb.mxu1 %v625_v54  ;;  %v512_v22 = vld [vmem:[#allocation8 + $0x1c8] sm:$0xff]  ;;  %vm1288_vm10 = vcmask 130048  }
 0x13b   :  { %v9690_v42 = vadd.f32 %v9674_v26, %v417_v39  ;;  %v9693_v43 = vadd.f32 %v9676_v29, %v418_v40  ;;  %v329_v48 = vsub.f32 1.5, %v328_v41  ;;  %v9707_v5 = vpop.eup %8707  ;;  %814 = vmatpush.msrb.mxu0 %v529_v37 }
 0x13c   :  { %v340_v49 = vmul.f32 %v8704_v12, %v339_v45  ;;  %v9713_v13 = vpop.eup %8709  ;;  %v366_v19 = vmul.f32 %v9707_v5, %v9679_v21  ;;  %v9743_v39 = vadd.f32 1e-05, %v306_v17  ;;  %v607_v17 = vld [vmem:[#allocation8 + $0x4c0] sm:$0xff]  ;;  %vm372_vm1 = vweird.f32 %v9707_v5  ;;  %v596_v21 = vld [vmem:[#allocation8 + $0x468] sm:$0xff] }
 0x13d   :  { %v330_v51 = vmul.f32 %v8706_v15, %v329_v48  ;;  %663 = vmatmul.f32.vlgmr.msra.gmra.mxu0 %v9690_v42  ;;  %704 = vmatmul.f32.vlgmr.msra.gmra.mxu1 %v9693_v43  ;;  %v356_v34 = vmul.f32 %v9713_v13, %v9683_v36  ;;  %v530_v48 = vld [vmem:[#allocation8 + $0x258] sm:$0xff]  ;;  %vm362_vm14 = vweird.f32 %v9713_v13  ;;  %vm373_vm2 = vmor %vm371_vm0, %vm372_vm1 }
 0x13e   :  { %745 = vmatmul.f32.vlgmr.msra.gmra.mxu2 %v9690_v42  ;;  %786 = vmatmul.f32.vlgmr.msra.gmra.mxu3 %v9693_v43  ;;  %v344_v57 = vsel %vm9697_vm7, %v8704_v12, %v340_v49  ;;  %v638_v12 = vld [vmem:[#allocation8 + $0x5b8] sm:$0xff]  ;;  %v9741_v38 = vpop.eup %8711  ;;  %v367_v45 = vmul.f32 %v9707_v5, %v366_v19  ;;  %8713 = vrsqrt.f32 %v9743_v39  ;;  %vm9767_vm15 = vmor %vm361_vm13, %vm362_vm14  ;;  %vm391_vm6 = vweird.f32 %v9743_v39 }
 0x13f   :  { %v334_v55 = vsel %vm333_vm9, %v8706_v15, %v330_v51  ;;  %v399_v32 = vmul.f32 %v344_v57, %v9579_v46  ;;  %v400_v18 = vmul.f32 %v344_v57, %v9581_v47  ;;  %935 = vmatpush.msrb.mxu3 %v638_v12  ;;  %v536_v46 = vld [vmem:[#allocation8 + $0x288] sm:$0xff]  ;;  %v357_v47 = vmul.f32 %v9713_v13, %v356_v34  ;;  %v626_v49 = vld [vmem:[#allocation8 + $0x558] sm:$0xff]  ;;  %v523_v51 = vld [vmem:[#allocation8 + $0x220] sm:$0xff] }
 0x140   :  { %v397_v6 = vmul.f32 %v334_v55, %v9608_v0  ;;  %v398_v7 = vmul.f32 %v334_v55, %v9611_v1  ;;  %v350_v0 = vmul.f32 %v9664_v8, %v349_v53  ;;  %895 = vmatpush.msrb.mxu2 %v536_v46  ;;  %v376_v53 = vmul.f32 %v9741_v38, %v9701_v52  ;;  %v524_v55 = vld [vmem:[#allocation8 + $0x228] sm:$0xff]  ;;  %v614_v36 = vld [vmem:[#allocation8 + $0x4f8] sm:$0xff]  ;;  %v601_v34 = vld [vmem:[#allocation8 + $0x490] sm:$0xff] }
 0x141   :  { %v421_v41 = vmul.f32 %v9670_v16, %v399_v32  ;;  %v422_v44 = vmul.f32 %v9672_v25, %v400_v18  ;;  %v358_v50 = vmul.f32 0.5, %v357_v47  ;;  %936 = vmatpush.msrb.mxu3 %v632_v35  ;;  %815 = vmatpush.msrb.mxu0 %v523_v51  ;;  %v608_v32 = vld [vmem:[#allocation8 + $0x4c8] sm:$0xff]  ;;  %v505_v18 = vld [vmem:[#allocation8 + $0x190] sm:$0xff]  ;;  %v506_v46 = vld [vmem:[#allocation8 + $0x198] sm:$0xff]  ;;  %vm382_vm4 = vweird.f32 %v9741_v38 }
 0x142   :  { %v419_v1 = vmul.f32 %v9670_v16, %v397_v6  ;;  %v420_v15 = vmul.f32 %v9672_v25, %v398_v7  ;;  %v354_v40 = vsel %vm353_vm12, %v9664_v8, %v350_v0  ;;  %v619_v8 = vld [vmem:[#allocation8 + $0x520] sm:$0xff]  ;;  %896 = vmatpush.msrb.mxu2 %v530_v48  ;;  %v368_v6 = vmul.f32 0.5, %v367_v45  ;;  %vm9821_vm5 = vmor %vm381_vm3, %vm382_vm4  ;;  %v578_v52 = vld [vmem:[#allocation8 + $0x3d8] sm:$0xff] }
 0x143   :  { %v401_v58 = vmul.f32 %v354_v40, %v9596_v60  ;;  %v402_v56 = vmul.f32 %v354_v40, %v9599_v61  ;;  %v359_v59 = vsub.f32 1.5, %v358_v50  ;;  %937 = vmatpush.msrb.mxu3 %v626_v49  ;;  %v9758_v4 = vadd.f32 %v9674_v26, %v421_v41  ;;  %856 = vmatpush.msrb.mxu1 %v619_v8  ;;  %v620_v60 = vld [vmem:[#allocation8 + $0x528] sm:$0xff]  ;;  %v517_v61 = vld [vmem:[#allocation8 + $0x1f0] sm:$0xff]  ;;  %v499_v45 = vld [vmem:[#allocation8 + $0x160] sm:$0xff] }
 0x144   :  { %v9727_v20 = vadd.f32 %v9674_v26, %v419_v1  ;;  %v9730_v33 = vadd.f32 %v9676_v29, %v420_v15  ;;  %v9761_v57 = vadd.f32 %v9676_v29, %v422_v44  ;;  %897 = vmatpush.msrb.mxu2 %v524_v55  ;;  %v377_v0 = vmul.f32 %v9741_v38, %v376_v53  ;;  %v511_v1 = vld [vmem:[#allocation8 + $0x1c0] sm:$0xff]  ;;  %v9781_v19 = vpop.eup %8713  ;;  %v602_v44 = vld [vmem:[#allocation8 + $0x498] sm:$0xff]  ;;  %v493_v49 = vld [vmem:[#allocation8 + $0x130] sm:$0xff] }
 0x145   :  { %v360_v7 = vmul.f32 %v9713_v13, %v359_v59  ;;  %v423_v14 = vmul.f32 %v9670_v16, %v401_v58  ;;  %v424_v12 = vmul.f32 %v9672_v25, %v402_v56  ;;  %v369_v15 = vsub.f32 1.5, %v368_v6  ;;  %938 = vmatpush.msrb.mxu3 %v620_v60  ;;  %816 = vmatpush.msrb.mxu0 %v517_v61  ;;  %v589_v8 = vld [vmem:[#allocation8 + $0x430] sm:$0xff]  ;;  %v494_v55 = vld [vmem:[#allocation8 + $0x138] sm:$0xff]  ;;  %v487_v59 = vld [vmem:[#allocation8 + $0x100] sm:$0xff] }
 0x146   :  { %666 = vmatmul.f32.gmra.mxu0 %v9727_v20  ;;  %707 = vmatmul.f32.gmra.mxu1 %v9730_v33  ;;  %v386_v41 = vmul.f32 %v9781_v19, %v9743_v39  ;;  %v590_v56 = vld [vmem:[#allocation8 + $0x438] sm:$0xff]  ;;  %v488_v6 = vld [vmem:[#allocation8 + $0x108] sm:$0xff]  ;;  %vm392_vm7 = vweird.f32 %v9781_v19  ;;  %v463_v39 = vld [vmem:[#allocation8 + $0x40] sm:$0xff]  ;;  %vm1147_vm9 = vcmask 261120  }
 0x147   :  { %748 = vmatmul.f32.gmra.mxu2 %v9727_v20  ;;  %789 = vmatmul.f32.gmra.mxu3 %v9730_v33  ;;  %v364_v31 = vsel %vm9767_vm15, %v9713_v13, %v360_v7  ;;  %v9786_v47 = vadd.f32 %v9674_v26, %v423_v14  ;;  %v9789_v35 = vadd.f32 %v9676_v29, %v424_v12  ;;  %v378_v13 = vmul.f32 0.5, %v377_v0  ;;  %v584_v14 = vld [vmem:[#allocation8 + $0x408] sm:$0xff]  ;;  %v481_v12 = vld [vmem:[#allocation8 + $0xd0] sm:$0xff]  ;;  %v482_v0 = vld [vmem:[#allocation8 + $0xd8] sm:$0xff] }
 0x148   :  { %857 = vmatpush.msrb.mxu1 %v613_v10  ;;  %898 = vmatpush.msrb.mxu2 %v518_v11  ;;  %v370_v37 = vmul.f32 %v9707_v5, %v369_v15  ;;  %v403_v54 = vmul.f32 %v364_v31, %v9602_v62  ;;  %v404_v40 = vmul.f32 %v364_v31, %v9605_v63  ;;  %v595_v62 = vld [vmem:[#allocation8 + $0x460] sm:$0xff]  ;;  %v500_v63 = vld [vmem:[#allocation8 + $0x168] sm:$0xff]  ;;  %vm393_vm8 = vmor %vm391_vm6, %vm392_vm7 }
 0x149   :  { %939 = vmatpush.msrb.mxu3 %v614_v36  ;;  %817 = vmatpush.msrb.mxu0 %v511_v1  ;;  %v379_v48 = vsub.f32 1.5, %v378_v13  ;;  %v387_v58 = vmul.f32 %v9781_v19, %v386_v41  ;;  %v475_v36 = vld [vmem:[#allocation8 + $0xa0] sm:$0xff]  ;;  %v476_v31 = vld [vmem:[#allocation8 + $0xa8] sm:$0xff]  ;;  %v470_v13 = vld [vmem:[#allocation8 + $0x78] sm:$0xff] }
 0x14a   :  { %858 = vmatpush.msrb.mxu1 %v607_v17  ;;  %899 = vmatpush.msrb.mxu2 %v512_v22  ;;  %v374_v50 = vsel %vm373_vm2, %v9707_v5, %v370_v37  ;;  %v425_v51 = vmul.f32 %v9670_v16, %v403_v54  ;;  %v426_v53 = vmul.f32 %v9672_v25, %v404_v40  ;;  %v583_v5 = vld [vmem:[#allocation8 + $0x400] sm:$0xff]  ;;  %v538_v11 = vld [vmem:[#allocation8 + $0x298] sm:$0xff] }
 0x14b   :  { %940 = vmatpush.msrb.mxu3 %v608_v32  ;;  %818 = vmatpush.msrb.mxu0 %v505_v18  ;;  %v405_v7 = vmul.f32 %v374_v50, %v9614_v2  ;;  %v380_v60 = vmul.f32 %v9741_v38, %v379_v48  ;;  %v406_v61 = vmul.f32 %v374_v50, %v9617_v3  ;;  %v388_v2 = vmul.f32 0.5, %v387_v58  ;;  %v577_v3 = vld [vmem:[#allocation8 + $0x3d0] sm:$0xff]  ;;  %v571_v22 = vld [vmem:[#allocation8 + $0x3a0] sm:$0xff]  ;;  %v572_v18 = vld [vmem:[#allocation8 + $0x3a8] sm:$0xff] }
 0x14c   :  { %859 = vmatpush.msrb.mxu1 %v601_v34  ;;  %900 = vmatpush.msrb.mxu2 %v506_v46  ;;  %v9814_v9 = vadd.f32 %v9674_v26, %v425_v51  ;;  %v9817_v10 = vadd.f32 %v9676_v29, %v426_v53  ;;  %v469_v34 = vld [vmem:[#allocation8 + $0x70] sm:$0xff]  ;;  %v554_v51 = vld [vmem:[#allocation8 + $0x318] sm:$0xff] }
 0x14d   :  { %941 = vmatpush.msrb.mxu3 %v602_v44  ;;  %819 = vmatpush.msrb.mxu0 %v499_v45  ;;  %v427_v1 = vmul.f32 %v9670_v16, %v405_v7  ;;  %v428_v15 = vmul.f32 %v9672_v25, %v406_v61  ;;  %v384_v17 = vsel %vm9821_vm5, %v9741_v38, %v380_v60  ;;  %v389_v32 = vsub.f32 1.5, %v388_v2  ;;  %v565_v46 = vld [vmem:[#allocation8 + $0x370] sm:$0xff]  ;;  %v559_v44 = vld [vmem:[#allocation8 + $0x340] sm:$0xff]  ;;  %v464_v45 = vld [vmem:[#allocation8 + $0x48] sm:$0xff] }
 0x14e   :  { %669 = vmatmul.f32.gmra.mxu0 %v9758_v4  ;;  %710 = vmatmul.f32.gmra.mxu1 %v9761_v57  ;;  %v407_v37 = vmul.f32 %v384_v17, %v9638_v23  ;;  %v408_v40 = vmul.f32 %v384_v17, %v9641_v24  ;;  %v566_v23 = vld [vmem:[#allocation8 + $0x378] sm:$0xff]  ;;  %v560_v24 = vld [vmem:[#allocation8 + $0x348] sm:$0xff]  ;;  %v537_v60 = vld [vmem:[#allocation8 + $0x290] sm:$0xff] }
 0x14f   :  { %751 = vmatmul.f32.gmra.mxu2 %v9758_v4  ;;  %792 = vmatmul.f32.gmra.mxu3 %v9761_v57  ;;  %v9838_v38 = vadd.f32 %v9674_v26, %v427_v1  ;;  %v9841_v54 = vadd.f32 %v9676_v29, %v428_v15  ;;  %v390_v41 = vmul.f32 %v9781_v19, %v389_v32  ;;  %v640_v7 = vld [vmem:[#allocation8 + $0x5c8] sm:$0xff]  ;;  %v633_v61 = vld [vmem:[#allocation8 + $0x590] sm:$0xff]  ;;  %v634_v2 = vld [vmem:[#allocation8 + $0x598] sm:$0xff] }
 0x150   :  { %860 = vmatpush.msrb.mxu1 %v595_v62  ;;  %901 = vmatpush.msrb.mxu2 %v500_v63  ;;  %v457_v62 = vld [vmem:[#allocation8 + $0x10] sm:$0xff]  ;;  %v429_v63 = vmul.f32 %v9670_v16, %v407_v37  ;;  %v430_v48 = vmul.f32 %v9672_v25, %v408_v40  ;;  %v526_v1 = vld [vmem:[#allocation8 + $0x238] sm:$0xff]  ;;  %v519_v17 = vld [vmem:[#allocation8 + $0x200] sm:$0xff] }
 0x151   :  { %942 = vmatpush.msrb.mxu3 %v596_v21  ;;  %820 = vmatpush.msrb.mxu0 %v493_v49  ;;  %v553_v21 = vld [vmem:[#allocation8 + $0x310] sm:$0xff]  ;;  %v458_v49 = vld [vmem:[#allocation8 + $0x18] sm:$0xff]  ;;  %v394_v50 = vsel %vm393_vm8, %v9781_v19, %v390_v41  ;;  %v616_v32 = vld [vmem:[#allocation8 + $0x508] sm:$0xff] }
 0x152   :  { %861 = vmatpush.msrb.mxu1 %v589_v8  ;;  %902 = vmatpush.msrb.mxu2 %v494_v55  ;;  %v9853_v53 = vadd.f32 %v9674_v26, %v429_v63  ;;  %v9856_v8 = vadd.f32 %v9676_v29, %v430_v48  ;;  %v409_v55 = vmul.f32 %v394_v50, %v9644_v27  ;;  %v622_v15 = vld [vmem:[#allocation8 + $0x538] sm:$0xff]  ;;  %v507_v37 = vld [vmem:[#allocation8 + $0x1a0] sm:$0xff]  ;;  %v508_v41 = vld [vmem:[#allocation8 + $0x1a8] sm:$0xff] }
 0x153   :  { %943 = vmatpush.msrb.mxu3 %v590_v56  ;;  %821 = vmatpush.msrb.mxu0 %v487_v59  ;;  %v410_v58 = vmul.f32 %v394_v50, %v9647_v28  ;;  %v549_v28 = vld [vmem:[#allocation8 + $0x2f0] sm:$0xff]  ;;  %v603_v40 = vld [vmem:[#allocation8 + $0x4a0] sm:$0xff]  ;;  %v496_v48 = vld [vmem:[#allocation8 + $0x148] sm:$0xff] }
 0x154   :  { %862 = vmatpush.msrb.mxu1 %v583_v5  ;;  %903 = vmatpush.msrb.mxu2 %v488_v6  ;;  %v431_v19 = vmul.f32 %v9670_v16, %v409_v55  ;;  %v645_v16 = vld [vmem:[#allocation8 + $0x5f0] sm:$0xff]  ;;  %v639_v5 = vld [vmem:[#allocation8 + $0x5c0] sm:$0xff]  ;;  %v544_v6 = vld [vmem:[#allocation8 + $0x2c8] sm:$0xff] }
 0x155   :  { %944 = vmatpush.msrb.mxu3 %v584_v14  ;;  %822 = vmatpush.msrb.mxu0 %v481_v12  ;;  %v432_v56 = vmul.f32 %v9672_v25, %v410_v58  ;;  %v550_v25 = vld [vmem:[#allocation8 + $0x2f8] sm:$0xff]  ;;  %v531_v14 = vld [vmem:[#allocation8 + $0x260] sm:$0xff]  ;;  %v585_v50 = vld [vmem:[#allocation8 + $0x410] sm:$0xff] }
 0x156   :  { %672 = vmatmul.f32.gmra.mxu0 %v9786_v47  ;;  %713 = vmatmul.f32.gmra.mxu1 %v9789_v35  ;;  %v9867_v59 = vadd.f32 %v9674_v26, %v431_v19  ;;  %v646_v26 = vld [vmem:[#allocation8 + $0x5f8] sm:$0xff]  ;;  %v627_v12 = vld [vmem:[#allocation8 + $0x560] sm:$0xff] }
 0x157   :  { %754 = vmatmul.f32.gmra.mxu2 %v9786_v47  ;;  %795 = vmatmul.f32.gmra.mxu3 %v9789_v35  ;;  %v9870_v27 = vadd.f32 %v9676_v29, %v432_v56  ;;  %v543_v29 = vld [vmem:[#allocation8 + $0x2c0] sm:$0xff]  ;;  %v586_v55 = vld [vmem:[#allocation8 + $0x418] sm:$0xff]  ;;  %v484_v56 = vld [vmem:[#allocation8 + $0xe8] sm:$0xff] }
 0x158   :  { %863 = vmatpush.msrb.mxu1 %v577_v3  ;;  %904 = vmatpush.msrb.mxu2 %v482_v0  ;;  %v532_v3 = vld [vmem:[#allocation8 + $0x268] sm:$0xff]  ;;  %v591_v63 = vld [vmem:[#allocation8 + $0x440] sm:$0xff] }
 0x159   :  { %945 = vmatpush.msrb.mxu3 %v578_v52  ;;  %823 = vmatpush.msrb.mxu0 %v475_v36  ;;  %v628_v0 = vld [vmem:[#allocation8 + $0x568] sm:$0xff]  ;;  %v525_v52 = vld [vmem:[#allocation8 + $0x230] sm:$0xff]  ;;  %v483_v58 = vld [vmem:[#allocation8 + $0xe0] sm:$0xff] }
 0x15a   :  { %864 = vmatpush.msrb.mxu1 %v571_v22  ;;  %905 = vmatpush.msrb.mxu2 %v476_v31  ;;  %v621_v36 = vld [vmem:[#allocation8 + $0x530] sm:$0xff]  ;;  %v615_v22 = vld [vmem:[#allocation8 + $0x500] sm:$0xff]  ;;  %v520_v31 = vld [vmem:[#allocation8 + $0x208] sm:$0xff] }
 0x15b   :  { %946 = vmatpush.msrb.mxu3 %v572_v18  ;;  %824 = vmatpush.msrb.mxu0 %v469_v34  ;;  %v513_v18 = vld [vmem:[#allocation8 + $0x1d0] sm:$0xff]  ;;  %v579_v19 = vld [vmem:[#allocation8 + $0x3e0] sm:$0xff] }
 0x15c   :  { %865 = vmatpush.msrb.mxu1 %v565_v46  ;;  %906 = vmatpush.msrb.mxu2 %v470_v13  ;;  %v609_v34 = vld [vmem:[#allocation8 + $0x4d0] sm:$0xff]  ;;  %v514_v46 = vld [vmem:[#allocation8 + $0x1d8] sm:$0xff] }
 0x15d   :  { %947 = vmatpush.msrb.mxu3 %v566_v23  ;;  %825 = vmatpush.msrb.mxu0 %v463_v39  ;;  %v610_v13 = vld [vmem:[#allocation8 + $0x4d8] sm:$0xff]  ;;  %v604_v23 = vld [vmem:[#allocation8 + $0x4a8] sm:$0xff]  ;;  %v501_v39 = vld [vmem:[#allocation8 + $0x170] sm:$0xff] }
 0x15e   :  { %675 = vmatmul.f32.gmra.mxu0 %v9814_v9  ;;  %716 = vmatmul.f32.gmra.mxu1 %v9817_v10 }
 0x15f   :  { %757 = vmatmul.f32.gmra.mxu2 %v9814_v9  ;;  %798 = vmatmul.f32.gmra.mxu3 %v9817_v10 }
 0x160   :  { %866 = vmatpush.msrb.mxu1 %v559_v44  ;;  %907 = vmatpush.msrb.mxu2 %v464_v45  ;;  %v597_v44 = vld [vmem:[#allocation8 + $0x470] sm:$0xff]  ;;  %v502_v45 = vld [vmem:[#allocation8 + $0x178] sm:$0xff] }
 0x161   :  { %948 = vmatpush.msrb.mxu3 %v560_v24  ;;  %826 = vmatpush.msrb.mxu0 %v457_v62  ;;  %v598_v24 = vld [vmem:[#allocation8 + $0x478] sm:$0xff]  ;;  %v495_v62 = vld [vmem:[#allocation8 + $0x140] sm:$0xff] }
 0x162   :  { %867 = vmatpush.msrb.mxu1 %v553_v21  ;;  %908 = vmatpush.msrb.mxu2 %v458_v49  ;;  %v592_v21 = vld [vmem:[#allocation8 + $0x448] sm:$0xff]  ;;  %v489_v49 = vld [vmem:[#allocation8 + $0x110] sm:$0xff] }
 0x163   :  { %949 = vmatpush.msrb.mxu3 %v554_v51  ;;  %975 = vmatpush.msra.mxu0 %v549_v28  ;;  %v490_v51 = vld [vmem:[#allocation8 + $0x118] sm:$0xff]  ;;  %v580_v28 = vld [vmem:[#allocation8 + $0x3e8] sm:$0xff] }
 0x164   :  { %1016 = vmatpush.msra.mxu1 %v645_v16  ;;  %1057 = vmatpush.msra.mxu2 %v550_v25  ;;  %v477_v16 = vld [vmem:[#allocation8 + $0xb0] sm:$0xff] }
 0x165   :  { %1098 = vmatpush.msra.mxu3 %v646_v26  ;;  %976 = vmatpush.msra.mxu0 %v543_v29  ;;  %v573_v25 = vld [vmem:[#allocation8 + $0x3b0] sm:$0xff]  ;;  %v478_v26 = vld [vmem:[#allocation8 + $0xb8] sm:$0xff] }
 0x166   :  { %678 = vmatmul.f32.gmra.mxu0 %v9838_v38  ;;  %719 = vmatmul.f32.gmra.mxu1 %v9841_v54  ;;  %v574_v29 = vld [vmem:[#allocation8 + $0x3b8] sm:$0xff] }
 0x167   :  { %760 = vmatmul.f32.gmra.mxu2 %v9838_v38  ;;  %801 = vmatmul.f32.gmra.mxu3 %v9841_v54 }
 0x168   :  { %1017 = vmatpush.msra.mxu1 %v639_v5  ;;  %1058 = vmatpush.msra.mxu2 %v544_v6  ;;  %v471_v5 = vld [vmem:[#allocation8 + $0x80] sm:$0xff] }
 0x169   :  { %1099 = vmatpush.msra.mxu3 %v640_v7  ;;  %977 = vmatpush.msra.mxu0 %v537_v60  ;;  %v567_v6 = vld [vmem:[#allocation8 + $0x380] sm:$0xff]  ;;  %v472_v7 = vld [vmem:[#allocation8 + $0x88] sm:$0xff] }
 0x16a   :  { %1018 = vmatpush.msra.mxu1 %v633_v61  ;;  %1059 = vmatpush.msra.mxu2 %v538_v11  ;;  %v568_v60 = vld [vmem:[#allocation8 + $0x388] sm:$0xff]  ;;  %v465_v61 = vld [vmem:[#allocation8 + $0x50] sm:$0xff] }
 0x16b   :  { %1100 = vmatpush.msra.mxu3 %v634_v2  ;;  %978 = vmatpush.msra.mxu0 %v531_v14  ;;  %v561_v11 = vld [vmem:[#allocation8 + $0x350] sm:$0xff]  ;;  %v466_v2 = vld [vmem:[#allocation8 + $0x58] sm:$0xff] }
 0x16c   :  { %1019 = vmatpush.msra.mxu1 %v627_v12  ;;  %1060 = vmatpush.msra.mxu2 %v532_v3  ;;  %v562_v14 = vld [vmem:[#allocation8 + $0x358] sm:$0xff]  ;;  %v459_v12 = vld [vmem:[#allocation8 + $0x20] sm:$0xff] }
 0x16d   :  { %1101 = vmatpush.msra.mxu3 %v628_v0  ;;  %979 = vmatpush.msra.mxu0 %v525_v52  ;;  %v555_v3 = vld [vmem:[#allocation8 + $0x320] sm:$0xff]  ;;  %v460_v0 = vld [vmem:[#allocation8 + $0x28] sm:$0xff] }
 0x16e   :  { %681 = vmatmul.f32.gmra.mxu0 %v9853_v53  ;;  %722 = vmatmul.f32.gmra.mxu1 %v9856_v8  ;;  %v556_v52 = vld [vmem:[#allocation8 + $0x328] sm:$0xff] }
 0x16f   :  { %763 = vmatmul.f32.gmra.mxu2 %v9853_v53  ;;  %804 = vmatmul.f32.gmra.mxu3 %v9856_v8 }
 0x170   :  { %1020 = vmatpush.msra.mxu1 %v621_v36  ;;  %1061 = vmatpush.msra.mxu2 %v526_v1 }
 0x171   :  { %1102 = vmatpush.msra.mxu3 %v622_v15  ;;  %980 = vmatpush.msra.mxu0 %v519_v17 }
 0x172   :  { %1021 = vmatpush.msra.mxu1 %v615_v22  ;;  %1062 = vmatpush.msra.mxu2 %v520_v31 }
 0x173   :  { %1103 = vmatpush.msra.mxu3 %v616_v32  ;;  %981 = vmatpush.msra.mxu0 %v513_v18 }
 0x174   :  { %1022 = vmatpush.msra.mxu1 %v609_v34  ;;  %1063 = vmatpush.msra.mxu2 %v514_v46 }
 0x175   :  { %1104 = vmatpush.msra.mxu3 %v610_v13  ;;  %982 = vmatpush.msra.mxu0 %v507_v37 }
 0x176   :  { %684 = vmatmul.f32.gmra.mxu0 %v9867_v59  ;;  %725 = vmatmul.f32.gmra.mxu1 %v9870_v27 }
 0x177   :  { %766 = vmatmul.f32.gmra.mxu2 %v9867_v59  ;;  %807 = vmatmul.f32.gmra.mxu3 %v9870_v27 }
 0x178   :  { %1023 = vmatpush.msra.mxu1 %v603_v40  ;;  %1064 = vmatpush.msra.mxu2 %v508_v41 }
 0x179   :  { %1105 = vmatpush.msra.mxu3 %v604_v23  ;;  %983 = vmatpush.msra.mxu0 %v501_v39 }
 0x17a   :  { %1024 = vmatpush.msra.mxu1 %v597_v44  ;;  %1065 = vmatpush.msra.mxu2 %v502_v45 }
 0x17b   :  { %1106 = vmatpush.msra.mxu3 %v598_v24  ;;  %984 = vmatpush.msra.mxu0 %v495_v62 }
 0x17c   :  { %1025 = vmatpush.msra.mxu1 %v591_v63  ;;  %1066 = vmatpush.msra.mxu2 %v496_v48 }
 0x17d   :  { %1107 = vmatpush.msra.mxu3 %v592_v21  ;;  %985 = vmatpush.msra.mxu0 %v489_v49 }
 0x17e   :  { %827 = vmatmul.f32.vlgmr.msrb.gmra.mxu0 %v9690_v42  ;;  %868 = vmatmul.f32.vlgmr.msrb.gmra.mxu1 %v9693_v43 }
 0x17f   :  { %909 = vmatmul.f32.vlgmr.msrb.gmra.mxu2 %v9690_v42  ;;  %950 = vmatmul.f32.vlgmr.msrb.gmra.mxu3 %v9693_v43 }
 0x180   :  { %1026 = vmatpush.msra.mxu1 %v585_v50  ;;  %1067 = vmatpush.msra.mxu2 %v490_v51 }
 0x181   :  { %1108 = vmatpush.msra.mxu3 %v586_v55  ;;  %986 = vmatpush.msra.mxu0 %v483_v58 }
 0x182   :  { %1027 = vmatpush.msra.mxu1 %v579_v19  ;;  %1068 = vmatpush.msra.mxu2 %v484_v56 }
 0x183   :  { %1109 = vmatpush.msra.mxu3 %v580_v28  ;;  %987 = vmatpush.msra.mxu0 %v477_v16 }
 0x184   :  { %1028 = vmatpush.msra.mxu1 %v573_v25  ;;  %1069 = vmatpush.msra.mxu2 %v478_v26 }
 0x185   :  { %1110 = vmatpush.msra.mxu3 %v574_v29  ;;  %988 = vmatpush.msra.mxu0 %v471_v5 }
 0x186   :  { %830 = vmatmul.f32.gmra.mxu0 %v9727_v20  ;;  %871 = vmatmul.f32.gmra.mxu1 %v9730_v33 }
 0x187   :  { %912 = vmatmul.f32.gmra.mxu2 %v9727_v20  ;;  %953 = vmatmul.f32.gmra.mxu3 %v9730_v33 }
 0x188   :  { %1029 = vmatpush.msra.mxu1 %v567_v6  ;;  %1070 = vmatpush.msra.mxu2 %v472_v7 }
 0x189   :  { %1111 = vmatpush.msra.mxu3 %v568_v60  ;;  %989 = vmatpush.msra.mxu0 %v465_v61 }
 0x18a   :  { %1030 = vmatpush.msra.mxu1 %v561_v11  ;;  %1071 = vmatpush.msra.mxu2 %v466_v2 }
 0x18b   :  { %1112 = vmatpush.msra.mxu3 %v562_v14  ;;  %990 = vmatpush.msra.mxu0 %v459_v12 }
 0x18c   :  { %1031 = vmatpush.msra.mxu1 %v555_v3  ;;  %1072 = vmatpush.msra.mxu2 %v460_v0 }
 0x18d   :  { %1113 = vmatpush.msra.mxu3 %v556_v52 }
 0x18e   :  { %833 = vmatmul.f32.gmra.mxu0 %v9758_v4  ;;  %874 = vmatmul.f32.gmra.mxu1 %v9761_v57 }
 0x18f   :  { %915 = vmatmul.f32.gmra.mxu2 %v9758_v4  ;;  %956 = vmatmul.f32.gmra.mxu3 %v9761_v57 }
 0x196   :  { %836 = vmatmul.f32.gmra.mxu0 %v9786_v47  ;;  %877 = vmatmul.f32.gmra.mxu1 %v9789_v35 }
 0x197   :  { %918 = vmatmul.f32.gmra.mxu2 %v9786_v47  ;;  %959 = vmatmul.f32.gmra.mxu3 %v9789_v35 }
 0x19e   :  { %839 = vmatmul.f32.gmra.mxu0 %v9814_v9  ;;  %880 = vmatmul.f32.gmra.mxu1 %v9817_v10 }
 0x19f   :  { %921 = vmatmul.f32.gmra.mxu2 %v9814_v9  ;;  %962 = vmatmul.f32.gmra.mxu3 %v9817_v10 }
 0x1a6   :  { %842 = vmatmul.f32.gmra.mxu0 %v9838_v38  ;;  %883 = vmatmul.f32.gmra.mxu1 %v9841_v54 }
 0x1a7   :  { %924 = vmatmul.f32.gmra.mxu2 %v9838_v38  ;;  %965 = vmatmul.f32.gmra.mxu3 %v9841_v54 }
 0x1ae   :  { %845 = vmatmul.f32.gmra.mxu0 %v9853_v53  ;;  %886 = vmatmul.f32.gmra.mxu1 %v9856_v8 }
 0x1af   :  { %927 = vmatmul.f32.gmra.mxu2 %v9853_v53  ;;  %968 = vmatmul.f32.gmra.mxu3 %v9856_v8 }
 0x1b6   :  { %848 = vmatmul.f32.gmra.mxu0 %v9867_v59  ;;  %889 = vmatmul.f32.gmra.mxu1 %v9870_v27 }
 0x1b7   :  { %930 = vmatmul.f32.gmra.mxu2 %v9867_v59  ;;  %971 = vmatmul.f32.gmra.mxu3 %v9870_v27 }
 0x1ba   :  { %v9908_v36 = vpop.f32.mrf.mxu0  ;;  %v9910_v1 = vpop.f32.mrf.mxu1 }
 0x1be   :  { %991 = vmatmul.f32.vlgmr.msra.gmra.mxu0 %v9690_v42  ;;  %1032 = vmatmul.f32.vlgmr.msra.gmra.mxu1 %v9693_v43 }
 0x1bf   :  { %1073 = vmatmul.f32.vlgmr.msra.gmra.mxu2 %v9690_v42  ;;  %1114 = vmatmul.f32.vlgmr.msra.gmra.mxu3 %v9693_v43 }
 0x1c1   :  { %v9916_v15 = vpop.f32.mrf.mxu2  ;;  %v9936_v43 = vpop.f32.mrf.mxu3 }
 0x1c3   :  { %v9918_v17 = vpop.f32.mrf.mxu0  ;;  %v9920_v22 = vpop.f32.mrf.mxu1 }
 0x1c4   :  { %v709_v51 = vadd.f32 %v9920_v22, %v9918_v17 }
 0x1c6   :  { %994 = vmatmul.f32.gmra.mxu0 %v9727_v20  ;;  %1035 = vmatmul.f32.gmra.mxu1 %v9730_v33  ;;  %v10020_v58 = vmul.f32 0.17677669, %v709_v51 }
 0x1c7   :  { %1076 = vmatmul.f32.gmra.mxu2 %v9727_v20  ;;  %1117 = vmatmul.f32.gmra.mxu3 %v9730_v33 }
 0x1ca   :  { %v9930_v42 = vpop.f32.mrf.mxu2 }
 0x1cb   :  { %v9926_v31 = vpop.f32.mrf.mxu0  ;;  %v9928_v32 = vpop.f32.mrf.mxu1  ;;  %13293 = vst [vmem:[#allocation28_spill] sm:$0xff] %v9930_v42 }
 0x1cc   :  { %v712_v16 = vadd.f32 %v9928_v32, %v9926_v31 }
 0x1ce   :  { %997 = vmatmul.f32.gmra.mxu0 %v9758_v4  ;;  %1038 = vmatmul.f32.gmra.mxu1 %v9761_v57  ;;  %v10036_v29 = vmul.f32 0.17677669, %v712_v16 }
 0x1cf   :  { %1079 = vmatmul.f32.gmra.mxu2 %v9758_v4  ;;  %1120 = vmatmul.f32.gmra.mxu3 %v9761_v57  ;;  %v9952_v57 = vpop.f32.mrf.mxu3 }
 0x1d0   :  { %13294 = vst [vmem:[#allocation29_spill] sm:$0xff] %v9952_v57 }
 0x1d2   :  { %v9942_v33 = vpop.f32.mrf.mxu2 }
 0x1d3   :  { %v9938_v18 = vpop.f32.mrf.mxu0  ;;  %v9940_v20 = vpop.f32.mrf.mxu1 }
 0x1d4   :  { %v715_v60 = vadd.f32 %v9940_v20, %v9938_v18 }
 0x1d6   :  { %1000 = vmatmul.f32.gmra.mxu0 %v9786_v47  ;;  %1041 = vmatmul.f32.gmra.mxu1 %v9789_v35  ;;  %v10046_v11 = vmul.f32 0.17677669, %v715_v60 }
 0x1d7   :  { %1082 = vmatmul.f32.gmra.mxu2 %v9786_v47  ;;  %1123 = vmatmul.f32.gmra.mxu3 %v9789_v35  ;;  %v9964_v35 = vpop.f32.mrf.mxu3 }
 0x1da   :  { %v9958_v46 = vpop.f32.mrf.mxu2 }
 0x1db   :  { %v9948_v34 = vpop.f32.mrf.mxu0  ;;  %v9950_v4 = vpop.f32.mrf.mxu1  ;;  %13295 = vst [vmem:[#allocation30_spill] sm:$0xff] %v9958_v46 }
 0x1dc   :  { %v718_v0 = vadd.f32 %v9950_v4, %v9948_v34 }
 0x1de   :  { %1003 = vmatmul.f32.gmra.mxu0 %v9814_v9  ;;  %1044 = vmatmul.f32.gmra.mxu1 %v9817_v10 }
 0x1df   :  { %1085 = vmatmul.f32.gmra.mxu2 %v9814_v9  ;;  %1126 = vmatmul.f32.gmra.mxu3 %v9817_v10  ;;  %v9980_v40 = vpop.f32.mrf.mxu3 }
 0x1e0   :  { %13296 = vst [vmem:[#allocation31_spill] sm:$0xff] %v9980_v40 }
 0x1e2   :  { %v9970_v37 = vpop.f32.mrf.mxu2 }
 0x1e3   :  { %v9960_v13 = vpop.f32.mrf.mxu0  ;;  %v9962_v47 = vpop.f32.mrf.mxu1 }
 0x1e4   :  { %v721_v31 = vadd.f32 %v9962_v47, %v9960_v13 }
 0x1e6   :  { %1006 = vmatmul.f32.gmra.mxu0 %v9838_v38  ;;  %1047 = vmatmul.f32.gmra.mxu1 %v9841_v54  ;;  %v10072_v18 = vmul.f32 0.17677669, %v721_v31 }
 0x1e7   :  { %1088 = vmatmul.f32.gmra.mxu2 %v9838_v38  ;;  %1129 = vmatmul.f32.gmra.mxu3 %v9841_v54  ;;  %v9992_v23 = vpop.f32.mrf.mxu3 }
 0x1ea   :  { %v9986_v54 = vpop.f32.mrf.mxu2 }
 0x1eb   :  { %v9972_v9 = vpop.f32.mrf.mxu0  ;;  %v9974_v10 = vpop.f32.mrf.mxu1  ;;  %13297 = vst [vmem:[#allocation32_spill] sm:$0xff] %v9986_v54 }
 0x1ee   :  { %1009 = vmatmul.f32.gmra.mxu0 %v9853_v53  ;;  %1050 = vmatmul.f32.gmra.mxu1 %v9856_v8 }
 0x1ef   :  { %1091 = vmatmul.f32.gmra.mxu2 %v9853_v53  ;;  %1132 = vmatmul.f32.gmra.mxu3 %v9856_v8  ;;  %v9996_v24 = vpop.f32.mrf.mxu3 }
 0x1f0   :  { %13299 = vst [vmem:[#allocation34_spill] sm:$0xff] %v9996_v24 }
 0x1f2   :  { %v9994_v39 = vpop.f32.mrf.mxu2 }
 0x1f3   :  { %v9982_v41 = vpop.f32.mrf.mxu0  ;;  %v9984_v38 = vpop.f32.mrf.mxu1  ;;  %13298 = vst [vmem:[#allocation33_spill] sm:$0xff] %v9994_v39 }
 0x1f6   :  { %1012 = vmatmul.f32.gmra.mxu0 %v9867_v59  ;;  %1053 = vmatmul.f32.gmra.mxu1 %v9870_v27 }
 0x1f7   :  { %1094 = vmatmul.f32.gmra.mxu2 %v9867_v59  ;;  %1135 = vmatmul.f32.gmra.mxu3 %v9870_v27  ;;  %v706_v59 = vadd.f32 %v9910_v1, %v9908_v36  ;;  %v10014_v50 = vpop.f32.mrf.mxu3  ;;  %v10062_v36 = vmul.f32 0.17677669, %v718_v0 }
 0x1f8   :  { %13301 = vst [vmem:[#allocation36_spill] sm:$0xff] %v10014_v50 }
 0x1f9   :  { %v10010_v48 = vmul.f32 0.17677669, %v706_v59 }
 0x1fa   :  { %v10004_v27 = vpop.f32.mrf.mxu2 }
 0x1fb   :  { %v828_v53 = vpop.f32.mrf.mxu0  ;;  %v869_v8 = vpop.f32.mrf.mxu1  ;;  %13300 = vst [vmem:[#allocation35_spill] sm:$0xff] %v10004_v27 }
 0x1fc   :  { %v10006_v63 = vadd.f32 %v869_v8, %v828_v53  ;;  %v724_v8 = vadd.f32 %v9974_v10, %v9972_v9 }
 0x1ff   :  { %v10030_v25 = vpop.f32.mrf.mxu3 }
 0x200   :  { %13302 = vst [vmem:[#allocation37_spill] sm:$0xff] %v10030_v25 }
 0x202   :  { %v10018_v55 = vpop.f32.mrf.mxu2 }
 0x203   :  { %v831_v44 = vpop.f32.mrf.mxu0  ;;  %v872_v45 = vpop.f32.mrf.mxu1 }
 0x204   :  { %v9998_v62 = vadd.f32 %v872_v45, %v831_v44  ;;  %v10090_v44 = vmul.f32 0.17677669, %v724_v8 }
 0x206   :  { %8245 = vmatpush.xpose.msk.msrb.mxu0 %vm1147_vm9, %v9998_v62 }
 0x207   :  { %v10044_v61 = vpop.f32.mrf.mxu3 }
 0x20a   :  { %8246 = vmatpush.xpose.msk.msrb.mxu0 %vm1147_vm9, %v10006_v63  ;;  %v10038_v7 = vpop.f32.mrf.mxu2 }
 0x20b   :  { %v834_v21 = vpop.f32.mrf.mxu0  ;;  %v875_v49 = vpop.f32.mrf.mxu1 }
 0x20c   :  { %v10032_v26 = vadd.f32 %v875_v49, %v834_v21  ;;  %v727_v21 = vadd.f32 %v9984_v38, %v9982_v41 }
 0x20d   :  { %8247 = vmatmul.msk.f32.vlgmr.msrb.gmra.mxu0 %vm1147_vm9, %v10010_v48 }
 0x20e   :  { %v10098_v9 = vmul.f32 0.17677669, %v727_v21 }
 0x20f   :  { %v10064_v22 = vpop.f32.mrf.mxu3 }
 0x212   :  { %v10052_v3 = vpop.f32.mrf.mxu2 }
 0x213   :  { %v837_v19 = vpop.f32.mrf.mxu0  ;;  %v878_v56 = vpop.f32.mrf.mxu1  ;;  %13303 = vst [vmem:[#allocation38_spill] sm:$0xff] %v10052_v3 }
 0x214   :  { %v10022_v28 = vadd.f32 %v878_v56, %v837_v19 }
 0x215   :  { %8248 = vmatmul.msk.f32.gmra.mxu0 %vm1147_vm9, %v10020_v58 }
 0x216   :  { %8249 = vmatpush.xpose.msk.msrb.mxu1 %vm1147_vm9, %v10022_v28 }
 0x217   :  { %v10078_v53 = vpop.f32.mrf.mxu3 }
 0x218   :  { %13305 = vst [vmem:[#allocation40_spill] sm:$0xff] %v10078_v53 }
 0x21a   :  { %8250 = vmatpush.xpose.msk.msrb.mxu1 %vm1147_vm9, %v10032_v26  ;;  %v10070_v32 = vpop.f32.mrf.mxu2 }
 0x21b   :  { %v840_v5 = vpop.f32.mrf.mxu0  ;;  %v881_v6 = vpop.f32.mrf.mxu1  ;;  %13304 = vst [vmem:[#allocation39_spill] sm:$0xff] %v10070_v32 }
 0x21c   :  { %v10058_v52 = vadd.f32 %v881_v6, %v840_v5 }
 0x21d   :  { %8251 = vmatmul.msk.f32.vlgmr.msrb.gmra.mxu1 %vm1147_vm9, %v10036_v29 }
 0x21f   :  { %v10096_v49 = vpop.f32.mrf.mxu3 }
 0x220   :  { %13306 = vst [vmem:[#allocation41_spill] sm:$0xff] %v10096_v49 }
 0x222   :  { %v10086_v47 = vpop.f32.mrf.mxu2 }
 0x223   :  { %v843_v2 = vpop.f32.mrf.mxu0  ;;  %v884_v14 = vpop.f32.mrf.mxu1 }
 0x224   :  { %v10048_v12 = vadd.f32 %v884_v14, %v843_v2 }
 0x225   :  { %8252 = vmatmul.msk.f32.gmra.mxu1 %vm1147_vm9, %v10046_v11 }
 0x226   :  { %8253 = vmatpush.xpose.msk.msrb.mxu2 %vm1147_vm9, %v10048_v12 }
 0x227   :  { %v10106_v6 = vpop.f32.mrf.mxu3 }
 0x22a   :  { %8254 = vmatpush.xpose.msk.msrb.mxu2 %vm1147_vm9, %v10058_v52  ;;  %v10100_v19 = vpop.f32.mrf.mxu2 }
 0x22b   :  { %v846_v1 = vpop.f32.mrf.mxu0  ;;  %v887_v17 = vpop.f32.mrf.mxu1 }
 0x22c   :  { %v10084_v13 = vadd.f32 %v887_v17, %v846_v1 }
 0x22d   :  { %8255 = vmatmul.msk.f32.vlgmr.msrb.gmra.mxu2 %vm1147_vm9, %v10062_v36 }
 0x22f   :  { %v10110_v0 = vpop.f32.mrf.mxu3 }
 0x232   :  { %v10108_v60 = vpop.f32.mrf.mxu2 }
 0x233   :  { %v849_v20 = vpop.f32.mrf.mxu0  ;;  %v890_v34 = vpop.f32.mrf.mxu1  ;;  %13307 = vst [vmem:[#allocation42_spill] sm:$0xff] %v10108_v60 }
 0x234   :  { %v10074_v4 = vadd.f32 %v890_v34, %v849_v20 }
 0x235   :  { %8256 = vmatmul.msk.f32.gmra.mxu2 %vm1147_vm9, %v10072_v18 }
 0x236   :  { %8257 = vmatpush.xpose.msk.msrb.mxu3 %vm1147_vm9, %v10074_v4 }
 0x23a   :  { %8258 = vmatpush.xpose.msk.msrb.mxu3 %vm1147_vm9, %v10084_v13  ;;  %v10114_v20 = vpop.f32.mrf.mxu2 }
 0x23b   :  { %v992_v45 = vpop.f32.mrf.mxu0  ;;  %v1033_v59 = vpop.f32.mrf.mxu1  ;;  %13308 = vst [vmem:[#allocation43_spill] sm:$0xff] %v10114_v20 }
 0x23c   :  { %v1034_v56 = vadd.f32 %v1033_v59, %v992_v45  ;;  %v10116_v45 = vpop.f32.mrf.mxu3 }
 0x23d   :  { %8259 = vmatmul.msk.f32.vlgmr.msrb.gmra.mxu3 %vm1147_vm9, %v10090_v44  ;;  %13309 = vst [vmem:[#allocation44_spill] sm:$0xff] %v10116_v45 }
 0x242   :  { %v10118_v59 = vpop.f32.mrf.mxu2 }
 0x243   :  { %v995_v10 = vpop.f32.mrf.mxu0  ;;  %v1036_v51 = vpop.f32.mrf.mxu1 }
 0x244   :  { %v1037_v16 = vadd.f32 %v1036_v51, %v995_v10 }
 0x245   :  { %8260 = vmatmul.msk.f32.gmra.mxu3 %vm1147_vm9, %v10098_v9 }
 0x246   :  { %1501 = vmatpush.msra.mxu0 %v1037_v16  ;;  %v10104_v5 = vpack.i.bf16 %v1034_v56, %v1037_v16 }
 0x248   :  { %1502 = vmatpush.msra.mxu0 %v1034_v56 }
 0x24b   :  { %v998_v41 = vpop.f32.mrf.mxu0  ;;  %v1039_v38 = vpop.f32.mrf.mxu1 }
 0x24c   :  { %v1040_v1 = vadd.f32 %v1039_v38, %v998_v41  ;;  %v10122_v41 = vpop.f32.mrf.mxu3 }
 0x24d   :  { %13310 = vst [vmem:[#allocation45_spill] sm:$0xff] %v10122_v41 }
 0x253   :  { %v1001_v2 = vpop.f32.mrf.mxu0  ;;  %v1042_v14 = vpop.f32.mrf.mxu1 }
 0x254   :  { %v1043_v17 = vadd.f32 %v1042_v14, %v1001_v2  ;;  %v10124_v14 = vpop.f32.mrf.mxu2 }
 0x256   :  { %1530 = vmatpush.msra.mxu1 %v1043_v17  ;;  %v10112_v31 = vpack.i.bf16 %v1040_v1, %v1043_v17 }
 0x258   :  { %1531 = vmatpush.msra.mxu1 %v1040_v1  ;;  %v10126_v1 = vpop.f32.mrf.mxu3 }
 0x259   :  { %13311 = vst [vmem:[#allocation46_spill] sm:$0xff] %v10126_v1 }
 0x25b   :  { %v1004_v34 = vpop.f32.mrf.mxu0  ;;  %v1045_v8 = vpop.f32.mrf.mxu1 }
 0x25c   :  { %v1046_v51 = vadd.f32 %v1045_v8, %v1004_v34  ;;  %v10128_v50 = vpop.f32.mrf.mxu2 }
 0x25d   :  { %13312 = vst [vmem:[#allocation47_spill] sm:$0xff] %v10128_v50 }
 0x260   :  { %v10132_v8 = vpop.f32.mrf.mxu3 }
 0x263   :  { %v1007_v21 = vpop.f32.mrf.mxu0  ;;  %v1048_v10 = vpop.f32.mrf.mxu1 }
 0x264   :  { %v1049_v56 = vadd.f32 %v1048_v10, %v1007_v21  ;;  %v10134_v21 = vpop.f32.mrf.mxu2 }
 0x265   :  { %13313 = vst [vmem:[#allocation48_spill] sm:$0xff] %v10134_v21 }
 0x266   :  { %1559 = vmatpush.msra.mxu2 %v1049_v56  ;;  %v10120_v16 = vpack.i.bf16 %v1046_v51, %v1049_v56 }
 0x268   :  { %1560 = vmatpush.msra.mxu2 %v1046_v51  ;;  %v10136_v10 = vpop.f32.mrf.mxu3 }
 0x269   :  { %13314 = vst [vmem:[#allocation49_spill] sm:$0xff] %v10136_v10 }
 0x26b   :  { %v1010_v38 = vpop.f32.mrf.mxu0  ;;  %v1051_v2 = vpop.f32.mrf.mxu1 }
 0x26c   :  { %v1052_v25 = vadd.f32 %v1051_v2, %v1010_v38  ;;  %v10138_v51 = vpop.f32.mrf.mxu2 }
 0x26d   :  { %13315 = vst [vmem:[#allocation50_spill] sm:$0xff] %v10138_v51 }
 0x273   :  { %v1013_v17 = vpop.f32.mrf.mxu0  ;;  %v1054_v30 = vpop.f32.mrf.mxu1 }
 0x274   :  { %v1055_v27 = vadd.f32 %v1054_v30, %v1013_v17  ;;  %v10141_v30 = vpop.f32.mrf.mxu3  ;;  %v10144_v2 = vpop.f32.mrf.mxu2 }
 0x275   :  { %13316 = vst [vmem:[#allocation51_spill] sm:$0xff] %v10141_v30 }
 0x276   :  { %1588 = vmatpush.msra.mxu3 %v1055_v27  ;;  %v10130_v34 = vpack.i.bf16 %v1052_v25, %v1055_v27  ;;  %13317 = vst [vmem:[#allocation52_spill] sm:$0xff] %v10144_v2 }
 0x278   :  { %1589 = vmatpush.msra.mxu3 %v1052_v25 }
 0x27c   :  { %v10146_v25 = vpop.f32.mrf.mxu3  ;;  %v10149_v54 = vpop.f32.mrf.mxu2 }
 0x27d   :  { %13318 = vst [vmem:[#allocation53_spill] sm:$0xff] %v10146_v25 }
 0x27e   :  { %13319 = vst [vmem:[#allocation54_spill] sm:$0xff] %v10149_v54 }
 0x284   :  { %v10155_v46 = vpop.f32.mrf.mxu3  ;;  %v10157_v45 = vpop.f32.mrf.mxu2 }
 0x285   :  { %13320 = vst [vmem:[#allocation55_spill] sm:$0xff] %v10155_v46 }
 0x286   :  { %13321 = vst [vmem:[#allocation56_spill] sm:$0xff] %v10157_v45 }
 0x28a   :  { %v1177_v56 = vpop.f32.mrf.mxu0 }
 0x28b   :  { %v1289_v39 = vsel %vm1288_vm10, %v1177_v56, -inf }
 0x28c   :  { %1290 = vmax.xlane.f32.xlu0 %v1289_v39  ;;  %v10159_v60 = vpop.f32.mrf.mxu3 }
 0x28d   :  { %13322 = vst [vmem:[#allocation57_spill] sm:$0xff] %v10159_v60 }
 0x292   :  { %v1180_v38 = vpop.f32.mrf.mxu0 }
 0x293   :  { %v1292_v27 = vsel %vm1288_vm10, %v1180_v38, -inf }
 0x294   :  { %1293 = vmax.xlane.f32.xlu2 %v1292_v27  ;;  %v10162_v50 = vpop.f32.mrf.mxu3 }
 0x295   :  { %13323 = vst [vmem:[#allocation58_spill] sm:$0xff] %v10162_v50 }
 0x29a   :  { %v1212_v17 = vpop.f32.mrf.mxu1 }
 0x29b   :  { %v1295_v24 = vsel %vm1288_vm10, %v1212_v17, -inf }
 0x29c   :  { %1296 = vmax.xlane.f32.xlu1 %v1295_v24 }
 0x2a2   :  { %v10151_v40 = vpop.f32.mrf.mxu1 }
 0x2a3   :  { %v1298_v39 = vsel %vm1288_vm10, %v10151_v40, -inf }
 0x2a4   :  { %1299 = vmax.xlane.f32.xlu2 %v1298_v39 }
 0x2b0   :  { %v1247_v27 = vpop.f32.mrf.mxu2 }
 0x2b1   :  { %v1301_v10 = vsel %vm1288_vm10, %v1247_v27, -inf }
 0x2b2   :  { %1302 = vmax.xlane.f32.xlu1 %v1301_v10 }
 0x2b8   :  { %v1250_v24 = vpop.f32.mrf.mxu2 }
 0x2b9   :  { %v1304_v54 = vsel %vm1288_vm10, %v1250_v24, -inf }
 0x2ba   :  { %1305 = vmax.xlane.f32.xlu2 %v1304_v54 }
 0x2c0   :  { %v1282_v41 = vpop.f32.mrf.mxu3 }
 0x2c1   :  { %v1307_v20 = vsel %vm1288_vm10, %v1282_v41, -inf }
 0x2c2   :  { %1308 = vmax.xlane.f32.xlu1 %v1307_v20 }
 0x2c8   :  { %v1285_v30 = vpop.f32.mrf.mxu3 }
 0x2c9   :  { %v1310_v39 = vsel %vm1288_vm10, %v1285_v30, -inf }
 0x2ca   :  { %1311 = vmax.xlane.f32.xlu0 %v1310_v39 }
 0x2ff   :  { %v1291_v45 = vpop.xlane.xlu0 %1290 }
 0x300   :  { %v1313_v60 = vsub.f32 %v1177_v56, %v1291_v45 }
 0x302   :  { %v1321_v21 = vmul.f32 1.442695, %v1313_v60 }
 0x304   :  { %8715 = vpow2.f32 %v1321_v21 }
 0x307   :  { %v1294_v53 = vpop.xlane.xlu2 %1293 }
 0x308   :  { %v1314_v10 = vsub.f32 %v1180_v38, %v1294_v53 }
 0x30a   :  { %v10167_v3 = vpop.eup %8715  ;;  %v1323_v50 = vmul.f32 1.442695, %v1314_v10 }
 0x30b   :  { %v1337_v54 = vsel %vm1288_vm10, %v10167_v3, 0.0 }
 0x30c   :  { %8717 = vpow2.f32 %v1323_v50  ;;  %1338 = vadd.xlane.f32.xlu2 %v1337_v54 }
 0x30f   :  { %v1297_v49 = vpop.xlane.xlu1 %1296 }
 0x310   :  { %v1315_v20 = vsub.f32 %v1212_v17, %v1297_v49 }
 0x312   :  { %v10171_v32 = vpop.eup %8717  ;;  %v1325_v25 = vmul.f32 1.442695, %v1315_v20 }
 0x313   :  { %v1340_v45 = vsel %vm1288_vm10, %v10171_v32, 0.0 }
 0x314   :  { %8719 = vpow2.f32 %v1325_v25  ;;  %1341 = vadd.xlane.f32.xlu1 %v1340_v45 }
 0x317   :  { %v1300_v25 = vpop.xlane.xlu2 %1299 }
 0x31a   :  { %v10175_v60 = vpop.eup %8719 }
 0x31b   :  { %v1343_v53 = vsel %vm1288_vm10, %v10175_v60, 0.0 }
 0x31c   :  { %1344 = vadd.xlane.f32.xlu1 %v1343_v53 }
 0x324   :  { %1679 = vrot.lane.b32.xlu2 %v10058_v52, %s9427_s8 }
 0x325   :  { %v1303_v50 = vpop.xlane.xlu1 %1302 }
 0x326   :  { %v1317_v49 = vsub.f32 %v1247_v27, %v1303_v50 }
 0x328   :  { %v1329_v21 = vmul.f32 1.442695, %v1317_v49 }
 0x32a   :  { %8721 = vpow2.f32 %v1329_v21  ;;  %v1316_v21 = vsub.f32 %v10151_v40, %v1300_v25 }
 0x32c   :  { %1677 = vrot.lane.b32.xlu2 %v10072_v18, %s9427_s8  ;;  %v1327_v51 = vmul.f32 1.442695, %v1316_v21 }
 0x32d   :  { %v1306_v17 = vpop.xlane.xlu2 %1305 }
 0x32e   :  { %v1318_v27 = vsub.f32 %v1250_v24, %v1306_v17 }
 0x330   :  { %v10183_v56 = vpop.eup %8721  ;;  %v1331_v39 = vmul.f32 1.442695, %v1318_v27 }
 0x331   :  { %v1349_v38 = vsel %vm1288_vm10, %v10183_v56, 0.0 }
 0x332   :  { %1350 = vadd.xlane.f32.xlu0 %v1349_v38  ;;  %8723 = vpow2.f32 %v1331_v39 }
 0x334   :  { %1603 = vrot.lane.b32.xlu2 %v9998_v62, %s9427_s8 }
 0x335   :  { %1675 = vrot.lane.b32.xlu1 %v10062_v36, %s9427_s8  ;;  %v1309_v54 = vpop.xlane.xlu1 %1308 }
 0x336   :  { %v1319_v20 = vsub.f32 %v1282_v41, %v1309_v54 }
 0x338   :  { %v10199_v10 = vpop.eup %8723  ;;  %v1333_v50 = vmul.f32 1.442695, %v1319_v20 }
 0x339   :  { %v1352_v45 = vsel %vm1288_vm10, %v10199_v10, 0.0 }
 0x33a   :  { %8725 = vpow2.f32 %v1333_v50 }
 0x33c   :  { %1601 = vrot.lane.b32.xlu2 %v10006_v63, %s9427_s8 }
 0x33d   :  { %v1312_v53 = vpop.xlane.xlu0 %1311 }
 0x33e   :  { %v1320_v49 = vsub.f32 %v1285_v30, %v1312_v53 }
 0x340   :  { %v1335_v38 = vmul.f32 1.442695, %v1320_v49  ;;  %v10204_v24 = vpop.eup %8725 }
 0x341   :  { %v1355_v17 = vsel %vm1288_vm10, %v10204_v24, 0.0 }
 0x342   :  { %8727 = vpow2.f32 %v1335_v38 }
 0x343   :  { %8729 = vpow2.f32 %v1327_v51 }
 0x344   :  { %1597 = vrot.lane.b32.xlu2 %v10010_v48, %s9427_s8 }
 0x346   :  { %1681 = vrot.lane.b32.xlu0 %v10048_v12, %s9427_s8 }
 0x348   :  { %v10208_v41 = vpop.eup %8727 }
 0x349   :  { %v10210_v27 = vpop.eup %8729  ;;  %v1358_v30 = vsel %vm1288_vm10, %v10208_v41, 0.0 }
 0x34a   :  { %v1346_v40 = vsel %vm1288_vm10, %v10210_v27, 0.0 }
 0x34c   :  { %1599 = vrot.lane.b32.xlu2 %v10020_v58, %s9427_s8 }
 0x35f   :  { %1353 = vadd.xlane.f32.xlu1 %v1352_v45 }
 0x370   :  { %1356 = vadd.xlane.f32.xlu0 %v1355_v17 }
 0x375   :  { %1359 = vadd.xlane.f32.xlu2 %v1358_v30 }
 0x378   :  { %1720 = vrot.lane.b32.xlu1 %v10074_v4, %s9427_s8  ;;  %1347 = vadd.xlane.f32.xlu0 %v1346_v40 }
 0x37f   :  { %v1339_v51 = vpop.xlane.xlu2 %1338 }
 0x380   :  { %8731 = vrcp.f32 %v1339_v51  ;;  %1718 = vrot.lane.b32.xlu1 %v10084_v13, %s9427_s8  ;;  %v1372_v53 = vand.u32 2147483648, %v1339_v51  ;;  %v1370_v49 = vand.u32 2147483647, %v1339_v51  ;;  %vm1366_vm12 = vweird.f32 %v1339_v51 }
 0x382   :  { %v1373_v17 = vor.u32 1.1754944e-38, %v1372_v53  ;;  %vm1371_vm14 = vcmp.eq.f32.partialorder %v1370_v49, 8.507059e+37 }
 0x386   :  { %v8732_v25 = vpop.eup %8731 }
 0x387   :  { %v1362_v39 = vmul.f32 %v8732_v25, %v1339_v51  ;;  %v10220_v54 = vpop.permute.xlu2 %1679  ;;  %v1342_v20 = vpop.xlane.xlu1 %1341  ;;  %vm1367_vm11 = vweird.f32 %v8732_v25 }
 0x388   :  { %8733 = vrcp.f32 %v1342_v20  ;;  %1714 = vrot.lane.b32.xlu1 %v10090_v44, %s9427_s8  ;;  %vm1368_vm13 = vmor %vm1366_vm12, %vm1367_vm11  ;;  %v1387_v2 = vand.u32 2147483648, %v1342_v20  ;;  %v1385_v53 = vand.u32 2147483647, %v1342_v20  ;;  %vm1381_vm0 = vweird.f32 %v1342_v20 }
 0x389   :  { %v1363_v45 = vsub.f32 1.0, %v1362_v39 }
 0x38a   :  { %vm1386_vm2 = vcmp.eq.f32.partialorder %v1385_v53, 8.507059e+37 }
 0x38b   :  { %v1364_v50 = vmul.f32 %v8732_v25, %v1363_v45 }
 0x38c   :  { %1642 = vrot.lane.b32.xlu0 %v10022_v28, %s9427_s8 }
 0x38d   :  { %v1365_v21 = vadd.f32 %v8732_v25, %v1364_v50  ;;  %1640 = vrot.lane.b32.xlu2 %v10032_v26, %s9427_s8 }
 0x38e   :  { %v8734_v38 = vpop.eup %8733 }
 0x38f   :  { %v1369_v30 = vsel %vm1368_vm13, %v8732_v25, %v1365_v21  ;;  %v1377_v40 = vmul.f32 %v8734_v38, %v1342_v20  ;;  %v10228_v46 = vpop.permute.xlu2 %1677  ;;  %v1345_v39 = vpop.xlane.xlu1 %1344  ;;  %vm1382_vm15 = vweird.f32 %v8734_v38  ;;  %v1388_v21 = vor.u32 1.1754944e-38, %v1387_v2 }
 0x390   :  { %v1374_v45 = vsel %vm1371_vm14, %v1373_v17, %v1369_v30  ;;  %8735 = vrcp.f32 %v1345_v39  ;;  %1716 = vrot.lane.b32.xlu1 %v10098_v9, %s9427_s8  ;;  %vm1383_vm1 = vmor %vm1381_vm0, %vm1382_vm15  ;;  %vm1396_vm4 = vweird.f32 %v1345_v39 }
 0x391   :  { %v1375_v50 = vmul.f32 %v10167_v3, %v1374_v45  ;;  %v1378_v51 = vsub.f32 1.0, %v1377_v40 }
 0x393   :  { %v1379_v57 = vmul.f32 %v8734_v38, %v1378_v51  ;;  %8261 = vmatmul.msk.f32.vlgmr.msra.gmra.mxu0 %vm1288_vm10, %v1375_v50  ;;  %v1402_v50 = vand.u32 2147483648, %v1345_v39 }
 0x394   :  { %8458 = vrot.lane.b32.xlu0 %v10120_v16, %s9427_s8 }
 0x395   :  { %1638 = vrot.lane.b32.xlu2 %v10046_v11, %s9427_s8  ;;  %v1380_v25 = vadd.f32 %v8734_v38, %v1379_v57  ;;  %v1400_v57 = vand.u32 2147483647, %v1345_v39 }
 0x396   :  { %v8736_v49 = vpop.eup %8735 }
 0x397   :  { %v1392_v17 = vmul.f32 %v8736_v49, %v1345_v39  ;;  %v1604_v3 = vpop.permute.xlu2 %1603  ;;  %v1384_v30 = vsel %vm1383_vm1, %v8734_v38, %v1380_v25  ;;  %vm1397_vm3 = vweird.f32 %v8736_v49  ;;  %v1403_v38 = vor.u32 1.1754944e-38, %v1402_v50 }
 0x398   :  { %8269 = vmatpush.xpose.msk.msrb.mxu0 %vm1147_vm9, %v1604_v3  ;;  %1636 = vrot.lane.b32.xlu1 %v10036_v29, %s9427_s8  ;;  %v1389_v40 = vsel %vm1386_vm2, %v1388_v21, %v1384_v30  ;;  %vm1398_vm5 = vmor %vm1396_vm4, %vm1397_vm3  ;;  %vm1401_vm6 = vcmp.eq.f32.partialorder %v1400_v57, 8.507059e+37 }
 0x399   :  { %v1393_v45 = vsub.f32 1.0, %v1392_v17  ;;  %v1390_v20 = vmul.f32 %v10171_v32, %v1389_v40 }
 0x39b   :  { %v1394_v51 = vmul.f32 %v8736_v49, %v1393_v45  ;;  %8262 = vmatmul.msk.f32.gmra.mxu0 %vm1288_vm10, %v1390_v20 }
 0x39c   :  { %2177 = vrot.lane.b32.xlu0 %v10048_v12, %s9424_s27 }
 0x39d   :  { %v1395_v2 = vadd.f32 %v8736_v49, %v1394_v51  ;;  %8468 = vrot.lane.b32.xlu2 %v10130_v34, %s9427_s8 }
 0x39f   :  { %v1399_v53 = vsel %vm1398_vm5, %v8736_v49, %v1395_v2  ;;  %v1602_v25 = vpop.permute.xlu2 %1601 }
 0x3a0   :  { %v1404_v32 = vsel %vm1401_vm6, %v1403_v38, %v1399_v53  ;;  %8270 = vmatpush.xpose.msk.msrb.mxu0 %vm1147_vm9, %v1602_v25  ;;  %8463 = vrot.lane.b32.xlu1 %v10104_v5, %s9427_s8 }
 0x3a1   :  { %v1405_v21 = vmul.f32 %v10175_v60, %v1404_v32 }
 0x3a3   :  { %8263 = vmatmul.msk.f32.vlgmr.msra.gmra.mxu1 %vm1288_vm10, %v1405_v21 }
 0x3a5   :  { %v1351_v17 = vpop.xlane.xlu0 %1350 }
 0x3a6   :  { %8737 = vrcp.f32 %v1351_v17  ;;  %v1432_v45 = vand.u32 2147483648, %v1351_v17  ;;  %v1430_v50 = vand.u32 2147483647, %v1351_v17  ;;  %vm1426_vm8 = vweird.f32 %v1351_v17 }
 0x3a7   :  { %v1598_v39 = vpop.permute.xlu2 %1597  ;;  %v1676_v25 = vpop.permute.xlu1 %1675 }
 0x3a8   :  { %8271 = vmatmul.msk.f32.vlgmr.msrb.gmra.mxu0 %vm1147_vm9, %v1598_v39  ;;  %v1433_v60 = vor.u32 1.1754944e-38, %v1432_v45  ;;  %vm1431_vm12 = vcmp.eq.f32.partialorder %v1430_v50, 8.507059e+37 }
 0x3ac   :  { %v8738_v3 = vpop.eup %8737 }
 0x3ad   :  { %v1422_v30 = vmul.f32 %v8738_v3, %v1351_v17  ;;  %vm1427_vm7 = vweird.f32 %v8738_v3 }
 0x3ae   :  { %vm1428_vm11 = vmor %vm1426_vm8, %vm1427_vm7 }
 0x3af   :  { %v1423_v49 = vsub.f32 1.0, %v1422_v30  ;;  %v1600_v40 = vpop.permute.xlu2 %1599 }
 0x3b0   :  { %8272 = vmatmul.msk.f32.gmra.mxu0 %vm1147_vm9, %v1600_v40 }
 0x3b1   :  { %v1424_v20 = vmul.f32 %v8738_v3, %v1423_v49 }
 0x3b3   :  { %v1425_v51 = vadd.f32 %v8738_v3, %v1424_v20 }
 0x3b5   :  { %v1429_v57 = vsel %vm1428_vm11, %v8738_v3, %v1425_v51 }
 0x3b6   :  { %v1434_v2 = vsel %vm1431_vm12, %v1433_v60, %v1429_v57 }
 0x3b7   :  { %v1435_v38 = vmul.f32 %v10183_v56, %v1434_v2 }
 0x3b8   :  { %v1682_v53 = vpop.permute.xlu0 %1681 }
 0x3b9   :  { %8265 = vmatmul.msk.f32.vlgmr.msra.gmra.mxu2 %vm1288_vm10, %v1435_v38 }
 0x3ba   :  { %8277 = vmatpush.xpose.msk.msrb.mxu2 %vm1147_vm9, %v1682_v53 }
 0x3be   :  { %8278 = vmatpush.xpose.msk.msrb.mxu2 %vm1147_vm9, %v10220_v54 }
 0x3d2   :  { %v1354_v32 = vpop.xlane.xlu1 %1353 }
 0x3d3   :  { %8739 = vrcp.f32 %v1354_v32  ;;  %v1447_v30 = vand.u32 2147483648, %v1354_v32  ;;  %v1445_v49 = vand.u32 2147483647, %v1354_v32  ;;  %vm1441_vm14 = vweird.f32 %v1354_v32 }
 0x3d5   :  { %v1448_v40 = vor.u32 1.1754944e-38, %v1447_v30  ;;  %vm1446_vm0 = vcmp.eq.f32.partialorder %v1445_v49, 8.507059e+37 }
 0x3d9   :  { %v8740_v21 = vpop.eup %8739 }
 0x3da   :  { %v1437_v17 = vmul.f32 %v8740_v21, %v1354_v32  ;;  %vm1442_vm13 = vweird.f32 %v8740_v21 }
 0x3db   :  { %vm1443_vm15 = vmor %vm1441_vm14, %vm1442_vm13 }
 0x3dc   :  { %v1438_v39 = vsub.f32 1.0, %v1437_v17 }
 0x3de   :  { %v1439_v3 = vmul.f32 %v8740_v21, %v1438_v39 }
 0x3e0   :  { %v1440_v56 = vadd.f32 %v8740_v21, %v1439_v3 }
 0x3e2   :  { %v1444_v45 = vsel %vm1443_vm15, %v8740_v21, %v1440_v56 }
 0x3e3   :  { %v1357_v20 = vpop.xlane.xlu0 %1356  ;;  %v1449_v50 = vsel %vm1446_vm0, %v1448_v40, %v1444_v45 }
 0x3e4   :  { %8741 = vrcp.f32 %v1357_v20  ;;  %v1450_v54 = vmul.f32 %v10199_v10, %v1449_v50  ;;  %v1462_v32 = vand.u32 2147483648, %v1357_v20  ;;  %v1460_v39 = vand.u32 2147483647, %v1357_v20 }
 0x3e5   :  { %vm1456_vm2 = vweird.f32 %v1357_v20 }
 0x3e6   :  { %8266 = vmatmul.msk.f32.gmra.mxu2 %vm1288_vm10, %v1450_v54  ;;  %v1463_v56 = vor.u32 1.1754944e-38, %v1462_v32  ;;  %vm1461_vm4 = vcmp.eq.f32.partialorder %v1460_v39, 8.507059e+37 }
 0x3e8   :  { %v1360_v51 = vpop.xlane.xlu2 %1359 }
 0x3e9   :  { %8743 = vrcp.f32 %v1360_v51  ;;  %v1475_v1 = vand.u32 2147483647, %v1360_v51  ;;  %vm1471_vm6 = vweird.f32 %v1360_v51 }
 0x3ea   :  { %v8742_v60 = vpop.eup %8741  ;;  %v1721_v57 = vpop.permute.xlu1 %1720 }
 0x3eb   :  { %v1452_v2 = vmul.f32 %v8742_v60, %v1357_v20  ;;  %8281 = vmatpush.xpose.msk.msrb.mxu3 %vm1147_vm9, %v1721_v57  ;;  %v1348_v38 = vpop.xlane.xlu0 %1347  ;;  %vm1457_vm1 = vweird.f32 %v8742_v60  ;;  %vm1476_vm12 = vcmp.eq.f32.partialorder %v1475_v1, 8.507059e+37 }
 0x3ec   :  { %8745 = vrcp.f32 %v1348_v38  ;;  %vm1458_vm3 = vmor %vm1456_vm2, %vm1457_vm1  ;;  %v1417_v20 = vand.u32 2147483648, %v1348_v38  ;;  %v1415_v39 = vand.u32 2147483647, %v1348_v38  ;;  %vm1411_vm11 = vweird.f32 %v1348_v38 }
 0x3ed   :  { %v1453_v53 = vsub.f32 1.0, %v1452_v2 }
 0x3ee   :  { %8279 = vmatmul.msk.f32.vlgmr.msrb.gmra.mxu2 %vm1147_vm9, %v1676_v25  ;;  %vm1416_vm14 = vcmp.eq.f32.partialorder %v1415_v39, 8.507059e+37 }
 0x3ef   :  { %v8744_v21 = vpop.eup %8743  ;;  %v1454_v17 = vmul.f32 %v8742_v60, %v1453_v53  ;;  %v1477_v53 = vand.u32 2147483648, %v1360_v51 }
 0x3f0   :  { %v1467_v10 = vmul.f32 %v8744_v21, %v1360_v51  ;;  %v1641_v30 = vpop.permute.xlu2 %1640  ;;  %vm1472_vm5 = vweird.f32 %v8744_v21 }
 0x3f1   :  { %v1455_v3 = vadd.f32 %v8742_v60, %v1454_v17  ;;  %vm10265_vm7 = vmor %vm1471_vm6, %vm1472_vm5 }
 0x3f2   :  { %v8746_v49 = vpop.eup %8745  ;;  %v1468_v40 = vsub.f32 1.0, %v1467_v10  ;;  %v1719_v45 = vpop.permute.xlu1 %1718  ;;  %v1478_v10 = vor.u32 1.1754944e-38, %v1477_v53 }
 0x3f3   :  { %v1459_v50 = vsel %vm1458_vm3, %v8742_v60, %v1455_v3  ;;  %v1407_v54 = vmul.f32 %v8746_v49, %v1348_v38  ;;  %8282 = vmatpush.xpose.msk.msrb.mxu3 %vm1147_vm9, %v1719_v45  ;;  %vm1412_vm8 = vweird.f32 %v8746_v49 }
 0x3f4   :  { %v1464_v57 = vsel %vm1461_vm4, %v1463_v56, %v1459_v50  ;;  %v1469_v2 = vmul.f32 %v8744_v21, %v1468_v40  ;;  %vm1413_vm13 = vmor %vm1411_vm11, %vm1412_vm8  ;;  %v1418_v56 = vor.u32 1.1754944e-38, %v1417_v20 }
 0x3f5   :  { %v1465_v25 = vmul.f32 %v10204_v24, %v1464_v57  ;;  %v1408_v42 = vsub.f32 1.0, %v1407_v54 }
 0x3f6   :  { %v1470_v17 = vadd.f32 %v8744_v21, %v1469_v2  ;;  %8280 = vmatmul.msk.f32.gmra.mxu2 %vm1147_vm9, %v10228_v46 }
 0x3f7   :  { %v1409_v60 = vmul.f32 %v8746_v49, %v1408_v42  ;;  %8267 = vmatmul.msk.f32.vlgmr.msra.gmra.mxu3 %vm1288_vm10, %v1465_v25 }
 0x3f8   :  { %v1639_v3 = vpop.permute.xlu2 %1638  ;;  %v1474_v24 = vsel %vm10265_vm7, %v8744_v21, %v1470_v17 }
 0x3f9   :  { %v1410_v51 = vadd.f32 %v8746_v49, %v1409_v60  ;;  %v1479_v45 = vsel %vm1476_vm12, %v1478_v10, %v1474_v24 }
 0x3fa   :  { %v1715_v40 = vpop.permute.xlu1 %1714  ;;  %v1480_v54 = vmul.f32 %v10208_v41, %v1479_v45 }
 0x3fb   :  { %v1414_v42 = vsel %vm1413_vm13, %v8746_v49, %v1410_v51 }
 0x3fc   :  { %v1419_v50 = vsel %vm1416_vm14, %v1418_v56, %v1414_v42 }
 0x3fd   :  { %v1420_v46 = vmul.f32 %v10210_v27, %v1419_v50 }
 0x3fe   :  { %v1643_v57 = vpop.permute.xlu0 %1642 }
 0x3ff   :  { %8264 = vmatmul.msk.f32.gmra.mxu1 %vm1288_vm10, %v1420_v46  ;;  %8268 = vmatmul.msk.f32.gmra.mxu3 %vm1288_vm10, %v1480_v54 }
 0x400   :  { %8273 = vmatpush.xpose.msk.msrb.mxu1 %vm1147_vm9, %v1643_v57  ;;  %v8469_v38 = vpop.permute.xlu2 %8468 }
 0x401   :  { %v8470_v1 = vunpack.i.l.bf16 %v8469_v38  ;;  %v8471_v2 = vunpack.i.h.bf16 %v8469_v38 }
 0x402   :  { %v1717_v21 = vpop.permute.xlu1 %1716 }
 0x403   :  { %2084 = vmatpush.msra.mxu3 %v8470_v1 }
 0x404   :  { %8274 = vmatpush.xpose.msk.msrb.mxu1 %vm1147_vm9, %v1641_v30 }
 0x405   :  { %2085 = vmatpush.msra.mxu3 %v8471_v2 }
 0x406   :  { %v8459_v49 = vpop.permute.xlu0 %8458 }
 0x407   :  { %v8460_v53 = vunpack.i.l.bf16 %v8459_v49  ;;  %8283 = vmatmul.msk.f32.vlgmr.msrb.gmra.mxu3 %vm1147_vm9, %v1715_v40  ;;  %v8461_v41 = vunpack.i.h.bf16 %v8459_v49 }
 0x409   :  { %2047 = vmatpush.msra.mxu2 %v8460_v53 }
 0x40a   :  { %v1637_v27 = vpop.permute.xlu1 %1636 }
 0x40b   :  { %8275 = vmatmul.msk.f32.vlgmr.msrb.gmra.mxu1 %vm1147_vm9, %v1637_v27  ;;  %2048 = vmatpush.msra.mxu2 %v8461_v41 }
 0x40e   :  { %v2178_v25 = vpop.permute.xlu0 %2177 }
 0x40f   :  { %8284 = vmatmul.msk.f32.gmra.mxu3 %vm1147_vm9, %v1717_v21  ;;  %8301 = vmatpush.xpose.msk.msrb.mxu2 %vm1147_vm9, %v2178_v25 }
 0x410   :  { %v10284_v17 = vpop.f32.mrf.mxu0 }
 0x411   :  { %13326 = vst [vmem:[#allocation59_spill] sm:$0xff] %v10284_v17 }
 0x412   :  { %v8464_v20 = vpop.permute.xlu1 %8463 }
 0x413   :  { %v8465_v30 = vunpack.i.l.bf16 %v8464_v20  ;;  %8276 = vmatmul.msk.f32.gmra.mxu1 %vm1147_vm9, %v1639_v3  ;;  %v8466_v32 = vunpack.i.h.bf16 %v8464_v20 }
 0x415   :  { %1973 = vmatpush.msra.mxu0 %v8465_v30 }
 0x417   :  { %1974 = vmatpush.msra.mxu0 %v8466_v32 }
 0x418   :  { %v10287_v60 = vpop.f32.mrf.mxu0 }
 0x419   :  { %13327 = vst [vmem:[#allocation60_spill] sm:$0xff] %v10287_v60 }
 0x420   :  { %v10296_v42 = vpop.f32.mrf.mxu1 }
 0x421   :  { %13330 = vst [vmem:[#allocation63_spill] sm:$0xff] %v10296_v42 }
 0x425   :  { %v1630_v39 = vpop.f32.mrf.mxu0 }
 0x426   :  { %v1753_v10 = vsel %vm1288_vm10, %v1630_v39, -inf }
 0x427   :  { %1754 = vmax.xlane.f32.xlu0 %v1753_v10 }
 0x42d   :  { %v1633_v24 = vpop.f32.mrf.mxu0 }
 0x42e   :  { %v1756_v51 = vsel %vm1288_vm10, %v1633_v24, -inf }
 0x42f   :  { %1757 = vmax.xlane.f32.xlu2 %v1756_v51 }
 0x43c   :  { %v10291_v56 = vpop.f32.mrf.mxu2 }
 0x43d   :  { %13328 = vst [vmem:[#allocation61_spill] sm:$0xff] %v10291_v56 }
 0x469   :  { %v10293_v40 = vpop.f32.mrf.mxu2 }
 0x46a   :  { %13329 = vst [vmem:[#allocation62_spill] sm:$0xff] %v10293_v40 }
 0x471   :  { %v1708_v45 = vpop.f32.mrf.mxu2 }
 0x472   :  { %v1765_v3 = vsel %vm1288_vm10, %v1708_v45, -inf }
 0x473   :  { %1766 = vmax.xlane.f32.xlu1 %v1765_v3 }
 0x479   :  { %v1711_v27 = vpop.f32.mrf.mxu2 }
 0x47a   :  { %v10298_v50 = vpop.f32.mrf.mxu3  ;;  %v1768_v25 = vsel %vm1288_vm10, %v1711_v27, -inf }
 0x47b   :  { %13331 = vst [vmem:[#allocation64_spill] sm:$0xff] %v10298_v50 }
 0x47c   :  { %v10300_v46 = vpop.f32.mrf.mxu1 }
 0x47d   :  { %13332 = vst [vmem:[#allocation65_spill] sm:$0xff] %v10300_v46 }
 0x482   :  { %v10302_v54 = vpop.f32.mrf.mxu3 }
 0x483   :  { %13333 = vst [vmem:[#allocation66_spill] sm:$0xff] %v10302_v54 }
 0x488   :  { %v1669_v57 = vpop.f32.mrf.mxu1 }
 0x489   :  { %v1759_v38 = vsel %vm1288_vm10, %v1669_v57, -inf }
 0x48a   :  { %v10305_v1 = vpop.f32.mrf.mxu3  ;;  %1760 = vmax.xlane.f32.xlu0 %v1759_v38 }
 0x48b   :  { %v1771_v21 = vsel %vm1288_vm10, %v10305_v1, -inf }
 0x48c   :  { %1772 = vmax.xlane.f32.xlu1 %v1771_v21 }
 0x490   :  { %v1672_v2 = vpop.f32.mrf.mxu1 }
 0x491   :  { %v1762_v49 = vsel %vm1288_vm10, %v1672_v2, -inf }
 0x492   :  { %v10310_v53 = vpop.f32.mrf.mxu3  ;;  %1763 = vmax.xlane.f32.xlu2 %v1762_v49 }
 0x493   :  { %v1774_v41 = vsel %vm1288_vm10, %v10310_v53, -inf }
 0x494   :  { %1775 = vmax.xlane.f32.xlu1 %v1774_v41 }
 0x49a   :  { %1769 = vmax.xlane.f32.xlu2 %v1768_v25  ;;  %v1755_v20 = vpop.xlane.xlu0 %1754 }
 0x49b   :  { %v1777_v30 = vsub.f32 %v1630_v39, %v1755_v20 }
 0x49d   :  { %v1785_v32 = vmul.f32 1.442695, %v1777_v30 }
 0x49e   :  { %2175 = vrot.lane.b32.xlu0 %v10058_v52, %s9424_s27 }
 0x49f   :  { %8747 = vpow2.f32 %v1785_v32 }
 0x4a2   :  { %v1758_v10 = vpop.xlane.xlu2 %1757 }
 0x4a3   :  { %v1778_v51 = vsub.f32 %v1633_v24, %v1758_v10 }
 0x4a5   :  { %v10317_v3 = vpop.eup %8747  ;;  %v1787_v38 = vmul.f32 1.442695, %v1778_v51 }
 0x4a6   :  { %v1801_v21 = vsel %vm1288_vm10, %v10317_v3, 0.0 }
 0x4a7   :  { %8749 = vpow2.f32 %v1787_v38  ;;  %1802 = vadd.xlane.f32.xlu2 %v1801_v21 }
 0x4ad   :  { %v10321_v49 = vpop.eup %8749 }
 0x4ae   :  { %v1804_v39 = vsel %vm1288_vm10, %v10321_v49, 0.0 }
 0x4af   :  { %1805 = vadd.xlane.f32.xlu2 %v1804_v39 }
 0x4e6   :  { %v1767_v41 = vpop.xlane.xlu1 %1766 }
 0x4e7   :  { %v1781_v25 = vsub.f32 %v1708_v45, %v1767_v41 }
 0x4e9   :  { %v1793_v20 = vmul.f32 1.442695, %v1781_v25 }
 0x4eb   :  { %8751 = vpow2.f32 %v1793_v20 }
 0x4f1   :  { %v10325_v30 = vpop.eup %8751 }
 0x4f2   :  { %v1813_v24 = vsel %vm1288_vm10, %v10325_v30, 0.0 }
 0x4f3   :  { %1814 = vadd.xlane.f32.xlu1 %v1813_v24 }
 0x4fd   :  { %v1761_v32 = vpop.xlane.xlu0 %1760 }
 0x4fe   :  { %v1779_v10 = vsub.f32 %v1669_v57, %v1761_v32 }
 0x500   :  { %v1789_v51 = vmul.f32 1.442695, %v1779_v10 }
 0x502   :  { %8753 = vpow2.f32 %v1789_v51 }
 0x505   :  { %v1764_v38 = vpop.xlane.xlu2 %1763 }
 0x506   :  { %v1780_v25 = vsub.f32 %v1672_v2, %v1764_v38 }
 0x508   :  { %v10329_v21 = vpop.eup %8753  ;;  %v1791_v57 = vmul.f32 1.442695, %v1780_v25 }
 0x509   :  { %v1807_v39 = vsel %vm1288_vm10, %v10329_v21, 0.0 }
 0x50a   :  { %1808 = vadd.xlane.f32.xlu2 %v1807_v39 }
 0x50c   :  { %2171 = vrot.lane.b32.xlu1 %v10062_v36, %s9424_s27 }
 0x50d   :  { %v1770_v45 = vpop.xlane.xlu2 %1769 }
 0x50e   :  { %v1782_v41 = vsub.f32 %v1711_v27, %v1770_v45 }
 0x510   :  { %v1795_v20 = vmul.f32 1.442695, %v1782_v41  ;;  %v2176_v54 = vpop.permute.xlu0 %2175 }
 0x511   :  { %8302 = vmatpush.xpose.msk.msrb.mxu2 %vm1147_vm9, %v2176_v54 }
 0x512   :  { %8755 = vpow2.f32 %v1795_v20 }
 0x513   :  { %8757 = vpow2.f32 %v1791_v57 }
 0x514   :  { %8473 = vrot.lane.b32.xlu1 %v10112_v31, %s9427_s8 }
 0x518   :  { %v10338_v24 = vpop.eup %8755 }
 0x519   :  { %v1816_v32 = vsel %vm1288_vm10, %v10338_v24, 0.0  ;;  %v10344_v2 = vpop.eup %8757 }
 0x51a   :  { %1817 = vadd.xlane.f32.xlu0 %v1816_v32  ;;  %v1803_v10 = vpop.xlane.xlu2 %1802  ;;  %v1810_v27 = vsel %vm1288_vm10, %v10344_v2, 0.0 }
 0x51b   :  { %8759 = vrcp.f32 %v1803_v10  ;;  %v1836_v45 = vand.u32 2147483648, %v1803_v10  ;;  %v1834_v25 = vand.u32 2147483647, %v1803_v10  ;;  %vm1830_vm0 = vweird.f32 %v1803_v10 }
 0x51c   :  { %2173 = vrot.lane.b32.xlu1 %v10072_v18, %s9424_s27 }
 0x51d   :  { %v1837_v32 = vor.u32 1.1754944e-38, %v1836_v45  ;;  %vm1835_vm2 = vcmp.eq.f32.partialorder %v1834_v25, 8.507059e+37 }
 0x521   :  { %v8760_v54 = vpop.eup %8759 }
 0x522   :  { %v1826_v51 = vmul.f32 %v8760_v54, %v1803_v10  ;;  %1811 = vadd.xlane.f32.xlu0 %v1810_v27  ;;  %v1806_v38 = vpop.xlane.xlu2 %1805  ;;  %2099 = vrot.lane.b32.xlu2 %v9998_v62, %s9424_s27  ;;  %vm1831_vm15 = vweird.f32 %v8760_v54 }
 0x523   :  { %8761 = vrcp.f32 %v1806_v38  ;;  %vm1832_vm1 = vmor %vm1830_vm0, %vm1831_vm15  ;;  %v1851_v46 = vand.u32 2147483648, %v1806_v38  ;;  %v1849_v10 = vand.u32 2147483647, %v1806_v38  ;;  %vm1845_vm4 = vweird.f32 %v1806_v38 }
 0x524   :  { %v1827_v39 = vsub.f32 1.0, %v1826_v51  ;;  %2093 = vrot.lane.b32.xlu1 %v10010_v48, %s9424_s27 }
 0x525   :  { %v1852_v45 = vor.u32 1.1754944e-38, %v1851_v46  ;;  %vm1850_vm6 = vcmp.eq.f32.partialorder %v1849_v10, 8.507059e+37 }
 0x526   :  { %v1828_v41 = vmul.f32 %v8760_v54, %v1827_v39 }
 0x528   :  { %v1829_v20 = vadd.f32 %v8760_v54, %v1828_v41 }
 0x529   :  { %v8762_v57 = vpop.eup %8761 }
 0x52a   :  { %v1833_v50 = vsel %vm1832_vm1, %v8760_v54, %v1829_v20  ;;  %v1841_v27 = vmul.f32 %v8762_v57, %v1806_v38  ;;  %2097 = vrot.lane.b32.xlu2 %v10006_v63, %s9424_s27  ;;  %vm1846_vm3 = vweird.f32 %v8762_v57 }
 0x52b   :  { %v1838_v40 = vsel %vm1835_vm2, %v1837_v32, %v1833_v50  ;;  %vm1847_vm5 = vmor %vm1845_vm4, %vm1846_vm3 }
 0x52c   :  { %v1839_v51 = vmul.f32 %v10317_v3, %v1838_v40  ;;  %v1842_v56 = vsub.f32 1.0, %v1841_v27  ;;  %2210 = vrot.lane.b32.xlu1 %v10090_v44, %s9424_s27 }
 0x52e   :  { %v1843_v39 = vmul.f32 %v8762_v57, %v1842_v56  ;;  %8285 = vmatmul.msk.f32.vlgmr.msra.gmra.mxu0 %vm1288_vm10, %v1839_v51  ;;  %v1773_v56 = vpop.xlane.xlu1 %1772 }
 0x52f   :  { %v1783_v46 = vsub.f32 %v10305_v1, %v1773_v56 }
 0x530   :  { %v1844_v54 = vadd.f32 %v8762_v57, %v1843_v39 }
 0x532   :  { %2216 = vrot.lane.b32.xlu2 %v10074_v4, %s9424_s27  ;;  %v1848_v50 = vsel %vm1847_vm5, %v8762_v57, %v1844_v54 }
 0x533   :  { %v1853_v40 = vsel %vm1850_vm6, %v1852_v45, %v1848_v50 }
 0x534   :  { %v1854_v3 = vmul.f32 %v10321_v49, %v1853_v40  ;;  %2136 = vrot.lane.b32.xlu1 %v10032_v26, %s9424_s27  ;;  %v1797_v49 = vmul.f32 1.442695, %v1783_v46 }
 0x536   :  { %2138 = vrot.lane.b32.xlu0 %v10022_v28, %s9424_s27  ;;  %8286 = vmatmul.msk.f32.gmra.mxu0 %vm1288_vm10, %v1854_v3  ;;  %v1776_v38 = vpop.xlane.xlu1 %1775  ;;  %8763 = vpow2.f32 %v1797_v49 }
 0x537   :  { %v1784_v41 = vsub.f32 %v10310_v53, %v1776_v38 }
 0x53a   :  { %2214 = vrot.lane.b32.xlu2 %v10084_v13, %s9424_s27 }
 0x53c   :  { %v10386_v25 = vpop.eup %8763 }
 0x53e   :  { %8478 = vrot.lane.b32.xlu0 %v10120_v16, %s9424_s27 }
 0x542   :  { %2095 = vrot.lane.b32.xlu2 %v10020_v58, %s9424_s27 }
 0x546   :  { %2665 = vrot.lane.b32.xlu0 %v10048_v12, %s9428_s10  ;;  %v1799_v12 = vmul.f32 1.442695, %v1784_v41 }
 0x548   :  { %8765 = vpow2.f32 %v1799_v12 }
 0x54a   :  { %2212 = vrot.lane.b32.xlu2 %v10098_v9, %s9424_s27 }
 0x54e   :  { %2587 = vrot.lane.b32.xlu0 %v9998_v62, %s9428_s10  ;;  %v1819_v62 = vsel %vm1288_vm10, %v10386_v25, 0.0  ;;  %v10394_v1 = vpop.eup %8765 }
 0x552   :  { %2134 = vrot.lane.b32.xlu2 %v10046_v11, %s9424_s27 }
 0x556   :  { %2659 = vrot.lane.b32.xlu0 %v10062_v36, %s9428_s10  ;;  %v1822_v36 = vsel %vm1288_vm10, %v10394_v1, 0.0 }
 0x55a   :  { %8488 = vrot.lane.b32.xlu2 %v10130_v34, %s9424_s27 }
 0x55e   :  { %2585 = vrot.lane.b32.xlu0 %v10006_v63, %s9428_s10  ;;  %1820 = vadd.xlane.f32.xlu1 %v1819_v62 }
 0x562   :  { %2661 = vrot.lane.b32.xlu2 %v10072_v18, %s9428_s10 }
 0x566   :  { %1823 = vadd.xlane.f32.xlu1 %v1822_v36  ;;  %v1815_v53 = vpop.xlane.xlu1 %1814 }
 0x567   :  { %8767 = vrcp.f32 %v1815_v53  ;;  %v1896_v27 = vand.u32 2147483648, %v1815_v53  ;;  %v1894_v39 = vand.u32 2147483647, %v1815_v53  ;;  %vm1890_vm8 = vweird.f32 %v1815_v53 }
 0x569   :  { %v1897_v10 = vor.u32 1.1754944e-38, %v1896_v27  ;;  %vm1895_vm12 = vcmp.eq.f32.partialorder %v1894_v39, 8.507059e+37 }
 0x56d   :  { %v8768_v20 = vpop.eup %8767 }
 0x56e   :  { %v1886_v57 = vmul.f32 %v8768_v20, %v1815_v53  ;;  %vm1891_vm7 = vweird.f32 %v8768_v20 }
 0x56f   :  { %vm1892_vm11 = vmor %vm1890_vm8, %vm1891_vm7 }
 0x570   :  { %v1887_v32 = vsub.f32 1.0, %v1886_v57 }
 0x572   :  { %v1888_v51 = vmul.f32 %v8768_v20, %v1887_v32 }
 0x574   :  { %v1889_v63 = vadd.f32 %v8768_v20, %v1888_v51 }
 0x576   :  { %v1893_v18 = vsel %vm1892_vm11, %v8768_v20, %v1889_v63 }
 0x577   :  { %v1898_v54 = vsel %vm1895_vm12, %v1897_v10, %v1893_v18 }
 0x578   :  { %v1899_v45 = vmul.f32 %v10325_v30, %v1898_v54 }
 0x57a   :  { %8289 = vmatmul.msk.f32.vlgmr.msra.gmra.mxu2 %vm1288_vm10, %v1899_v45 }
 0x57d   :  { %v1809_v50 = vpop.xlane.xlu2 %1808 }
 0x57e   :  { %8769 = vrcp.f32 %v1809_v50  ;;  %v10400_v40 = vpop.permute.xlu1 %2171  ;;  %v1866_v41 = vand.u32 2147483648, %v1809_v50  ;;  %v1864_v62 = vand.u32 2147483647, %v1809_v50  ;;  %vm1860_vm14 = vweird.f32 %v1809_v50 }
 0x57f   :  { %2132 = vrot.lane.b32.xlu1 %v10036_v29, %s9424_s27 }
 0x580   :  { %v1867_v20 = vor.u32 1.1754944e-38, %v1866_v41  ;;  %vm1865_vm0 = vcmp.eq.f32.partialorder %v1864_v62, 8.507059e+37 }
 0x584   :  { %v8770_v3 = vpop.eup %8769 }
 0x585   :  { %v1856_v56 = vmul.f32 %v8770_v3, %v1809_v50  ;;  %v2100_v46 = vpop.permute.xlu2 %2099  ;;  %vm1861_vm13 = vweird.f32 %v8770_v3 }
 0x586   :  { %8293 = vmatpush.xpose.msk.msrb.mxu0 %vm1147_vm9, %v2100_v46  ;;  %v8474_v38 = vpop.permute.xlu1 %8473  ;;  %vm1862_vm15 = vmor %vm1860_vm14, %vm1861_vm13 }
 0x587   :  { %v1857_v49 = vsub.f32 1.0, %v1856_v56  ;;  %v8475_v12 = vunpack.i.l.bf16 %v8474_v38  ;;  %8483 = vrot.lane.b32.xlu1 %v10104_v5, %s9424_s27  ;;  %v8476_v36 = vunpack.i.h.bf16 %v8474_v38 }
 0x589   :  { %v1858_v30 = vmul.f32 %v8770_v3, %v1857_v49  ;;  %2010 = vmatpush.msra.mxu1 %v8475_v12 }
 0x58b   :  { %v1859_v53 = vadd.f32 %v8770_v3, %v1858_v30  ;;  %2011 = vmatpush.msra.mxu1 %v8476_v36 }
 0x58d   :  { %v1863_v57 = vsel %vm1862_vm15, %v8770_v3, %v1859_v53  ;;  %v2098_v32 = vpop.permute.xlu2 %2097  ;;  %v1818_v27 = vpop.xlane.xlu0 %1817 }
 0x58e   :  { %v1868_v51 = vsel %vm1865_vm0, %v1867_v20, %v1863_v57  ;;  %8771 = vrcp.f32 %v1818_v27  ;;  %8294 = vmatpush.xpose.msk.msrb.mxu0 %vm1147_vm9, %v2098_v32  ;;  %v2174_v63 = vpop.permute.xlu1 %2173  ;;  %v1911_v56 = vand.u32 2147483648, %v1818_v27  ;;  %vm1905_vm2 = vweird.f32 %v1818_v27 }
 0x58f   :  { %v1869_v39 = vmul.f32 %v10329_v21, %v1868_v51  ;;  %2663 = vrot.lane.b32.xlu1 %v10058_v52, %s9428_s10  ;;  %v1909_v52 = vand.u32 2147483647, %v1818_v27 }
 0x590   :  { %v1912_v38 = vor.u32 1.1754944e-38, %v1911_v56 }
 0x591   :  { %8287 = vmatmul.msk.f32.vlgmr.msra.gmra.mxu1 %vm1288_vm10, %v1869_v39  ;;  %vm1910_vm4 = vcmp.eq.f32.partialorder %v1909_v52, 8.507059e+37 }
 0x594   :  { %v8772_v10 = vpop.eup %8771 }
 0x595   :  { %v1901_v18 = vmul.f32 %v8772_v10, %v1818_v27  ;;  %v2217_v54 = vpop.permute.xlu2 %2216  ;;  %v1812_v45 = vpop.xlane.xlu0 %1811  ;;  %vm1906_vm1 = vweird.f32 %v8772_v10 }
 0x596   :  { %8773 = vrcp.f32 %v1812_v45  ;;  %8305 = vmatpush.xpose.msk.msrb.mxu3 %vm1147_vm9, %v2217_v54  ;;  %v2094_v3 = vpop.permute.xlu1 %2093  ;;  %vm1907_vm3 = vmor %vm1905_vm2, %vm1906_vm1  ;;  %v1881_v20 = vand.u32 2147483648, %v1812_v45  ;;  %v1879_v32 = vand.u32 2147483647, %v1812_v45  ;;  %vm1875_vm6 = vweird.f32 %v1812_v45 }
 0x597   :  { %v1902_v50 = vsub.f32 1.0, %v1901_v18  ;;  %8493 = vrot.lane.b32.xlu1 %v10112_v31, %s9424_s27  ;;  %8295 = vmatmul.msk.f32.vlgmr.msrb.gmra.mxu0 %vm1147_vm9, %v2094_v3 }
 0x598   :  { %v1882_v39 = vor.u32 1.1754944e-38, %v1881_v20  ;;  %vm1880_vm8 = vcmp.eq.f32.partialorder %v1879_v32, 8.507059e+37 }
 0x599   :  { %v1903_v21 = vmul.f32 %v8772_v10, %v1902_v50 }
 0x59b   :  { %v1904_v46 = vadd.f32 %v8772_v10, %v1903_v21 }
 0x59c   :  { %v8774_v49 = vpop.eup %8773 }
 0x59d   :  { %v1871_v41 = vmul.f32 %v8774_v49, %v1812_v45  ;;  %v2215_v12 = vpop.permute.xlu2 %2214  ;;  %v1908_v30 = vsel %vm1907_vm3, %v8772_v10, %v1904_v46  ;;  %vm1876_vm5 = vweird.f32 %v8774_v49 }
 0x59e   :  { %8306 = vmatpush.xpose.msk.msrb.mxu3 %vm1147_vm9, %v2215_v12  ;;  %v1913_v62 = vsel %vm1910_vm4, %v1912_v38, %v1908_v30  ;;  %v10421_v27 = vpop.permute.xlu1 %2210  ;;  %vm1877_vm7 = vmor %vm1875_vm6, %vm1876_vm5 }
 0x59f   :  { %v1872_v36 = vsub.f32 1.0, %v1871_v41  ;;  %v1914_v53 = vmul.f32 %v10338_v24, %v1913_v62  ;;  %2581 = vrot.lane.b32.xlu1 %v10010_v48, %s9428_s10 }
 0x5a1   :  { %v1873_v57 = vmul.f32 %v8774_v49, %v1872_v36  ;;  %8290 = vmatmul.msk.f32.gmra.mxu2 %vm1288_vm10, %v1914_v53 }
 0x5a3   :  { %v1874_v51 = vadd.f32 %v8774_v49, %v1873_v57 }
 0x5a5   :  { %v2096_v10 = vpop.permute.xlu2 %2095  ;;  %v1878_v18 = vsel %vm1877_vm7, %v8774_v49, %v1874_v51 }
 0x5a6   :  { %8296 = vmatmul.msk.f32.gmra.mxu0 %vm1147_vm9, %v2096_v10  ;;  %v1883_v24 = vsel %vm1880_vm8, %v1882_v39, %v1878_v18  ;;  %v2137_v45 = vpop.permute.xlu1 %2136 }
 0x5a7   :  { %v1884_v54 = vmul.f32 %v10344_v2, %v1883_v24 }
 0x5a8   :  { %v2139_v48 = vpop.permute.xlu0 %2138 }
 0x5a9   :  { %8288 = vmatmul.msk.f32.gmra.mxu1 %vm1288_vm10, %v1884_v54  ;;  %8303 = vmatmul.msk.f32.vlgmr.msrb.gmra.mxu2 %vm1147_vm9, %v10400_v40 }
 0x5aa   :  { %8297 = vmatpush.xpose.msk.msrb.mxu1 %vm1147_vm9, %v2139_v48 }
 0x5ad   :  { %v2213_v2 = vpop.permute.xlu2 %2212 }
 0x5ae   :  { %8298 = vmatpush.xpose.msk.msrb.mxu1 %vm1147_vm9, %v2137_v45 }
 0x5b0   :  { %v8479_v50 = vpop.permute.xlu0 %8478 }
 0x5b1   :  { %v8480_v3 = vunpack.i.l.bf16 %v8479_v50  ;;  %8304 = vmatmul.msk.f32.gmra.mxu2 %vm1147_vm9, %v2174_v63  ;;  %v8481_v56 = vunpack.i.h.bf16 %v8479_v50 }
 0x5b3   :  { %2537 = vmatpush.msra.mxu2 %v8480_v3 }
 0x5b5   :  { %2538 = vmatpush.msra.mxu2 %v8481_v56  ;;  %v2135_v46 = vpop.permute.xlu2 %2134 }
 0x5b8   :  { %v2666_v21 = vpop.permute.xlu0 %2665 }
 0x5b9   :  { %8325 = vmatpush.xpose.msk.msrb.mxu2 %vm1147_vm9, %v2666_v21 }
 0x5bd   :  { %v8489_v20 = vpop.permute.xlu2 %8488 }
 0x5be   :  { %v8490_v18 = vunpack.i.l.bf16 %v8489_v20  ;;  %v8491_v45 = vunpack.i.h.bf16 %v8489_v20 }
 0x5d1   :  { %v1821_v52 = vpop.xlane.xlu1 %1820 }
 0x5d2   :  { %8775 = vrcp.f32 %v1821_v52  ;;  %v1926_v12 = vand.u32 2147483648, %v1821_v52  ;;  %v1924_v62 = vand.u32 2147483647, %v1821_v52  ;;  %vm1920_vm12 = vweird.f32 %v1821_v52 }
 0x5d4   :  { %v1927_v53 = vor.u32 1.1754944e-38, %v1926_v12  ;;  %vm1925_vm14 = vcmp.eq.f32.partialorder %v1924_v62, 8.507059e+37 }
 0x5d8   :  { %v8776_v40 = vpop.eup %8775 }
 0x5d9   :  { %v1916_v49 = vmul.f32 %v8776_v40, %v1821_v52  ;;  %v1824_v38 = vpop.xlane.xlu1 %1823  ;;  %vm1921_vm11 = vweird.f32 %v8776_v40  ;;  %v2588_v52 = vpop.permute.xlu0 %2587 }
 0x5da   :  { %8777 = vrcp.f32 %v1824_v38  ;;  %vm1922_vm13 = vmor %vm1920_vm12, %vm1921_vm11  ;;  %v1941_v24 = vand.u32 2147483648, %v1824_v38  ;;  %v1939_v48 = vand.u32 2147483647, %v1824_v38  ;;  %vm1935_vm0 = vweird.f32 %v1824_v38 }
 0x5db   :  { %v1917_v41 = vsub.f32 1.0, %v1916_v49 }
 0x5dc   :  { %v1942_v3 = vor.u32 1.1754944e-38, %v1941_v24  ;;  %vm1940_vm2 = vcmp.eq.f32.partialorder %v1939_v48, 8.507059e+37 }
 0x5dd   :  { %v1918_v30 = vmul.f32 %v8776_v40, %v1917_v41 }
 0x5df   :  { %v1919_v63 = vadd.f32 %v8776_v40, %v1918_v30  ;;  %v10444_v30 = vpop.f32.mrf.mxu0 }
 0x5e0   :  { %v8778_v36 = vpop.eup %8777 }
 0x5e1   :  { %v1923_v57 = vsel %vm1922_vm13, %v8776_v40, %v1919_v63  ;;  %v1931_v32 = vmul.f32 %v8778_v36, %v1824_v38  ;;  %vm1936_vm15 = vweird.f32 %v8778_v36  ;;  %v10439_v49 = vpop.permute.xlu0 %2659 }
 0x5e2   :  { %v1928_v51 = vsel %vm1925_vm14, %v1927_v53, %v1923_v57  ;;  %vm1937_vm1 = vmor %vm1935_vm0, %vm1936_vm15 }
 0x5e3   :  { %v1929_v39 = vmul.f32 %v10386_v25, %v1928_v51  ;;  %v1932_v10 = vsub.f32 1.0, %v1931_v32 }
 0x5e5   :  { %v1933_v54 = vmul.f32 %v8778_v36, %v1932_v10  ;;  %8291 = vmatmul.msk.f32.vlgmr.msra.gmra.mxu3 %vm1288_vm10, %v1929_v39 }
 0x5e6   :  { %2572 = vmatpush.msra.mxu3 %v8490_v18 }
 0x5e7   :  { %v1934_v50 = vadd.f32 %v8778_v36, %v1933_v54 }
 0x5e8   :  { %2573 = vmatpush.msra.mxu3 %v8491_v45 }
 0x5e9   :  { %v1938_v56 = vsel %vm1937_vm1, %v8778_v36, %v1934_v50  ;;  %v2586_v62 = vpop.permute.xlu0 %2585  ;;  %v10448_v36 = vpop.f32.mrf.mxu0 }
 0x5ea   :  { %v1943_v21 = vsel %vm1940_vm2, %v1942_v3, %v1938_v56 }
 0x5eb   :  { %v1944_v25 = vmul.f32 %v10394_v1, %v1943_v21 }
 0x5ed   :  { %8292 = vmatmul.msk.f32.gmra.mxu3 %vm1288_vm10, %v1944_v25 }
 0x5f1   :  { %v2133_v40 = vpop.permute.xlu1 %2132 }
 0x5f2   :  { %8299 = vmatmul.msk.f32.vlgmr.msrb.gmra.mxu1 %vm1147_vm9, %v2133_v40 }
 0x5f5   :  { %8307 = vmatmul.msk.f32.vlgmr.msrb.gmra.mxu3 %vm1147_vm9, %v10421_v27 }
 0x5f9   :  { %v8484_v38 = vpop.permute.xlu1 %8483 }
 0x5fa   :  { %v8485_v41 = vunpack.i.l.bf16 %v8484_v38  ;;  %8300 = vmatmul.msk.f32.gmra.mxu1 %vm1147_vm9, %v2135_v46  ;;  %v8486_v12 = vunpack.i.h.bf16 %v8484_v38 }
 0x5fc   :  { %2467 = vmatpush.msra.mxu0 %v8485_v41 }
 0x5fd   :  { %8308 = vmatmul.msk.f32.gmra.mxu3 %vm1147_vm9, %v2213_v2  ;;  %v10451_v20 = vpop.f32.mrf.mxu2 }
 0x5fe   :  { %2468 = vmatpush.msra.mxu0 %v8486_v12 }
 0x600   :  { %8317 = vmatpush.xpose.msk.msrb.mxu0 %vm1147_vm9, %v2588_v52 }
 0x601   :  { %v2664_v1 = vpop.permute.xlu1 %2663 }
 0x602   :  { %8326 = vmatpush.xpose.msk.msrb.mxu2 %vm1147_vm9, %v2664_v1 }
 0x604   :  { %8318 = vmatpush.xpose.msk.msrb.mxu0 %vm1147_vm9, %v2586_v62 }
 0x609   :  { %v8494_v27 = vpop.permute.xlu1 %8493 }
 0x60a   :  { %v8495_v63 = vunpack.i.l.bf16 %v8494_v27  ;;  %v8496_v46 = vunpack.i.h.bf16 %v8494_v27 }
 0x60c   :  { %2502 = vmatpush.msra.mxu1 %v8495_v63 }
 0x60e   :  { %2503 = vmatpush.msra.mxu1 %v8496_v46  ;;  %v10457_v18 = vpop.f32.mrf.mxu1 }
 0x60f   :  { %13334 = vst [vmem:[#allocation67_spill] sm:$0xff] %v10457_v18 }
 0x611   :  { %v10479_v12 = vpop.permute.xlu1 %2581 }
 0x614   :  { %v2126_v53 = vpop.f32.mrf.mxu0 }
 0x615   :  { %v2249_v2 = vsel %vm1288_vm10, %v2126_v53, -inf }
 0x616   :  { %2250 = vmax.xlane.f32.xlu0 %v2249_v2 }
 0x623   :  { %v2129_v57 = vpop.f32.mrf.mxu0 }
 0x624   :  { %v10453_v32 = vpop.f32.mrf.mxu2  ;;  %v2252_v51 = vsel %vm1288_vm10, %v2129_v57, -inf }
 0x625   :  { %2253 = vmax.xlane.f32.xlu1 %v2252_v51 }
 0x626   :  { %v10459_v24 = vpop.f32.mrf.mxu1 }
 0x62c   :  { %v2204_v39 = vpop.f32.mrf.mxu2 }
 0x62d   :  { %v2261_v10 = vsel %vm1288_vm10, %v2204_v39, -inf }
 0x62e   :  { %2262 = vmax.xlane.f32.xlu1 %v2261_v10  ;;  %v10489_v10 = vpop.permute.xlu2 %2661 }
 0x634   :  { %v2207_v3 = vpop.f32.mrf.mxu2 }
 0x635   :  { %v2264_v52 = vsel %vm1288_vm10, %v2207_v3, -inf }
 0x668   :  { %v10461_v54 = vpop.f32.mrf.mxu3 }
 0x66f   :  { %v2165_v48 = vpop.f32.mrf.mxu1 }
 0x670   :  { %v10463_v45 = vpop.f32.mrf.mxu3  ;;  %v2255_v50 = vsel %vm1288_vm10, %v2165_v48, -inf }
 0x671   :  { %2256 = vmax.xlane.f32.xlu2 %v2255_v50 }
 0x677   :  { %v2168_v56 = vpop.f32.mrf.mxu1 }
 0x678   :  { %v2243_v21 = vpop.f32.mrf.mxu3  ;;  %v2258_v25 = vsel %vm1288_vm10, %v2168_v56, -inf }
 0x679   :  { %2259 = vmax.xlane.f32.xlu0 %v2258_v25  ;;  %2265 = vmax.xlane.f32.xlu2 %v2264_v52  ;;  %v2267_v38 = vsel %vm1288_vm10, %v2243_v21, -inf }
 0x680   :  { %v10468_v40 = vpop.f32.mrf.mxu3 }
 0x681   :  { %2268 = vmax.xlane.f32.xlu0 %v2267_v38  ;;  %v2270_v41 = vsel %vm1288_vm10, %v10468_v40, -inf }
 0x682   :  { %2271 = vmax.xlane.f32.xlu1 %v2270_v41 }
 0x689   :  { %v2251_v63 = vpop.xlane.xlu0 %2250 }
 0x68a   :  { %v2273_v46 = vsub.f32 %v2126_v53, %v2251_v63 }
 0x68c   :  { %v2281_v51 = vmul.f32 1.442695, %v2273_v46 }
 0x691   :  { %2626 = vrot.lane.b32.xlu2 %v10022_v28, %s9428_s10 }
 0x695   :  { %2704 = vrot.lane.b32.xlu0 %v10074_v4, %s9428_s10 }
 0x698   :  { %v2254_v1 = vpop.xlane.xlu1 %2253 }
 0x699   :  { %v2274_v62 = vsub.f32 %v2129_v57, %v2254_v1 }
 0x69b   :  { %2583 = vrot.lane.b32.xlu1 %v10020_v58, %s9428_s10  ;;  %v2283_v27 = vmul.f32 1.442695, %v2274_v62 }
 0x69d   :  { %8779 = vpow2.f32 %v2283_v27 }
 0x69e   :  { %8781 = vpow2.f32 %v2281_v51 }
 0x6a1   :  { %v2263_v53 = vpop.xlane.xlu1 %2262 }
 0x6a2   :  { %v2277_v27 = vsub.f32 %v2204_v39, %v2263_v53 }
 0x6a3   :  { %v10481_v2 = vpop.eup %8779 }
 0x6a4   :  { %v2300_v28 = vsel %vm1288_vm10, %v10481_v2, 0.0  ;;  %v10485_v4 = vpop.eup %8781 }
 0x6a5   :  { %v2297_v58 = vsel %vm1288_vm10, %v10485_v4, 0.0 }
 0x6ba   :  { %2301 = vadd.xlane.f32.xlu2 %v2300_v28  ;;  %v2289_v28 = vmul.f32 1.442695, %v2277_v27 }
 0x6c5   :  { %2298 = vadd.xlane.f32.xlu1 %v2297_v58 }
 0x6e4   :  { %v2257_v57 = vpop.xlane.xlu2 %2256 }
 0x6e5   :  { %v2275_v50 = vsub.f32 %v2165_v48, %v2257_v57 }
 0x6e7   :  { %v2285_v25 = vmul.f32 1.442695, %v2275_v50 }
 0x6e9   :  { %8783 = vpow2.f32 %v2285_v25 }
 0x6ec   :  { %v2260_v52 = vpop.xlane.xlu0 %2259  ;;  %v2266_v38 = vpop.xlane.xlu2 %2265 }
 0x6ed   :  { %v2276_v41 = vsub.f32 %v2168_v56, %v2260_v52  ;;  %v2278_v1 = vsub.f32 %v2207_v3, %v2266_v38 }
 0x6ef   :  { %v10491_v62 = vpop.eup %8783  ;;  %v2287_v63 = vmul.f32 1.442695, %v2276_v41  ;;  %v2291_v46 = vmul.f32 1.442695, %v2278_v1 }
 0x6f0   :  { %v2303_v51 = vsel %vm1288_vm10, %v10491_v62, 0.0 }
 0x6f1   :  { %8785 = vpow2.f32 %v2287_v63  ;;  %2304 = vadd.xlane.f32.xlu2 %v2303_v51 }
 0x6f2   :  { %8787 = vpow2.f32 %v2291_v46 }
 0x6f3   :  { %8789 = vpow2.f32 %v2289_v28 }
 0x6f4   :  { %v2269_v48 = vpop.xlane.xlu0 %2268  ;;  %v2627_v58 = vpop.permute.xlu2 %2626 }
 0x6f5   :  { %v2279_v57 = vsub.f32 %v2243_v21, %v2269_v48  ;;  %8321 = vmatpush.xpose.msk.msrb.mxu1 %vm1147_vm9, %v2627_v58  ;;  %v2272_v1 = vpop.xlane.xlu1 %2271 }
 0x6f6   :  { %v2280_v27 = vsub.f32 %v10468_v40, %v2272_v1 }
 0x6f7   :  { %v10496_v50 = vpop.eup %8785  ;;  %v2293_v3 = vmul.f32 1.442695, %v2279_v57 }
 0x6f8   :  { %v10498_v56 = vpop.eup %8787  ;;  %v2306_v39 = vsel %vm1288_vm10, %v10496_v50, 0.0  ;;  %v2295_v51 = vmul.f32 1.442695, %v2280_v27 }
 0x6f9   :  { %8791 = vpow2.f32 %v2293_v3  ;;  %2307 = vadd.xlane.f32.xlu2 %v2306_v39  ;;  %v2312_v25 = vsel %vm1288_vm10, %v10498_v56, 0.0  ;;  %v10504_v53 = vpop.eup %8789 }
 0x6fa   :  { %2313 = vadd.xlane.f32.xlu0 %v2312_v25  ;;  %v2309_v38 = vsel %vm1288_vm10, %v10504_v53, 0.0 }
 0x6ff   :  { %v10506_v21 = vpop.eup %8791 }
 0x700   :  { %v2315_v52 = vsel %vm1288_vm10, %v10506_v21, 0.0 }
 0x701   :  { %2316 = vadd.xlane.f32.xlu1 %v2315_v52  ;;  %2310 = vadd.xlane.f32.xlu2 %v2309_v38 }
 0x707   :  { %v2705_v41 = vpop.permute.xlu0 %2704 }
 0x708   :  { %8329 = vmatpush.xpose.msk.msrb.mxu3 %vm1147_vm9, %v2705_v41 }
 0x70d   :  { %v2584_v63 = vpop.permute.xlu1 %2583 }
 0x70e   :  { %2702 = vrot.lane.b32.xlu0 %v10084_v13, %s9428_s10 }
 0x716   :  { %2620 = vrot.lane.b32.xlu0 %v10036_v29, %s9428_s10 }
 0x719   :  { %2624 = vrot.lane.b32.xlu2 %v10032_v26, %s9428_s10 }
 0x71a   :  { %2698 = vrot.lane.b32.xlu1 %v10090_v44, %s9428_s10 }
 0x722   :  { %2700 = vrot.lane.b32.xlu1 %v10098_v9, %s9428_s10 }
 0x72d   :  { %v2302_v46 = vpop.xlane.xlu2 %2301 }
 0x72e   :  { %8793 = vrcp.f32 %v2302_v46  ;;  %v2347_v27 = vand.u32 2147483648, %v2302_v46  ;;  %vm2341_vm8 = vweird.f32 %v2302_v46 }
 0x72f   :  { %8795 = vpow2.f32 %v2295_v51 }
 0x734   :  { %v8794_v28 = vpop.eup %8793 }
 0x735   :  { %v2337_v29 = vmul.f32 %v8794_v28, %v2302_v46  ;;  %v10524_v48 = vpop.eup %8795  ;;  %vm2342_vm6 = vweird.f32 %v8794_v28 }
 0x736   :  { %v2318_v9 = vsel %vm1288_vm10, %v10524_v48, 0.0  ;;  %vm2343_vm11 = vmor %vm2341_vm8, %vm2342_vm6 }
 0x737   :  { %v2338_v58 = vsub.f32 1.0, %v2337_v29 }
 0x738   :  { %v2299_v13 = vpop.xlane.xlu1 %2298 }
 0x739   :  { %8797 = vrcp.f32 %v2299_v13  ;;  %v2332_v40 = vand.u32 2147483648, %v2299_v13  ;;  %v2339_v3 = vmul.f32 %v8794_v28, %v2338_v58  ;;  %v2330_v25 = vand.u32 2147483647, %v2299_v13 }
 0x73a   :  { %vm2326_vm4 = vweird.f32 %v2299_v13 }
 0x73b   :  { %v2333_v38 = vor.u32 1.1754944e-38, %v2332_v40  ;;  %vm2331_vm7 = vcmp.eq.f32.partialorder %v2330_v25, 8.507059e+37  ;;  %v2340_v1 = vadd.f32 %v8794_v28, %v2339_v3 }
 0x73d   :  { %v2344_v58 = vsel %vm2343_vm11, %v8794_v28, %v2340_v1 }
 0x73f   :  { %v8798_v26 = vpop.eup %8797 }
 0x740   :  { %v2322_v44 = vmul.f32 %v8798_v26, %v2299_v13  ;;  %vm2327_vm3 = vweird.f32 %v8798_v26 }
 0x741   :  { %vm2328_vm5 = vmor %vm2326_vm4, %vm2327_vm3 }
 0x742   :  { %v2323_v57 = vsub.f32 1.0, %v2322_v44  ;;  %2319 = vadd.xlane.f32.xlu2 %v2318_v9  ;;  %v2345_v44 = vand.u32 2147483647, %v2302_v46  ;;  %v2348_v9 = vor.u32 1.1754944e-38, %v2347_v27 }
 0x744   :  { %v2324_v39 = vmul.f32 %v8798_v26, %v2323_v57  ;;  %vm2346_vm12 = vcmp.eq.f32.partialorder %v2345_v44, 8.507059e+37 }
 0x745   :  { %v2349_v57 = vsel %vm2346_vm12, %v2348_v9, %v2344_v58 }
 0x746   :  { %v2325_v52 = vadd.f32 %v8798_v26, %v2324_v39  ;;  %v2350_v13 = vmul.f32 %v10481_v2, %v2349_v57 }
 0x748   :  { %v2329_v41 = vsel %vm2328_vm5, %v8798_v26, %v2325_v52 }
 0x749   :  { %v2334_v51 = vsel %vm2331_vm7, %v2333_v38, %v2329_v41 }
 0x74a   :  { %v2335_v29 = vmul.f32 %v10485_v4, %v2334_v51 }
 0x74c   :  { %8309 = vmatmul.msk.f32.vlgmr.msra.gmra.mxu0 %vm1288_vm10, %v2335_v29 }
 0x754   :  { %8310 = vmatmul.msk.f32.gmra.mxu0 %vm1288_vm10, %v2350_v13 }
 0x75a   :  { %2622 = vrot.lane.b32.xlu2 %v10046_v11, %s9428_s10 }
 0x75c   :  { %8319 = vmatmul.msk.f32.vlgmr.msrb.gmra.mxu0 %vm1147_vm9, %v10479_v12 }
 0x764   :  { %8320 = vmatmul.msk.f32.gmra.mxu0 %vm1147_vm9, %v2584_v63  ;;  %v2305_v4 = vpop.xlane.xlu2 %2304 }
 0x765   :  { %8799 = vrcp.f32 %v2305_v4  ;;  %v2362_v2 = vand.u32 2147483648, %v2305_v4  ;;  %v2360_v25 = vand.u32 2147483647, %v2305_v4  ;;  %vm2356_vm14 = vweird.f32 %v2305_v4 }
 0x767   :  { %v2363_v63 = vor.u32 1.1754944e-38, %v2362_v2  ;;  %vm2361_vm0 = vcmp.eq.f32.partialorder %v2360_v25, 8.507059e+37 }
 0x76b   :  { %v8800_v46 = vpop.eup %8799 }
 0x76c   :  { %v2352_v26 = vmul.f32 %v8800_v46, %v2305_v4  ;;  %v2308_v28 = vpop.xlane.xlu2 %2307  ;;  %vm2357_vm13 = vweird.f32 %v8800_v46 }
 0x76d   :  { %8801 = vrcp.f32 %v2308_v28  ;;  %v10537_v3 = vpop.xlane.xlu0 %2313  ;;  %vm2358_vm15 = vmor %vm2356_vm14, %vm2357_vm13  ;;  %v2377_v58 = vand.u32 2147483648, %v2308_v28  ;;  %v2375_v57 = vand.u32 2147483647, %v2308_v28  ;;  %vm2371_vm2 = vweird.f32 %v2308_v28 }
 0x76e   :  { %v2353_v40 = vsub.f32 1.0, %v2352_v26  ;;  %8803 = vrcp.f32 %v10537_v3 }
 0x76f   :  { %v2378_v26 = vor.u32 1.1754944e-38, %v2377_v58  ;;  %vm2376_vm4 = vcmp.eq.f32.partialorder %v2375_v57, 8.507059e+37 }
 0x770   :  { %v2354_v39 = vmul.f32 %v8800_v46, %v2353_v40 }
 0x772   :  { %v2355_v11 = vadd.f32 %v8800_v46, %v2354_v39 }
 0x773   :  { %v8802_v12 = vpop.eup %8801 }
 0x774   :  { %v2359_v52 = vsel %vm2358_vm15, %v8800_v46, %v2355_v11  ;;  %v2367_v38 = vmul.f32 %v8802_v12, %v2308_v28  ;;  %v2317_v41 = vpop.xlane.xlu1 %2316  ;;  %v2311_v1 = vpop.xlane.xlu2 %2310  ;;  %vm2372_vm1 = vweird.f32 %v8802_v12 }
 0x775   :  { %v2364_v27 = vsel %vm2361_vm0, %v2363_v63, %v2359_v52  ;;  %8805 = vrcp.f32 %v2317_v41  ;;  %v10541_v44 = vpop.eup %8803  ;;  %vm2373_vm3 = vmor %vm2371_vm2, %vm2372_vm1  ;;  %v2420_v28 = vand.u32 2147483647, %v2317_v41  ;;  %vm2416_vm6 = vweird.f32 %v2317_v41 }
 0x776   :  { %v2365_v51 = vmul.f32 %v10491_v62, %v2364_v27  ;;  %v2368_v29 = vsub.f32 1.0, %v2367_v38  ;;  %8807 = vrcp.f32 %v2311_v1  ;;  %v2397_v13 = vmul.f32 %v10541_v44, %v10537_v3 }
 0x777   :  { %v2422_v27 = vand.u32 2147483648, %v2317_v41  ;;  %v2392_v58 = vand.u32 2147483648, %v2311_v1  ;;  %vm2421_vm11 = vcmp.eq.f32.partialorder %v2420_v28, 8.507059e+37  ;;  %vm2386_vm12 = vweird.f32 %v2311_v1 }
 0x778   :  { %v2369_v9 = vmul.f32 %v8802_v12, %v2368_v29  ;;  %8311 = vmatmul.msk.f32.vlgmr.msra.gmra.mxu1 %vm1288_vm10, %v2365_v51  ;;  %v2398_v11 = vsub.f32 1.0, %v2397_v13  ;;  %vm2402_vm13 = vweird.f32 %v10541_v44  ;;  %vm2401_vm0 = vweird.f32 %v10537_v3 }
 0x779   :  { %vm2403_vm1 = vmor %vm2401_vm0, %vm2402_vm13 }
 0x77a   :  { %v2370_v4 = vadd.f32 %v8802_v12, %v2369_v9  ;;  %v2399_v57 = vmul.f32 %v10541_v44, %v2398_v11 }
 0x77b   :  { %v8806_v46 = vpop.eup %8805 }
 0x77c   :  { %v2412_v40 = vmul.f32 %v8806_v46, %v2317_v41  ;;  %v2625_v62 = vpop.permute.xlu2 %2624  ;;  %v2374_v2 = vsel %vm2373_vm3, %v8802_v12, %v2370_v4  ;;  %v8808_v39 = vpop.eup %8807  ;;  %vm2417_vm5 = vweird.f32 %v8806_v46  ;;  %v2390_v12 = vand.u32 2147483647, %v2311_v1 }
 0x77d   :  { %8322 = vmatpush.xpose.msk.msrb.mxu1 %vm1147_vm9, %v2625_v62  ;;  %v2379_v25 = vsel %vm2376_vm4, %v2378_v26, %v2374_v2  ;;  %v2382_v52 = vmul.f32 %v8808_v39, %v2311_v1  ;;  %vm2387_vm7 = vweird.f32 %v8808_v39  ;;  %vm2418_vm8 = vmor %vm2416_vm6, %vm2417_vm5  ;;  %v2393_v41 = vor.u32 1.1754944e-38, %v2392_v58 }
 0x77e   :  { %v2413_v63 = vsub.f32 1.0, %v2412_v40  ;;  %v2380_v38 = vmul.f32 %v10496_v50, %v2379_v25  ;;  %v2423_v50 = vor.u32 1.1754944e-38, %v2422_v27  ;;  %vm2388_vm14 = vmor %vm2386_vm12, %vm2387_vm7  ;;  %vm2391_vm15 = vcmp.eq.f32.partialorder %v2390_v12, 8.507059e+37 }
 0x77f   :  { %v2383_v29 = vsub.f32 1.0, %v2382_v52  ;;  %v2400_v11 = vadd.f32 %v10541_v44, %v2399_v57  ;;  %v2405_v1 = vand.u32 2147483647, %v10537_v3 }
 0x780   :  { %v2414_v51 = vmul.f32 %v8806_v46, %v2413_v63  ;;  %v2703_v9 = vpop.permute.xlu0 %2702  ;;  %8312 = vmatmul.msk.f32.gmra.mxu1 %vm1288_vm10, %v2380_v38  ;;  %v2407_v63 = vand.u32 2147483648, %v10537_v3 }
 0x781   :  { %8330 = vmatpush.xpose.msk.msrb.mxu3 %vm1147_vm9, %v2703_v9  ;;  %v2384_v4 = vmul.f32 %v8808_v39, %v2383_v29  ;;  %vm2406_vm2 = vcmp.eq.f32.partialorder %v2405_v1, 8.507059e+37 }
 0x782   :  { %v2415_v13 = vadd.f32 %v8806_v46, %v2414_v51 }
 0x783   :  { %v2385_v40 = vadd.f32 %v8808_v39, %v2384_v4 }
 0x784   :  { %v2419_v26 = vsel %vm2418_vm8, %v8806_v46, %v2415_v13 }
 0x785   :  { %v2424_v62 = vsel %vm2421_vm11, %v2423_v50, %v2419_v26  ;;  %v2389_v25 = vsel %vm2388_vm14, %v8808_v39, %v2385_v40  ;;  %v2408_v39 = vor.u32 1.1754944e-38, %v2407_v63 }
 0x786   :  { %v2425_v2 = vmul.f32 %v10506_v21, %v2424_v62  ;;  %v2394_v52 = vsel %vm2391_vm15, %v2393_v41, %v2389_v25  ;;  %v2404_v21 = vsel %vm2403_vm1, %v10541_v44, %v2400_v11 }
 0x787   :  { %v2395_v46 = vmul.f32 %v10504_v53, %v2394_v52  ;;  %v2409_v27 = vsel %vm2406_vm2, %v2408_v39, %v2404_v21 }
 0x788   :  { %v2621_v38 = vpop.permute.xlu0 %2620  ;;  %8315 = vmatmul.msk.f32.vlgmr.msra.gmra.mxu3 %vm1288_vm10, %v2425_v2  ;;  %v2410_v51 = vmul.f32 %v10498_v56, %v2409_v27 }
 0x789   :  { %8323 = vmatmul.msk.f32.vlgmr.msrb.gmra.mxu1 %vm1147_vm9, %v2621_v38  ;;  %8313 = vmatmul.msk.f32.vlgmr.msra.gmra.mxu2 %vm1288_vm10, %v2395_v46 }
 0x78c   :  { %v2699_v50 = vpop.permute.xlu1 %2698 }
 0x791   :  { %8314 = vmatmul.msk.f32.gmra.mxu2 %vm1288_vm10, %v2410_v51 }
 0x794   :  { %v2701_v40 = vpop.permute.xlu1 %2700 }
 0x799   :  { %8327 = vmatmul.msk.f32.vlgmr.msrb.gmra.mxu2 %vm1147_vm9, %v10439_v49 }
 0x7a1   :  { %8328 = vmatmul.msk.f32.gmra.mxu2 %vm1147_vm9, %v10489_v10 }
 0x7b5   :  { %v2320_v53 = vpop.xlane.xlu2 %2319 }
 0x7b6   :  { %8809 = vrcp.f32 %v2320_v53  ;;  %v2437_v9 = vand.u32 2147483648, %v2320_v53  ;;  %v2435_v56 = vand.u32 2147483647, %v2320_v53  ;;  %vm2431_vm4 = vweird.f32 %v2320_v53 }
 0x7b8   :  { %v2438_v57 = vor.u32 1.1754944e-38, %v2437_v9  ;;  %vm2436_vm6 = vcmp.eq.f32.partialorder %v2435_v56, 8.507059e+37 }
 0x7bc   :  { %v8810_v3 = vpop.eup %8809 }
 0x7bd   :  { %v2427_v28 = vmul.f32 %v8810_v3, %v2320_v53  ;;  %v2623_v29 = vpop.permute.xlu2 %2622  ;;  %vm2432_vm3 = vweird.f32 %v8810_v3 }
 0x7be   :  { %8324 = vmatmul.msk.f32.gmra.mxu1 %vm1147_vm9, %v2623_v29  ;;  %vm2433_vm5 = vmor %vm2431_vm4, %vm2432_vm3 }
 0x7bf   :  { %v2428_v44 = vsub.f32 1.0, %v2427_v28 }
 0x7c1   :  { %v2429_v12 = vmul.f32 %v8810_v3, %v2428_v44 }
 0x7c3   :  { %v2430_v58 = vadd.f32 %v8810_v3, %v2429_v12 }
 0x7c5   :  { %v2434_v49 = vsel %vm2433_vm5, %v8810_v3, %v2430_v58 }
 0x7c6   :  { %v2439_v13 = vsel %vm2436_vm6, %v2438_v57, %v2434_v49 }
 0x7c7   :  { %v2440_v10 = vmul.f32 %v10524_v48, %v2439_v13 }
 0x7c9   :  { %v10572_v4 = vpop.f32.mrf.mxu0  ;;  %8316 = vmatmul.msk.f32.gmra.mxu3 %vm1288_vm10, %v2440_v10 }
 0x7d1   :  { %v10575_v26 = vpop.f32.mrf.mxu0  ;;  %8331 = vmatmul.msk.f32.vlgmr.msrb.gmra.mxu3 %vm1147_vm9, %v2699_v50 }
 0x7d9   :  { %v2614_v62 = vpop.f32.mrf.mxu0  ;;  %8332 = vmatmul.msk.f32.gmra.mxu3 %vm1147_vm9, %v2701_v40 }
 0x7da   :  { %v2737_v41 = vsel %vm1288_vm10, %v2614_v62, -inf }
 0x7db   :  { %2738 = vmax.xlane.f32.xlu0 %v2737_v41 }
 0x7e1   :  { %v2617_v2 = vpop.f32.mrf.mxu0 }
 0x7e2   :  { %v2740_v25 = vsel %vm1288_vm10, %v2617_v2, -inf }
 0x7e3   :  { %2741 = vmax.xlane.f32.xlu2 %v2740_v25 }
 0x7f5   :  { %v10581_v48 = vpop.f32.mrf.mxu1 }
 0x7f6   :  { %13335 = vst [vmem:[#allocation68_spill] sm:$0xff] %v10581_v48 }
 0x7fd   :  { %v10583_v11 = vpop.f32.mrf.mxu1 }
 0x7fe   :  { %13336 = vst [vmem:[#allocation69_spill] sm:$0xff] %v10583_v11 }
 0x806   :  { %v2653_v63 = vpop.f32.mrf.mxu1 }
 0x807   :  { %v2743_v52 = vsel %vm1288_vm10, %v2653_v63, -inf }
 0x808   :  { %2744 = vmax.xlane.f32.xlu1 %v2743_v52 }
 0x80b   :  { %v10593_v3 = vpop.f32.mrf.mxu3 }
 0x80c   :  { %v10586_v46 = vpop.f32.mrf.mxu2  ;;  %13339 = vst [vmem:[#allocation72_spill] sm:$0xff] %v10593_v3 }
 0x80d   :  { %13337 = vst [vmem:[#allocation70_spill] sm:$0xff] %v10586_v46 }
 0x814   :  { %v10588_v38 = vpop.f32.mrf.mxu2 }
 0x815   :  { %13338 = vst [vmem:[#allocation71_spill] sm:$0xff] %v10588_v38 }
 0x81c   :  { %v2692_v1 = vpop.f32.mrf.mxu2 }
 0x81d   :  { %v2749_v21 = vsel %vm1288_vm10, %v2692_v1, -inf }
 0x81e   :  { %2750 = vmax.xlane.f32.xlu1 %v2749_v21 }
 0x824   :  { %v2695_v39 = vpop.f32.mrf.mxu2 }
 0x825   :  { %v2752_v27 = vsel %vm1288_vm10, %v2695_v39, -inf }
 0x826   :  { %2753 = vmax.xlane.f32.xlu0 %v2752_v27 }
 0x83b   :  { %v2656_v51 = vpop.f32.mrf.mxu1 }
 0x83c   :  { %v2746_v53 = vsel %vm1288_vm10, %v2656_v51, -inf }
 0x83d   :  { %2747 = vmax.xlane.f32.xlu0 %v2746_v53 }
 0x84c   :  { %v10595_v28 = vpop.f32.mrf.mxu3 }
 0x84d   :  { %13340 = vst [vmem:[#allocation73_spill] sm:$0xff] %v10595_v28 }
 0x84e   :  { %v2739_v29 = vpop.xlane.xlu0 %2738 }
 0x84f   :  { %v2761_v44 = vsub.f32 %v2614_v62, %v2739_v29 }
 0x851   :  { %v2769_v9 = vmul.f32 1.442695, %v2761_v44  ;;  %8503 = vrot.lane.b32.xlu0 %v10120_v16, %s9428_s10 }
 0x853   :  { %8811 = vpow2.f32 %v2769_v9 }
 0x854   :  { %v10599_v12 = vpop.f32.mrf.mxu3 }
 0x855   :  { %v2755_v56 = vsel %vm1288_vm10, %v10599_v12, -inf }
 0x856   :  { %2756 = vmax.xlane.f32.xlu2 %v2755_v56  ;;  %v2742_v41 = vpop.xlane.xlu2 %2741 }
 0x857   :  { %v2762_v25 = vsub.f32 %v2617_v2, %v2742_v41 }
 0x859   :  { %v10603_v58 = vpop.eup %8811  ;;  %v2771_v52 = vmul.f32 1.442695, %v2762_v25 }
 0x85a   :  { %v2785_v49 = vsel %vm1288_vm10, %v10603_v58, 0.0 }
 0x85c   :  { %v10605_v57 = vpop.f32.mrf.mxu3 }
 0x85d   :  { %v2758_v13 = vsel %vm1288_vm10, %v10605_v57, -inf }
 0x85e   :  { %2786 = vadd.xlane.f32.xlu2 %v2785_v49  ;;  %2759 = vmax.xlane.f32.xlu1 %v2758_v13 }
 0x877   :  { %8498 = vrot.lane.b32.xlu1 %v10104_v5, %s9428_s10 }
 0x87b   :  { %v2745_v16 = vpop.xlane.xlu1 %2744 }
 0x87c   :  { %v2763_v10 = vsub.f32 %v2653_v63, %v2745_v16  ;;  %v10629_v16 = vadd.f32 %v10064_v22, %v10038_v7  ;;  %v10647_v22 = vadd.f32 %v10110_v0, %v10100_v19  ;;  %v10661_v19 = vadd.f32 %v10106_v6, %v10086_v47 }
 0x87e   :  { %v2773_v50 = vmul.f32 1.442695, %v2763_v10 }
 0x880   :  { %8813 = vpow2.f32 %v2773_v50 }
 0x881   :  { %8815 = vpow2.f32 %v2771_v52 }
 0x886   :  { %v10613_v40 = vpop.eup %8813 }
 0x887   :  { %v2791_v62 = vsel %vm1288_vm10, %v10613_v40, 0.0  ;;  %v10617_v29 = vpop.eup %8815 }
 0x888   :  { %2792 = vadd.xlane.f32.xlu0 %v2791_v62  ;;  %v2788_v44 = vsel %vm1288_vm10, %v10617_v29, 0.0 }
 0x891   :  { %v2751_v21 = vpop.xlane.xlu1 %2750 }
 0x892   :  { %v2765_v27 = vsub.f32 %v2692_v1, %v2751_v21 }
 0x894   :  { %v2777_v53 = vmul.f32 1.442695, %v2765_v27 }
 0x896   :  { %8817 = vpow2.f32 %v2777_v53 }
 0x899   :  { %v2754_v9 = vpop.xlane.xlu0 %2753 }
 0x89a   :  { %v2766_v49 = vsub.f32 %v2695_v39, %v2754_v9  ;;  %v788_v39 = vadd.f32 %v9936_v43, %v9916_v15  ;;  %v800_v15 = vadd.f32 %v9992_v23, %v9970_v37  ;;  %v794_v23 = vadd.f32 %v9964_v35, %v9942_v33 }
 0x89c   :  { %v10619_v5 = vpop.eup %8817  ;;  %v2779_v13 = vmul.f32 1.442695, %v2766_v49  ;;  %v10657_v41 = vmul.f32 0.17677669, %v800_v15  ;;  %v10674_v47 = vmul.f32 0.17677669, %v794_v23 }
 0x89d   :  { %v2797_v63 = vsel %vm1288_vm10, %v10619_v5, 0.0 }
 0x89e   :  { %2798 = vadd.xlane.f32.xlu0 %v2797_v63 }
 0x8a1   :  { %2789 = vadd.xlane.f32.xlu1 %v2788_v44 }
 0x8b0   :  { %v2748_v2 = vpop.xlane.xlu0 %2747 }
 0x8b1   :  { %v2764_v56 = vsub.f32 %v2656_v51, %v2748_v2  ;;  %v10641_v51 = vmul.f32 0.17677669, %v788_v39 }
 0x8b2   :  { %8508 = vrot.lane.b32.xlu0 %v10112_v31, %s9428_s10 }
 0x8b3   :  { %v2775_v1 = vmul.f32 1.442695, %v2764_v56 }
 0x8b5   :  { %8819 = vpow2.f32 %v2775_v1 }
 0x8b6   :  { %8821 = vpow2.f32 %v2779_v13 }
 0x8ba   :  { %8513 = vrot.lane.b32.xlu1 %v10130_v34, %s9428_s10  ;;  %3531 = vrot.lane.b32.xlu0 %v10629_v16, %s9427_s8 }
 0x8bb   :  { %v10633_v10 = vpop.eup %8819 }
 0x8bc   :  { %v2794_v31 = vsel %vm1288_vm10, %v10633_v10, 0.0  ;;  %v10643_v7 = vpop.eup %8821 }
 0x8bd   :  { %2795 = vadd.xlane.f32.xlu2 %v2794_v31  ;;  %v2800_v50 = vsel %vm1288_vm10, %v10643_v7, 0.0 }
 0x8c2   :  { %3525 = vrot.lane.b32.xlu1 %v10641_v51, %s9427_s8  ;;  %3609 = vrot.lane.b32.xlu0 %v10647_v22, %s9427_s8 }
 0x8c3   :  { %v8504_v34 = vpop.permute.xlu0 %8503 }
 0x8c4   :  { %v8505_v43 = vunpack.i.l.bf16 %v8504_v34  ;;  %v8506_v62 = vunpack.i.h.bf16 %v8504_v34 }
 0x8c5   :  { %2801 = vadd.xlane.f32.xlu2 %v2800_v50  ;;  %v10693_v50 = vadd.f32 %v10044_v61, %v10018_v55  ;;  %v13342_v55 = vld [vmem:[#allocation28_spill] sm:$0xff]  ;;  %v13343_v61 = vld [vmem:[#allocation29_spill] sm:$0xff] }
 0x8c6   :  { %3025 = vmatpush.msra.mxu2 %v8505_v43 }
 0x8c8   :  { %3026 = vmatpush.msra.mxu2 %v8506_v62  ;;  %v10697_v62 = vadd.f32 %v10132_v8, %v10124_v14 }
 0x8c9   :  { %v2757_v0 = vpop.xlane.xlu2 %2756 }
 0x8ca   :  { %8349 = vmatpush.xpose.msk.msrb.mxu2 %vm1147_vm9, %v10647_v22  ;;  %v2767_v37 = vsub.f32 %v10599_v12, %v2757_v0  ;;  %3603 = vrot.lane.b32.xlu1 %v10657_v41, %s9427_s8  ;;  %v13341_v0 = vld [vmem:[#allocation46_spill] sm:$0xff] }
 0x8cb   :  { %3607 = vrot.lane.b32.xlu0 %v10661_v19, %s9427_s8 }
 0x8cc   :  { %v2781_v25 = vmul.f32 1.442695, %v2767_v37  ;;  %v791_v37 = vadd.f32 %v13343_v61, %v13342_v55 }
 0x8ce   :  { %8350 = vmatpush.xpose.msk.msrb.mxu2 %vm1147_vm9, %v10661_v19  ;;  %8823 = vpow2.f32 %v2781_v25  ;;  %v10711_v23 = vmul.f32 0.17677669, %v791_v37 }
 0x8d1   :  { %v2760_v6 = vpop.xlane.xlu1 %2759  ;;  %v2787_v52 = vpop.xlane.xlu2 %2786 }
 0x8d2   :  { %v2768_v12 = vsub.f32 %v10605_v57, %v2760_v6  ;;  %8825 = vrcp.f32 %v2787_v52  ;;  %3564 = vrot.lane.b32.xlu1 %v10674_v47, %s9427_s8  ;;  %v2820_v56 = vand.u32 2147483648, %v2787_v52  ;;  %vm2814_vm8 = vweird.f32 %v2787_v52 }
 0x8d3   :  { %v2818_v49 = vand.u32 2147483647, %v2787_v52 }
 0x8d4   :  { %v10679_v21 = vpop.eup %8823  ;;  %v2783_v27 = vmul.f32 1.442695, %v2768_v12  ;;  %v2821_v13 = vor.u32 1.1754944e-38, %v2820_v56 }
 0x8d5   :  { %v2803_v33 = vsel %vm1288_vm10, %v10679_v21, 0.0  ;;  %vm2819_vm12 = vcmp.eq.f32.partialorder %v2818_v49, 8.507059e+37 }
 0x8d6   :  { %8827 = vpow2.f32 %v2783_v27  ;;  %2804 = vadd.xlane.f32.xlu2 %v2803_v33 }
 0x8d8   :  { %v8826_v35 = vpop.eup %8825 }
 0x8d9   :  { %v2810_v53 = vmul.f32 %v8826_v35, %v2787_v52  ;;  %vm2815_vm7 = vweird.f32 %v8826_v35 }
 0x8da   :  { %vm2816_vm11 = vmor %vm2814_vm8, %vm2815_vm7 }
 0x8db   :  { %v2811_v63 = vsub.f32 1.0, %v2810_v53 }
 0x8dc   :  { %v10683_v44 = vpop.eup %8827 }
 0x8dd   :  { %v2806_v57 = vsel %vm1288_vm10, %v10683_v44, 0.0  ;;  %v2812_v9 = vmul.f32 %v8826_v35, %v2811_v63 }
 0x8de   :  { %2807 = vadd.xlane.f32.xlu2 %v2806_v57 }
 0x8df   :  { %v2813_v2 = vadd.f32 %v8826_v35, %v2812_v9 }
 0x8e1   :  { %v2817_v1 = vsel %vm2816_vm11, %v8826_v35, %v2813_v2 }
 0x8e2   :  { %v2822_v31 = vsel %vm2819_vm12, %v2821_v13, %v2817_v1 }
 0x8e3   :  { %v2823_v43 = vmul.f32 %v10603_v58, %v2822_v31  ;;  %v10703_v58 = vadd.f32 %v13341_v0, %v10118_v59  ;;  %v13354_v0 = vld [vmem:[#allocation48_spill] sm:$0xff] }
 0x8e9   :  { %v8499_v39 = vpop.permute.xlu1 %8498 }
 0x8ea   :  { %v8500_v34 = vunpack.i.l.bf16 %v8499_v39  ;;  %v8501_v15 = vunpack.i.h.bf16 %v8499_v39 }
 0x8ec   :  { %2955 = vmatpush.msra.mxu0 %v8500_v34 }
 0x8ee   :  { %2956 = vmatpush.msra.mxu0 %v8501_v15 }
 0x8ef   :  { %8333 = vmatmul.msk.f32.vlgmr.msra.gmra.mxu0 %vm1288_vm10, %v2823_v43 }
 0x8f0   :  { %8341 = vmatpush.xpose.msk.msrb.mxu0 %vm1147_vm9, %v10629_v16 }
 0x8f4   :  { %8342 = vmatpush.xpose.msk.msrb.mxu0 %vm1147_vm9, %v10693_v50 }
 0x8f6   :  { %3529 = vrot.lane.b32.xlu2 %v10693_v50, %s9427_s8 }
 0x8f8   :  { %3429 = vmatpush.msra.mxu0 %v10697_v62 }
 0x8fa   :  { %3430 = vmatpush.msra.mxu0 %v10703_v58 }
 0x8fb   :  { %v2793_v14 = vpop.xlane.xlu0 %2792 }
 0x8fc   :  { %8829 = vrcp.f32 %v2793_v14  ;;  %v2850_v57 = vand.u32 2147483648, %v2793_v14  ;;  %vm2844_vm1 = vweird.f32 %v2793_v14  ;;  %v2848_v15 = vand.u32 2147483647, %v2793_v14 }
 0x8fe   :  { %3527 = vrot.lane.b32.xlu2 %v10711_v23, %s9427_s8  ;;  %vm2849_vm8 = vcmp.eq.f32.partialorder %v2848_v15, 8.507059e+37  ;;  %v13353_v15 = vld [vmem:[#allocation40_spill] sm:$0xff] }
 0x902   :  { %v8830_v8 = vpop.eup %8829 }
 0x903   :  { %v2840_v25 = vmul.f32 %v8830_v8, %v2793_v14  ;;  %vm2845_vm14 = vweird.f32 %v8830_v8 }
 0x904   :  { %vm10715_vm3 = vmor %vm2844_vm1, %vm2845_vm14 }
 0x905   :  { %v2841_v52 = vsub.f32 1.0, %v2840_v25 }
 0x907   :  { %v2842_v35 = vmul.f32 %v8830_v8, %v2841_v52  ;;  %v2851_v52 = vor.u32 1.1754944e-38, %v2850_v57 }
 0x909   :  { %v2843_v1 = vadd.f32 %v8830_v8, %v2842_v35  ;;  %v13346_v35 = vld [vmem:[#allocation52_spill] sm:$0xff] }
 0x90b   :  { %v2847_v37 = vsel %vm10715_vm3, %v8830_v8, %v2843_v1  ;;  %v13350_v1 = vld [vmem:[#allocation39_spill] sm:$0xff] }
 0x911   :  { %v2799_v59 = vpop.xlane.xlu0 %2798 }
 0x912   :  { %8831 = vrcp.f32 %v2799_v59  ;;  %v2880_v9 = vand.u32 2147483648, %v2799_v59  ;;  %v2878_v56 = vand.u32 2147483647, %v2799_v59  ;;  %vm2874_vm15 = vweird.f32 %v2799_v59 }
 0x914   :  { %v2790_v6 = vpop.xlane.xlu1 %2789  ;;  %v2881_v43 = vor.u32 1.1754944e-38, %v2880_v9  ;;  %vm2879_vm4 = vcmp.eq.f32.partialorder %v2878_v56, 8.507059e+37  ;;  %v13348_v56 = vld [vmem:[#allocation50_spill] sm:$0xff] }
 0x915   :  { %8833 = vrcp.f32 %v2790_v6  ;;  %v2835_v13 = vand.u32 2147483648, %v2790_v6  ;;  %v2833_v34 = vand.u32 2147483647, %v2790_v6  ;;  %vm2829_vm5 = vweird.f32 %v2790_v6 }
 0x917   :  { %v2836_v25 = vor.u32 1.1754944e-38, %v2835_v13  ;;  %vm2834_vm7 = vcmp.eq.f32.partialorder %v2833_v34, 8.507059e+37  ;;  %v13351_v13 = vld [vmem:[#allocation41_spill] sm:$0xff]  ;;  %v13352_v34 = vld [vmem:[#allocation38_spill] sm:$0xff] }
 0x918   :  { %v8832_v12 = vpop.eup %8831 }
 0x919   :  { %v2870_v27 = vmul.f32 %v8832_v12, %v2799_v59  ;;  %vm2875_vm13 = vweird.f32 %v8832_v12 }
 0x91a   :  { %vm2876_vm2 = vmor %vm2874_vm15, %vm2875_vm13 }
 0x91b   :  { %v8834_v33 = vpop.eup %8833  ;;  %v2871_v53 = vsub.f32 1.0, %v2870_v27 }
 0x91c   :  { %v2825_v63 = vmul.f32 %v8834_v33, %v2790_v6  ;;  %vm2830_vm0 = vweird.f32 %v8834_v33  ;;  %v2852_v6 = vsel %vm2849_vm8, %v2851_v52, %v2847_v37  ;;  %v13357_v52 = vld [vmem:[#allocation45_spill] sm:$0xff] }
 0x91d   :  { %v2872_v2 = vmul.f32 %v8832_v12, %v2871_v53  ;;  %vm2831_vm6 = vmor %vm2829_vm5, %vm2830_vm0  ;;  %v13347_v53 = vld [vmem:[#allocation55_spill] sm:$0xff] }
 0x91e   :  { %v2826_v49 = vsub.f32 1.0, %v2825_v63  ;;  %v10724_v63 = vadd.f32 %v13347_v53, %v13346_v35  ;;  %v13359_v35 = vld [vmem:[#allocation49_spill] sm:$0xff] }
 0x91f   :  { %v2873_v39 = vadd.f32 %v8832_v12, %v2872_v2 }
 0x920   :  { %v2827_v31 = vmul.f32 %v8834_v33, %v2826_v49  ;;  %v13349_v49 = vld [vmem:[#allocation53_spill] sm:$0xff] }
 0x921   :  { %v2877_v55 = vsel %vm2876_vm2, %v8832_v12, %v2873_v39  ;;  %v10730_v57 = vadd.f32 %v13349_v49, %v13348_v56  ;;  %v10738_v39 = vadd.f32 %v13351_v13, %v13350_v1 }
 0x922   :  { %v2828_v61 = vadd.f32 %v8834_v33, %v2827_v31  ;;  %v2882_v59 = vsel %vm2879_vm4, %v2881_v43, %v2877_v55  ;;  %v10745_v43 = vadd.f32 %v13353_v15, %v13352_v34 }
 0x923   :  { %v2883_v27 = vmul.f32 %v10619_v5, %v2882_v59 }
 0x924   :  { %v2832_v14 = vsel %vm2831_vm6, %v8834_v33, %v2828_v61  ;;  %v8509_v12 = vpop.permute.xlu0 %8508  ;;  %v2853_v33 = vmul.f32 %v10613_v40, %v2852_v6  ;;  %v13355_v40 = vld [vmem:[#allocation51_spill] sm:$0xff] }
 0x925   :  { %v2837_v9 = vsel %vm2834_vm7, %v2836_v25, %v2832_v14  ;;  %v8510_v2 = vunpack.i.l.bf16 %v8509_v12  ;;  %8337 = vmatmul.msk.f32.vlgmr.msra.gmra.mxu2 %vm1288_vm10, %v2883_v27  ;;  %v8511_v5 = vunpack.i.h.bf16 %v8509_v12  ;;  %v10749_v55 = vadd.f32 %v13355_v40, %v13354_v0  ;;  %v13356_v25 = vld [vmem:[#allocation43_spill] sm:$0xff]  ;;  %v13360_v12 = vld [vmem:[#allocation42_spill] sm:$0xff] }
 0x926   :  { %v2838_v8 = vmul.f32 %v10617_v29, %v2837_v9  ;;  %3487 = vmatpush.msra.mxu2 %v10724_v63  ;;  %v10757_v27 = vadd.f32 %v13357_v52, %v13356_v25  ;;  %v13358_v14 = vld [vmem:[#allocation47_spill] sm:$0xff]  ;;  %v13361_v9 = vld [vmem:[#allocation44_spill] sm:$0xff] }
 0x927   :  { %2990 = vmatpush.msra.mxu1 %v8510_v2  ;;  %v10761_v53 = vadd.f32 %v13359_v35, %v13358_v14  ;;  %v10770_v6 = vadd.f32 %v13361_v9, %v13360_v12 }
 0x928   :  { %8334 = vmatmul.msk.f32.gmra.mxu0 %vm1288_vm10, %v2838_v8  ;;  %3488 = vmatpush.msra.mxu2 %v10730_v57 }
 0x929   :  { %2991 = vmatpush.msra.mxu1 %v8511_v5 }
 0x92a   :  { %8335 = vmatmul.msk.f32.vlgmr.msra.gmra.mxu1 %vm1288_vm10, %v2853_v33 }
 0x92b   :  { %8345 = vmatpush.xpose.msk.msrb.mxu1 %vm1147_vm9, %v10738_v39 }
 0x92c   :  { %v8514_v29 = vpop.permute.xlu1 %8513  ;;  %v3532_v61 = vpop.permute.xlu0 %3531 }
 0x92d   :  { %v8515_v31 = vunpack.i.l.bf16 %v8514_v29  ;;  %v8516_v37 = vunpack.i.h.bf16 %v8514_v29 }
 0x92f   :  { %3060 = vmatpush.msra.mxu3 %v8515_v31  ;;  %8346 = vmatpush.xpose.msk.msrb.mxu1 %vm1147_vm9, %v10745_v43 }
 0x930   :  { %8343 = vmatmul.msk.f32.vlgmr.msrb.gmra.mxu0 %vm1147_vm9, %v10641_v51  ;;  %v2796_v59 = vpop.xlane.xlu2 %2795 }
 0x931   :  { %8365 = vmatpush.xpose.msk.msrb.mxu0 %vm1147_vm9, %v3532_v61  ;;  %8835 = vrcp.f32 %v2796_v59  ;;  %3061 = vmatpush.msra.mxu3 %v8516_v37  ;;  %v2865_v5 = vand.u32 2147483648, %v2796_v59  ;;  %v2863_v1 = vand.u32 2147483647, %v2796_v59  ;;  %vm2859_vm12 = vweird.f32 %v2796_v59 }
 0x933   :  { %3458 = vmatpush.msra.mxu1 %v10749_v55  ;;  %8353 = vmatpush.xpose.msk.msrb.mxu3 %vm1147_vm9, %v10757_v27  ;;  %v2866_v31 = vor.u32 1.1754944e-38, %v2865_v5  ;;  %vm2864_vm14 = vcmp.eq.f32.partialorder %v2863_v1, 8.507059e+37 }
 0x934   :  { %v3610_v5 = vpop.permute.xlu0 %3609 }
 0x935   :  { %3459 = vmatpush.msra.mxu1 %v10761_v53 }
 0x937   :  { %v8836_v2 = vpop.eup %8835  ;;  %8354 = vmatpush.xpose.msk.msrb.mxu3 %vm1147_vm9, %v10770_v6 }
 0x938   :  { %v2855_v8 = vmul.f32 %v8836_v2, %v2796_v59  ;;  %8344 = vmatmul.msk.f32.gmra.mxu0 %vm1147_vm9, %v10711_v23  ;;  %v2802_v56 = vpop.xlane.xlu2 %2801  ;;  %vm2860_vm11 = vweird.f32 %v8836_v2 }
 0x939   :  { %8837 = vrcp.f32 %v2802_v56  ;;  %vm2861_vm13 = vmor %vm2859_vm12, %vm2860_vm11  ;;  %v2895_v37 = vand.u32 2147483648, %v2802_v56  ;;  %v2893_v52 = vand.u32 2147483647, %v2802_v56  ;;  %vm2889_vm0 = vweird.f32 %v2802_v56 }
 0x93a   :  { %v2856_v49 = vsub.f32 1.0, %v2855_v8  ;;  %v13363_v8 = vld [vmem:[#allocation31_spill] sm:$0xff] }
 0x93b   :  { %v2896_v59 = vor.u32 1.1754944e-38, %v2895_v37  ;;  %vm2894_vm2 = vcmp.eq.f32.partialorder %v2893_v52, 8.507059e+37 }
 0x93c   :  { %v2857_v33 = vmul.f32 %v8836_v2, %v2856_v49 }
 0x93d   :  { %v3608_v52 = vpop.permute.xlu0 %3607 }
 0x93e   :  { %v2858_v13 = vadd.f32 %v8836_v2, %v2857_v33 }
 0x93f   :  { %v8838_v29 = vpop.eup %8837 }
 0x940   :  { %v2885_v34 = vmul.f32 %v8838_v29, %v2802_v56  ;;  %v2862_v15 = vsel %vm2861_vm13, %v8836_v2, %v2858_v13  ;;  %vm2890_vm15 = vweird.f32 %v8838_v29 }
 0x941   :  { %v2867_v0 = vsel %vm2864_vm14, %v2866_v31, %v2862_v15  ;;  %vm2891_vm1 = vmor %vm2889_vm0, %vm2890_vm15  ;;  %v13364_v15 = vld [vmem:[#allocation32_spill] sm:$0xff] }
 0x942   :  { %v2886_v40 = vsub.f32 1.0, %v2885_v34  ;;  %v2868_v61 = vmul.f32 %v10633_v10, %v2867_v0  ;;  %v13362_v10 = vld [vmem:[#allocation30_spill] sm:$0xff] }
 0x943   :  { %v797_v49 = vadd.f32 %v13363_v8, %v13362_v10  ;;  %v13365_v0 = vld [vmem:[#allocation34_spill] sm:$0xff] }
 0x944   :  { %v2887_v25 = vmul.f32 %v8838_v29, %v2886_v40  ;;  %8336 = vmatmul.msk.f32.gmra.mxu1 %vm1288_vm10, %v2868_v61  ;;  %v803_v40 = vadd.f32 %v13365_v0, %v13364_v15 }
 0x945   :  { %v10784_v13 = vmul.f32 0.17677669, %v797_v49  ;;  %v13366_v49 = vld [vmem:[#allocation56_spill] sm:$0xff] }
 0x946   :  { %v2888_v14 = vadd.f32 %v8838_v29, %v2887_v25 }
 0x948   :  { %v2892_v35 = vsel %vm2891_vm1, %v8838_v29, %v2888_v14 }
 0x949   :  { %v2805_v12 = vpop.xlane.xlu2 %2804  ;;  %v2897_v9 = vsel %vm2894_vm2, %v2896_v59, %v2892_v35 }
 0x94a   :  { %8839 = vrcp.f32 %v2805_v12  ;;  %v2898_v2 = vmul.f32 %v10643_v7, %v2897_v9  ;;  %v2910_v31 = vand.u32 2147483648, %v2805_v12  ;;  %v2908_v34 = vand.u32 2147483647, %v2805_v12 }
 0x94b   :  { %vm2904_vm4 = vweird.f32 %v2805_v12 }
 0x94c   :  { %8347 = vmatmul.msk.f32.vlgmr.msrb.gmra.mxu1 %vm1147_vm9, %v10674_v47  ;;  %8338 = vmatmul.msk.f32.gmra.mxu2 %vm1288_vm10, %v2898_v2  ;;  %v2911_v25 = vor.u32 1.1754944e-38, %v2910_v31  ;;  %vm2909_vm6 = vcmp.eq.f32.partialorder %v2908_v34, 8.507059e+37  ;;  %v10795_v2 = vmul.f32 0.17677669, %v803_v40  ;;  %v13368_v31 = vld [vmem:[#allocation54_spill] sm:$0xff] }
 0x950   :  { %v8840_v56 = vpop.eup %8839 }
 0x951   :  { %v2900_v33 = vmul.f32 %v8840_v56, %v2805_v12  ;;  %v2808_v1 = vpop.xlane.xlu2 %2807  ;;  %vm2905_vm3 = vweird.f32 %v8840_v56  ;;  %v13367_v12 = vld [vmem:[#allocation58_spill] sm:$0xff] }
 0x952   :  { %8841 = vrcp.f32 %v2808_v1  ;;  %vm2906_vm5 = vmor %vm2904_vm4, %vm2905_vm3  ;;  %vm2919_vm8 = vweird.f32 %v2808_v1 }
 0x953   :  { %v2901_v29 = vsub.f32 1.0, %v2900_v33  ;;  %v2925_v33 = vand.u32 2147483648, %v2808_v1 }
 0x954   :  { %8348 = vmatmul.msk.f32.gmra.mxu1 %vm1147_vm9, %v10784_v13  ;;  %8351 = vmatmul.msk.f32.vlgmr.msrb.gmra.mxu2 %vm1147_vm9, %v10657_v41 }
 0x955   :  { %v2902_v7 = vmul.f32 %v8840_v56, %v2901_v29  ;;  %8373 = vmatpush.xpose.msk.msrb.mxu2 %vm1147_vm9, %v3610_v5  ;;  %v10800_v5 = vadd.f32 %v13367_v12, %v13366_v49  ;;  %v2926_v15 = vor.u32 1.1754944e-38, %v2925_v33 }
 0x957   :  { %v2903_v61 = vadd.f32 %v8840_v56, %v2902_v7  ;;  %v13369_v7 = vld [vmem:[#allocation57_spill] sm:$0xff] }
 0x958   :  { %v8842_v37 = vpop.eup %8841  ;;  %v10807_v34 = vadd.f32 %v13369_v7, %v13368_v31 }
 0x959   :  { %v2907_v14 = vsel %vm2906_vm5, %v8840_v56, %v2903_v61  ;;  %v2915_v59 = vmul.f32 %v8842_v37, %v2808_v1  ;;  %v3530_v35 = vpop.permute.xlu2 %3529  ;;  %8374 = vmatpush.xpose.msk.msrb.mxu2 %vm1147_vm9, %v3608_v52  ;;  %vm2920_vm7 = vweird.f32 %v8842_v37  ;;  %v2923_v56 = vand.u32 2147483647, %v2808_v1  ;;  %v13371_v52 = vld [vmem:[#allocation36_spill] sm:$0xff]  ;;  %v13372_v1 = vld [vmem:[#allocation35_spill] sm:$0xff] }
 0x95a   :  { %v2912_v9 = vsel %vm2909_vm6, %v2911_v25, %v2907_v14  ;;  %8366 = vmatpush.xpose.msk.msrb.mxu0 %vm1147_vm9, %v3530_v35  ;;  %vm2921_vm11 = vmor %vm2919_vm8, %vm2920_vm7  ;;  %v13370_v25 = vld [vmem:[#allocation33_spill] sm:$0xff] }
 0x95b   :  { %v2913_v10 = vmul.f32 %v10679_v21, %v2912_v9  ;;  %v2916_v8 = vsub.f32 1.0, %v2915_v59  ;;  %vm2924_vm12 = vcmp.eq.f32.partialorder %v2923_v56, 8.507059e+37  ;;  %v806_v14 = vadd.f32 %v13371_v52, %v13370_v25  ;;  %v13373_v35 = vld [vmem:[#allocation37_spill] sm:$0xff] }
 0x95c   :  { %8352 = vmatmul.msk.f32.gmra.mxu2 %vm1147_vm9, %v10795_v2  ;;  %v809_v9 = vadd.f32 %v13373_v35, %v13372_v1 }
 0x95d   :  { %v2917_v29 = vmul.f32 %v8842_v37, %v2916_v8  ;;  %8339 = vmatmul.msk.f32.vlgmr.msra.gmra.mxu3 %vm1288_vm10, %v2913_v10  ;;  %v10815_v59 = vmul.f32 0.17677669, %v806_v14 }
 0x95e   :  { %3516 = vmatpush.msra.mxu3 %v10800_v5  ;;  %v10821_v10 = vmul.f32 0.17677669, %v809_v9 }
 0x95f   :  { %v2918_v21 = vadd.f32 %v8842_v37, %v2917_v29 }
 0x960   :  { %3517 = vmatpush.msra.mxu3 %v10807_v34 }
 0x961   :  { %v2922_v0 = vsel %vm2921_vm11, %v8842_v37, %v2918_v21 }
 0x962   :  { %v2927_v40 = vsel %vm2924_vm12, %v2926_v15, %v2922_v0 }
 0x963   :  { %v2928_v61 = vmul.f32 %v10683_v44, %v2927_v40 }
 0x965   :  { %8340 = vmatmul.msk.f32.gmra.mxu3 %vm1288_vm10, %v2928_v61 }
 0x96c   :  { %v10825_v37 = vpop.f32.mrf.mxu0 }
 0x96d   :  { %8355 = vmatmul.msk.f32.vlgmr.msrb.gmra.mxu3 %vm1147_vm9, %v10815_v59  ;;  %13374 = vst [vmem:[#allocation46_spill] sm:$0xff] %v10825_v37 }
 0x975   :  { %8356 = vmatmul.msk.f32.gmra.mxu3 %vm1147_vm9, %v10821_v10 }
 0x9a5   :  { %v10827_v44 = vpop.f32.mrf.mxu0 }
 0x9a6   :  { %13375 = vst [vmem:[#allocation28_spill] sm:$0xff] %v10827_v44 }
 0x9a7   :  { %v10839_v31 = vpop.f32.mrf.mxu1 }
 0x9a8   :  { %v10833_v29 = vpop.f32.mrf.mxu2  ;;  %13378 = vst [vmem:[#allocation55_spill] sm:$0xff] %v10839_v31 }
 0x9a9   :  { %13376 = vst [vmem:[#allocation29_spill] sm:$0xff] %v10833_v29 }
 0x9ad   :  { %v3106_v8 = vpop.f32.mrf.mxu0 }
 0x9ae   :  { %v3217_v49 = vsel %vm1288_vm10, %v3106_v8, -inf }
 0x9af   :  { %3218 = vmax.xlane.f32.xlu2 %v3217_v49 }
 0x9b5   :  { %v3109_v12 = vpop.f32.mrf.mxu0 }
 0x9b6   :  { %v3220_v33 = vsel %vm1288_vm10, %v3109_v12, -inf }
 0x9b7   :  { %3221 = vmax.xlane.f32.xlu0 %v3220_v33 }
 0x9c1   :  { %v10842_v15 = vpop.f32.mrf.mxu1 }
 0x9c2   :  { %13379 = vst [vmem:[#allocation50_spill] sm:$0xff] %v10842_v15 }
 0x9c7   :  { %3568 = vrot.lane.b32.xlu2 %v10745_v43, %s9427_s8 }
 0x9c9   :  { %v3141_v0 = vpop.f32.mrf.mxu1 }
 0x9ca   :  { %v3223_v61 = vsel %vm1288_vm10, %v3141_v0, -inf }
 0x9cb   :  { %3570 = vrot.lane.b32.xlu0 %v10738_v39, %s9427_s8 }
 0x9cf   :  { %v10837_v56 = vpop.f32.mrf.mxu2 }
 0x9d0   :  { %13377 = vst [vmem:[#allocation52_spill] sm:$0xff] %v10837_v56 }
 0x9d1   :  { %v3144_v25 = vpop.f32.mrf.mxu1 }
 0x9d2   :  { %v3226_v52 = vsel %vm1288_vm10, %v3144_v25, -inf }
 0x9d7   :  { %v3176_v7 = vpop.f32.mrf.mxu2 }
 0x9d8   :  { %v3229_v21 = vsel %vm1288_vm10, %v3176_v7, -inf }
 0x9d9   :  { %3230 = vmax.xlane.f32.xlu1 %v3229_v21 }
 0x9df   :  { %v3179_v1 = vpop.f32.mrf.mxu2 }
 0x9e0   :  { %v10844_v40 = vpop.f32.mrf.mxu3  ;;  %v3232_v35 = vsel %vm1288_vm10, %v3179_v1, -inf }
 0x9e1   :  { %13380 = vst [vmem:[#allocation53_spill] sm:$0xff] %v10844_v40 }
 0x9e8   :  { %v10848_v14 = vpop.f32.mrf.mxu3 }
 0x9e9   :  { %13381 = vst [vmem:[#allocation39_spill] sm:$0xff] %v10848_v14 }
 0x9f0   :  { %3224 = vmax.xlane.f32.xlu2 %v3223_v61  ;;  %v10851_v9 = vpop.f32.mrf.mxu3  ;;  %v10859_v61 = vpop.permute.xlu2 %3527 }
 0x9f1   :  { %v3235_v49 = vsel %vm1288_vm10, %v10851_v9, -inf }
 0x9f8   :  { %3227 = vmax.xlane.f32.xlu2 %v3226_v52  ;;  %v10855_v33 = vpop.f32.mrf.mxu3 }
 0x9f9   :  { %v3238_v21 = vsel %vm1288_vm10, %v10855_v33, -inf }
 0xa00   :  { %3233 = vmax.xlane.f32.xlu2 %v3232_v35 }
 0xa08   :  { %3236 = vmax.xlane.f32.xlu2 %v3235_v49 }
 0xa10   :  { %3239 = vmax.xlane.f32.xlu2 %v3238_v21 }
 0xa22   :  { %v3219_v42 = vpop.xlane.xlu2 %3218 }
 0xa23   :  { %v3241_v52 = vsub.f32 %v3106_v8, %v3219_v42  ;;  %v10871_v8 = vpop.permute.xlu1 %3525 }
 0xa25   :  { %v3249_v14 = vmul.f32 1.442695, %v3241_v52 }
 0xa27   :  { %8843 = vpow2.f32 %v3249_v14 }
 0xa2a   :  { %v3222_v40 = vpop.xlane.xlu0 %3221  ;;  %v3569_v42 = vpop.permute.xlu2 %3568 }
 0xa2b   :  { %v3242_v35 = vsub.f32 %v3109_v12, %v3222_v40  ;;  %v10873_v12 = vpop.permute.xlu1 %3603 }
 0xa2d   :  { %v10861_v60 = vpop.eup %8843  ;;  %v3251_v56 = vmul.f32 1.442695, %v3242_v35 }
 0xa2e   :  { %v3265_v49 = vsel %vm1288_vm10, %v10861_v60, 0.0 }
 0xa2f   :  { %8845 = vpow2.f32 %v3251_v56  ;;  %3266 = vadd.xlane.f32.xlu2 %v3265_v49 }
 0xa33   :  { %v10875_v40 = vpop.permute.xlu1 %3564 }
 0xa35   :  { %v10865_v29 = vpop.eup %8845 }
 0xa36   :  { %v3268_v21 = vsel %vm1288_vm10, %v10865_v29, 0.0 }
 0xa37   :  { %3269 = vadd.xlane.f32.xlu0 %v3268_v21 }
 0xa3d   :  { %v3571_v17 = vpop.permute.xlu0 %3570 }
 0xa3e   :  { %8369 = vmatpush.xpose.msk.msrb.mxu1 %vm1147_vm9, %v3571_v17 }
 0xa42   :  { %8370 = vmatpush.xpose.msk.msrb.mxu1 %vm1147_vm9, %v3569_v42 }
 0xa4c   :  { %v3231_v35 = vpop.xlane.xlu1 %3230 }
 0xa4d   :  { %v3245_v31 = vsub.f32 %v3176_v7, %v3231_v35 }
 0xa4f   :  { %v3257_v28 = vmul.f32 1.442695, %v3245_v31 }
 0xa63   :  { %v3225_v56 = vpop.xlane.xlu2 %3224 }
 0xa64   :  { %v3243_v14 = vsub.f32 %v3141_v0, %v3225_v56 }
 0xa66   :  { %v3253_v52 = vmul.f32 1.442695, %v3243_v14  ;;  %v10904_v14 = vpack.i.bf16 %v10703_v58, %v10697_v62 }
 0xa68   :  { %8847 = vpow2.f32 %v3253_v52 }
 0xa6b   :  { %v3228_v49 = vpop.xlane.xlu2 %3227 }
 0xa6c   :  { %v3244_v15 = vsub.f32 %v3144_v25, %v3228_v49 }
 0xa6e   :  { %v10877_v21 = vpop.eup %8847  ;;  %v3255_v17 = vmul.f32 1.442695, %v3244_v15 }
 0xa6f   :  { %v3271_v42 = vsel %vm1288_vm10, %v10877_v21, 0.0 }
 0xa70   :  { %8849 = vpow2.f32 %v3255_v17  ;;  %3272 = vadd.xlane.f32.xlu2 %v3271_v42  ;;  %v8522_v42 = vpack.i.bf16 %v10749_v55, %v10724_v63 }
 0xa71   :  { %8851 = vpow2.f32 %v3257_v28 }
 0xa73   :  { %v3234_v3 = vpop.xlane.xlu2 %3233 }
 0xa74   :  { %v3246_v38 = vsub.f32 %v3179_v1, %v3234_v3 }
 0xa76   :  { %v10881_v46 = vpop.eup %8849  ;;  %v3259_v0 = vmul.f32 1.442695, %v3246_v38 }
 0xa77   :  { %v3274_v56 = vsel %vm1288_vm10, %v10881_v46, 0.0  ;;  %v10885_v25 = vpop.eup %8851 }
 0xa78   :  { %8853 = vpow2.f32 %v3259_v0  ;;  %3275 = vadd.xlane.f32.xlu1 %v3274_v56  ;;  %v3277_v15 = vsel %vm1288_vm10, %v10885_v25, 0.0 }
 0xa7b   :  { %v3237_v38 = vpop.xlane.xlu2 %3236 }
 0xa7c   :  { %v3247_v28 = vsub.f32 %v10851_v9, %v3237_v38 }
 0xa7e   :  { %v10887_v7 = vpop.eup %8853  ;;  %v3261_v52 = vmul.f32 1.442695, %v3247_v28 }
 0xa7f   :  { %v3280_v31 = vsel %vm1288_vm10, %v10887_v7, 0.0 }
 0xa80   :  { %3278 = vadd.xlane.f32.xlu1 %v3277_v15  ;;  %3281 = vadd.xlane.f32.xlu0 %v3280_v31 }
 0xa83   :  { %v3240_v3 = vpop.xlane.xlu2 %3239 }
 0xa84   :  { %v3248_v28 = vsub.f32 %v10855_v33, %v3240_v3 }
 0xa86   :  { %v3263_v44 = vmul.f32 1.442695, %v3248_v28 }
 0xa88   :  { %3648 = vrot.lane.b32.xlu2 %v10757_v27, %s9427_s8 }
 0xa94   :  { %3605 = vrot.lane.b32.xlu0 %v10795_v2, %s9427_s8 }
 0xa99   :  { %3646 = vrot.lane.b32.xlu1 %v10770_v6, %s9427_s8 }
 0xa9c   :  { %3566 = vrot.lane.b32.xlu0 %v10784_v13, %s9427_s8 }
 0xaa2   :  { %v3267_v1 = vpop.xlane.xlu2 %3266 }
 0xaa3   :  { %8855 = vrcp.f32 %v3267_v1  ;;  %v3300_v62 = vand.u32 2147483648, %v3267_v1  ;;  %v3298_v56 = vand.u32 2147483647, %v3267_v1  ;;  %vm3294_vm14 = vweird.f32 %v3267_v1 }
 0xaa4   :  { %8518 = vrot.lane.b32.xlu0 %v10904_v14, %s9427_s8  ;;  %8857 = vpow2.f32 %v3261_v52 }
 0xaa5   :  { %v3301_v52 = vor.u32 1.1754944e-38, %v3300_v62  ;;  %vm3299_vm0 = vcmp.eq.f32.partialorder %v3298_v56, 8.507059e+37 }
 0xaa9   :  { %v8856_v35 = vpop.eup %8855 }
 0xaaa   :  { %v3290_v49 = vmul.f32 %v8856_v35, %v3267_v1  ;;  %v3270_v17 = vpop.xlane.xlu0 %3269  ;;  %v10911_v9 = vpop.eup %8857  ;;  %vm3295_vm13 = vweird.f32 %v8856_v35 }
 0xaab   :  { %8859 = vrcp.f32 %v3270_v17  ;;  %v3283_v31 = vsel %vm1288_vm10, %v10911_v9, 0.0  ;;  %vm3296_vm15 = vmor %vm3294_vm14, %vm3295_vm13  ;;  %v3315_v18 = vand.u32 2147483648, %v3270_v17  ;;  %v3313_v1 = vand.u32 2147483647, %v3270_v17 }
 0xaac   :  { %v3291_v0 = vsub.f32 1.0, %v3290_v49  ;;  %8523 = vrot.lane.b32.xlu0 %v8522_v42, %s9427_s8  ;;  %vm3309_vm2 = vweird.f32 %v3270_v17  ;;  %8861 = vpow2.f32 %v3263_v44 }
 0xaad   :  { %v3316_v33 = vor.u32 1.1754944e-38, %v3315_v18  ;;  %vm3314_vm4 = vcmp.eq.f32.partialorder %v3313_v1, 8.507059e+37  ;;  %v8527_v18 = vpack.i.bf16 %v10761_v53, %v10730_v57 }
 0xaae   :  { %v3292_v58 = vmul.f32 %v8856_v35, %v3291_v0 }
 0xab0   :  { %v3293_v15 = vadd.f32 %v8856_v35, %v3292_v58 }
 0xab1   :  { %v8860_v38 = vpop.eup %8859  ;;  %3284 = vadd.xlane.f32.xlu2 %v3283_v31 }
 0xab2   :  { %v3297_v49 = vsel %vm3296_vm15, %v8856_v35, %v3293_v15  ;;  %v3305_v42 = vmul.f32 %v8860_v38, %v3270_v17  ;;  %vm3310_vm1 = vweird.f32 %v8860_v38 }
 0xab3   :  { %v3302_v11 = vsel %vm3299_vm0, %v3301_v52, %v3297_v49  ;;  %vm3311_vm3 = vmor %vm3309_vm2, %vm3310_vm1 }
 0xab4   :  { %v3303_v48 = vmul.f32 %v10861_v60, %v3302_v11  ;;  %v3306_v0 = vsub.f32 1.0, %v3305_v42  ;;  %v10920_v60 = vpop.eup %8861 }
 0xab5   :  { %v3286_v11 = vsel %vm1288_vm10, %v10920_v60, 0.0 }
 0xab6   :  { %v3307_v58 = vmul.f32 %v8860_v38, %v3306_v0  ;;  %8357 = vmatmul.msk.f32.vlgmr.msra.gmra.mxu0 %vm1288_vm10, %v3303_v48 }
 0xab8   :  { %v3308_v37 = vadd.f32 %v8860_v38, %v3307_v58 }
 0xaba   :  { %v3312_v3 = vsel %vm3311_vm3, %v8860_v38, %v3308_v37 }
 0xabb   :  { %v3317_v35 = vsel %vm3314_vm4, %v3316_v33, %v3312_v3 }
 0xabc   :  { %v3318_v62 = vmul.f32 %v10865_v29, %v3317_v35 }
 0xabe   :  { %8358 = vmatmul.msk.f32.gmra.mxu0 %vm1288_vm10, %v3318_v62 }
 0xac3   :  { %3287 = vadd.xlane.f32.xlu1 %v3286_v11 }
 0xac6   :  { %8367 = vmatmul.msk.f32.vlgmr.msrb.gmra.mxu0 %vm1147_vm9, %v10871_v8 }
 0xac9   :  { %3642 = vrot.lane.b32.xlu2 %v10815_v59, %s9427_s8 }
 0xace   :  { %8368 = vmatmul.msk.f32.gmra.mxu0 %vm1147_vm9, %v10859_v61 }
 0xad1   :  { %4027 = vrot.lane.b32.xlu2 %v10629_v16, %s9424_s27 }
 0xadc   :  { %3644 = vrot.lane.b32.xlu1 %v10821_v10, %s9427_s8 }
 0xae3   :  { %v3273_v48 = vpop.xlane.xlu2 %3272 }
 0xae4   :  { %8863 = vrcp.f32 %v3273_v48  ;;  %8528 = vrot.lane.b32.xlu1 %v8527_v18, %s9427_s8  ;;  %v3330_v17 = vand.u32 2147483648, %v3273_v48  ;;  %v3328_v15 = vand.u32 2147483647, %v3273_v48  ;;  %vm3324_vm6 = vweird.f32 %v3273_v48 }
 0xae6   :  { %v3331_v28 = vor.u32 1.1754944e-38, %v3330_v17  ;;  %vm3329_vm8 = vcmp.eq.f32.partialorder %v3328_v15, 8.507059e+37 }
 0xaea   :  { %v8864_v37 = vpop.eup %8863 }
 0xaeb   :  { %v3320_v44 = vmul.f32 %v8864_v37, %v3273_v48  ;;  %v3276_v29 = vpop.xlane.xlu1 %3275  ;;  %v3649_v8 = vpop.permute.xlu2 %3648  ;;  %vm3325_vm5 = vweird.f32 %v8864_v37 }
 0xaec   :  { %8865 = vrcp.f32 %v3276_v29  ;;  %8377 = vmatpush.xpose.msk.msrb.mxu3 %vm1147_vm9, %v3649_v8  ;;  %vm3326_vm7 = vmor %vm3324_vm6, %vm3325_vm5  ;;  %v3345_v3 = vand.u32 2147483648, %v3276_v29  ;;  %v3343_v62 = vand.u32 2147483647, %v3276_v29  ;;  %vm3339_vm12 = vweird.f32 %v3276_v29 }
 0xaed   :  { %v3321_v61 = vsub.f32 1.0, %v3320_v44 }
 0xaee   :  { %v3346_v48 = vor.u32 1.1754944e-38, %v3345_v3  ;;  %vm3344_vm14 = vcmp.eq.f32.partialorder %v3343_v62, 8.507059e+37 }
 0xaef   :  { %v3322_v56 = vmul.f32 %v8864_v37, %v3321_v61 }
 0xaf1   :  { %v3323_v31 = vadd.f32 %v8864_v37, %v3322_v56 }
 0xaf2   :  { %v8866_v38 = vpop.eup %8865 }
 0xaf3   :  { %v3327_v52 = vsel %vm3326_vm7, %v8864_v37, %v3323_v31  ;;  %v3335_v49 = vmul.f32 %v8866_v38, %v3276_v29  ;;  %v3279_v42 = vpop.xlane.xlu1 %3278  ;;  %v3282_v0 = vpop.xlane.xlu0 %3281  ;;  %vm3340_vm11 = vweird.f32 %v8866_v38 }
 0xaf4   :  { %v3332_v58 = vsel %vm3329_vm8, %v3331_v28, %v3327_v52  ;;  %8867 = vrcp.f32 %v3279_v42  ;;  %vm3341_vm13 = vmor %vm3339_vm12, %vm3340_vm11  ;;  %v3360_v15 = vand.u32 2147483648, %v3279_v42  ;;  %v3358_v52 = vand.u32 2147483647, %v3279_v42 }
 0xaf5   :  { %v3333_v1 = vmul.f32 %v10877_v21, %v3332_v58  ;;  %v3336_v33 = vsub.f32 1.0, %v3335_v49  ;;  %8869 = vrcp.f32 %v3282_v0  ;;  %vm3354_vm0 = vweird.f32 %v3279_v42 }
 0xaf6   :  { %v3361_v58 = vor.u32 1.1754944e-38, %v3360_v15  ;;  %vm3359_vm2 = vcmp.eq.f32.partialorder %v3358_v52, 8.507059e+37  ;;  %v3375_v3 = vand.u32 2147483648, %v3282_v0  ;;  %vm3369_vm4 = vweird.f32 %v3282_v0 }
 0xaf7   :  { %v3337_v35 = vmul.f32 %v8866_v38, %v3336_v33  ;;  %8359 = vmatmul.msk.f32.vlgmr.msra.gmra.mxu1 %vm1288_vm10, %v3333_v1 }
 0xaf9   :  { %v3338_v11 = vadd.f32 %v8866_v38, %v3337_v35  ;;  %v3373_v35 = vand.u32 2147483647, %v3282_v0 }
 0xafa   :  { %v8868_v18 = vpop.eup %8867 }
 0xafb   :  { %v8870_v37 = vpop.eup %8869  ;;  %v3350_v44 = vmul.f32 %v8868_v18, %v3279_v42  ;;  %v3342_v8 = vsel %vm3341_vm13, %v8866_v38, %v3338_v11  ;;  %vm3355_vm15 = vweird.f32 %v8868_v18  ;;  %v3376_v11 = vor.u32 1.1754944e-38, %v3375_v3 }
 0xafc   :  { %v3365_v61 = vmul.f32 %v8870_v37, %v3282_v0  ;;  %v3347_v17 = vsel %vm3344_vm14, %v3346_v48, %v3342_v8  ;;  %vm3356_vm1 = vmor %vm3354_vm0, %vm3355_vm15  ;;  %vm3370_vm3 = vweird.f32 %v8870_v37  ;;  %vm3374_vm6 = vcmp.eq.f32.partialorder %v3373_v35, 8.507059e+37 }
 0xafd   :  { %v3351_v21 = vsub.f32 1.0, %v3350_v44  ;;  %v3348_v56 = vmul.f32 %v10881_v46, %v3347_v17  ;;  %vm3371_vm5 = vmor %vm3369_vm4, %vm3370_vm3 }
 0xafe   :  { %v3366_v31 = vsub.f32 1.0, %v3365_v61 }
 0xaff   :  { %v3352_v28 = vmul.f32 %v8868_v18, %v3351_v21  ;;  %8360 = vmatmul.msk.f32.gmra.mxu1 %vm1288_vm10, %v3348_v56 }
 0xb00   :  { %v3367_v29 = vmul.f32 %v8870_v37, %v3366_v31 }
 0xb01   :  { %v3353_v49 = vadd.f32 %v8868_v18, %v3352_v28 }
 0xb02   :  { %v3368_v38 = vadd.f32 %v8870_v37, %v3367_v29 }
 0xb03   :  { %v3357_v1 = vsel %vm3356_vm1, %v8868_v18, %v3353_v49 }
 0xb04   :  { %v3362_v33 = vsel %vm3359_vm2, %v3361_v58, %v3357_v1  ;;  %v3372_v42 = vsel %vm3371_vm5, %v8870_v37, %v3368_v38 }
 0xb05   :  { %v3363_v46 = vmul.f32 %v10885_v25, %v3362_v33  ;;  %v3377_v18 = vsel %vm3374_vm6, %v3376_v11, %v3372_v42 }
 0xb06   :  { %v3606_v62 = vpop.permute.xlu0 %3605  ;;  %v3378_v44 = vmul.f32 %v10887_v7, %v3377_v18 }
 0xb07   :  { %8361 = vmatmul.msk.f32.vlgmr.msra.gmra.mxu2 %vm1288_vm10, %v3363_v46  ;;  %8371 = vmatmul.msk.f32.vlgmr.msrb.gmra.mxu1 %vm1147_vm9, %v10875_v40 }
 0xb0b   :  { %v3647_v48 = vpop.permute.xlu1 %3646 }
 0xb0c   :  { %8378 = vmatpush.xpose.msk.msrb.mxu3 %vm1147_vm9, %v3647_v48 }
 0xb0e   :  { %v3567_v8 = vpop.permute.xlu0 %3566 }
 0xb0f   :  { %8362 = vmatmul.msk.f32.gmra.mxu2 %vm1288_vm10, %v3378_v44  ;;  %8372 = vmatmul.msk.f32.gmra.mxu1 %vm1147_vm9, %v3567_v8 }
 0xb16   :  { %v8519_v25 = vpop.permute.xlu0 %8518 }
 0xb17   :  { %v8520_v0 = vunpack.i.l.bf16 %v8519_v25  ;;  %8375 = vmatmul.msk.f32.vlgmr.msrb.gmra.mxu2 %vm1147_vm9, %v10873_v12  ;;  %v8521_v40 = vunpack.i.h.bf16 %v8519_v25 }
 0xb19   :  { %3901 = vmatpush.msra.mxu0 %v8520_v0 }
 0xb1b   :  { %3902 = vmatpush.msra.mxu0 %v8521_v40 }
 0xb1e   :  { %v8524_v37 = vpop.permute.xlu0 %8523 }
 0xb1f   :  { %v8526_v61 = vunpack.i.h.bf16 %v8524_v37  ;;  %v8525_v17 = vunpack.i.l.bf16 %v8524_v37  ;;  %8376 = vmatmul.msk.f32.gmra.mxu2 %vm1147_vm9, %v3606_v62 }
 0xb21   :  { %3938 = vmatpush.msra.mxu1 %v8526_v61  ;;  %3975 = vmatpush.msra.mxu2 %v8525_v17 }
 0xb24   :  { %v3285_v7 = vpop.xlane.xlu2 %3284 }
 0xb25   :  { %8871 = vrcp.f32 %v3285_v7  ;;  %v3390_v28 = vand.u32 2147483648, %v3285_v7  ;;  %v3388_v12 = vand.u32 2147483647, %v3285_v7  ;;  %vm3384_vm8 = vweird.f32 %v3285_v7 }
 0xb27   :  { %v3391_v49 = vor.u32 1.1754944e-38, %v3390_v28  ;;  %vm3389_vm12 = vcmp.eq.f32.partialorder %v3388_v12, 8.507059e+37 }
 0xb2b   :  { %v8872_v21 = vpop.eup %8871 }
 0xb2c   :  { %v3380_v56 = vmul.f32 %v8872_v21, %v3285_v7  ;;  %v3643_v15 = vpop.permute.xlu2 %3642  ;;  %vm3385_vm7 = vweird.f32 %v8872_v21 }
 0xb2d   :  { %vm3386_vm11 = vmor %vm3384_vm8, %vm3385_vm7 }
 0xb2e   :  { %v3381_v31 = vsub.f32 1.0, %v3380_v56 }
 0xb30   :  { %v3382_v52 = vmul.f32 %v8872_v21, %v3381_v31 }
 0xb32   :  { %v3383_v29 = vadd.f32 %v8872_v21, %v3382_v52 }
 0xb33   :  { %v10953_v58 = vpop.f32.mrf.mxu0 }
 0xb34   :  { %v3387_v1 = vsel %vm3386_vm11, %v8872_v21, %v3383_v29  ;;  %v4028_v38 = vpop.permute.xlu2 %4027 }
 0xb35   :  { %v3392_v33 = vsel %vm3389_vm12, %v3391_v49, %v3387_v1  ;;  %8389 = vmatpush.xpose.msk.msrb.mxu0 %vm1147_vm9, %v4028_v38 }
 0xb36   :  { %v3393_v3 = vmul.f32 %v10911_v9, %v3392_v33  ;;  %v3288_v46 = vpop.xlane.xlu1 %3287 }
 0xb37   :  { %8873 = vrcp.f32 %v3288_v46  ;;  %v3405_v18 = vand.u32 2147483648, %v3288_v46  ;;  %v3403_v44 = vand.u32 2147483647, %v3288_v46  ;;  %vm3399_vm14 = vweird.f32 %v3288_v46 }
 0xb38   :  { %8363 = vmatmul.msk.f32.vlgmr.msra.gmra.mxu3 %vm1288_vm10, %v3393_v3 }
 0xb39   :  { %v3406_v9 = vor.u32 1.1754944e-38, %v3405_v18  ;;  %vm3404_vm0 = vcmp.eq.f32.partialorder %v3403_v44, 8.507059e+37 }
 0xb3b   :  { %v10958_v35 = vpop.f32.mrf.mxu0 }
 0xb3d   :  { %v8874_v62 = vpop.eup %8873 }
 0xb3e   :  { %v3395_v42 = vmul.f32 %v8874_v62, %v3288_v46  ;;  %vm3400_vm13 = vweird.f32 %v8874_v62 }
 0xb3f   :  { %vm3401_vm15 = vmor %vm3399_vm14, %vm3400_vm13 }
 0xb40   :  { %v3396_v11 = vsub.f32 1.0, %v3395_v42 }
 0xb42   :  { %v3397_v48 = vmul.f32 %v8874_v62, %v3396_v11 }
 0xb43   :  { %v3558_v8 = vpop.f32.mrf.mxu0 }
 0xb44   :  { %v3681_v25 = vsel %vm1288_vm10, %v3558_v8, -inf  ;;  %v3398_v0 = vadd.f32 %v8874_v62, %v3397_v48 }
 0xb45   :  { %3682 = vmax.xlane.f32.xlu0 %v3681_v25 }
 0xb46   :  { %v3402_v40 = vsel %vm3401_vm15, %v8874_v62, %v3398_v0 }
 0xb47   :  { %v3407_v37 = vsel %vm3404_vm0, %v3406_v9, %v3402_v40 }
 0xb48   :  { %v3408_v61 = vmul.f32 %v10920_v60, %v3407_v37 }
 0xb4a   :  { %8364 = vmatmul.msk.f32.gmra.mxu3 %vm1288_vm10, %v3408_v61 }
 0xb4b   :  { %v3561_v17 = vpop.f32.mrf.mxu0 }
 0xb4c   :  { %v3684_v7 = vsel %vm1288_vm10, %v3561_v17, -inf }
 0xb4d   :  { %3685 = vmax.xlane.f32.xlu2 %v3684_v7 }
 0xb4e   :  { %v3645_v21 = vpop.permute.xlu1 %3644 }
 0xb52   :  { %8379 = vmatmul.msk.f32.vlgmr.msrb.gmra.mxu3 %vm1147_vm9, %v3643_v15 }
 0xb56   :  { %v8529_v56 = vpop.permute.xlu1 %8528 }
 0xb57   :  { %v8531_v31 = vunpack.i.h.bf16 %v8529_v56  ;;  %v8530_v28 = vunpack.i.l.bf16 %v8529_v56 }
 0xb59   :  { %3939 = vmatpush.msra.mxu1 %v8531_v31  ;;  %3976 = vmatpush.msra.mxu2 %v8530_v28  ;;  %v11002_v31 = vpack.i.bf16 %v10807_v34, %v10800_v5 }
 0xb5a   :  { %8380 = vmatmul.msk.f32.gmra.mxu3 %vm1147_vm9, %v3645_v21 }
 0xb74   :  { %v10966_v52 = vpop.f32.mrf.mxu1 }
 0xb7c   :  { %v10968_v12 = vpop.f32.mrf.mxu1 }
 0xb84   :  { %v3597_v60 = vpop.f32.mrf.mxu1 }
 0xb85   :  { %v3687_v29 = vsel %vm1288_vm10, %v3597_v60, -inf }
 0xb86   :  { %3688 = vmax.xlane.f32.xlu0 %v3687_v29 }
 0xb8a   :  { %v10971_v49 = vpop.f32.mrf.mxu2 }
 0xb8c   :  { %v3600_v1 = vpop.f32.mrf.mxu1 }
 0xb8d   :  { %v3690_v15 = vsel %vm1288_vm10, %v3600_v1, -inf }
 0xb8e   :  { %3691 = vmax.xlane.f32.xlu1 %v3690_v15 }
 0xb92   :  { %v10974_v38 = vpop.f32.mrf.mxu2 }
 0xb9a   :  { %v3636_v33 = vpop.f32.mrf.mxu2 }
 0xb9b   :  { %v3693_v3 = vsel %vm1288_vm10, %v3636_v33, -inf }
 0xb9c   :  { %3694 = vmax.xlane.f32.xlu1 %v3693_v3 }
 0xba2   :  { %v3639_v46 = vpop.f32.mrf.mxu2 }
 0xba3   :  { %v3696_v62 = vsel %vm1288_vm10, %v3639_v46, -inf }
 0xba4   :  { %3697 = vmax.xlane.f32.xlu2 %v3696_v62 }
 0xbb8   :  { %v3683_v42 = vpop.xlane.xlu0 %3682 }
 0xbb9   :  { %v3705_v11 = vsub.f32 %v3558_v8, %v3683_v42 }
 0xbbb   :  { %v3713_v18 = vmul.f32 1.442695, %v3705_v11  ;;  %v10982_v25 = vpop.f32.mrf.mxu3 }
 0xbbd   :  { %8875 = vpow2.f32 %v3713_v18 }
 0xbc0   :  { %v3686_v0 = vpop.xlane.xlu2 %3685 }
 0xbc1   :  { %v3706_v9 = vsub.f32 %v3561_v17, %v3686_v0 }
 0xbc3   :  { %v10978_v48 = vpop.eup %8875  ;;  %v3715_v37 = vmul.f32 1.442695, %v3706_v9 }
 0xbc4   :  { %v3729_v44 = vsel %vm1288_vm10, %v10978_v48, 0.0 }
 0xbc5   :  { %3730 = vadd.xlane.f32.xlu1 %v3729_v44  ;;  %8877 = vpow2.f32 %v3715_v37 }
 0xbcb   :  { %v10990_v7 = vpop.eup %8877 }
 0xbcc   :  { %v3732_v56 = vsel %vm1288_vm10, %v10990_v7, 0.0 }
 0xbcd   :  { %v10984_v40 = vpop.f32.mrf.mxu3 }
 0xbd5   :  { %v10986_v61 = vpop.f32.mrf.mxu3 }
 0xbd6   :  { %v3699_v8 = vsel %vm1288_vm10, %v10986_v61, -inf }
 0xbd7   :  { %3700 = vmax.xlane.f32.xlu0 %v3699_v8 }
 0xbdd   :  { %v10992_v21 = vpop.f32.mrf.mxu3 }
 0xbde   :  { %4023 = vrot.lane.b32.xlu1 %v10711_v23, %s9424_s27  ;;  %v3702_v17 = vsel %vm1288_vm10, %v10992_v21, -inf }
 0xbdf   :  { %3703 = vmax.xlane.f32.xlu2 %v3702_v17  ;;  %3733 = vadd.xlane.f32.xlu0 %v3732_v56 }
 0xbe6   :  { %8533 = vrot.lane.b32.xlu1 %v11002_v31, %s9427_s8 }
 0xbee   :  { %4064 = vrot.lane.b32.xlu1 %v10745_v43, %s9424_s27 }
 0xbf3   :  { %4025 = vrot.lane.b32.xlu0 %v10693_v50, %s9424_s27 }
 0xbf6   :  { %4060 = vrot.lane.b32.xlu1 %v10674_v47, %s9424_s27 }
 0xbf7   :  { %4021 = vrot.lane.b32.xlu2 %v10641_v51, %s9424_s27 }
 0xbf9   :  { %v3689_v5 = vpop.xlane.xlu0 %3688 }
 0xbfa   :  { %v3707_v34 = vsub.f32 %v3597_v60, %v3689_v5 }
 0xbfc   :  { %v3717_v28 = vmul.f32 1.442695, %v3707_v34 }
 0xbfe   :  { %8879 = vpow2.f32 %v3717_v28 }
 0xbff   :  { %4105 = vrot.lane.b32.xlu2 %v10647_v22, %s9424_s27 }
 0xc01   :  { %v3692_v29 = vpop.xlane.xlu1 %3691 }
 0xc02   :  { %v3708_v15 = vsub.f32 %v3600_v1, %v3692_v29 }
 0xc04   :  { %v3719_v3 = vmul.f32 1.442695, %v3708_v15  ;;  %v11022_v62 = vpop.eup %8879 }
 0xc05   :  { %v3735_v60 = vsel %vm1288_vm10, %v11022_v62, 0.0 }
 0xc06   :  { %8881 = vpow2.f32 %v3719_v3 }
 0xc07   :  { %4066 = vrot.lane.b32.xlu2 %v10738_v39, %s9424_s27 }
 0xc0c   :  { %v11028_v42 = vpop.eup %8881 }
 0xc0d   :  { %v3738_v11 = vsel %vm1288_vm10, %v11028_v42, 0.0 }
 0xc0f   :  { %4103 = vrot.lane.b32.xlu2 %v10661_v19, %s9424_s27  ;;  %v3695_v1 = vpop.xlane.xlu1 %3694 }
 0xc10   :  { %v3709_v18 = vsub.f32 %v3636_v33, %v3695_v1 }
 0xc12   :  { %v3721_v0 = vmul.f32 1.442695, %v3709_v18 }
 0xc17   :  { %4099 = vrot.lane.b32.xlu2 %v10657_v41, %s9424_s27  ;;  %v3698_v9 = vpop.xlane.xlu2 %3697 }
 0xc18   :  { %v3710_v37 = vsub.f32 %v3639_v46, %v3698_v9 }
 0xc1a   :  { %v3723_v56 = vmul.f32 1.442695, %v3710_v37 }
 0xc1f   :  { %4101 = vrot.lane.b32.xlu2 %v10795_v2, %s9424_s27 }
 0xc20   :  { %3736 = vadd.xlane.f32.xlu1 %v3735_v60 }
 0xc28   :  { %3739 = vadd.xlane.f32.xlu1 %v3738_v11 }
 0xc38   :  { %v3731_v44 = vpop.xlane.xlu1 %3730 }
 0xc39   :  { %8883 = vrcp.f32 %v3731_v44  ;;  %v3764_v34 = vand.u32 2147483648, %v3731_v44  ;;  %v3762_v15 = vand.u32 2147483647, %v3731_v44  ;;  %vm3758_vm2 = vweird.f32 %v3731_v44 }
 0xc3a   :  { %8885 = vpow2.f32 %v3721_v0 }
 0xc3b   :  { %8887 = vpow2.f32 %v3723_v56  ;;  %v3765_v33 = vor.u32 1.1754944e-38, %v3764_v34  ;;  %vm3763_vm4 = vcmp.eq.f32.partialorder %v3762_v15, 8.507059e+37 }
 0xc3f   :  { %v8884_v8 = vpop.eup %8883 }
 0xc40   :  { %v3754_v17 = vmul.f32 %v8884_v8, %v3731_v44  ;;  %v11032_v28 = vpop.eup %8885  ;;  %vm3759_vm1 = vweird.f32 %v8884_v8 }
 0xc41   :  { %vm3760_vm3 = vmor %vm3758_vm2, %vm3759_vm1  ;;  %v3741_v60 = vsel %vm1288_vm10, %v11032_v28, 0.0  ;;  %v11038_v9 = vpop.eup %8887 }
 0xc42   :  { %v3755_v5 = vsub.f32 1.0, %v3754_v17  ;;  %v3744_v44 = vsel %vm1288_vm10, %v11038_v9, 0.0 }
 0xc44   :  { %v3756_v29 = vmul.f32 %v8884_v8, %v3755_v5 }
 0xc46   :  { %v3757_v3 = vadd.f32 %v8884_v8, %v3756_v29 }
 0xc48   :  { %v3761_v11 = vsel %vm3760_vm3, %v8884_v8, %v3757_v3  ;;  %3742 = vadd.xlane.f32.xlu2 %v3741_v60 }
 0xc49   :  { %v3766_v46 = vsel %vm3763_vm4, %v3765_v33, %v3761_v11 }
 0xc4a   :  { %v3767_v1 = vmul.f32 %v10978_v48, %v3766_v46  ;;  %v3701_v18 = vpop.xlane.xlu0 %3700 }
 0xc4b   :  { %v3711_v0 = vsub.f32 %v10986_v61, %v3701_v18 }
 0xc4c   :  { %8381 = vmatmul.msk.f32.vlgmr.msra.gmra.mxu0 %vm1288_vm10, %v3767_v1 }
 0xc4d   :  { %v3725_v37 = vmul.f32 1.442695, %v3711_v0 }
 0xc4f   :  { %8889 = vpow2.f32 %v3725_v37 }
 0xc50   :  { %v4024_v17 = vpop.permute.xlu1 %4023  ;;  %3745 = vadd.xlane.f32.xlu2 %v3744_v44 }
 0xc52   :  { %v3734_v8 = vpop.xlane.xlu0 %3733  ;;  %v3704_v56 = vpop.xlane.xlu2 %3703 }
 0xc53   :  { %8891 = vrcp.f32 %v3734_v8  ;;  %v3712_v5 = vsub.f32 %v10992_v21, %v3704_v56  ;;  %v3779_v1 = vand.u32 2147483648, %v3734_v8  ;;  %v3777_v0 = vand.u32 2147483647, %v3734_v8 }
 0xc54   :  { %vm3773_vm6 = vweird.f32 %v3734_v8 }
 0xc55   :  { %v11044_v48 = vpop.eup %8889  ;;  %v3727_v34 = vmul.f32 1.442695, %v3712_v5  ;;  %v3780_v56 = vor.u32 1.1754944e-38, %v3779_v1  ;;  %vm3778_vm8 = vcmp.eq.f32.partialorder %v3777_v0, 8.507059e+37 }
 0xc56   :  { %v3747_v61 = vsel %vm1288_vm10, %v11044_v48, 0.0 }
 0xc57   :  { %3748 = vadd.xlane.f32.xlu1 %v3747_v61  ;;  %8893 = vpow2.f32 %v3727_v34 }
 0xc58   :  { %v8534_v29 = vpop.permute.xlu1 %8533 }
 0xc59   :  { %v8892_v15 = vpop.eup %8891  ;;  %v8535_v3 = vunpack.i.l.bf16 %v8534_v29  ;;  %v8536_v11 = vunpack.i.h.bf16 %v8534_v29 }
 0xc5a   :  { %v3769_v33 = vmul.f32 %v8892_v15, %v3734_v8  ;;  %v4022_v60 = vpop.permute.xlu2 %4021  ;;  %vm3774_vm5 = vweird.f32 %v8892_v15 }
 0xc5b   :  { %4012 = vmatpush.msra.mxu3 %v8535_v3  ;;  %vm3775_vm7 = vmor %vm3773_vm6, %vm3774_vm5 }
 0xc5c   :  { %v3770_v46 = vsub.f32 1.0, %v3769_v33 }
 0xc5d   :  { %4013 = vmatpush.msra.mxu3 %v8536_v11  ;;  %v11048_v18 = vpop.eup %8893 }
 0xc5e   :  { %v3771_v21 = vmul.f32 %v8892_v15, %v3770_v46  ;;  %v3750_v37 = vsel %vm1288_vm10, %v11048_v18, 0.0 }
 0xc5f   :  { %3751 = vadd.xlane.f32.xlu0 %v3750_v37 }
 0xc60   :  { %v3772_v44 = vadd.f32 %v8892_v15, %v3771_v21  ;;  %v4065_v33 = vpop.permute.xlu1 %4064 }
 0xc62   :  { %v4106_v5 = vpop.permute.xlu2 %4105  ;;  %v3776_v34 = vsel %vm3775_vm7, %v8892_v15, %v3772_v44  ;;  %v11081_v15 = vpack.i.bf16 %v10761_v53, %v10749_v55 }
 0xc63   :  { %8397 = vmatpush.xpose.msk.msrb.mxu2 %vm1147_vm9, %v4106_v5  ;;  %v3781_v61 = vsel %vm3778_vm8, %v3780_v56, %v3776_v34 }
 0xc64   :  { %v3782_v29 = vmul.f32 %v10990_v7, %v3781_v61 }
 0xc65   :  { %v4026_v3 = vpop.permute.xlu0 %4025 }
 0xc66   :  { %8382 = vmatmul.msk.f32.gmra.mxu0 %vm1288_vm10, %v3782_v29 }
 0xc67   :  { %8390 = vmatpush.xpose.msk.msrb.mxu0 %vm1147_vm9, %v4026_v3 }
 0xc68   :  { %4142 = vrot.lane.b32.xlu2 %v10770_v6, %s9424_s27 }
 0xc6a   :  { %v4067_v8 = vpop.permute.xlu2 %4066 }
 0xc6b   :  { %8393 = vmatpush.xpose.msk.msrb.mxu1 %vm1147_vm9, %v4067_v8 }
 0xc6e   :  { %8391 = vmatmul.msk.f32.vlgmr.msrb.gmra.mxu0 %vm1147_vm9, %v4022_v60 }
 0xc6f   :  { %8394 = vmatpush.xpose.msk.msrb.mxu1 %vm1147_vm9, %v4065_v33 }
 0xc70   :  { %4062 = vrot.lane.b32.xlu1 %v10784_v13, %s9424_s27  ;;  %4140 = vrot.lane.b32.xlu2 %v10821_v10, %s9424_s27 }
 0xc72   :  { %v4104_v7 = vpop.permute.xlu2 %4103 }
 0xc73   :  { %8398 = vmatpush.xpose.msk.msrb.mxu2 %vm1147_vm9, %v4104_v7  ;;  %4144 = vrot.lane.b32.xlu0 %v10757_v27, %s9424_s27 }
 0xc76   :  { %8392 = vmatmul.msk.f32.gmra.mxu0 %vm1147_vm9, %v4024_v17  ;;  %v11087_v17 = vpack.i.bf16 %v10730_v57, %v10724_v63 }
 0xc78   :  { %4138 = vrot.lane.b32.xlu1 %v10815_v59, %s9424_s27  ;;  %4515 = vrot.lane.b32.xlu2 %v10629_v16, %s9428_s10  ;;  %v4061_v16 = vpop.permute.xlu1 %4060 }
 0xc7b   :  { %8538 = vrot.lane.b32.xlu0 %v10904_v14, %s9424_s27 }
 0xc80   :  { %4513 = vrot.lane.b32.xlu1 %v10693_v50, %s9428_s10  ;;  %4509 = vrot.lane.b32.xlu2 %v10641_v51, %s9428_s10 }
 0xc83   :  { %8543 = vrot.lane.b32.xlu0 %v11081_v15, %s9424_s27 }
 0xc88   :  { %8548 = vrot.lane.b32.xlu1 %v11087_v17, %s9424_s27 }
 0xc8b   :  { %4593 = vrot.lane.b32.xlu0 %v10647_v22, %s9428_s10 }
 0xc90   :  { %4511 = vrot.lane.b32.xlu1 %v10711_v23, %s9428_s10 }
 0xc93   :  { %v3737_v51 = vpop.xlane.xlu1 %3736 }
 0xc94   :  { %8895 = vrcp.f32 %v3737_v51  ;;  %v3794_v57 = vand.u32 2147483648, %v3737_v51  ;;  %v3792_v11 = vand.u32 2147483647, %v3737_v51  ;;  %vm3788_vm12 = vweird.f32 %v3737_v51 }
 0xc96   :  { %v3795_v46 = vor.u32 1.1754944e-38, %v3794_v57  ;;  %vm3793_vm14 = vcmp.eq.f32.partialorder %v3792_v11, 8.507059e+37 }
 0xc98   :  { %4554 = vrot.lane.b32.xlu1 %v10738_v39, %s9428_s10 }
 0xc9a   :  { %v8896_v50 = vpop.eup %8895 }
 0xc9b   :  { %v3784_v55 = vmul.f32 %v8896_v50, %v3737_v51  ;;  %v3740_v53 = vpop.xlane.xlu1 %3739  ;;  %vm3789_vm11 = vweird.f32 %v8896_v50 }
 0xc9c   :  { %8897 = vrcp.f32 %v3740_v53  ;;  %vm3790_vm13 = vmor %vm3788_vm12, %vm3789_vm11  ;;  %v3809_v44 = vand.u32 2147483648, %v3740_v53  ;;  %v3807_v5 = vand.u32 2147483647, %v3740_v53  ;;  %vm3803_vm0 = vweird.f32 %v3740_v53 }
 0xc9d   :  { %v3785_v63 = vsub.f32 1.0, %v3784_v55 }
 0xc9e   :  { %v3810_v61 = vor.u32 1.1754944e-38, %v3809_v44  ;;  %vm3808_vm2 = vcmp.eq.f32.partialorder %v3807_v5, 8.507059e+37 }
 0xc9f   :  { %v3786_v60 = vmul.f32 %v8896_v50, %v3785_v63 }
 0xca0   :  { %4552 = vrot.lane.b32.xlu1 %v10745_v43, %s9428_s10  ;;  %v11103_v43 = vpop.permute.xlu2 %4099 }
 0xca1   :  { %v3787_v22 = vadd.f32 %v8896_v50, %v3786_v60 }
 0xca2   :  { %v8898_v23 = vpop.eup %8897 }
 0xca3   :  { %v3791_v1 = vsel %vm3790_vm13, %v8896_v50, %v3787_v22  ;;  %v3799_v39 = vmul.f32 %v8898_v23, %v3740_v53  ;;  %vm3804_vm15 = vweird.f32 %v8898_v23 }
 0xca4   :  { %v3796_v21 = vsel %vm3793_vm14, %v3795_v46, %v3791_v1  ;;  %vm3805_vm1 = vmor %vm3803_vm0, %vm3804_vm15 }
 0xca5   :  { %v3797_v0 = vmul.f32 %v11022_v62, %v3796_v21  ;;  %v3800_v37 = vsub.f32 1.0, %v3799_v39 }
 0xca7   :  { %v3801_v56 = vmul.f32 %v8898_v23, %v3800_v37  ;;  %8383 = vmatmul.msk.f32.vlgmr.msra.gmra.mxu1 %vm1288_vm10, %v3797_v0 }
 0xca8   :  { %4548 = vrot.lane.b32.xlu1 %v10674_v47, %s9428_s10  ;;  %v11109_v8 = vpop.permute.xlu2 %4101 }
 0xca9   :  { %v3802_v34 = vadd.f32 %v8898_v23, %v3801_v56 }
 0xcab   :  { %v3806_v29 = vsel %vm3805_vm1, %v8898_v23, %v3802_v34 }
 0xcac   :  { %v3811_v3 = vsel %vm3808_vm2, %v3810_v61, %v3806_v29 }
 0xcad   :  { %v3812_v62 = vmul.f32 %v11028_v42, %v3811_v3 }
 0xcaf   :  { %8384 = vmatmul.msk.f32.gmra.mxu1 %vm1288_vm10, %v3812_v62 }
 0xcb0   :  { %8553 = vrot.lane.b32.xlu1 %v11002_v31, %s9424_s27 }
 0xcb7   :  { %8395 = vmatmul.msk.f32.vlgmr.msrb.gmra.mxu1 %vm1147_vm9, %v4061_v16 }
 0xcbb   :  { %v3743_v47 = vpop.xlane.xlu2 %3742 }
 0xcbc   :  { %8899 = vrcp.f32 %v3743_v47  ;;  %v3824_v55 = vand.u32 2147483648, %v3743_v47  ;;  %v3822_v42 = vand.u32 2147483647, %v3743_v47  ;;  %vm3818_vm4 = vweird.f32 %v3743_v47 }
 0xcbe   :  { %v3825_v60 = vor.u32 1.1754944e-38, %v3824_v55  ;;  %vm3823_vm6 = vcmp.eq.f32.partialorder %v3822_v42, 8.507059e+37 }
 0xcc2   :  { %v8900_v33 = vpop.eup %8899 }
 0xcc3   :  { %v3814_v7 = vmul.f32 %v8900_v33, %v3743_v47  ;;  %v3746_v51 = vpop.xlane.xlu2 %3745  ;;  %vm3819_vm3 = vweird.f32 %v8900_v33 }
 0xcc4   :  { %8901 = vrcp.f32 %v3746_v51  ;;  %vm3820_vm5 = vmor %vm3818_vm4, %vm3819_vm3  ;;  %v3839_v21 = vand.u32 2147483648, %v3746_v51  ;;  %v3837_v0 = vand.u32 2147483647, %v3746_v51  ;;  %vm3833_vm8 = vweird.f32 %v3746_v51 }
 0xcc5   :  { %v3815_v50 = vsub.f32 1.0, %v3814_v7 }
 0xcc6   :  { %v3840_v5 = vor.u32 1.1754944e-38, %v3839_v21  ;;  %vm3838_vm12 = vcmp.eq.f32.partialorder %v3837_v0, 8.507059e+37 }
 0xcc7   :  { %v3816_v53 = vmul.f32 %v8900_v33, %v3815_v50 }
 0xcc9   :  { %v3817_v63 = vadd.f32 %v8900_v33, %v3816_v53  ;;  %v11116_v53 = vpop.f32.mrf.mxu0 }
 0xcca   :  { %v8902_v57 = vpop.eup %8901  ;;  %v3749_v11 = vpop.xlane.xlu1 %3748 }
 0xccb   :  { %v3821_v22 = vsel %vm3820_vm5, %v8900_v33, %v3817_v63  ;;  %v3829_v16 = vmul.f32 %v8902_v57, %v3746_v51  ;;  %8903 = vrcp.f32 %v3749_v11  ;;  %vm3834_vm7 = vweird.f32 %v8902_v57 }
 0xccc   :  { %v3826_v23 = vsel %vm3823_vm6, %v3825_v60, %v3821_v22  ;;  %vm3835_vm11 = vmor %vm3833_vm8, %vm3834_vm7  ;;  %v3854_v3 = vand.u32 2147483648, %v3749_v11  ;;  %v3852_v47 = vand.u32 2147483647, %v3749_v11  ;;  %vm3848_vm14 = vweird.f32 %v3749_v11 }
 0xccd   :  { %v3827_v46 = vmul.f32 %v11032_v28, %v3826_v23  ;;  %v3830_v1 = vsub.f32 1.0, %v3829_v16 }
 0xcce   :  { %v3855_v51 = vor.u32 1.1754944e-38, %v3854_v3  ;;  %vm3853_vm0 = vcmp.eq.f32.partialorder %v3852_v47, 8.507059e+37 }
 0xccf   :  { %v3831_v39 = vmul.f32 %v8902_v57, %v3830_v1  ;;  %8385 = vmatmul.msk.f32.vlgmr.msra.gmra.mxu2 %vm1288_vm10, %v3827_v46 }
 0xcd1   :  { %v8904_v37 = vpop.eup %8903  ;;  %v3832_v44 = vadd.f32 %v8902_v57, %v3831_v39 }
 0xcd2   :  { %v3844_v56 = vmul.f32 %v8904_v37, %v3749_v11  ;;  %v3752_v34 = vpop.xlane.xlu0 %3751  ;;  %vm3849_vm13 = vweird.f32 %v8904_v37 }
 0xcd3   :  { %v3836_v61 = vsel %vm3835_vm11, %v8902_v57, %v3832_v44  ;;  %8905 = vrcp.f32 %v3752_v34  ;;  %vm3850_vm15 = vmor %vm3848_vm14, %vm3849_vm13  ;;  %v3869_v22 = vand.u32 2147483648, %v3752_v34  ;;  %v3867_v11 = vand.u32 2147483647, %v3752_v34 }
 0xcd4   :  { %v3845_v29 = vsub.f32 1.0, %v3844_v56  ;;  %v3841_v28 = vsel %vm3838_vm12, %v3840_v5, %v3836_v61  ;;  %vm3863_vm2 = vweird.f32 %v3752_v34 }
 0xcd5   :  { %v3842_v33 = vmul.f32 %v11038_v9, %v3841_v28  ;;  %v4143_v9 = vpop.permute.xlu2 %4142  ;;  %v3870_v46 = vor.u32 1.1754944e-38, %v3869_v22  ;;  %vm3868_vm4 = vcmp.eq.f32.partialorder %v3867_v11, 8.507059e+37 }
 0xcd6   :  { %v3846_v62 = vmul.f32 %v8904_v37, %v3845_v29 }
 0xcd7   :  { %8386 = vmatmul.msk.f32.gmra.mxu2 %vm1288_vm10, %v3842_v33 }
 0xcd8   :  { %v3847_v7 = vadd.f32 %v8904_v37, %v3846_v62 }
 0xcd9   :  { %v8906_v50 = vpop.eup %8905 }
 0xcda   :  { %v3851_v55 = vsel %vm3850_vm15, %v8904_v37, %v3847_v7  ;;  %v3859_v63 = vmul.f32 %v8906_v50, %v3752_v34  ;;  %vm3864_vm1 = vweird.f32 %v8906_v50 }
 0xcdb   :  { %v3856_v42 = vsel %vm3853_vm0, %v3855_v51, %v3851_v55  ;;  %vm3865_vm3 = vmor %vm3863_vm2, %vm3864_vm1 }
 0xcdc   :  { %v3857_v57 = vmul.f32 %v11044_v48, %v3856_v42  ;;  %v3860_v60 = vsub.f32 1.0, %v3859_v63 }
 0xcde   :  { %8387 = vmatmul.msk.f32.vlgmr.msra.gmra.mxu3 %vm1288_vm10, %v3857_v57  ;;  %v3861_v16 = vmul.f32 %v8906_v50, %v3860_v60 }
 0xcdf   :  { %8399 = vmatmul.msk.f32.vlgmr.msrb.gmra.mxu2 %vm1147_vm9, %v11103_v43  ;;  %v4141_v43 = vpop.permute.xlu2 %4140 }
 0xce0   :  { %v3862_v23 = vadd.f32 %v8906_v50, %v3861_v16 }
 0xce2   :  { %v4063_v1 = vpop.permute.xlu1 %4062  ;;  %v3866_v48 = vsel %vm3865_vm3, %v8906_v50, %v3862_v23 }
 0xce3   :  { %v11122_v39 = vpop.f32.mrf.mxu0  ;;  %8396 = vmatmul.msk.f32.gmra.mxu1 %vm1147_vm9, %v4063_v1  ;;  %v3871_v21 = vsel %vm3868_vm4, %v3870_v46, %v3866_v48 }
 0xce4   :  { %v3872_v0 = vmul.f32 %v11048_v18, %v3871_v21 }
 0xce5   :  { %v4145_v37 = vpop.permute.xlu0 %4144 }
 0xce6   :  { %8388 = vmatmul.msk.f32.gmra.mxu3 %vm1288_vm10, %v3872_v0 }
 0xce7   :  { %8401 = vmatpush.xpose.msk.msrb.mxu3 %vm1147_vm9, %v4145_v37  ;;  %8400 = vmatmul.msk.f32.gmra.mxu2 %vm1147_vm9, %v11109_v8  ;;  %v4516_v3 = vpop.permute.xlu2 %4515 }
 0xcea   :  { %v4139_v44 = vpop.permute.xlu1 %4138 }
 0xceb   :  { %v4054_v56 = vpop.f32.mrf.mxu0  ;;  %8402 = vmatpush.xpose.msk.msrb.mxu3 %vm1147_vm9, %v4143_v9 }
 0xcec   :  { %v4177_v5 = vsel %vm1288_vm10, %v4054_v56, -inf }
 0xced   :  { %4178 = vmax.xlane.f32.xlu1 %v4177_v5  ;;  %v8539_v34 = vpop.permute.xlu0 %8538 }
 0xcee   :  { %v8540_v61 = vunpack.i.l.bf16 %v8539_v34  ;;  %8403 = vmatmul.msk.f32.vlgmr.msrb.gmra.mxu3 %vm1147_vm9, %v4139_v44  ;;  %v8541_v18 = vunpack.i.h.bf16 %v8539_v34 }
 0xcf0   :  { %4395 = vmatpush.msra.mxu0 %v8540_v61 }
 0xcf2   :  { %v4514_v29 = vpop.permute.xlu1 %4513  ;;  %4396 = vmatpush.msra.mxu0 %v8541_v18 }
 0xcf3   :  { %v4057_v28 = vpop.f32.mrf.mxu0 }
 0xcf4   :  { %8413 = vmatpush.xpose.msk.msrb.mxu0 %vm1147_vm9, %v4516_v3  ;;  %v4180_v8 = vsel %vm1288_vm10, %v4057_v28, -inf }
 0xcf5   :  { %4181 = vmax.xlane.f32.xlu0 %v4180_v8  ;;  %v8544_v62 = vpop.permute.xlu0 %8543 }
 0xcf6   :  { %v8545_v47 = vunpack.i.l.bf16 %v8544_v62  ;;  %8404 = vmatmul.msk.f32.gmra.mxu3 %vm1147_vm9, %v4141_v43  ;;  %v8546_v33 = vunpack.i.h.bf16 %v8544_v62 }
 0xcf8   :  { %8414 = vmatpush.xpose.msk.msrb.mxu0 %vm1147_vm9, %v4514_v29  ;;  %4430 = vmatpush.msra.mxu1 %v8545_v47 }
 0xcfa   :  { %v8549_v7 = vpop.permute.xlu1 %8548  ;;  %4431 = vmatpush.msra.mxu1 %v8546_v33 }
 0xcfb   :  { %v8550_v51 = vunpack.i.l.bf16 %v8549_v7  ;;  %v8551_v50 = vunpack.i.h.bf16 %v8549_v7 }
 0xcfd   :  { %4465 = vmatpush.msra.mxu2 %v8550_v51  ;;  %v4594_v55 = vpop.permute.xlu0 %4593 }
 0xcff   :  { %4466 = vmatpush.msra.mxu2 %v8551_v50 }
 0xd01   :  { %8421 = vmatpush.xpose.msk.msrb.mxu2 %vm1147_vm9, %v4594_v55 }
 0xd02   :  { %v11138_v42 = vpop.permute.xlu1 %4511 }
 0xd0a   :  { %v4555_v63 = vpop.permute.xlu1 %4554 }
 0xd0b   :  { %8417 = vmatpush.xpose.msk.msrb.mxu1 %vm1147_vm9, %v4555_v63 }
 0xd12   :  { %v4553_v57 = vpop.permute.xlu1 %4552 }
 0xd13   :  { %8418 = vmatpush.xpose.msk.msrb.mxu1 %vm1147_vm9, %v4553_v57 }
 0xd1a   :  { %v11142_v60 = vpop.permute.xlu1 %4548 }
 0xd22   :  { %v8554_v22 = vpop.permute.xlu1 %8553 }
 0xd23   :  { %v8555_v9 = vunpack.i.l.bf16 %v8554_v22  ;;  %v8556_v11 = vunpack.i.h.bf16 %v8554_v22  ;;  %v11179_v22 = vpop.permute.xlu2 %4509 }
 0xd24   :  { %v11144_v16 = vpop.f32.mrf.mxu1 }
 0xd25   :  { %4500 = vmatpush.msra.mxu3 %v8555_v9 }
 0xd27   :  { %4501 = vmatpush.msra.mxu3 %v8556_v11 }
 0xd2c   :  { %v11146_v23 = vpop.f32.mrf.mxu1 }
 0xd34   :  { %v4093_v46 = vpop.f32.mrf.mxu1 }
 0xd35   :  { %v4183_v1 = vsel %vm1288_vm10, %v4093_v46, -inf }
 0xd36   :  { %4184 = vmax.xlane.f32.xlu2 %v4183_v1 }
 0xd52   :  { %v11149_v48 = vpop.f32.mrf.mxu2 }
 0xd5a   :  { %v11151_v21 = vpop.f32.mrf.mxu2 }
 0xd60   :  { %v4179_v0 = vpop.xlane.xlu1 %4178  ;;  %v4096_v37 = vpop.f32.mrf.mxu1 }
 0xd61   :  { %v11153_v43 = vpop.f32.mrf.mxu3  ;;  %v4186_v44 = vsel %vm1288_vm10, %v4096_v37, -inf  ;;  %v4201_v5 = vsub.f32 %v4054_v56, %v4179_v0 }
 0xd62   :  { %4187 = vmax.xlane.f32.xlu2 %v4186_v44  ;;  %v4132_v34 = vpop.f32.mrf.mxu2 }
 0xd63   :  { %v4189_v61 = vsel %vm1288_vm10, %v4132_v34, -inf  ;;  %v4209_v18 = vmul.f32 1.442695, %v4201_v5 }
 0xd64   :  { %4190 = vmax.xlane.f32.xlu1 %v4189_v61 }
 0xd65   :  { %8907 = vpow2.f32 %v4209_v18 }
 0xd68   :  { %v4182_v29 = vpop.xlane.xlu0 %4181 }
 0xd69   :  { %v4202_v3 = vsub.f32 %v4057_v28, %v4182_v29  ;;  %v11157_v8 = vpop.f32.mrf.mxu3 }
 0xd6a   :  { %v4135_v62 = vpop.f32.mrf.mxu2 }
 0xd6b   :  { %v4192_v47 = vsel %vm1288_vm10, %v4135_v62, -inf  ;;  %v4211_v33 = vmul.f32 1.442695, %v4202_v3  ;;  %v11160_v7 = vpop.eup %8907 }
 0xd6c   :  { %4193 = vmax.xlane.f32.xlu0 %v4192_v47  ;;  %v4225_v50 = vsel %vm1288_vm10, %v11160_v7, 0.0 }
 0xd6d   :  { %8909 = vpow2.f32 %v4211_v33 }
 0xd71   :  { %v4171_v51 = vpop.f32.mrf.mxu3 }
 0xd72   :  { %v4195_v56 = vsel %vm1288_vm10, %v4171_v51, -inf }
 0xd73   :  { %4196 = vmax.xlane.f32.xlu1 %v4195_v56  ;;  %v11165_v28 = vpop.eup %8909 }
 0xd74   :  { %4226 = vadd.xlane.f32.xlu0 %v4225_v50  ;;  %v4228_v63 = vsel %vm1288_vm10, %v11165_v28, 0.0 }
 0xd79   :  { %v11167_v55 = vpop.f32.mrf.mxu3 }
 0xd7a   :  { %v4198_v57 = vsel %vm1288_vm10, %v11167_v55, -inf }
 0xd7b   :  { %4229 = vadd.xlane.f32.xlu1 %v4228_v63  ;;  %4199 = vmax.xlane.f32.xlu2 %v4198_v57 }
 0xd88   :  { %4587 = vrot.lane.b32.xlu0 %v10657_v41, %s9428_s10 }
 0xd90   :  { %4589 = vrot.lane.b32.xlu0 %v10795_v2, %s9428_s10 }
 0xd94   :  { %4550 = vrot.lane.b32.xlu1 %v10784_v13, %s9428_s10 }
 0xda9   :  { %v4185_v9 = vpop.xlane.xlu2 %4184 }
 0xdaa   :  { %v4203_v11 = vsub.f32 %v4093_v46, %v4185_v9 }
 0xdac   :  { %v4213_v1 = vmul.f32 1.442695, %v4203_v11 }
 0xdae   :  { %8911 = vpow2.f32 %v4213_v1 }
 0xdb4   :  { %v11181_v0 = vpop.eup %8911 }
 0xdb5   :  { %v4231_v44 = vsel %vm1288_vm10, %v11181_v0, 0.0 }
 0xdb6   :  { %4232 = vadd.xlane.f32.xlu2 %v4231_v44 }
 0xdd5   :  { %v4188_v5 = vpop.xlane.xlu2 %4187 }
 0xdd6   :  { %v4204_v41 = vsub.f32 %v4096_v37, %v4188_v5 }
 0xdd7   :  { %v4191_v18 = vpop.xlane.xlu1 %4190 }
 0xdd8   :  { %v4215_v61 = vmul.f32 1.442695, %v4204_v41  ;;  %v4205_v2 = vsub.f32 %v4132_v34, %v4191_v18 }
 0xdda   :  { %8913 = vpow2.f32 %v4215_v61  ;;  %v4217_v29 = vmul.f32 1.442695, %v4205_v2 }
 0xddc   :  { %8915 = vpow2.f32 %v4217_v29 }
 0xddf   :  { %v4194_v3 = vpop.xlane.xlu0 %4193 }
 0xde0   :  { %v11185_v13 = vpop.eup %8913  ;;  %v4206_v46 = vsub.f32 %v4135_v62, %v4194_v3 }
 0xde1   :  { %v4234_v47 = vsel %vm1288_vm10, %v11185_v13, 0.0 }
 0xde2   :  { %4235 = vadd.xlane.f32.xlu2 %v4234_v47  ;;  %v11189_v33 = vpop.eup %8915  ;;  %v4219_v56 = vmul.f32 1.442695, %v4206_v46 }
 0xde3   :  { %v4237_v37 = vsel %vm1288_vm10, %v11189_v33, 0.0 }
 0xde4   :  { %8917 = vpow2.f32 %v4219_v56  ;;  %4238 = vadd.xlane.f32.xlu1 %v4237_v37 }
 0xde6   :  { %v4197_v34 = vpop.xlane.xlu1 %4196 }
 0xde7   :  { %v4207_v50 = vsub.f32 %v4171_v51, %v4197_v34  ;;  %v4227_v63 = vpop.xlane.xlu0 %4226 }
 0xde8   :  { %8919 = vrcp.f32 %v4227_v63  ;;  %v4260_v61 = vand.u32 2147483648, %v4227_v63  ;;  %v4258_v2 = vand.u32 2147483647, %v4227_v63  ;;  %vm4254_vm6 = vweird.f32 %v4227_v63 }
 0xde9   :  { %v4221_v57 = vmul.f32 1.442695, %v4207_v50 }
 0xdea   :  { %v11193_v9 = vpop.eup %8917  ;;  %v4261_v46 = vor.u32 1.1754944e-38, %v4260_v61  ;;  %vm4259_vm8 = vcmp.eq.f32.partialorder %v4258_v2, 8.507059e+37 }
 0xdeb   :  { %8921 = vpow2.f32 %v4221_v57  ;;  %v4240_v62 = vsel %vm1288_vm10, %v11193_v9, 0.0 }
 0xdec   :  { %4241 = vadd.xlane.f32.xlu1 %v4240_v62 }
 0xdee   :  { %v8920_v11 = vpop.eup %8919  ;;  %v4230_v1 = vpop.xlane.xlu1 %4229 }
 0xdef   :  { %v4250_v44 = vmul.f32 %v8920_v11, %v4227_v63  ;;  %8923 = vrcp.f32 %v4230_v1  ;;  %vm4255_vm5 = vweird.f32 %v8920_v11  ;;  %v4275_v57 = vand.u32 2147483648, %v4230_v1 }
 0xdf0   :  { %vm4256_vm7 = vmor %vm4254_vm6, %vm4255_vm5  ;;  %vm4269_vm12 = vweird.f32 %v4230_v1 }
 0xdf1   :  { %v11197_v5 = vpop.eup %8921  ;;  %v4251_v41 = vsub.f32 1.0, %v4250_v44  ;;  %v4273_v44 = vand.u32 2147483647, %v4230_v1  ;;  %v4276_v63 = vor.u32 1.1754944e-38, %v4275_v57 }
 0xdf2   :  { %v4243_v51 = vsel %vm1288_vm10, %v11197_v5, 0.0 }
 0xdf3   :  { %v4252_v18 = vmul.f32 %v8920_v11, %v4251_v41  ;;  %4244 = vadd.xlane.f32.xlu0 %v4243_v51  ;;  %vm4274_vm14 = vcmp.eq.f32.partialorder %v4273_v44, 8.507059e+37 }
 0xdf5   :  { %v8924_v29 = vpop.eup %8923  ;;  %v4253_v3 = vadd.f32 %v8920_v11, %v4252_v18 }
 0xdf6   :  { %v4265_v47 = vmul.f32 %v8924_v29, %v4230_v1  ;;  %vm4270_vm11 = vweird.f32 %v8924_v29 }
 0xdf7   :  { %v4257_v56 = vsel %vm4256_vm7, %v8920_v11, %v4253_v3  ;;  %vm4271_vm13 = vmor %vm4269_vm12, %vm4270_vm11 }
 0xdf8   :  { %v4262_v37 = vsel %vm4259_vm8, %v4261_v46, %v4257_v56  ;;  %v4266_v34 = vsub.f32 1.0, %v4265_v47 }
 0xdf9   :  { %v4263_v50 = vmul.f32 %v11160_v7, %v4262_v37 }
 0xdfa   :  { %4591 = vrot.lane.b32.xlu2 %v10661_v19, %s9428_s10  ;;  %v4267_v62 = vmul.f32 %v8924_v29, %v4266_v34  ;;  %v4200_v19 = vpop.xlane.xlu2 %4199  ;;  %v11228_v34 = vpop.permute.xlu0 %4587 }
 0xdfb   :  { %8405 = vmatmul.msk.f32.vlgmr.msra.gmra.mxu0 %vm1288_vm10, %v4263_v50  ;;  %v4208_v7 = vsub.f32 %v11167_v55, %v4200_v19 }
 0xdfc   :  { %v4268_v41 = vadd.f32 %v8924_v29, %v4267_v62 }
 0xdfe   :  { %v4272_v11 = vsel %vm4271_vm13, %v8924_v29, %v4268_v41 }
 0xdff   :  { %v4277_v61 = vsel %vm4274_vm14, %v4276_v63, %v4272_v11 }
 0xe00   :  { %v4278_v51 = vmul.f32 %v11165_v28, %v4277_v61  ;;  %v4223_v28 = vmul.f32 1.442695, %v4208_v7 }
 0xe02   :  { %8925 = vpow2.f32 %v4223_v28 }
 0xe03   :  { %8406 = vmatmul.msk.f32.gmra.mxu0 %vm1288_vm10, %v4278_v51 }
 0xe05   :  { %4632 = vrot.lane.b32.xlu1 %v10757_v27, %s9428_s10 }
 0xe06   :  { %v11226_v37 = vpop.permute.xlu1 %4550 }
 0xe07   :  { %4630 = vrot.lane.b32.xlu0 %v10770_v6, %s9428_s10 }
 0xe08   :  { %v11218_v1 = vpop.eup %8925 }
 0xe09   :  { %v4246_v27 = vsel %vm1288_vm10, %v11218_v1, 0.0 }
 0xe0b   :  { %8415 = vmatmul.msk.f32.vlgmr.msrb.gmra.mxu0 %vm1147_vm9, %v11179_v22 }
 0xe0d   :  { %4626 = vrot.lane.b32.xlu1 %v10815_v59, %s9428_s10 }
 0xe13   :  { %8416 = vmatmul.msk.f32.gmra.mxu0 %vm1147_vm9, %v11138_v42 }
 0xe23   :  { %4247 = vadd.xlane.f32.xlu2 %v4246_v27 }
 0xe29   :  { %v4233_v6 = vpop.xlane.xlu2 %4232 }
 0xe2a   :  { %8927 = vrcp.f32 %v4233_v6  ;;  %v4290_v29 = vand.u32 2147483648, %v4233_v6  ;;  %v4288_v55 = vand.u32 2147483647, %v4233_v6  ;;  %vm4284_vm0 = vweird.f32 %v4233_v6 }
 0xe2c   :  { %v4291_v42 = vor.u32 1.1754944e-38, %v4290_v29  ;;  %vm4289_vm2 = vcmp.eq.f32.partialorder %v4288_v55, 8.507059e+37 }
 0xe30   :  { %v8928_v22 = vpop.eup %8927 }
 0xe31   :  { %v4280_v18 = vmul.f32 %v8928_v22, %v4233_v6  ;;  %vm4285_vm15 = vweird.f32 %v8928_v22 }
 0xe32   :  { %vm4286_vm1 = vmor %vm4284_vm0, %vm4285_vm15 }
 0xe33   :  { %v4281_v2 = vsub.f32 1.0, %v4280_v18 }
 0xe35   :  { %v4282_v59 = vmul.f32 %v8928_v22, %v4281_v2 }
 0xe37   :  { %v4283_v3 = vadd.f32 %v8928_v22, %v4282_v59 }
 0xe39   :  { %v4287_v46 = vsel %vm4286_vm1, %v8928_v22, %v4283_v3 }
 0xe3a   :  { %v4292_v47 = vsel %vm4289_vm2, %v4291_v42, %v4287_v46 }
 0xe3b   :  { %v4293_v56 = vmul.f32 %v11181_v0, %v4292_v47  ;;  %4628 = vrot.lane.b32.xlu2 %v10821_v10, %s9428_s10  ;;  %v11231_v0 = vpop.permute.xlu0 %4589 }
 0xe3d   :  { %8407 = vmatmul.msk.f32.vlgmr.msra.gmra.mxu1 %vm1288_vm10, %v4293_v56 }
 0xe55   :  { %v4236_v50 = vpop.xlane.xlu2 %4235 }
 0xe56   :  { %8929 = vrcp.f32 %v4236_v50  ;;  %v4305_v10 = vand.u32 2147483648, %v4236_v50  ;;  %v4303_v7 = vand.u32 2147483647, %v4236_v50  ;;  %vm4299_vm4 = vweird.f32 %v4236_v50 }
 0xe57   :  { %v4239_v57 = vpop.xlane.xlu1 %4238 }
 0xe58   :  { %8931 = vrcp.f32 %v4239_v57  ;;  %v4320_v6 = vand.u32 2147483648, %v4239_v57  ;;  %v4306_v22 = vor.u32 1.1754944e-38, %v4305_v10  ;;  %v4318_v2 = vand.u32 2147483647, %v4239_v57 }
 0xe59   :  { %vm4304_vm7 = vcmp.eq.f32.partialorder %v4303_v7, 8.507059e+37  ;;  %vm4314_vm8 = vweird.f32 %v4239_v57 }
 0xe5a   :  { %v4321_v42 = vor.u32 1.1754944e-38, %v4320_v6  ;;  %vm4319_vm12 = vcmp.eq.f32.partialorder %v4318_v2, 8.507059e+37 }
 0xe5c   :  { %v8930_v62 = vpop.eup %8929 }
 0xe5d   :  { %v4295_v44 = vmul.f32 %v8930_v62, %v4236_v50  ;;  %v4592_v41 = vpop.permute.xlu2 %4591  ;;  %vm4300_vm3 = vweird.f32 %v8930_v62 }
 0xe5e   :  { %8422 = vmatpush.xpose.msk.msrb.mxu2 %vm1147_vm9, %v4592_v41  ;;  %v8932_v63 = vpop.eup %8931  ;;  %vm4301_vm5 = vmor %vm4299_vm4, %vm4300_vm3 }
 0xe5f   :  { %v4296_v11 = vsub.f32 1.0, %v4295_v44  ;;  %v4310_v61 = vmul.f32 %v8932_v63, %v4239_v57  ;;  %v4242_v51 = vpop.xlane.xlu1 %4241  ;;  %vm4315_vm6 = vweird.f32 %v8932_v63 }
 0xe60   :  { %8933 = vrcp.f32 %v4242_v51  ;;  %vm4316_vm11 = vmor %vm4314_vm8, %vm4315_vm6  ;;  %v4333_v57 = vand.u32 2147483647, %v4242_v51  ;;  %vm4329_vm14 = vweird.f32 %v4242_v51 }
 0xe61   :  { %v4297_v19 = vmul.f32 %v8930_v62, %v4296_v11  ;;  %v4311_v28 = vsub.f32 1.0, %v4310_v61 }
 0xe62   :  { %vm4334_vm0 = vcmp.eq.f32.partialorder %v4333_v57, 8.507059e+37 }
 0xe63   :  { %v4298_v27 = vadd.f32 %v8930_v62, %v4297_v19  ;;  %v4312_v18 = vmul.f32 %v8932_v63, %v4311_v28 }
 0xe65   :  { %v4302_v29 = vsel %vm4301_vm5, %v8930_v62, %v4298_v27  ;;  %v4313_v59 = vadd.f32 %v8932_v63, %v4312_v18  ;;  %v4335_v62 = vand.u32 2147483648, %v4242_v51 }
 0xe66   :  { %v4307_v55 = vsel %vm4304_vm7, %v4306_v22, %v4302_v29  ;;  %v8934_v3 = vpop.eup %8933  ;;  %v4245_v46 = vpop.xlane.xlu0 %4244 }
 0xe67   :  { %v4308_v47 = vmul.f32 %v11185_v13, %v4307_v55  ;;  %v4317_v56 = vsel %vm4316_vm11, %v8932_v63, %v4313_v59  ;;  %v4325_v50 = vmul.f32 %v8934_v3, %v4242_v51  ;;  %8935 = vrcp.f32 %v4245_v46 }
 0xe68   :  { %v4322_v44 = vsel %vm4319_vm12, %v4321_v42, %v4317_v56  ;;  %vm4330_vm13 = vweird.f32 %v8934_v3  ;;  %v4336_v13 = vor.u32 1.1754944e-38, %v4335_v62  ;;  %v4350_v27 = vand.u32 2147483648, %v4245_v46 }
 0xe69   :  { %8408 = vmatmul.msk.f32.gmra.mxu1 %vm1288_vm10, %v4308_v47  ;;  %v4323_v41 = vmul.f32 %v11189_v33, %v4322_v44  ;;  %v4326_v11 = vsub.f32 1.0, %v4325_v50  ;;  %vm4331_vm15 = vmor %vm4329_vm14, %vm4330_vm13  ;;  %v4348_v18 = vand.u32 2147483647, %v4245_v46  ;;  %vm4344_vm2 = vweird.f32 %v4245_v46 }
 0xe6a   :  { %v4351_v51 = vor.u32 1.1754944e-38, %v4350_v27 }
 0xe6b   :  { %v4327_v10 = vmul.f32 %v8934_v3, %v4326_v11  ;;  %8409 = vmatmul.msk.f32.vlgmr.msra.gmra.mxu2 %vm1288_vm10, %v4323_v41  ;;  %vm4349_vm4 = vcmp.eq.f32.partialorder %v4348_v18, 8.507059e+37 }
 0xe6d   :  { %v8936_v61 = vpop.eup %8935  ;;  %v4328_v19 = vadd.f32 %v8934_v3, %v4327_v10 }
 0xe6e   :  { %v4340_v63 = vmul.f32 %v8936_v61, %v4245_v46  ;;  %vm4345_vm1 = vweird.f32 %v8936_v61 }
 0xe6f   :  { %v4332_v7 = vsel %vm4331_vm15, %v8934_v3, %v4328_v19  ;;  %vm4346_vm3 = vmor %vm4344_vm2, %vm4345_vm1 }
 0xe70   :  { %v4341_v28 = vsub.f32 1.0, %v4340_v63  ;;  %v4337_v33 = vsel %vm4334_vm0, %v4336_v13, %v4332_v7 }
 0xe71   :  { %8419 = vmatmul.msk.f32.vlgmr.msrb.gmra.mxu1 %vm1147_vm9, %v11142_v60  ;;  %v4338_v6 = vmul.f32 %v11193_v9, %v4337_v33 }
 0xe72   :  { %v4342_v22 = vmul.f32 %v8936_v61, %v4341_v28 }
 0xe73   :  { %8410 = vmatmul.msk.f32.gmra.mxu2 %vm1288_vm10, %v4338_v6 }
 0xe74   :  { %v4343_v2 = vadd.f32 %v8936_v61, %v4342_v22 }
 0xe76   :  { %v4347_v29 = vsel %vm4346_vm3, %v8936_v61, %v4343_v2 }
 0xe77   :  { %v4352_v59 = vsel %vm4349_vm4, %v4351_v51, %v4347_v29  ;;  %v4633_v55 = vpop.permute.xlu1 %4632 }
 0xe78   :  { %v4353_v3 = vmul.f32 %v11197_v5, %v4352_v59  ;;  %v11242_v60 = vpop.f32.mrf.mxu0  ;;  %8425 = vmatpush.xpose.msk.msrb.mxu3 %vm1147_vm9, %v4633_v55 }
 0xe79   :  { %8420 = vmatmul.msk.f32.gmra.mxu1 %vm1147_vm9, %v11226_v37  ;;  %v4631_v9 = vpop.permute.xlu0 %4630 }
 0xe7a   :  { %8411 = vmatmul.msk.f32.vlgmr.msra.gmra.mxu3 %vm1288_vm10, %v4353_v3 }
 0xe7b   :  { %8423 = vmatmul.msk.f32.vlgmr.msrb.gmra.mxu2 %vm1147_vm9, %v11228_v34 }
 0xe7c   :  { %8426 = vmatpush.xpose.msk.msrb.mxu3 %vm1147_vm9, %v4631_v9 }
 0xe7f   :  { %v4627_v13 = vpop.permute.xlu1 %4626 }
 0xe80   :  { %v11251_v42 = vpop.f32.mrf.mxu0 }
 0xe83   :  { %8424 = vmatmul.msk.f32.gmra.mxu2 %vm1147_vm9, %v11231_v0 }
 0xe88   :  { %v4542_v5 = vpop.f32.mrf.mxu0 }
 0xe89   :  { %v4665_v46 = vsel %vm1288_vm10, %v4542_v5, -inf }
 0xe8a   :  { %4666 = vmax.xlane.f32.xlu0 %v4665_v46 }
 0xe90   :  { %v4545_v47 = vpop.f32.mrf.mxu0 }
 0xe91   :  { %v4668_v37 = vsel %vm1288_vm10, %v4545_v47, -inf }
 0xe92   :  { %4669 = vmax.xlane.f32.xlu1 %v4668_v37 }
 0xe96   :  { %v4248_v56 = vpop.xlane.xlu2 %4247 }
 0xe97   :  { %8937 = vrcp.f32 %v4248_v56  ;;  %v4365_v41 = vand.u32 2147483648, %v4248_v56  ;;  %v4363_v62 = vand.u32 2147483647, %v4248_v56  ;;  %vm4359_vm6 = vweird.f32 %v4248_v56 }
 0xe99   :  { %v4366_v0 = vor.u32 1.1754944e-38, %v4365_v41  ;;  %vm4364_vm8 = vcmp.eq.f32.partialorder %v4363_v62, 8.507059e+37  ;;  %v8577_v62 = vpack.i.bf16 %v11116_v53, %v10444_v30 }
 0xe9d   :  { %v8938_v50 = vpop.eup %8937 }
 0xe9e   :  { %v4355_v44 = vmul.f32 %v8938_v50, %v4248_v56  ;;  %vm4360_vm5 = vweird.f32 %v8938_v50  ;;  %v4629_v63 = vpop.permute.xlu2 %4628 }
 0xe9f   :  { %vm4361_vm7 = vmor %vm4359_vm6, %vm4360_vm5 }
 0xea0   :  { %v4356_v34 = vsub.f32 1.0, %v4355_v44 }
 0xea2   :  { %v4357_v11 = vmul.f32 %v8938_v50, %v4356_v34 }
 0xea4   :  { %v4358_v10 = vadd.f32 %v8938_v50, %v4357_v11 }
 0xea6   :  { %v4362_v57 = vsel %vm4361_vm7, %v8938_v50, %v4358_v10 }
 0xea7   :  { %v4367_v61 = vsel %vm4364_vm8, %v4366_v0, %v4362_v57  ;;  %v8587_v0 = vpack.i.bf16 %v11122_v39, %v10448_v36 }
 0xea8   :  { %v4368_v19 = vmul.f32 %v11218_v1, %v4367_v61 }
 0xeaa   :  { %8412 = vmatmul.msk.f32.gmra.mxu3 %vm1288_vm10, %v4368_v19 }
 0xeb2   :  { %8427 = vmatmul.msk.f32.vlgmr.msrb.gmra.mxu3 %vm1147_vm9, %v4627_v13 }
 0xeba   :  { %8428 = vmatmul.msk.f32.gmra.mxu3 %vm1147_vm9, %v4629_v63  ;;  %v11261_v7 = vpop.f32.mrf.mxu1 }
 0xee6   :  { %v11263_v28 = vpop.f32.mrf.mxu1 }
 0xeee   :  { %v4581_v33 = vpop.f32.mrf.mxu1  ;;  %v11265_v27 = vpop.f32.mrf.mxu2 }
 0xeef   :  { %v4671_v6 = vsel %vm1288_vm10, %v4581_v33, -inf }
 0xef0   :  { %4672 = vmax.xlane.f32.xlu2 %v4671_v6 }
 0xef6   :  { %v4584_v22 = vpop.f32.mrf.mxu1  ;;  %v11268_v1 = vpop.f32.mrf.mxu2 }
 0xef7   :  { %v4674_v18 = vsel %vm1288_vm10, %v4584_v22, -inf }
 0xef8   :  { %4675 = vmax.xlane.f32.xlu0 %v4674_v18 }
 0xefd   :  { %v4667_v2 = vpop.xlane.xlu0 %4666  ;;  %v11277_v56 = vpop.f32.mrf.mxu3 }
 0xefe   :  { %v4689_v51 = vsub.f32 %v4542_v5, %v4667_v2  ;;  %v4620_v29 = vpop.f32.mrf.mxu2 }
 0xeff   :  { %v4677_v59 = vsel %vm1288_vm10, %v4620_v29, -inf }
 0xf00   :  { %4678 = vmax.xlane.f32.xlu1 %v4677_v59  ;;  %v4697_v55 = vmul.f32 1.442695, %v4689_v51 }
 0xf02   :  { %8939 = vpow2.f32 %v4697_v55 }
 0xf05   :  { %v4670_v5 = vpop.xlane.xlu1 %4669 }
 0xf06   :  { %v4623_v3 = vpop.f32.mrf.mxu2  ;;  %v4690_v50 = vsub.f32 %v4545_v47, %v4670_v5 }
 0xf07   :  { %v4680_v9 = vsel %vm1288_vm10, %v4623_v3, -inf }
 0xf08   :  { %4681 = vmax.xlane.f32.xlu2 %v4680_v9  ;;  %v11273_v46 = vpop.eup %8939  ;;  %v4699_v34 = vmul.f32 1.442695, %v4690_v50 }
 0xf09   :  { %v4713_v37 = vsel %vm1288_vm10, %v11273_v46, 0.0 }
 0xf0a   :  { %8941 = vpow2.f32 %v4699_v34 }
 0xf10   :  { %4714 = vadd.xlane.f32.xlu2 %v4713_v37 }
 0xf28   :  { %8558 = vrot.lane.b32.xlu2 %v10904_v14, %s9428_s10  ;;  %v11292_v14 = vpop.eup %8941 }
 0xf29   :  { %v4716_v10 = vsel %vm1288_vm10, %v11292_v14, 0.0 }
 0xf2d   :  { %v11281_v44 = vpop.f32.mrf.mxu3 }
 0xf30   :  { %8568 = vrot.lane.b32.xlu2 %v11087_v17, %s9428_s10 }
 0xf35   :  { %v11285_v41 = vpop.f32.mrf.mxu3 }
 0xf36   :  { %v4683_v11 = vsel %vm1288_vm10, %v11285_v41, -inf }
 0xf37   :  { %4684 = vmax.xlane.f32.xlu0 %v4683_v11 }
 0xf38   :  { %8578 = vrot.lane.b32.xlu2 %v8577_v62, %s9428_s10 }
 0xf3d   :  { %v11294_v47 = vpop.f32.mrf.mxu3 }
 0xf3e   :  { %v4686_v17 = vsel %vm1288_vm10, %v11294_v47, -inf }
 0xf3f   :  { %4717 = vadd.xlane.f32.xlu0 %v4716_v10  ;;  %4687 = vmax.xlane.f32.xlu1 %v4686_v17 }
 0xf40   :  { %8588 = vrot.lane.b32.xlu2 %v8587_v0, %s9428_s10 }
 0xf53   :  { %8563 = vrot.lane.b32.xlu0 %v11081_v15, %s9428_s10 }
 0xf63   :  { %v4673_v30 = vpop.xlane.xlu2 %4672 }
 0xf64   :  { %v4691_v53 = vsub.f32 %v4581_v33, %v4673_v30 }
 0xf66   :  { %v4701_v57 = vmul.f32 1.442695, %v4691_v53 }
 0xf68   :  { %8943 = vpow2.f32 %v4701_v57 }
 0xf6b   :  { %v4676_v61 = vpop.xlane.xlu0 %4675 }
 0xf6c   :  { %v4692_v19 = vsub.f32 %v4584_v22, %v4676_v61 }
 0xf6e   :  { %v11305_v13 = vpop.eup %8943  ;;  %v4703_v63 = vmul.f32 1.442695, %v4692_v19 }
 0xf6f   :  { %v4719_v6 = vsel %vm1288_vm10, %v11305_v13, 0.0 }
 0xf70   :  { %4720 = vadd.xlane.f32.xlu1 %v4719_v6  ;;  %8945 = vpow2.f32 %v4703_v63 }
 0xf73   :  { %v4679_v36 = vpop.xlane.xlu1 %4678 }
 0xf74   :  { %v4693_v39 = vsub.f32 %v4620_v29, %v4679_v36  ;;  %v8592_v36 = vpack.i.bf16 %v11251_v42, %v10575_v26 }
 0xf76   :  { %v4705_v18 = vmul.f32 1.442695, %v4693_v39  ;;  %v11309_v2 = vpop.eup %8945 }
 0xf77   :  { %v4722_v33 = vsel %vm1288_vm10, %v11309_v2, 0.0 }
 0xf78   :  { %8947 = vpow2.f32 %v4705_v18 }
 0xf7b   :  { %v4682_v15 = vpop.xlane.xlu2 %4681 }
 0xf7c   :  { %v4694_v51 = vsub.f32 %v4623_v3, %v4682_v15 }
 0xf7d   :  { %4723 = vadd.xlane.f32.xlu0 %v4722_v33 }
 0xf7e   :  { %v11313_v22 = vpop.eup %8947  ;;  %v4707_v59 = vmul.f32 1.442695, %v4694_v51 }
 0xf7f   :  { %v4725_v55 = vsel %vm1288_vm10, %v11313_v22, 0.0 }
 0xf80   :  { %8949 = vpow2.f32 %v4707_v59  ;;  %4726 = vadd.xlane.f32.xlu1 %v4725_v55 }
 0xf83   :  { %v4715_v9 = vpop.xlane.xlu2 %4714 }
 0xf84   :  { %8951 = vrcp.f32 %v4715_v9  ;;  %v4748_v62 = vand.u32 2147483648, %v4715_v9  ;;  %v4746_v0 = vand.u32 2147483647, %v4715_v9  ;;  %vm4742_vm12 = vweird.f32 %v4715_v9 }
 0xf86   :  { %v11317_v29 = vpop.eup %8949  ;;  %v4749_v53 = vor.u32 1.1754944e-38, %v4748_v62  ;;  %vm4747_vm14 = vcmp.eq.f32.partialorder %v4746_v0, 8.507059e+37 }
 0xf87   :  { %v4728_v37 = vsel %vm1288_vm10, %v11317_v29, 0.0 }
 0xf88   :  { %4729 = vadd.xlane.f32.xlu1 %v4728_v37 }
 0xf8a   :  { %v8952_v5 = vpop.eup %8951 }
 0xf8b   :  { %v4738_v50 = vmul.f32 %v8952_v5, %v4715_v9  ;;  %v8559_v3 = vpop.permute.xlu2 %8558  ;;  %vm4743_vm11 = vweird.f32 %v8952_v5 }
 0xf8c   :  { %v8560_v34 = vunpack.i.l.bf16 %v8559_v3  ;;  %v8561_v10 = vunpack.i.h.bf16 %v8559_v3  ;;  %vm4744_vm13 = vmor %vm4742_vm12, %vm4743_vm11 }
 0xf8d   :  { %v4739_v11 = vsub.f32 1.0, %v4738_v50 }
 0xf8e   :  { %4883 = vmatpush.msra.mxu0 %v8560_v34 }
 0xf8f   :  { %v4740_v17 = vmul.f32 %v8952_v5, %v4739_v11 }
 0xf90   :  { %4884 = vmatpush.msra.mxu0 %v8561_v10 }
 0xf91   :  { %8573 = vrot.lane.b32.xlu0 %v11002_v31, %s9428_s10  ;;  %v4741_v30 = vadd.f32 %v8952_v5, %v4740_v17 }
 0xf93   :  { %v4745_v57 = vsel %vm4744_vm13, %v8952_v5, %v4741_v30  ;;  %v8569_v61 = vpop.permute.xlu2 %8568 }
 0xf94   :  { %v4750_v19 = vsel %vm4747_vm14, %v4749_v53, %v4745_v57  ;;  %v8570_v63 = vunpack.i.l.bf16 %v8569_v61  ;;  %v8571_v39 = vunpack.i.h.bf16 %v8569_v61  ;;  %v8582_v57 = vpack.i.bf16 %v11242_v60, %v10572_v4 }
 0xf95   :  { %v4751_v6 = vmul.f32 %v11273_v46, %v4750_v19  ;;  %v8617_v61 = vpack.i.bf16 %v11146_v23, %v10459_v24  ;;  %v8637_v4 = vpack.i.bf16 %v11151_v21, %v10453_v32  ;;  %v8647_v32 = vpack.i.bf16 %v11153_v43, %v10461_v54 }
 0xf96   :  { %4953 = vmatpush.msra.mxu2 %v8570_v63  ;;  %v8657_v54 = vpack.i.bf16 %v11157_v8, %v10463_v45 }
 0xf97   :  { %8429 = vmatmul.msk.f32.vlgmr.msra.gmra.mxu0 %vm1288_vm10, %v4751_v6 }
 0xf98   :  { %4954 = vmatpush.msra.mxu2 %v8571_v39 }
 0xf99   :  { %8593 = vrot.lane.b32.xlu0 %v8592_v36, %s9424_s27 }
 0xfaa   :  { %v4685_v31 = vpop.xlane.xlu0 %4684 }
 0xfab   :  { %v4695_v18 = vsub.f32 %v11285_v41, %v4685_v31 }
 0xfad   :  { %v4709_v15 = vmul.f32 1.442695, %v4695_v18 }
 0xfaf   :  { %8953 = vpow2.f32 %v4709_v15 }
 0xfb2   :  { %v4718_v33 = vpop.xlane.xlu0 %4717  ;;  %v4688_v51 = vpop.xlane.xlu1 %4687 }
 0xfb3   :  { %8955 = vrcp.f32 %v4718_v33  ;;  %v4696_v46 = vsub.f32 %v11294_v47, %v4688_v51  ;;  %v4763_v5 = vand.u32 2147483648, %v4718_v33  ;;  %v4761_v3 = vand.u32 2147483647, %v4718_v33 }
 0xfb4   :  { %vm4757_vm0 = vweird.f32 %v4718_v33 }
 0xfb5   :  { %v11330_v59 = vpop.eup %8953  ;;  %v4711_v26 = vmul.f32 1.442695, %v4696_v46  ;;  %v4764_v11 = vor.u32 1.1754944e-38, %v4763_v5  ;;  %vm4762_vm2 = vcmp.eq.f32.partialorder %v4761_v3, 8.507059e+37 }
 0xfb6   :  { %v4731_v42 = vsel %vm1288_vm10, %v11330_v59, 0.0 }
 0xfb7   :  { %4732 = vadd.xlane.f32.xlu1 %v4731_v42  ;;  %8957 = vpow2.f32 %v4711_v26 }
 0xfb9   :  { %v8956_v55 = vpop.eup %8955 }
 0xfba   :  { %v4753_v9 = vmul.f32 %v8956_v55, %v4718_v33  ;;  %vm4758_vm15 = vweird.f32 %v8956_v55 }
 0xfbb   :  { %vm4759_vm1 = vmor %vm4757_vm0, %vm4758_vm15 }
 0xfbc   :  { %v4754_v37 = vsub.f32 1.0, %v4753_v9 }
 0xfbd   :  { %v11334_v41 = vpop.eup %8957 }
 0xfbe   :  { %v4755_v50 = vmul.f32 %v8956_v55, %v4754_v37  ;;  %v4734_v47 = vsel %vm1288_vm10, %v11334_v41, 0.0 }
 0xfbf   :  { %4735 = vadd.xlane.f32.xlu1 %v4734_v47 }
 0xfc0   :  { %v4756_v34 = vadd.f32 %v8956_v55, %v4755_v50 }
 0xfc2   :  { %v4760_v62 = vsel %vm4759_vm1, %v8956_v55, %v4756_v34 }
 0xfc3   :  { %v4765_v10 = vsel %vm4762_vm2, %v4764_v11, %v4760_v62 }
 0xfc4   :  { %v4766_v17 = vmul.f32 %v11292_v14, %v4765_v10  ;;  %v8627_v14 = vpack.i.bf16 %v11149_v48, %v10451_v20 }
 0xfc5   :  { %v8564_v0 = vpop.permute.xlu0 %8563 }
 0xfc6   :  { %v8565_v30 = vunpack.i.l.bf16 %v8564_v0  ;;  %8430 = vmatmul.msk.f32.gmra.mxu0 %vm1288_vm10, %v4766_v17  ;;  %v8566_v53 = vunpack.i.h.bf16 %v8564_v0 }
 0xfc8   :  { %4918 = vmatpush.msra.mxu1 %v8565_v30 }
 0xfca   :  { %4919 = vmatpush.msra.mxu1 %v8566_v53 }
 0xfd8   :  { %8583 = vrot.lane.b32.xlu1 %v8582_v57, %s9424_s27 }
 0xfe0   :  { %8618 = vrot.lane.b32.xlu1 %v8617_v61, %s9428_s10 }
 0xfe3   :  { %v4721_v19 = vpop.xlane.xlu1 %4720 }
 0xfe4   :  { %8959 = vrcp.f32 %v4721_v19  ;;  %v4778_v39 = vand.u32 2147483648, %v4721_v19  ;;  %v4776_v31 = vand.u32 2147483647, %v4721_v19  ;;  %vm4772_vm4 = vweird.f32 %v4721_v19 }
 0xfe6   :  { %v4779_v20 = vor.u32 1.1754944e-38, %v4778_v39  ;;  %vm4777_vm6 = vcmp.eq.f32.partialorder %v4776_v31, 8.507059e+37 }
 0xfe8   :  { %8628 = vrot.lane.b32.xlu1 %v8627_v14, %s9428_s10 }
 0xfea   :  { %v8960_v63 = vpop.eup %8959 }
 0xfeb   :  { %v4768_v6 = vmul.f32 %v8960_v63, %v4721_v19  ;;  %vm4773_vm3 = vweird.f32 %v8960_v63 }
 0xfec   :  { %vm4774_vm5 = vmor %vm4772_vm4, %vm4773_vm3 }
 0xfed   :  { %v4769_v36 = vsub.f32 1.0, %v4768_v6 }
 0xfef   :  { %v4770_v60 = vmul.f32 %v8960_v63, %v4769_v36 }
 0xff0   :  { %v4724_v24 = vpop.xlane.xlu0 %4723  ;;  %8638 = vrot.lane.b32.xlu1 %v8637_v4, %s9428_s10 }
 0xff1   :  { %v4771_v23 = vadd.f32 %v8960_v63, %v4770_v60  ;;  %8961 = vrcp.f32 %v4724_v24  ;;  %v4791_v42 = vand.u32 2147483647, %v4724_v24  ;;  %v4793_v55 = vand.u32 2147483648, %v4724_v24 }
 0xff2   :  { %vm4787_vm8 = vweird.f32 %v4724_v24 }
 0xff3   :  { %v4775_v48 = vsel %vm4774_vm5, %v8960_v63, %v4771_v23  ;;  %v4727_v15 = vpop.xlane.xlu1 %4726  ;;  %vm4792_vm12 = vcmp.eq.f32.partialorder %v4791_v42, 8.507059e+37  ;;  %v4794_v43 = vor.u32 1.1754944e-38, %v4793_v55  ;;  %v13382_v23 = vld [vmem:[#allocation46_spill] sm:$0xff] }
 0xff4   :  { %v4780_v18 = vsel %vm4777_vm6, %v4779_v20, %v4775_v48  ;;  %8963 = vrcp.f32 %v4727_v15  ;;  %v4808_v3 = vand.u32 2147483648, %v4727_v15  ;;  %v4806_v34 = vand.u32 2147483647, %v4727_v15  ;;  %v13383_v48 = vld [vmem:[#allocation67_spill] sm:$0xff] }
 0xff5   :  { %v4781_v33 = vmul.f32 %v11305_v13, %v4780_v18  ;;  %vm4802_vm14 = vweird.f32 %v4727_v15  ;;  %v8602_v18 = vpack.i.bf16 %v11144_v16, %v13383_v48  ;;  %v5262_v48 = vld [vmem:[#allocation10 + $0xb8] sm:$0xff] }
 0xff6   :  { %v4809_v30 = vor.u32 1.1754944e-38, %v4808_v3  ;;  %vm4807_vm0 = vcmp.eq.f32.partialorder %v4806_v34, 8.507059e+37 }
 0xff7   :  { %v8962_v51 = vpop.eup %8961  ;;  %8431 = vmatmul.msk.f32.vlgmr.msra.gmra.mxu1 %vm1288_vm10, %v4781_v33 }
 0xff8   :  { %v4783_v21 = vmul.f32 %v8962_v51, %v4724_v24  ;;  %8648 = vrot.lane.b32.xlu1 %v8647_v32, %s9428_s10  ;;  %vm4788_vm7 = vweird.f32 %v8962_v51 }
 0xff9   :  { %vm4789_vm11 = vmor %vm4787_vm8, %vm4788_vm7 }
 0xffa   :  { %v4784_v46 = vsub.f32 1.0, %v4783_v21  ;;  %v8964_v26 = vpop.eup %8963 }
 0xffb   :  { %v4798_v37 = vmul.f32 %v8964_v26, %v4727_v15  ;;  %v4730_v5 = vpop.xlane.xlu1 %4729  ;;  %vm4803_vm13 = vweird.f32 %v8964_v26 }
 0xffc   :  { %v4785_v9 = vmul.f32 %v8962_v51, %v4784_v46  ;;  %8965 = vrcp.f32 %v4730_v5  ;;  %vm4804_vm15 = vmor %vm4802_vm14, %vm4803_vm13  ;;  %v4823_v63 = vand.u32 2147483648, %v4730_v5  ;;  %vm4817_vm2 = vweird.f32 %v4730_v5 }
 0xffd   :  { %v4799_v50 = vsub.f32 1.0, %v4798_v37 }
 0xffe   :  { %v4786_v13 = vadd.f32 %v8962_v51, %v4785_v9  ;;  %v4824_v4 = vor.u32 1.1754944e-38, %v4823_v63  ;;  %v5268_v63 = vld [vmem:[#allocation10 + $0xe8] sm:$0xff] }
 0xfff   :  { %v4800_v47 = vmul.f32 %v8964_v26, %v4799_v50 }
0x1000   :  { %v4790_v11 = vsel %vm4789_vm11, %v8962_v51, %v4786_v13  ;;  %8658 = vrot.lane.b32.xlu1 %v8657_v54, %s9428_s10 }
0x1001   :  { %v4795_v62 = vsel %vm4792_vm12, %v4794_v43, %v4790_v11  ;;  %v4801_v10 = vadd.f32 %v8964_v26, %v4800_v47 }
0x1002   :  { %v4796_v17 = vmul.f32 %v11309_v2, %v4795_v62  ;;  %v8966_v0 = vpop.eup %8965  ;;  %v4821_v2 = vand.u32 2147483647, %v4730_v5 }
0x1003   :  { %v8574_v53 = vpop.permute.xlu0 %8573  ;;  %v4805_v45 = vsel %vm4804_vm15, %v8964_v26, %v4801_v10  ;;  %v4813_v8 = vmul.f32 %v8966_v0, %v4730_v5  ;;  %vm4818_vm1 = vweird.f32 %v8966_v0  ;;  %v13384_v10 = vld [vmem:[#allocation28_spill] sm:$0xff]  ;;  %vm5197_vm15 = vcmask 523264  }
0x1004   :  { %8432 = vmatmul.msk.f32.gmra.mxu1 %vm1288_vm10, %v4796_v17  ;;  %v4810_v57 = vsel %vm4807_vm0, %v4809_v30, %v4805_v45  ;;  %v8575_v61 = vunpack.i.l.bf16 %v8574_v53  ;;  %v8576_v6 = vunpack.i.h.bf16 %v8574_v53  ;;  %vm4819_vm3 = vmor %vm4817_vm2, %vm4818_vm1  ;;  %vm4822_vm4 = vcmp.eq.f32.partialorder %v4821_v2, 8.507059e+37  ;;  %v5269_v45 = vld [vmem:[#allocation10 + $0xf0] sm:$0xff] }
0x1005   :  { %v4811_v19 = vmul.f32 %v11313_v22, %v4810_v57  ;;  %v4814_v14 = vsub.f32 1.0, %v4813_v8  ;;  %v5301_v8 = vld [vmem:[#allocation10 + $0x1f0] sm:$0xff]  ;;  %v5270_v57 = vld [vmem:[#allocation10 + $0xf8] sm:$0xff]  ;;  %5303 = vmatpush.msrb.mxu0 %v5269_v45  ;;  %v5280_v45 = vld [vmem:[#allocation10 + $0x148] sm:$0xff] }
0x1006   :  { %4988 = vmatpush.msra.mxu3 %v8575_v61  ;;  %5344 = vmatpush.msrb.mxu1 %v5301_v8  ;;  %v5302_v61 = vld [vmem:[#allocation10 + $0x1f8] sm:$0xff]  ;;  %v5245_v8 = vld [vmem:[#allocation10 + $0x30] sm:$0xff] }
0x1007   :  { %v4815_v36 = vmul.f32 %v8966_v0, %v4814_v14  ;;  %8433 = vmatmul.msk.f32.vlgmr.msra.gmra.mxu2 %vm1288_vm10, %v4811_v19  ;;  %v5267_v19 = vld [vmem:[#allocation10 + $0xe0] sm:$0xff] }
0x1008   :  { %4989 = vmatpush.msra.mxu3 %v8576_v6  ;;  %5385 = vmatpush.msrb.mxu2 %v5270_v57  ;;  %v5299_v14 = vld [vmem:[#allocation10 + $0x1e0] sm:$0xff]  ;;  %v5297_v6 = vld [vmem:[#allocation10 + $0x1d0] sm:$0xff] }
0x1009   :  { %v4816_v39 = vadd.f32 %v8966_v0, %v4815_v36  ;;  %5304 = vmatpush.msrb.mxu0 %v5267_v19  ;;  %5345 = vmatpush.msrb.mxu1 %v5299_v14  ;;  %v5298_v36 = vld [vmem:[#allocation10 + $0x1d8] sm:$0xff]  ;;  %v5277_v57 = vld [vmem:[#allocation10 + $0x130] sm:$0xff]  ;;  %v5243_v19 = vld [vmem:[#allocation10 + $0x20] sm:$0xff] }
0x100a   :  { %5426 = vmatpush.msrb.mxu3 %v5302_v61  ;;  %5386 = vmatpush.msrb.mxu2 %v5268_v63  ;;  %v5246_v61 = vld [vmem:[#allocation10 + $0x38] sm:$0xff]  ;;  %v5275_v14 = vld [vmem:[#allocation10 + $0x120] sm:$0xff]  ;;  %v5244_v63 = vld [vmem:[#allocation10 + $0x28] sm:$0xff] }
0x100b   :  { %v4820_v60 = vsel %vm4819_vm3, %v8966_v0, %v4816_v39  ;;  %5346 = vmatpush.msrb.mxu1 %v5297_v6  ;;  %v5265_v39 = vld [vmem:[#allocation10 + $0xd0] sm:$0xff] }
0x100c   :  { %v4825_v31 = vsel %vm4822_vm4, %v4824_v4, %v4820_v60  ;;  %v5266_v4 = vld [vmem:[#allocation10 + $0xd8] sm:$0xff]  ;;  %5305 = vmatpush.msrb.mxu0 %v5265_v39  ;;  %v5263_v60 = vld [vmem:[#allocation10 + $0xc0] sm:$0xff]  ;;  %v13389_v6 = vld [vmem:[#allocation72_spill] sm:$0xff] }
0x100d   :  { %v4826_v24 = vmul.f32 %v11317_v29, %v4825_v31  ;;  %5387 = vmatpush.msrb.mxu2 %v5266_v4  ;;  %v5295_v31 = vld [vmem:[#allocation10 + $0x1c0] sm:$0xff]  ;;  %v5242_v39 = vld [vmem:[#allocation10 + $0x18] sm:$0xff] }
0x100e   :  { %5347 = vmatpush.msrb.mxu1 %v5295_v31  ;;  %5306 = vmatpush.msrb.mxu0 %v5263_v60  ;;  %v5274_v4 = vld [vmem:[#allocation10 + $0x118] sm:$0xff]  ;;  %v5239_v60 = vld [vmem:[#allocation10] sm:$0xff] }
0x100f   :  { %8434 = vmatmul.msk.f32.gmra.mxu2 %vm1288_vm10, %v4826_v24  ;;  %v5264_v24 = vld [vmem:[#allocation10 + $0xc8] sm:$0xff]  ;;  %v5271_v31 = vld [vmem:[#allocation10 + $0x100] sm:$0xff] }
0x1010   :  { %5388 = vmatpush.msrb.mxu2 %v5264_v24  ;;  %v5240_v24 = vld [vmem:[#allocation10 + $0x8] sm:$0xff] }
0x1012   :  { %5389 = vmatpush.msrb.mxu2 %v5262_v48  ;;  %v13391_v48 = vld [vmem:[#allocation55_spill] sm:$0xff] }
0x1014   :  { %v4886_v22 = vpop.f32.mrf.mxu0 }
0x1015   :  { %v8597_v20 = vpack.i.bf16 %v4886_v22, %v13382_v23  ;;  %v5296_v22 = vld [vmem:[#allocation10 + $0x1c8] sm:$0xff]  ;;  %v5261_v23 = vld [vmem:[#allocation10 + $0xb0] sm:$0xff] }
0x1016   :  { %5307 = vmatpush.msrb.mxu0 %v5261_v23 }
0x1017   :  { %8598 = vrot.lane.b32.xlu0 %v8597_v20, %s9427_s8  ;;  %v5293_v20 = vld [vmem:[#allocation10 + $0x1b0] sm:$0xff] }
0x1018   :  { %5348 = vmatpush.msrb.mxu1 %v5293_v20 }
0x101f   :  { %8603 = vrot.lane.b32.xlu0 %v8602_v18, %s9428_s10  ;;  %v5294_v18 = vld [vmem:[#allocation10 + $0x1b8] sm:$0xff] }
0x102a   :  { %v4733_v15 = vpop.xlane.xlu1 %4732 }
0x102b   :  { %8967 = vrcp.f32 %v4733_v15  ;;  %v4838_v29 = vand.u32 2147483648, %v4733_v15  ;;  %v4836_v26 = vand.u32 2147483647, %v4733_v15  ;;  %vm4832_vm6 = vweird.f32 %v4733_v15 }
0x102d   :  { %v4839_v55 = vor.u32 1.1754944e-38, %v4838_v29  ;;  %vm4837_vm8 = vcmp.eq.f32.partialorder %v4836_v26, 8.507059e+37  ;;  %v5258_v29 = vld [vmem:[#allocation10 + $0x98] sm:$0xff] }
0x102e   :  { %v13387_v26 = vld [vmem:[#allocation70_spill] sm:$0xff] }
0x1031   :  { %v8968_v33 = vpop.eup %8967 }
0x1032   :  { %v4828_v51 = vmul.f32 %v8968_v33, %v4733_v15  ;;  %v4736_v32 = vpop.xlane.xlu1 %4735  ;;  %vm4833_vm5 = vweird.f32 %v8968_v33  ;;  %v5291_v15 = vld [vmem:[#allocation10 + $0x1a0] sm:$0xff] }
0x1033   :  { %8969 = vrcp.f32 %v4736_v32  ;;  %vm4834_vm7 = vmor %vm4832_vm6, %vm4833_vm5  ;;  %v4853_v54 = vand.u32 2147483648, %v4736_v32  ;;  %v4851_v3 = vand.u32 2147483647, %v4736_v32  ;;  %vm4847_vm12 = vweird.f32 %v4736_v32  ;;  %5349 = vmatpush.msrb.mxu1 %v5291_v15  ;;  %v8594_v15 = vpop.permute.xlu0 %8593 }
0x1034   :  { %v4829_v21 = vsub.f32 1.0, %v4828_v51  ;;  %v5292_v51 = vld [vmem:[#allocation10 + $0x1a8] sm:$0xff] }
0x1035   :  { %v4854_v34 = vor.u32 1.1754944e-38, %v4853_v54  ;;  %vm4852_vm14 = vcmp.eq.f32.partialorder %v4851_v3, 8.507059e+37  ;;  %v5286_v54 = vld [vmem:[#allocation10 + $0x178] sm:$0xff]  ;;  %v5252_v3 = vld [vmem:[#allocation10 + $0x68] sm:$0xff] }
0x1036   :  { %v4830_v46 = vmul.f32 %v8968_v33, %v4829_v21  ;;  %v5257_v21 = vld [vmem:[#allocation10 + $0x90] sm:$0xff] }
0x1038   :  { %v4831_v42 = vadd.f32 %v8968_v33, %v4830_v46  ;;  %v5290_v46 = vld [vmem:[#allocation10 + $0x198] sm:$0xff] }
0x1039   :  { %v8970_v9 = vpop.eup %8969 }
0x103a   :  { %v4835_v37 = vsel %vm4834_vm7, %v8968_v33, %v4831_v42  ;;  %v4843_v5 = vmul.f32 %v8970_v9, %v4736_v32  ;;  %vm4848_vm11 = vweird.f32 %v8970_v9  ;;  %v5260_v33 = vld [vmem:[#allocation10 + $0xa8] sm:$0xff]  ;;  %v5289_v32 = vld [vmem:[#allocation10 + $0x190] sm:$0xff]  ;;  %v8632_v42 = vpack.i.bf16 %v11265_v27, %v13387_v26  ;;  %v5251_v27 = vld [vmem:[#allocation10 + $0x60] sm:$0xff] }
0x103b   :  { %v4840_v16 = vsel %vm4837_vm8, %v4839_v55, %v4835_v37  ;;  %vm4849_vm13 = vmor %vm4847_vm12, %vm4848_vm11  ;;  %5390 = vmatpush.msrb.mxu2 %v5260_v33  ;;  %5350 = vmatpush.msrb.mxu1 %v5289_v32  ;;  %v5255_v55 = vld [vmem:[#allocation10 + $0x80] sm:$0xff]  ;;  %v5256_v37 = vld [vmem:[#allocation10 + $0x88] sm:$0xff]  ;;  %v8579_v32 = vpop.permute.xlu2 %8578 }
0x103c   :  { %v4841_v13 = vmul.f32 %v11330_v59, %v4840_v16  ;;  %v4844_v50 = vsub.f32 1.0, %v4843_v5  ;;  %v13385_v59 = vld [vmem:[#allocation68_spill] sm:$0xff]  ;;  %v13392_v33 = vld [vmem:[#allocation50_spill] sm:$0xff] }
0x103d   :  { %v8612_v53 = vpack.i.bf16 %v11261_v7, %v13385_v59  ;;  %v13386_v7 = vld [vmem:[#allocation69_spill] sm:$0xff]  ;;  %5391 = vmatpush.msrb.mxu2 %v5258_v29  ;;  %v5288_v16 = vld [vmem:[#allocation10 + $0x188] sm:$0xff]  ;;  %v5279_v59 = vld [vmem:[#allocation10 + $0x140] sm:$0xff]  ;;  %v8581_v29 = vunpack.i.h.bf16 %v8579_v32 }
0x103e   :  { %8435 = vmatmul.msk.f32.vlgmr.msra.gmra.mxu3 %vm1288_vm10, %v4841_v13  ;;  %v4845_v43 = vmul.f32 %v8970_v9, %v4844_v50  ;;  %v8622_v2 = vpack.i.bf16 %v11263_v28, %v13386_v7  ;;  %v5259_v28 = vld [vmem:[#allocation10 + $0xa0] sm:$0xff]  ;;  %v5253_v5 = vld [vmem:[#allocation10 + $0x70] sm:$0xff]  ;;  %v5254_v50 = vld [vmem:[#allocation10 + $0x78] sm:$0xff] }
0x103f   :  { %5308 = vmatpush.msrb.mxu0 %v5259_v28  ;;  %v5285_v13 = vld [vmem:[#allocation10 + $0x170] sm:$0xff]  ;;  %5392 = vmatpush.msrb.mxu2 %v5256_v37 }
0x1040   :  { %v4846_v47 = vadd.f32 %v8970_v9, %v4845_v43  ;;  %v5283_v43 = vld [vmem:[#allocation10 + $0x160] sm:$0xff]  ;;  %v5241_v7 = vld [vmem:[#allocation10 + $0x10] sm:$0xff] }
0x1041   :  { %5309 = vmatpush.msrb.mxu0 %v5257_v21  ;;  %5393 = vmatpush.msrb.mxu2 %v5254_v50 }
0x1042   :  { %v4850_v62 = vsel %vm4849_vm13, %v8970_v9, %v4846_v47  ;;  %v5287_v9 = vld [vmem:[#allocation10 + $0x180] sm:$0xff]  ;;  %v5284_v47 = vld [vmem:[#allocation10 + $0x168] sm:$0xff] }
0x1043   :  { %v4889_v11 = vpop.f32.mrf.mxu0  ;;  %v4855_v0 = vsel %vm4852_vm14, %v4854_v34, %v4850_v62  ;;  %5310 = vmatpush.msrb.mxu0 %v5255_v55  ;;  %5351 = vmatpush.msrb.mxu1 %v5287_v9  ;;  %v5249_v34 = vld [vmem:[#allocation10 + $0x50] sm:$0xff]  ;;  %v5250_v62 = vld [vmem:[#allocation10 + $0x58] sm:$0xff]  ;;  %v13393_v9 = vld [vmem:[#allocation59_spill] sm:$0xff] }
0x1044   :  { %v8607_v17 = vpack.i.bf16 %v4889_v11, %v13384_v10  ;;  %v4856_v30 = vmul.f32 %v11334_v41, %v4855_v0  ;;  %v5300_v41 = vld [vmem:[#allocation10 + $0x1e8] sm:$0xff]  ;;  %v5281_v11 = vld [vmem:[#allocation10 + $0x150] sm:$0xff]  ;;  %5394 = vmatpush.msrb.mxu2 %v5252_v3  ;;  %v5282_v0 = vld [vmem:[#allocation10 + $0x158] sm:$0xff] }
0x1045   :  { %5427 = vmatpush.msrb.mxu3 %v5300_v41  ;;  %5311 = vmatpush.msrb.mxu0 %v5253_v5  ;;  %v13388_v10 = vld [vmem:[#allocation71_spill] sm:$0xff] }
0x1046   :  { %8608 = vrot.lane.b32.xlu2 %v8607_v17, %s9427_s8  ;;  %8436 = vmatmul.msk.f32.gmra.mxu3 %vm1288_vm10, %v4856_v30  ;;  %v8642_v17 = vpack.i.bf16 %v11268_v1, %v13388_v10  ;;  %v5247_v30 = vld [vmem:[#allocation10 + $0x40] sm:$0xff]  ;;  %v5278_v1 = vld [vmem:[#allocation10 + $0x138] sm:$0xff]  ;;  %v5276_v41 = vld [vmem:[#allocation10 + $0x128] sm:$0xff]  ;;  %vm5206_vm10 = vcmask 785408  }
0x1047   :  { %5428 = vmatpush.msrb.mxu3 %v5298_v36  ;;  %5352 = vmatpush.msrb.mxu1 %v5285_v13  ;;  %v8652_v36 = vpack.i.bf16 %v11277_v56, %v13389_v6  ;;  %v13390_v56 = vld [vmem:[#allocation73_spill] sm:$0xff] }
0x1048   :  { %5312 = vmatpush.msrb.mxu0 %v5251_v27  ;;  %5395 = vmatpush.msrb.mxu2 %v5250_v62  ;;  %v8662_v23 = vpack.i.bf16 %v11281_v44, %v13390_v56  ;;  %v5215_v44 = vsel %vm1147_vm9, %v10953_v58, %v8581_v29  ;;  %v13394_v27 = vld [vmem:[#allocation29_spill] sm:$0xff]  ;;  %v8589_v62 = vpop.permute.xlu2 %8588 }
0x1049   :  { %5429 = vmatpush.msrb.mxu3 %v5296_v22  ;;  %5353 = vmatpush.msrb.mxu1 %v5283_v43  ;;  %v5272_v22 = vld [vmem:[#allocation10 + $0x108] sm:$0xff]  ;;  %v8591_v10 = vunpack.i.h.bf16 %v8589_v62  ;;  %v13397_v6 = vld [vmem:[#allocation53_spill] sm:$0xff] }
0x104a   :  { %5313 = vmatpush.msrb.mxu0 %v5249_v34  ;;  %v8584_v21 = vpop.permute.xlu1 %8583  ;;  %v13395_v34 = vld [vmem:[#allocation52_spill] sm:$0xff] }
0x104b   :  { %5430 = vmatpush.msrb.mxu3 %v5294_v18  ;;  %5354 = vmatpush.msrb.mxu1 %v5281_v11  ;;  %v8586_v26 = vunpack.i.h.bf16 %v8584_v21 }
0x104c   :  { %5314 = vmatpush.msrb.mxu0 %v5247_v30  ;;  %v8595_v30 = vunpack.i.l.bf16 %v8594_v15 }
0x104d   :  { %5431 = vmatpush.msrb.mxu3 %v5292_v51  ;;  %5355 = vmatpush.msrb.mxu1 %v5279_v59 }
0x104e   :  { %8613 = vrot.lane.b32.xlu2 %v8612_v53, %s9424_s27  ;;  %v5248_v53 = vld [vmem:[#allocation10 + $0x48] sm:$0xff]  ;;  %5315 = vmatpush.msrb.mxu0 %v5245_v8 }
0x104f   :  { %5432 = vmatpush.msrb.mxu3 %v5290_v46  ;;  %5396 = vmatpush.msrb.mxu2 %v5248_v53  ;;  %v8580_v46 = vunpack.i.l.bf16 %v8579_v32  ;;  %v13396_v8 = vld [vmem:[#allocation60_spill] sm:$0xff] }
0x1050   :  { %5356 = vmatpush.msrb.mxu1 %v5277_v57  ;;  %5316 = vmatpush.msrb.mxu0 %v5243_v19 }
0x1051   :  { %5433 = vmatpush.msrb.mxu3 %v5288_v16  ;;  %5397 = vmatpush.msrb.mxu2 %v5246_v61  ;;  %v5189_v37 = vsel %vm1147_vm9, %v13393_v9, %v8580_v46  ;;  %v5216_v61 = vsel %vm1147_vm9, %v10958_v35, %v8591_v10 }
0x1052   :  { %5357 = vmatpush.msrb.mxu1 %v5275_v14  ;;  %5317 = vmatpush.msrb.mxu0 %v5241_v7 }
0x1053   :  { %5434 = vmatpush.msrb.mxu3 %v5286_v54  ;;  %5398 = vmatpush.msrb.mxu2 %v5244_v63  ;;  %v5223_v54 = vsel %vm5197_vm15, %v5215_v44, %v8586_v26 }
0x1054   :  { %5318 = vmatpush.msrb.mxu0 %v5239_v60 }
0x1055   :  { %5435 = vmatpush.msrb.mxu3 %v5284_v47  ;;  %5399 = vmatpush.msrb.mxu2 %v5242_v39 }
0x1056   :  { %8623 = vrot.lane.b32.xlu2 %v8622_v2, %s9424_s27  ;;  %v5273_v2 = vld [vmem:[#allocation10 + $0x110] sm:$0xff] }
0x1057   :  { %5436 = vmatpush.msrb.mxu3 %v5282_v0  ;;  %5358 = vmatpush.msrb.mxu1 %v5273_v2  ;;  %v8596_v0 = vunpack.i.h.bf16 %v8594_v15  ;;  %v13398_v2 = vld [vmem:[#allocation39_spill] sm:$0xff] }
0x1058   :  { %5400 = vmatpush.msrb.mxu2 %v5240_v24 }
0x1059   :  { %5437 = vmatpush.msrb.mxu3 %v5280_v45  ;;  %5359 = vmatpush.msrb.mxu1 %v5271_v31  ;;  %v5224_v19 = vsel %vm5197_vm15, %v5216_v61, %v8596_v0 }
0x105b   :  { %5438 = vmatpush.msrb.mxu3 %v5278_v1 }
0x105d   :  { %5439 = vmatpush.msrb.mxu3 %v5276_v41 }
0x105e   :  { %8633 = vrot.lane.b32.xlu2 %v8632_v42, %s9424_s27  ;;  %v8585_v42 = vunpack.i.l.bf16 %v8584_v21  ;;  %v8619_v21 = vpop.permute.xlu1 %8618 }
0x105f   :  { %5440 = vmatpush.msrb.mxu3 %v5274_v4  ;;  %v8621_v46 = vunpack.i.h.bf16 %v8619_v21  ;;  %v8620_v26 = vunpack.i.l.bf16 %v8619_v21 }
0x1060   :  { %v5198_v50 = vsel %vm5197_vm15, %v5189_v37, %v8585_v42  ;;  %v13400_v37 = vld [vmem:[#allocation65_spill] sm:$0xff] }
0x1061   :  { %5441 = vmatpush.msrb.mxu3 %v5272_v22 }
0x1066   :  { %8643 = vrot.lane.b32.xlu2 %v8642_v17, %s9424_s27  ;;  %v8590_v17 = vunpack.i.l.bf16 %v8589_v62 }
0x1068   :  { %v5190_v57 = vsel %vm1147_vm9, %v13396_v8, %v8590_v17  ;;  %v13401_v17 = vld [vmem:[#allocation61_spill] sm:$0xff] }
0x1069   :  { %v5199_v1 = vsel %vm5197_vm15, %v5190_v57, %v8595_v30 }
0x106e   :  { %8653 = vrot.lane.b32.xlu2 %v8652_v36, %s9424_s27 }
0x1074   :  { %v4921_v20 = vpop.f32.mrf.mxu1 }
0x1075   :  { %v8667_v18 = vpack.i.bf16 %v4921_v20, %v13391_v48  ;;  %v13399_v48 = vld [vmem:[#allocation63_spill] sm:$0xff] }
0x1076   :  { %8663 = vrot.lane.b32.xlu2 %v8662_v23, %s9424_s27 }
0x1077   :  { %8668 = vrot.lane.b32.xlu0 %v8667_v18, %s9427_s8 }
0x1081   :  { %v4924_v28 = vpop.f32.mrf.mxu1 }
0x1082   :  { %v8672_v51 = vpack.i.bf16 %v4924_v28, %v13392_v33 }
0x1084   :  { %8673 = vrot.lane.b32.xlu0 %v8672_v51, %s9427_s8 }
0x1089   :  { %v8599_v55 = vpop.permute.xlu0 %8598 }
0x108a   :  { %v8601_v16 = vunpack.i.h.bf16 %v8599_v55  ;;  %v8600_v5 = vunpack.i.l.bf16 %v8599_v55  ;;  %v4956_v13 = vpop.f32.mrf.mxu2 }
0x108b   :  { %v8677_v43 = vpack.i.bf16 %v4956_v13, %v13394_v27  ;;  %v8629_v13 = vpop.permute.xlu1 %8628 }
0x108c   :  { %v5207_v3 = vsel %vm5206_vm10, %v5198_v50, %v8600_v5  ;;  %v5231_v47 = vsel %vm5206_vm10, %v5223_v54, %v8601_v16  ;;  %v5192_v16 = vsel %vm1147_vm9, %v13400_v37, %v8620_v26  ;;  %v5218_v5 = vsel %vm1147_vm9, %v10968_v12, %v8621_v46 }
0x108d   :  { %8678 = vrot.lane.b32.xlu0 %v8677_v43, %s9427_s8  ;;  %5319 = vmatmul.f32.vlgmr.msrb.gmra.mxu0 %v5207_v3 }
0x108e   :  { %5360 = vmatmul.f32.vlgmr.msrb.gmra.mxu1 %v5231_v47  ;;  %5401 = vmatmul.f32.vlgmr.msrb.gmra.mxu2 %v5207_v3 }
0x108f   :  { %5442 = vmatmul.f32.vlgmr.msrb.gmra.mxu3 %v5231_v47  ;;  %v8631_v47 = vunpack.i.h.bf16 %v8629_v13 }
0x1091   :  { %v8604_v39 = vpop.permute.xlu0 %8603  ;;  %v5219_v30 = vsel %vm1147_vm9, %v10971_v49, %v8631_v47 }
0x1092   :  { %v4959_v58 = vpop.f32.mrf.mxu2  ;;  %v8606_v60 = vunpack.i.h.bf16 %v8604_v39  ;;  %v8605_v31 = vunpack.i.l.bf16 %v8604_v39 }
0x1093   :  { %v8682_v11 = vpack.i.bf16 %v4959_v58, %v13395_v34  ;;  %v8630_v58 = vunpack.i.l.bf16 %v8629_v13 }
0x1094   :  { %v5191_v18 = vsel %vm1147_vm9, %v13399_v48, %v8605_v31  ;;  %v5217_v28 = vsel %vm1147_vm9, %v10966_v52, %v8606_v60  ;;  %v9115_v48 = vld [vmem:[#allocation2] sm:$0xff] }
0x1095   :  { %8683 = vrot.lane.b32.xlu0 %v8682_v11, %s9427_s8  ;;  %v5193_v0 = vsel %vm1147_vm9, %v13401_v17, %v8630_v58 }
0x10a0   :  { %v8609_v59 = vpop.permute.xlu2 %8608 }
0x10a1   :  { %v8611_v53 = vunpack.i.h.bf16 %v8609_v59  ;;  %v8610_v45 = vunpack.i.l.bf16 %v8609_v59  ;;  %v8639_v59 = vpop.permute.xlu1 %8638 }
0x10a3   :  { %v5208_v14 = vsel %vm5206_vm10, %v5199_v1, %v8610_v45  ;;  %v5232_v63 = vsel %vm5206_vm10, %v5224_v19, %v8611_v53  ;;  %v8641_v1 = vunpack.i.h.bf16 %v8639_v59  ;;  %v8640_v19 = vunpack.i.l.bf16 %v8639_v59 }
0x10a4   :  { %5322 = vmatmul.f32.gmra.mxu0 %v5208_v14  ;;  %5363 = vmatmul.f32.gmra.mxu1 %v5232_v63 }
0x10a5   :  { %5404 = vmatmul.f32.gmra.mxu2 %v5208_v14  ;;  %5445 = vmatmul.f32.gmra.mxu3 %v5232_v63 }
0x10a8   :  { %v8614_v4 = vpop.permute.xlu2 %8613 }
0x10a9   :  { %v8616_v24 = vunpack.i.h.bf16 %v8614_v4  ;;  %v8615_v22 = vunpack.i.l.bf16 %v8614_v4 }
0x10ab   :  { %v5200_v15 = vsel %vm5197_vm15, %v5191_v18, %v8615_v22  ;;  %v5225_v33 = vsel %vm5197_vm15, %v5217_v28, %v8616_v24 }
0x10b0   :  { %v8624_v29 = vpop.permute.xlu2 %8623 }
0x10b1   :  { %v8626_v42 = vunpack.i.h.bf16 %v8624_v29  ;;  %v8625_v44 = vunpack.i.l.bf16 %v8624_v29 }
0x10b3   :  { %v5201_v50 = vsel %vm5197_vm15, %v5192_v16, %v8625_v44  ;;  %v5226_v54 = vsel %vm5197_vm15, %v5218_v5, %v8626_v42  ;;  %v9118_v16 = vld [vmem:[#allocation2 + $0x18] sm:$0xff] }
0x10b8   :  { %v8634_v27 = vpop.permute.xlu2 %8633 }
0x10b9   :  { %v8636_v34 = vunpack.i.h.bf16 %v8634_v27  ;;  %v8635_v11 = vunpack.i.l.bf16 %v8634_v27 }
0x10bb   :  { %v5202_v53 = vsel %vm5197_vm15, %v5193_v0, %v8635_v11  ;;  %v5227_v45 = vsel %vm5197_vm15, %v5219_v30, %v8636_v34 }
0x10c0   :  { %v8644_v8 = vpop.permute.xlu2 %8643 }
0x10c1   :  { %v4991_v41 = vpop.f32.mrf.mxu3  ;;  %v8646_v14 = vunpack.i.h.bf16 %v8644_v8  ;;  %v8645_v63 = vunpack.i.l.bf16 %v8644_v8 }
0x10c2   :  { %v8687_v36 = vpack.i.bf16 %v4991_v41, %v13397_v6 }
0x10c4   :  { %8688 = vrot.lane.b32.xlu0 %v8687_v36, %s9427_s8  ;;  %v13402_v36 = vld [vmem:[#allocation62_spill] sm:$0xff] }
0x10c9   :  { %v4994_v7 = vpop.f32.mrf.mxu3 }
0x10ca   :  { %v8692_v35 = vpack.i.bf16 %v4994_v7, %v13398_v2  ;;  %v5194_v7 = vsel %vm1147_vm9, %v13402_v36, %v8640_v19  ;;  %v5220_v2 = vsel %vm1147_vm9, %v10974_v38, %v8641_v1 }
0x10cb   :  { %v5228_v39 = vsel %vm5197_vm15, %v5220_v2, %v8646_v14 }
0x10cc   :  { %8693 = vrot.lane.b32.xlu0 %v8692_v35, %s9427_s8  ;;  %v5203_v35 = vsel %vm5197_vm15, %v5194_v7, %v8645_v63 }
0x10e9   :  { %v8669_v56 = vpop.permute.xlu0 %8668 }
0x10ea   :  { %v8671_v23 = vunpack.i.h.bf16 %v8669_v56  ;;  %v8670_v20 = vunpack.i.l.bf16 %v8669_v56  ;;  %v5483_v56 = vld [vmem:[#allocation11] sm:$0x3] }
0x10eb   :  { %v11455_v18 = vperm.slane %v5483_v56, 0 }
0x10ec   :  { %v5209_v51 = vsel %vm5206_vm10, %v5200_v15, %v8670_v20  ;;  %v5233_v32 = vsel %vm5206_vm10, %v5225_v33, %v8671_v23  ;;  %v11457_v15 = vperm.slane %v5483_v56, 1  ;;  %v9116_v33 = vld [vmem:[#allocation2 + $0x8] sm:$0xff]  ;;  %v9119_v56 = vld [vmem:[#allocation2 + $0x20] sm:$0xff] }
0x10ed   :  { %5325 = vmatmul.f32.gmra.mxu0 %v5209_v51  ;;  %5366 = vmatmul.f32.gmra.mxu1 %v5233_v32 }
0x10ee   :  { %5407 = vmatmul.f32.gmra.mxu2 %v5209_v51  ;;  %5448 = vmatmul.f32.gmra.mxu3 %v5233_v32 }
0x10f6   :  { %v8674_v55 = vpop.permute.xlu0 %8673 }
0x10f7   :  { %v8676_v52 = vunpack.i.h.bf16 %v8674_v55  ;;  %v8675_v9 = vunpack.i.l.bf16 %v8674_v55 }
0x10f9   :  { %v5210_v43 = vsel %vm5206_vm10, %v5201_v50, %v8675_v9  ;;  %v5234_v3 = vsel %vm5206_vm10, %v5226_v54, %v8676_v52  ;;  %v9117_v52 = vld [vmem:[#allocation2 + $0x10] sm:$0xff]  ;;  %v8649_v54 = vpop.permute.xlu1 %8648 }
0x10fa   :  { %5328 = vmatmul.f32.gmra.mxu0 %v5210_v43  ;;  %5369 = vmatmul.f32.gmra.mxu1 %v5234_v3  ;;  %v8650_v47 = vunpack.i.l.bf16 %v8649_v54 }
0x10fb   :  { %5410 = vmatmul.f32.gmra.mxu2 %v5210_v43  ;;  %5451 = vmatmul.f32.gmra.mxu3 %v5234_v3  ;;  %v8654_v43 = vpop.permute.xlu2 %8653  ;;  %v8651_v3 = vunpack.i.h.bf16 %v8649_v54 }
0x10fc   :  { %v8656_v58 = vunpack.i.h.bf16 %v8654_v43  ;;  %v8655_v34 = vunpack.i.l.bf16 %v8654_v43 }
0x10fd   :  { %v5221_v0 = vsel %vm1147_vm9, %v10982_v25, %v8651_v3 }
0x10fe   :  { %v5229_v59 = vsel %vm5197_vm15, %v5221_v0, %v8656_v58 }
0x10ff   :  { %v8679_v62 = vpop.permute.xlu0 %8678 }
0x1100   :  { %v8681_v12 = vunpack.i.h.bf16 %v8679_v62  ;;  %v8680_v10 = vunpack.i.l.bf16 %v8679_v62 }
0x1102   :  { %v5211_v57 = vsel %vm5206_vm10, %v5202_v53, %v8680_v10  ;;  %v5235_v61 = vsel %vm5206_vm10, %v5227_v45, %v8681_v12  ;;  %v13407_v10 = vld [vmem:[#allocation64_spill] sm:$0xff]  ;;  %v8659_v53 = vpop.permute.xlu1 %8658 }
0x1103   :  { %5331 = vmatmul.f32.gmra.mxu0 %v5211_v57  ;;  %5372 = vmatmul.f32.gmra.mxu1 %v5235_v61  ;;  %v5195_v17 = vsel %vm1147_vm9, %v13407_v10, %v8650_v47  ;;  %v8660_v1 = vunpack.i.l.bf16 %v8659_v53 }
0x1104   :  { %5413 = vmatmul.f32.gmra.mxu2 %v5211_v57  ;;  %5454 = vmatmul.f32.gmra.mxu3 %v5235_v61  ;;  %v5204_v30 = vsel %vm5197_vm15, %v5195_v17, %v8655_v34  ;;  %v8664_v57 = vpop.permute.xlu2 %8663  ;;  %v8661_v61 = vunpack.i.h.bf16 %v8659_v53  ;;  %v9123_v34 = vld [vmem:[#allocation2 + $0x40] sm:$0xff]  ;;  %v9124_v17 = vld [vmem:[#allocation2 + $0x48] sm:$0xff] }
0x1105   :  { %v8666_v19 = vunpack.i.h.bf16 %v8664_v57  ;;  %v8665_v14 = vunpack.i.l.bf16 %v8664_v57  ;;  %v13415_v57 = vld [vmem:[#allocation27_spill] sm:$0xff] }
0x1106   :  { %v5222_v36 = vsel %vm1147_vm9, %v10984_v40, %v8661_v61 }
0x1107   :  { %v8684_v41 = vpop.permute.xlu0 %8683  ;;  %v5230_v2 = vsel %vm5197_vm15, %v5222_v36, %v8666_v19 }
0x1108   :  { %v8686_v49 = vunpack.i.h.bf16 %v8684_v41  ;;  %v8685_v6 = vunpack.i.l.bf16 %v8684_v41 }
0x110a   :  { %v5212_v4 = vsel %vm5206_vm10, %v5203_v35, %v8685_v6  ;;  %v5236_v60 = vsel %vm5206_vm10, %v5228_v39, %v8686_v49  ;;  %v5320_v31 = vpop.f32.mrf.mxu0  ;;  %v13408_v49 = vld [vmem:[#allocation66_spill] sm:$0xff] }
0x110b   :  { %5334 = vmatmul.f32.gmra.mxu0 %v5212_v4  ;;  %5375 = vmatmul.f32.gmra.mxu1 %v5236_v60  ;;  %v5361_v24 = vpop.f32.mrf.mxu1  ;;  %v5196_v6 = vsel %vm1147_vm9, %v13408_v49, %v8660_v1 }
0x110c   :  { %5416 = vmatmul.f32.gmra.mxu2 %v5212_v4  ;;  %5457 = vmatmul.f32.gmra.mxu3 %v5236_v60  ;;  %v5362_v22 = vadd.f32 %v5361_v24, %v5320_v31  ;;  %v5205_v7 = vsel %vm5197_vm15, %v5196_v6, %v8665_v14  ;;  %v9125_v14 = vld [vmem:[#allocation2 + $0x50] sm:$0xff]  ;;  %v9126_v6 = vld [vmem:[#allocation2 + $0x58] sm:$0xff] }
0x110e   :  { %v5467_v38 = vadd.f32 %v9115_v48, %v5362_v22 }
0x1110   :  { %v11460_v32 = vadd.f32 %v11455_v18, %v5467_v38 }
0x1111   :  { %v5402_v23 = vpop.f32.mrf.mxu2 }
0x1112   :  { %v5443_v20 = vpop.f32.mrf.mxu3  ;;  %13403 = vst [vmem:[#allocation41_spill] sm:$0xff] %v11460_v32 }
0x1113   :  { %v5444_v28 = vadd.f32 %v5443_v20, %v5402_v23  ;;  %v9120_v20 = vld [vmem:[#allocation2 + $0x28] sm:$0xff] }
0x1115   :  { %v5468_v51 = vadd.f32 %v9116_v33, %v5444_v28 }
0x1117   :  { %v11463_v21 = vadd.f32 %v11457_v15, %v5468_v51 }
0x1119   :  { %13404 = vst [vmem:[#allocation38_spill] sm:$0xff] %v11463_v21  ;;  %v5505_v29 = vadd.f32 %v11463_v21, %v11460_v32 }
0x111b   :  { %5506 = vadd.xlane.f32.xlu1 %v5505_v29 }
0x1121   :  { %v5323_v46 = vpop.f32.mrf.mxu0  ;;  %v5364_v26 = vpop.f32.mrf.mxu1 }
0x1122   :  { %v5365_v42 = vadd.f32 %v5364_v26, %v5323_v46 }
0x1124   :  { %v5469_v9 = vadd.f32 %v9117_v52, %v5365_v42 }
0x1126   :  { %v11468_v13 = vadd.f32 %v11455_v18, %v5469_v9  ;;  %v9122_v9 = vld [vmem:[#allocation2 + $0x38] sm:$0xff] }
0x1128   :  { %v5405_v44 = vpop.f32.mrf.mxu2  ;;  %v5446_v55 = vpop.f32.mrf.mxu3  ;;  %13405 = vst [vmem:[#allocation40_spill] sm:$0xff] %v11468_v13 }
0x1129   :  { %v5447_v37 = vadd.f32 %v5446_v55, %v5405_v44  ;;  %v9121_v44 = vld [vmem:[#allocation2 + $0x30] sm:$0xff] }
0x112b   :  { %v5470_v5 = vadd.f32 %v9118_v16, %v5447_v37 }
0x112d   :  { %v11471_v50 = vadd.f32 %v11457_v15, %v5470_v5 }
0x112f   :  { %13406 = vst [vmem:[#allocation48_spill] sm:$0xff] %v11471_v50  ;;  %v5508_v27 = vadd.f32 %v11471_v50, %v11468_v13 }
0x1131   :  { %5509 = vadd.xlane.f32.xlu2 %v5508_v27 }
0x1136   :  { %v8689_v11 = vpop.permute.xlu0 %8688 }
0x1137   :  { %v8691_v62 = vunpack.i.h.bf16 %v8689_v11  ;;  %v8690_v12 = vunpack.i.l.bf16 %v8689_v11 }
0x1139   :  { %v5213_v45 = vsel %vm5206_vm10, %v5204_v30, %v8690_v12  ;;  %v5237_v8 = vsel %vm5206_vm10, %v5229_v59, %v8691_v62 }
0x113a   :  { %5337 = vmatmul.f32.gmra.mxu0 %v5213_v45  ;;  %5378 = vmatmul.f32.gmra.mxu1 %v5237_v8 }
0x113b   :  { %5419 = vmatmul.f32.gmra.mxu2 %v5213_v45  ;;  %5460 = vmatmul.f32.gmra.mxu3 %v5237_v8 }
0x113e   :  { %v8694_v63 = vpop.permute.xlu0 %8693 }
0x113f   :  { %v8696_v25 = vunpack.i.h.bf16 %v8694_v63  ;;  %v8695_v41 = vunpack.i.l.bf16 %v8694_v63 }
0x1141   :  { %v5214_v35 = vsel %vm5206_vm10, %v5205_v7, %v8695_v41  ;;  %v5238_v39 = vsel %vm5206_vm10, %v5230_v2, %v8696_v25 }
0x1142   :  { %5340 = vmatmul.f32.gmra.mxu0 %v5214_v35  ;;  %5381 = vmatmul.f32.gmra.mxu1 %v5238_v39 }
0x1143   :  { %5422 = vmatmul.f32.gmra.mxu2 %v5214_v35  ;;  %5463 = vmatmul.f32.gmra.mxu3 %v5238_v39 }
0x116a   :  { %v5326_v4 = vpop.f32.mrf.mxu0  ;;  %v5367_v60 = vpop.f32.mrf.mxu1 }
0x116b   :  { %v5368_v31 = vadd.f32 %v5367_v60, %v5326_v4 }
0x116d   :  { %v5471_v23 = vadd.f32 %v9119_v56, %v5368_v31 }
0x116f   :  { %v11492_v38 = vadd.f32 %v11455_v18, %v5471_v23 }
0x1171   :  { %v5408_v24 = vpop.f32.mrf.mxu2  ;;  %v5449_v22 = vpop.f32.mrf.mxu3  ;;  %13409 = vst [vmem:[#allocation51_spill] sm:$0xff] %v11492_v38 }
0x1172   :  { %v5450_v40 = vadd.f32 %v5449_v22, %v5408_v24 }
0x1174   :  { %v5472_v48 = vadd.f32 %v9120_v20, %v5450_v40  ;;  %v9127_v20 = vld [vmem:[#allocation2 + $0x60] sm:$0xff] }
0x1176   :  { %v11495_v28 = vadd.f32 %v11457_v15, %v5472_v48 }
0x1177   :  { %v5329_v33 = vpop.f32.mrf.mxu0  ;;  %v5370_v51 = vpop.f32.mrf.mxu1 }
0x1178   :  { %13410 = vst [vmem:[#allocation43_spill] sm:$0xff] %v11495_v28  ;;  %v5511_v29 = vadd.f32 %v11495_v28, %v11492_v38  ;;  %v5371_v46 = vadd.f32 %v5370_v51, %v5329_v33 }
0x117a   :  { %5512 = vadd.xlane.f32.xlu0 %v5511_v29  ;;  %v5473_v55 = vadd.f32 %v9121_v44, %v5371_v46  ;;  %v9128_v29 = vld [vmem:[#allocation2 + $0x68] sm:$0xff] }
0x117c   :  { %v11500_v54 = vadd.f32 %v11455_v18, %v5473_v55 }
0x117e   :  { %v5411_v26 = vpop.f32.mrf.mxu2  ;;  %v5452_v42 = vpop.f32.mrf.mxu3  ;;  %13411 = vst [vmem:[#allocation45_spill] sm:$0xff] %v11500_v54 }
0x117f   :  { %v5453_v52 = vadd.f32 %v5452_v42, %v5411_v26 }
0x1180   :  { %v5332_v16 = vpop.f32.mrf.mxu0  ;;  %v5373_v5 = vpop.f32.mrf.mxu1 }
0x1181   :  { %v5474_v37 = vadd.f32 %v9122_v9, %v5453_v52  ;;  %v5374_v43 = vadd.f32 %v5373_v5, %v5332_v16 }
0x1183   :  { %v11503_v27 = vadd.f32 %v11457_v15, %v5474_v37  ;;  %v5475_v11 = vadd.f32 %v9123_v34, %v5374_v43 }
0x1185   :  { %13412 = vst [vmem:[#allocation47_spill] sm:$0xff] %v11503_v27  ;;  %v5514_v3 = vadd.f32 %v11503_v27, %v11500_v54  ;;  %v11508_v30 = vadd.f32 %v11455_v18, %v5475_v11 }
0x1187   :  { %5515 = vadd.xlane.f32.xlu1 %v5514_v3  ;;  %v5414_v47 = vpop.f32.mrf.mxu2  ;;  %v5455_v58 = vpop.f32.mrf.mxu3  ;;  %13413 = vst [vmem:[#allocation49_spill] sm:$0xff] %v11508_v30  ;;  %v9129_v3 = vld [vmem:[#allocation2 + $0x70] sm:$0xff] }
0x1188   :  { %v5456_v62 = vadd.f32 %v5455_v58, %v5414_v47  ;;  %v5335_v12 = vpop.f32.mrf.mxu0  ;;  %v5376_v10 = vpop.f32.mrf.mxu1 }
0x1189   :  { %v5377_v53 = vadd.f32 %v5376_v10, %v5335_v12 }
0x118a   :  { %v5476_v0 = vadd.f32 %v9124_v17, %v5456_v62  ;;  %v9130_v62 = vld [vmem:[#allocation2 + $0x78] sm:$0xff] }
0x118b   :  { %v5477_v63 = vadd.f32 %v9125_v14, %v5377_v53  ;;  %v5989_v14 = vld [vmem:[#allocation16 + $0x780] sm:$0xff] }
0x118c   :  { %v11511_v59 = vadd.f32 %v11457_v15, %v5476_v0 }
0x118d   :  { %v11527_v35 = vadd.f32 %v11455_v18, %v5477_v63  ;;  %v5990_v63 = vld [vmem:[#allocation16 + $0x788] sm:$0xff] }
0x118e   :  { %13414 = vst [vmem:[#allocation42_spill] sm:$0xff] %v11511_v59  ;;  %v5507_v45 = vpop.xlane.xlu1 %5506  ;;  %v5517_v8 = vadd.f32 %v11511_v59, %v11508_v30 }
0x118f   :  { %v5529_v61 = vmul.f32 %v5507_v45, %v13415_v57  ;;  %v5417_v1 = vpop.f32.mrf.mxu2  ;;  %v5458_v19 = vpop.f32.mrf.mxu3  ;;  %13416 = vst [vmem:[#allocation44_spill] sm:$0xff] %v11527_v35  ;;  %v5869_v45 = vld [vmem:[#allocation16 + $0x3c0] sm:$0xff] }
0x1190   :  { %v5459_v25 = vadd.f32 %v5458_v19, %v5417_v1  ;;  %5518 = vadd.xlane.f32.xlu2 %v5517_v8  ;;  %v5997_v8 = vld [vmem:[#allocation16 + $0x7c0] sm:$0xff]  ;;  %6023 = vmatpush.msra.mxu0 %v5869_v45  ;;  %v5998_v1 = vld [vmem:[#allocation16 + $0x7c8] sm:$0xff] }
0x1191   :  { %v11517_v41 = vsub.f32 %v11460_v32, %v5529_v61  ;;  %v11520_v49 = vsub.f32 %v11463_v21, %v5529_v61  ;;  %v5870_v61 = vld [vmem:[#allocation16 + $0x3c8] sm:$0xff]  ;;  %6064 = vmatpush.msra.mxu1 %v5997_v8  ;;  %v5861_v19 = vld [vmem:[#allocation16 + $0x380] sm:$0xff]  ;;  %6146 = vmatpush.msra.mxu3 %v5998_v1 }
0x1192   :  { %v5478_v36 = vadd.f32 %v9126_v6, %v5459_v25  ;;  %6105 = vmatpush.msra.mxu2 %v5870_v61  ;;  %6024 = vmatpush.msra.mxu0 %v5861_v19  ;;  %v5805_v45 = vld [vmem:[#allocation16 + $0x1c0] sm:$0xff]  ;;  %v5806_v61 = vld [vmem:[#allocation16 + $0x1c8] sm:$0xff] }
0x1193   :  { %v5553_v7 = vmul.f32 %v11517_v41, %v11517_v41  ;;  %v5554_v2 = vmul.f32 %v11520_v49, %v11520_v49  ;;  %6065 = vmatpush.msra.mxu1 %v5989_v14  ;;  %6147 = vmatpush.msra.mxu3 %v5990_v63  ;;  %v5933_v8 = vld [vmem:[#allocation16 + $0x5c0] sm:$0xff]  ;;  %v5934_v14 = vld [vmem:[#allocation16 + $0x5c8] sm:$0xff] }
0x1194   :  { %v11530_v39 = vadd.f32 %v11457_v15, %v5478_v36  ;;  %v5925_v63 = vld [vmem:[#allocation16 + $0x580] sm:$0xff] }
0x1195   :  { %v5569_v4 = vadd.f32 %v5554_v2, %v5553_v7  ;;  %v7379_v32 = vld [vmem:[#allocation17 + $0x3e0] sm:$0xff] }
0x1196   :  { %13417 = vst [vmem:[#allocation30_spill] sm:$0xff] %v11530_v39  ;;  %v5520_v60 = vadd.f32 %v11530_v39, %v11527_v35 }
0x1198   :  { %5570 = vadd.xlane.f32.xlu2 %v5569_v4  ;;  %5521 = vadd.xlane.f32.xlu0 %v5520_v60  ;;  %v5853_v4 = vld [vmem:[#allocation16 + $0x340] sm:$0xff] }
0x1199   :  { %v5981_v60 = vld [vmem:[#allocation16 + $0x740] sm:$0xff]  ;;  %6025 = vmatpush.msra.mxu0 %v5853_v4 }
0x119a   :  { %6066 = vmatpush.msra.mxu1 %v5981_v60  ;;  %v5917_v4 = vld [vmem:[#allocation16 + $0x540] sm:$0xff]  ;;  %v5790_v60 = vld [vmem:[#allocation16 + $0x148] sm:$0xff] }
0x11a4   :  { %v5510_v56 = vpop.xlane.xlu2 %5509 }
0x11a5   :  { %v5530_v51 = vmul.f32 %v5510_v56, %v13415_v57  ;;  %v5845_v56 = vld [vmem:[#allocation16 + $0x300] sm:$0xff] }
0x11a6   :  { %6026 = vmatpush.msra.mxu0 %v5845_v56  ;;  %v5909_v56 = vld [vmem:[#allocation16 + $0x500] sm:$0xff] }
0x11a7   :  { %v11542_v9 = vsub.f32 %v11468_v13, %v5530_v51  ;;  %v11545_v37 = vsub.f32 %v11471_v50, %v5530_v51  ;;  %v5838_v51 = vld [vmem:[#allocation16 + $0x2c8] sm:$0xff]  ;;  %v7347_v13 = vld [vmem:[#allocation17 + $0x2e0] sm:$0xff] }
0x11a9   :  { %v5555_v34 = vmul.f32 %v11542_v9, %v11542_v9  ;;  %v5556_v11 = vmul.f32 %v11545_v37, %v11545_v37 }
0x11ab   :  { %v5572_v0 = vadd.f32 %v5556_v11, %v5555_v34  ;;  %v5813_v34 = vld [vmem:[#allocation16 + $0x200] sm:$0xff] }
0x11ac   :  { %v5941_v11 = vld [vmem:[#allocation16 + $0x600] sm:$0xff] }
0x11b7   :  { %v5338_v31 = vpop.f32.mrf.mxu0  ;;  %v5379_v24 = vpop.f32.mrf.mxu1 }
0x11b8   :  { %v5380_v22 = vadd.f32 %v5379_v24, %v5338_v31  ;;  %v5854_v31 = vld [vmem:[#allocation16 + $0x348] sm:$0xff] }
0x11b9   :  { %v5982_v24 = vld [vmem:[#allocation16 + $0x748] sm:$0xff] }
0x11ba   :  { %v5479_v48 = vadd.f32 %v9127_v20, %v5380_v22  ;;  %6148 = vmatpush.msra.mxu3 %v5982_v24  ;;  %v5974_v20 = vld [vmem:[#allocation16 + $0x708] sm:$0xff] }
0x11bc   :  { %v11536_v44 = vadd.f32 %v11455_v18, %v5479_v48  ;;  %v5837_v48 = vld [vmem:[#allocation16 + $0x2c0] sm:$0xff]  ;;  %6149 = vmatpush.msra.mxu3 %v5974_v20  ;;  %v5910_v20 = vld [vmem:[#allocation16 + $0x508] sm:$0xff] }
0x11bd   :  { %6027 = vmatpush.msra.mxu0 %v5837_v48  ;;  %v5773_v48 = vld [vmem:[#allocation16 + $0xc0] sm:$0xff] }
0x11be   :  { %v5420_v23 = vpop.f32.mrf.mxu2  ;;  %v5461_v40 = vpop.f32.mrf.mxu3  ;;  %13418 = vst [vmem:[#allocation31_spill] sm:$0xff] %v11536_v44 }
0x11bf   :  { %v5462_v33 = vadd.f32 %v5461_v40, %v5420_v23  ;;  %v5341_v26 = vpop.f32.mrf.mxu0  ;;  %v5382_v42 = vpop.f32.mrf.mxu1  ;;  %v5973_v23 = vld [vmem:[#allocation16 + $0x700] sm:$0xff]  ;;  %v5846_v40 = vld [vmem:[#allocation16 + $0x308] sm:$0xff] }
0x11c0   :  { %v5383_v52 = vadd.f32 %v5382_v42, %v5341_v26  ;;  %6067 = vmatpush.msra.mxu1 %v5973_v23  ;;  %v5957_v26 = vld [vmem:[#allocation16 + $0x680] sm:$0xff]  ;;  %v5830_v42 = vld [vmem:[#allocation16 + $0x288] sm:$0xff] }
0x11c1   :  { %v5480_v46 = vadd.f32 %v9128_v29, %v5462_v33  ;;  %v5965_v33 = vld [vmem:[#allocation16 + $0x6c0] sm:$0xff]  ;;  %v5966_v29 = vld [vmem:[#allocation16 + $0x6c8] sm:$0xff] }
0x11c2   :  { %v5481_v47 = vadd.f32 %v9129_v3, %v5383_v52  ;;  %6068 = vmatpush.msra.mxu1 %v5965_v33  ;;  %6150 = vmatpush.msra.mxu3 %v5966_v29  ;;  %v5958_v52 = vld [vmem:[#allocation16 + $0x688] sm:$0xff]  ;;  %v5901_v33 = vld [vmem:[#allocation16 + $0x4c0] sm:$0xff] }
0x11c3   :  { %v11539_v55 = vadd.f32 %v11457_v15, %v5480_v46  ;;  %v5829_v46 = vld [vmem:[#allocation16 + $0x280] sm:$0xff]  ;;  %v5822_v3 = vld [vmem:[#allocation16 + $0x248] sm:$0xff] }
0x11c4   :  { %v11554_v10 = vadd.f32 %v11455_v18, %v5481_v47  ;;  %v5862_v18 = vld [vmem:[#allocation16 + $0x388] sm:$0xff]  ;;  %6028 = vmatpush.msra.mxu0 %v5829_v46  ;;  %6069 = vmatpush.msra.mxu1 %v5957_v26 }
0x11c5   :  { %13419 = vst [vmem:[#allocation32_spill] sm:$0xff] %v11539_v55  ;;  %v5523_v16 = vadd.f32 %v11539_v55, %v11536_v44  ;;  %6106 = vmatpush.msra.mxu2 %v5862_v18  ;;  %6151 = vmatpush.msra.mxu3 %v5958_v52  ;;  %v5797_v18 = vld [vmem:[#allocation16 + $0x180] sm:$0xff]  ;;  %v5782_v23 = vld [vmem:[#allocation16 + $0x108] sm:$0xff] }
0x11c6   :  { %v5423_v5 = vpop.f32.mrf.mxu2  ;;  %v5464_v43 = vpop.f32.mrf.mxu3  ;;  %13420 = vst [vmem:[#allocation34_spill] sm:$0xff] %v11554_v10  ;;  %v5902_v26 = vld [vmem:[#allocation16 + $0x4c8] sm:$0xff]  ;;  %v5893_v52 = vld [vmem:[#allocation16 + $0x480] sm:$0xff] }
0x11c7   :  { %5524 = vadd.xlane.f32.xlu1 %v5523_v16  ;;  %v5465_v58 = vadd.f32 %v5464_v43, %v5423_v5  ;;  %6107 = vmatpush.msra.mxu2 %v5854_v31  ;;  %v5821_v5 = vld [vmem:[#allocation16 + $0x240] sm:$0xff]  ;;  %v5918_v31 = vld [vmem:[#allocation16 + $0x548] sm:$0xff] }
0x11c8   :  { %v5949_v43 = vld [vmem:[#allocation16 + $0x640] sm:$0xff]  ;;  %6029 = vmatpush.msra.mxu0 %v5821_v5  ;;  %v5894_v5 = vld [vmem:[#allocation16 + $0x488] sm:$0xff] }
0x11c9   :  { %v5482_v12 = vadd.f32 %v9130_v62, %v5465_v58  ;;  %6108 = vmatpush.msra.mxu2 %v5846_v40  ;;  %v5950_v58 = vld [vmem:[#allocation16 + $0x648] sm:$0xff]  ;;  %6070 = vmatpush.msra.mxu1 %v5949_v43 }
0x11ca   :  { %v5814_v62 = vld [vmem:[#allocation16 + $0x208] sm:$0xff]  ;;  %6152 = vmatpush.msra.mxu3 %v5950_v58  ;;  %6030 = vmatpush.msra.mxu0 %v5813_v34  ;;  %v5885_v58 = vld [vmem:[#allocation16 + $0x440] sm:$0xff] }
0x11cb   :  { %v11557_v17 = vadd.f32 %v11457_v15, %v5482_v12  ;;  %6109 = vmatpush.msra.mxu2 %v5838_v51  ;;  %6071 = vmatpush.msra.mxu1 %v5941_v11  ;;  %v5774_v51 = vld [vmem:[#allocation16 + $0xc8] sm:$0xff] }
0x11cc   :  { %6031 = vmatpush.msra.mxu0 %v5805_v45  ;;  %v5758_v34 = vld [vmem:[#allocation16 + $0x48] sm:$0xff] }
0x11cd   :  { %13421 = vst [vmem:[#allocation56_spill] sm:$0xff] %v11557_v17  ;;  %v5526_v53 = vadd.f32 %v11557_v17, %v11554_v10  ;;  %6110 = vmatpush.msra.mxu2 %v5830_v42  ;;  %6072 = vmatpush.msra.mxu1 %v5933_v8  ;;  %v5765_v42 = vld [vmem:[#allocation16 + $0x80] sm:$0xff] }
0x11ce   :  { %6032 = vmatpush.msra.mxu0 %v5797_v18  ;;  %v5878_v18 = vld [vmem:[#allocation16 + $0x408] sm:$0xff] }
0x11cf   :  { %5573 = vadd.xlane.f32.xlu1 %v5572_v0  ;;  %5527 = vadd.xlane.f32.xlu0 %v5526_v53  ;;  %v5942_v53 = vld [vmem:[#allocation16 + $0x608] sm:$0xff] }
0x11d0   :  { %6111 = vmatpush.msra.mxu2 %v5822_v3  ;;  %6153 = vmatpush.msra.mxu3 %v5942_v53  ;;  %v5749_v53 = vld [vmem:[#allocation16] sm:$0xff] }
0x11d1   :  { %6073 = vmatpush.msra.mxu1 %v5925_v63 }
0x11d2   :  { %6112 = vmatpush.msra.mxu2 %v5814_v62  ;;  %6154 = vmatpush.msra.mxu3 %v5934_v14  ;;  %v5886_v62 = vld [vmem:[#allocation16 + $0x448] sm:$0xff] }
0x11d3   :  { %6074 = vmatpush.msra.mxu1 %v5917_v4 }
0x11d4   :  { %6113 = vmatpush.msra.mxu2 %v5806_v61  ;;  %v5877_v61 = vld [vmem:[#allocation16 + $0x400] sm:$0xff] }
0x11d5   :  { %6075 = vmatpush.msra.mxu1 %v5909_v56  ;;  %v5705_v56 = vld [vmem:[#allocation13] sm:$0x3] }
0x11d7   :  { %6076 = vmatpush.msra.mxu1 %v5901_v33  ;;  %v11608_v33 = vperm.slane %v5705_v56, 1 }
0x11d9   :  { %6077 = vmatpush.msra.mxu1 %v5893_v52 }
0x11db   :  { %6078 = vmatpush.msra.mxu1 %v5885_v58 }
0x11dd   :  { %6079 = vmatpush.msra.mxu1 %v5877_v61 }
0x11ed   :  { %v5513_v15 = vpop.xlane.xlu0 %5512 }
0x11ee   :  { %v5531_v25 = vmul.f32 %v5513_v15, %v13415_v57  ;;  %v5798_v15 = vld [vmem:[#allocation16 + $0x188] sm:$0xff] }
0x11ef   :  { %6114 = vmatpush.msra.mxu2 %v5798_v15 }
0x11f0   :  { %v11563_v6 = vsub.f32 %v11492_v38, %v5531_v25  ;;  %v11566_v36 = vsub.f32 %v11495_v28, %v5531_v25 }
0x11f1   :  { %6115 = vmatpush.msra.mxu2 %v5790_v60 }
0x11f2   :  { %v5557_v7 = vmul.f32 %v11563_v6, %v11563_v6  ;;  %v5558_v2 = vmul.f32 %v11566_v36, %v11566_v36 }
0x11f3   :  { %6116 = vmatpush.msra.mxu2 %v5782_v23 }
0x11f4   :  { %v5575_v22 = vadd.f32 %v5558_v2, %v5557_v7  ;;  %v5926_v7 = vld [vmem:[#allocation16 + $0x588] sm:$0xff]  ;;  %v5789_v2 = vld [vmem:[#allocation16 + $0x140] sm:$0xff] }
0x11f5   :  { %6155 = vmatpush.msra.mxu3 %v5926_v7  ;;  %6033 = vmatpush.msra.mxu0 %v5789_v2 }
0x11f6   :  { %5576 = vadd.xlane.f32.xlu2 %v5575_v22  ;;  %v5781_v22 = vld [vmem:[#allocation16 + $0x100] sm:$0xff]  ;;  %6117 = vmatpush.msra.mxu2 %v5774_v51 }
0x11f7   :  { %6156 = vmatpush.msra.mxu3 %v5918_v31  ;;  %6034 = vmatpush.msra.mxu0 %v5781_v22 }
0x11f9   :  { %6157 = vmatpush.msra.mxu3 %v5910_v20  ;;  %6035 = vmatpush.msra.mxu0 %v5773_v48  ;;  %v11606_v48 = vperm.slane %v5705_v56, 0 }
0x11fa   :  { %v5516_v16 = vpop.xlane.xlu1 %5515 }
0x11fb   :  { %v5532_v47 = vmul.f32 %v5516_v16, %v13415_v57  ;;  %v5766_v16 = vld [vmem:[#allocation16 + $0x88] sm:$0xff]  ;;  %6158 = vmatpush.msra.mxu3 %v5902_v26  ;;  %6036 = vmatpush.msra.mxu0 %v5765_v42 }
0x11fc   :  { %6118 = vmatpush.msra.mxu2 %v5766_v16 }
0x11fd   :  { %v11574_v12 = vsub.f32 %v11500_v54, %v5532_v47  ;;  %v11577_v0 = vsub.f32 %v11503_v27, %v5532_v47  ;;  %v5757_v47 = vld [vmem:[#allocation16 + $0x40] sm:$0xff]  ;;  %6159 = vmatpush.msra.mxu3 %v5894_v5 }
0x11fe   :  { %6037 = vmatpush.msra.mxu0 %v5757_v47  ;;  %6119 = vmatpush.msra.mxu2 %v5758_v34 }
0x11ff   :  { %v5559_v1 = vmul.f32 %v11574_v12, %v11574_v12  ;;  %v5560_v19 = vmul.f32 %v11577_v0, %v11577_v0  ;;  %6160 = vmatpush.msra.mxu3 %v5886_v62 }
0x1200   :  { %6038 = vmatpush.msra.mxu0 %v5749_v53 }
0x1201   :  { %v5578_v25 = vadd.f32 %v5560_v19, %v5559_v1  ;;  %v5750_v1 = vld [vmem:[#allocation16 + $0x8] sm:$0xff]  ;;  %6161 = vmatpush.msra.mxu3 %v5878_v18 }
0x1202   :  { %6120 = vmatpush.msra.mxu2 %v5750_v1 }
0x1203   :  { %5579 = vadd.xlane.f32.xlu0 %v5578_v25  ;;  %v5519_v24 = vpop.xlane.xlu2 %5518 }
0x1204   :  { %v5533_v40 = vmul.f32 %v5519_v24, %v13415_v57 }
0x1206   :  { %v11585_v29 = vsub.f32 %v11508_v30, %v5533_v40  ;;  %v11588_v46 = vsub.f32 %v11511_v59, %v5533_v40  ;;  %v5727_v40 = vld [vmem:[#allocation14] sm:$0x3]  ;;  %v7283_v30 = vld [vmem:[#allocation17 + $0xe0] sm:$0xff] }
0x1207   :  { %v11610_v26 = vperm.slane %v5727_v40, 0  ;;  %v11612_v42 = vperm.slane %v5727_v40, 1 }
0x1208   :  { %v5561_v43 = vmul.f32 %v11585_v29, %v11585_v29  ;;  %v5562_v3 = vmul.f32 %v11588_v46, %v11588_v46 }
0x120a   :  { %v5581_v11 = vadd.f32 %v5562_v3, %v5561_v43 }
0x120b   :  { %v5571_v45 = vpop.xlane.xlu2 %5570  ;;  %v5522_v8 = vpop.xlane.xlu0 %5521 }
0x120c   :  { %v5593_v19 = vmul.f32 %v5571_v45, %v13415_v57  ;;  %v5534_v14 = vmul.f32 %v5522_v8, %v13415_v57  ;;  %5582 = vadd.xlane.f32.xlu1 %v5581_v11 }
0x120e   :  { %v5601_v63 = vadd.f32 1e-05, %v5593_v19  ;;  %v11597_v15 = vsub.f32 %v11527_v35, %v5534_v14  ;;  %v11600_v25 = vsub.f32 %v11530_v39, %v5534_v14  ;;  %v7381_v35 = vld [vmem:[#allocation17 + $0x3f0] sm:$0xff] }
0x1210   :  { %8971 = vrsqrt.f32 %v5601_v63  ;;  %v5563_v7 = vmul.f32 %v11597_v15, %v11597_v15  ;;  %v5564_v2 = vmul.f32 %v11600_v25, %v11600_v25  ;;  %vm5615_vm0 = vweird.f32 %v5601_v63 }
0x1212   :  { %v5584_v4 = vadd.f32 %v5564_v2, %v5563_v7 }
0x1214   :  { %5585 = vadd.xlane.f32.xlu2 %v5584_v4 }
0x1216   :  { %v8972_v60 = vpop.eup %8971 }
0x1217   :  { %v5610_v31 = vmul.f32 %v8972_v60, %v5601_v63  ;;  %vm5616_vm9 = vweird.f32 %v8972_v60 }
0x1218   :  { %vm5617_vm1 = vmor %vm5615_vm0, %vm5616_vm9 }
0x1219   :  { %v5611_v24 = vmul.f32 %v8972_v60, %v5610_v31 }
0x121b   :  { %v5612_v22 = vmul.f32 0.5, %v5611_v24 }
0x121d   :  { %v5613_v23 = vsub.f32 1.5, %v5612_v22 }
0x121f   :  { %v5614_v20 = vmul.f32 %v8972_v60, %v5613_v23 }
0x1221   :  { %v5618_v51 = vsel %vm5617_vm1, %v8972_v60, %v5614_v20 }
0x1222   :  { %v5689_v52 = vmul.f32 %v5618_v51, %v11517_v41  ;;  %v5690_v16 = vmul.f32 %v5618_v51, %v11520_v49 }
0x1224   :  { %v5711_v5 = vmul.f32 %v11606_v48, %v5689_v52  ;;  %v5712_v43 = vmul.f32 %v11608_v33, %v5690_v16 }
0x1226   :  { %v11619_v3 = vadd.f32 %v11610_v26, %v5711_v5  ;;  %v11622_v47 = vadd.f32 %v11612_v42, %v5712_v43 }
0x1228   :  { %6039 = vmatmul.f32.vlgmr.msra.gmra.mxu0 %v11619_v3  ;;  %6080 = vmatmul.f32.vlgmr.msra.gmra.mxu1 %v11622_v47 }
0x1229   :  { %6121 = vmatmul.f32.vlgmr.msra.gmra.mxu2 %v11619_v3  ;;  %6162 = vmatmul.f32.vlgmr.msra.gmra.mxu3 %v11622_v47 }
0x123a   :  { %v5525_v41 = vpop.xlane.xlu1 %5524 }
0x123b   :  { %v5535_v49 = vmul.f32 %v5525_v41, %v13415_v57 }
0x123d   :  { %v11630_v58 = vsub.f32 %v11536_v44, %v5535_v49  ;;  %v11633_v34 = vsub.f32 %v11539_v55, %v5535_v49  ;;  %v5892_v55 = vld [vmem:[#allocation16 + $0x478] sm:$0xff] }
0x123f   :  { %v5565_v11 = vmul.f32 %v11630_v58, %v11630_v58  ;;  %v5566_v62 = vmul.f32 %v11633_v34, %v11633_v34 }
0x1241   :  { %v5587_v53 = vadd.f32 %v5566_v62, %v5565_v11 }
0x1242   :  { %v5574_v45 = vpop.xlane.xlu1 %5573  ;;  %v5528_v61 = vpop.xlane.xlu0 %5527 }
0x1243   :  { %v5594_v8 = vmul.f32 %v5574_v45, %v13415_v57  ;;  %5588 = vadd.xlane.f32.xlu0 %v5587_v53  ;;  %v5536_v1 = vmul.f32 %v5528_v61, %v13415_v57 }
0x1245   :  { %v5602_v19 = vadd.f32 1e-05, %v5594_v8  ;;  %v11642_v14 = vsub.f32 %v11554_v10, %v5536_v1  ;;  %v11645_v18 = vsub.f32 %v11557_v17, %v5536_v1  ;;  %v5764_v17 = vld [vmem:[#allocation16 + $0x78] sm:$0xff] }
0x1247   :  { %8973 = vrsqrt.f32 %v5602_v19  ;;  %v5567_v63 = vmul.f32 %v11642_v14, %v11642_v14  ;;  %v5568_v7 = vmul.f32 %v11645_v18, %v11645_v18  ;;  %vm5625_vm3 = vweird.f32 %v5602_v19 }
0x1249   :  { %v5590_v2 = vadd.f32 %v5568_v7, %v5567_v63 }
0x124b   :  { %5591 = vadd.xlane.f32.xlu1 %v5590_v2 }
0x124d   :  { %v8974_v4 = vpop.eup %8973 }
0x124e   :  { %v5620_v60 = vmul.f32 %v8974_v4, %v5602_v19  ;;  %vm5626_vm2 = vweird.f32 %v8974_v4 }
0x124f   :  { %vm5627_vm4 = vmor %vm5625_vm3, %vm5626_vm2 }
0x1250   :  { %v5621_v31 = vmul.f32 %v8974_v4, %v5620_v60 }
0x1252   :  { %v5622_v24 = vmul.f32 0.5, %v5621_v31 }
0x1254   :  { %v5623_v22 = vsub.f32 1.5, %v5622_v24 }
0x1256   :  { %v5624_v56 = vmul.f32 %v8974_v4, %v5623_v22 }
0x1258   :  { %v5628_v23 = vsel %vm5627_vm4, %v8974_v4, %v5624_v56 }
0x1259   :  { %v5691_v40 = vmul.f32 %v5628_v23, %v11542_v9  ;;  %v5692_v20 = vmul.f32 %v5628_v23, %v11545_v37 }
0x125b   :  { %v5713_v51 = vmul.f32 %v11606_v48, %v5691_v40  ;;  %v5714_v52 = vmul.f32 %v11608_v33, %v5692_v20 }
0x125d   :  { %v11656_v16 = vadd.f32 %v11610_v26, %v5713_v51  ;;  %v11659_v5 = vadd.f32 %v11612_v42, %v5714_v52 }
0x125f   :  { %6042 = vmatmul.f32.gmra.mxu0 %v11656_v16  ;;  %6083 = vmatmul.f32.gmra.mxu1 %v11659_v5 }
0x1260   :  { %6124 = vmatmul.f32.gmra.mxu2 %v11656_v16  ;;  %6165 = vmatmul.f32.gmra.mxu3 %v11659_v5 }
0x1269   :  { %v5577_v9 = vpop.xlane.xlu2 %5576 }
0x126a   :  { %v5595_v37 = vmul.f32 %v5577_v9, %v13415_v57 }
0x126c   :  { %v5603_v43 = vadd.f32 1e-05, %v5595_v37 }
0x126e   :  { %8975 = vrsqrt.f32 %v5603_v43  ;;  %vm5635_vm6 = vweird.f32 %v5603_v43 }
0x1274   :  { %v8976_v41 = vpop.eup %8975 }
0x1275   :  { %v5630_v49 = vmul.f32 %v8976_v41, %v5603_v43  ;;  %vm5636_vm5 = vweird.f32 %v8976_v41 }
0x1276   :  { %v5580_v11 = vpop.xlane.xlu0 %5579  ;;  %vm5637_vm7 = vmor %vm5635_vm6, %vm5636_vm5 }
0x1277   :  { %v5631_v62 = vmul.f32 %v8976_v41, %v5630_v49  ;;  %v5596_v53 = vmul.f32 %v5580_v11, %v13415_v57 }
0x1279   :  { %v5632_v45 = vmul.f32 0.5, %v5631_v62  ;;  %v5604_v8 = vadd.f32 1e-05, %v5596_v53 }
0x127b   :  { %v5633_v61 = vsub.f32 1.5, %v5632_v45  ;;  %8977 = vrsqrt.f32 %v5604_v8  ;;  %vm5645_vm11 = vweird.f32 %v5604_v8 }
0x127d   :  { %v5634_v1 = vmul.f32 %v8976_v41, %v5633_v61 }
0x127f   :  { %v5638_v19 = vsel %vm5637_vm7, %v8976_v41, %v5634_v1  ;;  %v5583_v2 = vpop.xlane.xlu1 %5582 }
0x1280   :  { %v5693_v63 = vmul.f32 %v5638_v19, %v11563_v6  ;;  %v5694_v7 = vmul.f32 %v5638_v19, %v11566_v36  ;;  %v5597_v60 = vmul.f32 %v5583_v2, %v13415_v57 }
0x1281   :  { %v8978_v4 = vpop.eup %8977 }
0x1282   :  { %v5715_v31 = vmul.f32 %v11606_v48, %v5693_v63  ;;  %v5716_v24 = vmul.f32 %v11608_v33, %v5694_v7  ;;  %v5640_v22 = vmul.f32 %v8978_v4, %v5604_v8  ;;  %v5605_v56 = vadd.f32 1e-05, %v5597_v60 }
0x1283   :  { %vm5646_vm8 = vweird.f32 %v8978_v4 }
0x1284   :  { %v11673_v23 = vadd.f32 %v11610_v26, %v5715_v31  ;;  %v11676_v40 = vadd.f32 %v11612_v42, %v5716_v24  ;;  %v5641_v20 = vmul.f32 %v8978_v4, %v5640_v22  ;;  %8979 = vrsqrt.f32 %v5605_v56  ;;  %vm5647_vm12 = vmor %vm5645_vm11, %vm5646_vm8 }
0x1285   :  { %vm5655_vm14 = vweird.f32 %v5605_v56 }
0x1286   :  { %v5642_v6 = vmul.f32 0.5, %v5641_v20  ;;  %6045 = vmatmul.f32.gmra.mxu0 %v11673_v23  ;;  %6086 = vmatmul.f32.gmra.mxu1 %v11676_v40 }
0x1287   :  { %6127 = vmatmul.f32.gmra.mxu2 %v11673_v23  ;;  %6168 = vmatmul.f32.gmra.mxu3 %v11676_v40  ;;  %v5586_v51 = vpop.xlane.xlu2 %5585 }
0x1288   :  { %v5643_v36 = vsub.f32 1.5, %v5642_v6  ;;  %v5598_v52 = vmul.f32 %v5586_v51, %v13415_v57 }
0x128a   :  { %v5644_v9 = vmul.f32 %v8978_v4, %v5643_v36  ;;  %v8980_v37 = vpop.eup %8979  ;;  %v5606_v43 = vadd.f32 1e-05, %v5598_v52 }
0x128b   :  { %v5650_v49 = vmul.f32 %v8980_v37, %v5605_v56  ;;  %vm5656_vm13 = vweird.f32 %v8980_v37 }
0x128c   :  { %v5648_v41 = vsel %vm5647_vm12, %v8978_v4, %v5644_v9  ;;  %8981 = vrsqrt.f32 %v5606_v43  ;;  %vm5657_vm10 = vmor %vm5655_vm14, %vm5656_vm13  ;;  %vm5665_vm9 = vweird.f32 %v5606_v43 }
0x128d   :  { %v5695_v11 = vmul.f32 %v5648_v41, %v11574_v12  ;;  %v5696_v62 = vmul.f32 %v5648_v41, %v11577_v0  ;;  %v5651_v53 = vmul.f32 %v8980_v37, %v5650_v49  ;;  %v5872_v49 = vld [vmem:[#allocation16 + $0x3d8] sm:$0xff] }
0x128e   :  { %6269 = vmatpush.msrb.mxu2 %v5872_v49 }
0x128f   :  { %v5717_v45 = vmul.f32 %v11606_v48, %v5695_v11  ;;  %v5718_v61 = vmul.f32 %v11608_v33, %v5696_v62  ;;  %v5652_v1 = vmul.f32 0.5, %v5651_v53  ;;  %v6000_v11 = vld [vmem:[#allocation16 + $0x7d8] sm:$0xff]  ;;  %v5863_v62 = vld [vmem:[#allocation16 + $0x390] sm:$0xff] }
0x1290   :  { %6310 = vmatpush.msrb.mxu3 %v6000_v11  ;;  %v5991_v53 = vld [vmem:[#allocation16 + $0x790] sm:$0xff] }
0x1291   :  { %v11688_v19 = vadd.f32 %v11610_v26, %v5717_v45  ;;  %v11691_v8 = vadd.f32 %v11612_v42, %v5718_v61  ;;  %v5653_v63 = vsub.f32 1.5, %v5652_v1  ;;  %v5864_v45 = vld [vmem:[#allocation16 + $0x398] sm:$0xff]  ;;  %v5855_v1 = vld [vmem:[#allocation16 + $0x350] sm:$0xff] }
0x1292   :  { %v8982_v7 = vpop.eup %8981  ;;  %v5992_v61 = vld [vmem:[#allocation16 + $0x798] sm:$0xff]  ;;  %6270 = vmatpush.msrb.mxu2 %v5864_v45  ;;  %v5815_v11 = vld [vmem:[#allocation16 + $0x210] sm:$0xff] }
0x1293   :  { %6048 = vmatmul.f32.gmra.mxu0 %v11688_v19  ;;  %6089 = vmatmul.f32.gmra.mxu1 %v11691_v8  ;;  %v5654_v12 = vmul.f32 %v8980_v37, %v5653_v63  ;;  %v5660_v0 = vmul.f32 %v8982_v7, %v5606_v43  ;;  %vm5666_vm15 = vweird.f32 %v8982_v7  ;;  %v5983_v63 = vld [vmem:[#allocation16 + $0x750] sm:$0xff]  ;;  %v5944_v45 = vld [vmem:[#allocation16 + $0x618] sm:$0xff] }
0x1294   :  { %6130 = vmatmul.f32.gmra.mxu2 %v11688_v19  ;;  %6171 = vmatmul.f32.gmra.mxu3 %v11691_v8  ;;  %vm5667_vm0 = vmor %vm5665_vm9, %vm5666_vm15 }
0x1295   :  { %v5658_v2 = vsel %vm5657_vm10, %v8980_v37, %v5654_v12  ;;  %v5661_v4 = vmul.f32 %v8982_v7, %v5660_v0  ;;  %6311 = vmatpush.msrb.mxu3 %v5992_v61  ;;  %v5984_v12 = vld [vmem:[#allocation16 + $0x758] sm:$0xff]  ;;  %v5847_v0 = vld [vmem:[#allocation16 + $0x310] sm:$0xff] }
0x1296   :  { %v5697_v60 = vmul.f32 %v5658_v2, %v11585_v29  ;;  %v5698_v31 = vmul.f32 %v5658_v2, %v11588_v46  ;;  %v5975_v2 = vld [vmem:[#allocation16 + $0x710] sm:$0xff] }
0x1297   :  { %v5662_v24 = vmul.f32 0.5, %v5661_v4  ;;  %6312 = vmatpush.msrb.mxu3 %v5984_v12  ;;  %v5848_v4 = vld [vmem:[#allocation16 + $0x318] sm:$0xff] }
0x1298   :  { %v5719_v22 = vmul.f32 %v11606_v48, %v5697_v60  ;;  %v5720_v20 = vmul.f32 %v11608_v33, %v5698_v31  ;;  %v5976_v60 = vld [vmem:[#allocation16 + $0x718] sm:$0xff]  ;;  %v5839_v31 = vld [vmem:[#allocation16 + $0x2d0] sm:$0xff] }
0x1299   :  { %v5663_v6 = vsub.f32 1.5, %v5662_v24  ;;  %6313 = vmatpush.msrb.mxu3 %v5976_v60  ;;  %v5967_v24 = vld [vmem:[#allocation16 + $0x6d0] sm:$0xff]  ;;  %v5936_v12 = vld [vmem:[#allocation16 + $0x5d8] sm:$0xff] }
0x129a   :  { %v11702_v56 = vadd.f32 %v11610_v26, %v5719_v22  ;;  %v11705_v36 = vadd.f32 %v11612_v42, %v5720_v20  ;;  %v5840_v22 = vld [vmem:[#allocation16 + $0x2d8] sm:$0xff] }
0x129b   :  { %v5664_v51 = vmul.f32 %v8982_v7, %v5663_v6  ;;  %v5968_v20 = vld [vmem:[#allocation16 + $0x6d8] sm:$0xff]  ;;  %v5831_v6 = vld [vmem:[#allocation16 + $0x290] sm:$0xff] }
0x129c   :  { %6051 = vmatmul.f32.gmra.mxu0 %v11702_v56  ;;  %6092 = vmatmul.f32.gmra.mxu1 %v11705_v36  ;;  %v5928_v60 = vld [vmem:[#allocation16 + $0x598] sm:$0xff] }
0x129d   :  { %v5668_v29 = vsel %vm5667_vm0, %v8982_v7, %v5664_v51  ;;  %6133 = vmatmul.f32.gmra.mxu2 %v11702_v56  ;;  %6174 = vmatmul.f32.gmra.mxu3 %v11705_v36  ;;  %v5856_v7 = vld [vmem:[#allocation16 + $0x358] sm:$0xff]  ;;  %v5959_v51 = vld [vmem:[#allocation16 + $0x690] sm:$0xff] }
0x129e   :  { %v5699_v46 = vmul.f32 %v5668_v29, %v11597_v15  ;;  %v5700_v52 = vmul.f32 %v5668_v29, %v11600_v25  ;;  %v5871_v15 = vld [vmem:[#allocation16 + $0x3d0] sm:$0xff]  ;;  %6271 = vmatpush.msrb.mxu2 %v5856_v7  ;;  %6314 = vmatpush.msrb.mxu3 %v5968_v20  ;;  %v5832_v29 = vld [vmem:[#allocation16 + $0x298] sm:$0xff] }
0x129f   :  { %v5999_v25 = vld [vmem:[#allocation16 + $0x7d0] sm:$0xff]  ;;  %6187 = vmatpush.msrb.mxu0 %v5871_v15  ;;  %v5808_v7 = vld [vmem:[#allocation16 + $0x1d8] sm:$0xff] }
0x12a0   :  { %v5721_v9 = vmul.f32 %v11606_v48, %v5699_v46  ;;  %v5722_v37 = vmul.f32 %v11608_v33, %v5700_v52  ;;  %6228 = vmatpush.msrb.mxu1 %v5999_v25  ;;  %6272 = vmatpush.msrb.mxu2 %v5848_v4  ;;  %v5960_v46 = vld [vmem:[#allocation16 + $0x698] sm:$0xff]  ;;  %v5823_v52 = vld [vmem:[#allocation16 + $0x250] sm:$0xff] }
0x12a1   :  { %6188 = vmatpush.msrb.mxu0 %v5863_v62  ;;  %6315 = vmatpush.msrb.mxu3 %v5960_v46  ;;  %v5952_v25 = vld [vmem:[#allocation16 + $0x658] sm:$0xff]  ;;  %v5943_v62 = vld [vmem:[#allocation16 + $0x610] sm:$0xff] }
0x12a2   :  { %v11716_v43 = vadd.f32 %v11610_v26, %v5721_v9  ;;  %v11719_v41 = vadd.f32 %v11612_v42, %v5722_v37  ;;  %6229 = vmatpush.msrb.mxu1 %v5991_v53  ;;  %6273 = vmatpush.msrb.mxu2 %v5840_v22  ;;  %v5951_v9 = vld [vmem:[#allocation16 + $0x650] sm:$0xff]  ;;  %v5824_v37 = vld [vmem:[#allocation16 + $0x258] sm:$0xff] }
0x12a3   :  { %6189 = vmatpush.msrb.mxu0 %v5855_v1  ;;  %6316 = vmatpush.msrb.mxu3 %v5952_v25  ;;  %v5816_v53 = vld [vmem:[#allocation16 + $0x218] sm:$0xff]  ;;  %v5807_v1 = vld [vmem:[#allocation16 + $0x1d0] sm:$0xff] }
0x12a4   :  { %6054 = vmatmul.f32.gmra.mxu0 %v11716_v43  ;;  %6095 = vmatmul.f32.gmra.mxu1 %v11719_v41  ;;  %v5800_v4 = vld [vmem:[#allocation16 + $0x198] sm:$0xff]  ;;  %v5903_v25 = vld [vmem:[#allocation16 + $0x4d0] sm:$0xff] }
0x12a5   :  { %6136 = vmatmul.f32.gmra.mxu2 %v11716_v43  ;;  %6177 = vmatmul.f32.gmra.mxu3 %v11719_v41  ;;  %v5792_v22 = vld [vmem:[#allocation16 + $0x158] sm:$0xff] }
0x12a6   :  { %6230 = vmatpush.msrb.mxu1 %v5983_v63  ;;  %6190 = vmatpush.msrb.mxu0 %v5847_v0  ;;  %v5935_v63 = vld [vmem:[#allocation16 + $0x5d0] sm:$0xff]  ;;  %v5920_v20 = vld [vmem:[#allocation16 + $0x558] sm:$0xff] }
0x12a7   :  { %6274 = vmatpush.msrb.mxu2 %v5832_v29  ;;  %6317 = vmatpush.msrb.mxu3 %v5944_v45  ;;  %v5799_v0 = vld [vmem:[#allocation16 + $0x190] sm:$0xff]  ;;  %v5784_v29 = vld [vmem:[#allocation16 + $0x118] sm:$0xff] }
0x12a8   :  { %6231 = vmatpush.msrb.mxu1 %v5975_v2  ;;  %6191 = vmatpush.msrb.mxu0 %v5839_v31  ;;  %v5927_v2 = vld [vmem:[#allocation16 + $0x590] sm:$0xff]  ;;  %v5912_v46 = vld [vmem:[#allocation16 + $0x518] sm:$0xff] }
0x12a9   :  { %6275 = vmatpush.msrb.mxu2 %v5824_v37  ;;  %6318 = vmatpush.msrb.mxu3 %v5936_v12  ;;  %v5791_v31 = vld [vmem:[#allocation16 + $0x150] sm:$0xff] }
0x12aa   :  { %6232 = vmatpush.msrb.mxu1 %v5967_v24  ;;  %6192 = vmatpush.msrb.mxu0 %v5831_v6  ;;  %v5919_v24 = vld [vmem:[#allocation16 + $0x550] sm:$0xff] }
0x12ab   :  { %6276 = vmatpush.msrb.mxu2 %v5816_v53  ;;  %6319 = vmatpush.msrb.mxu3 %v5928_v60  ;;  %v5783_v6 = vld [vmem:[#allocation16 + $0x110] sm:$0xff]  ;;  %v5904_v53 = vld [vmem:[#allocation16 + $0x4d8] sm:$0xff] }
0x12ac   :  { %6233 = vmatpush.msrb.mxu1 %v5959_v51  ;;  %6193 = vmatpush.msrb.mxu0 %v5823_v52  ;;  %v5911_v51 = vld [vmem:[#allocation16 + $0x510] sm:$0xff]  ;;  %v5888_v60 = vld [vmem:[#allocation16 + $0x458] sm:$0xff] }
0x12ad   :  { %6277 = vmatpush.msrb.mxu2 %v5808_v7  ;;  %6320 = vmatpush.msrb.mxu3 %v5920_v20  ;;  %v5767_v45 = vld [vmem:[#allocation16 + $0x90] sm:$0xff]  ;;  %v5896_v7 = vld [vmem:[#allocation16 + $0x498] sm:$0xff] }
0x12ae   :  { %6234 = vmatpush.msrb.mxu1 %v5951_v9  ;;  %6194 = vmatpush.msrb.mxu0 %v5815_v11  ;;  %v5759_v12 = vld [vmem:[#allocation16 + $0x50] sm:$0xff] }
0x12af   :  { %6278 = vmatpush.msrb.mxu2 %v5800_v4  ;;  %6321 = vmatpush.msrb.mxu3 %v5912_v46 }
0x12b0   :  { %6235 = vmatpush.msrb.mxu1 %v5943_v62  ;;  %6195 = vmatpush.msrb.mxu0 %v5807_v1  ;;  %v5895_v1 = vld [vmem:[#allocation16 + $0x490] sm:$0xff] }
0x12b1   :  { %6279 = vmatpush.msrb.mxu2 %v5792_v22  ;;  %6322 = vmatpush.msrb.mxu3 %v5904_v53  ;;  %v5752_v22 = vld [vmem:[#allocation16 + $0x18] sm:$0xff] }
0x12b2   :  { %6236 = vmatpush.msrb.mxu1 %v5935_v63  ;;  %6196 = vmatpush.msrb.mxu0 %v5799_v0  ;;  %v5887_v0 = vld [vmem:[#allocation16 + $0x450] sm:$0xff] }
0x12b3   :  { %6280 = vmatpush.msrb.mxu2 %v5784_v29  ;;  %6323 = vmatpush.msrb.mxu3 %v5896_v7 }
0x12b4   :  { %6237 = vmatpush.msrb.mxu1 %v5927_v2  ;;  %6197 = vmatpush.msrb.mxu0 %v5791_v31  ;;  %v5760_v2 = vld [vmem:[#allocation16 + $0x58] sm:$0xff]  ;;  %v5751_v31 = vld [vmem:[#allocation16 + $0x10] sm:$0xff] }
0x12b5   :  { %6324 = vmatpush.msrb.mxu3 %v5888_v60  ;;  %v5985_v60 = vld [vmem:[#allocation16 + $0x760] sm:$0xff] }
0x12b6   :  { %v5589_v15 = vpop.xlane.xlu0 %5588  ;;  %6238 = vmatpush.msrb.mxu1 %v5919_v24  ;;  %6198 = vmatpush.msrb.mxu0 %v5783_v6  ;;  %v5879_v24 = vld [vmem:[#allocation16 + $0x410] sm:$0xff]  ;;  %v5880_v6 = vld [vmem:[#allocation16 + $0x418] sm:$0xff] }
0x12b7   :  { %v5599_v49 = vmul.f32 %v5589_v15, %v13415_v57  ;;  %v5775_v15 = vld [vmem:[#allocation16 + $0xd0] sm:$0xff]  ;;  %6325 = vmatpush.msrb.mxu3 %v5880_v6  ;;  %v5850_v6 = vld [vmem:[#allocation16 + $0x328] sm:$0xff] }
0x12b8   :  { %6239 = vmatpush.msrb.mxu1 %v5911_v51  ;;  %6199 = vmatpush.msrb.mxu0 %v5775_v15 }
0x12b9   :  { %v11726_v61 = vadd.f32 1e-05, %v5599_v49  ;;  %v5776_v49 = vld [vmem:[#allocation16 + $0xd8] sm:$0xff] }
0x12ba   :  { %6240 = vmatpush.msrb.mxu1 %v5903_v25  ;;  %6281 = vmatpush.msrb.mxu2 %v5776_v49 }
0x12bb   :  { %8983 = vrsqrt.f32 %v11726_v61  ;;  %6200 = vmatpush.msrb.mxu0 %v5767_v45  ;;  %vm5675_vm2 = vweird.f32 %v11726_v61 }
0x12bc   :  { %6241 = vmatpush.msrb.mxu1 %v5895_v1 }
0x12bd   :  { %6201 = vmatpush.msrb.mxu0 %v5759_v12 }
0x12be   :  { %v5592_v52 = vpop.xlane.xlu1 %5591  ;;  %6242 = vmatpush.msrb.mxu1 %v5887_v0  ;;  %v5866_v0 = vld [vmem:[#allocation16 + $0x3a8] sm:$0xff] }
0x12bf   :  { %v5600_v9 = vmul.f32 %v5592_v52, %v13415_v57  ;;  %v5768_v57 = vld [vmem:[#allocation16 + $0x98] sm:$0xff]  ;;  %6202 = vmatpush.msrb.mxu0 %v5751_v31  ;;  %v5858_v31 = vld [vmem:[#allocation16 + $0x368] sm:$0xff] }
0x12c0   :  { %6282 = vmatpush.msrb.mxu2 %v5768_v57  ;;  %6243 = vmatpush.msrb.mxu1 %v5879_v24  ;;  %v5986_v24 = vld [vmem:[#allocation16 + $0x768] sm:$0xff] }
0x12c1   :  { %v8984_v37 = vpop.eup %8983  ;;  %v5608_v62 = vadd.f32 1e-05, %v5600_v9 }
0x12c2   :  { %v5670_v11 = vmul.f32 %v8984_v37, %v11726_v61  ;;  %6283 = vmatpush.msrb.mxu2 %v5760_v2  ;;  %vm5676_vm1 = vweird.f32 %v8984_v37  ;;  %v5994_v2 = vld [vmem:[#allocation16 + $0x7a8] sm:$0xff] }
0x12c3   :  { %8985 = vrsqrt.f32 %v5608_v62  ;;  %vm5677_vm3 = vmor %vm5675_vm2, %vm5676_vm1  ;;  %vm5685_vm5 = vweird.f32 %v5608_v62 }
0x12c4   :  { %v5671_v63 = vmul.f32 %v8984_v37, %v5670_v11  ;;  %6284 = vmatpush.msrb.mxu2 %v5752_v22  ;;  %v5849_v22 = vld [vmem:[#allocation16 + $0x320] sm:$0xff] }
0x12c6   :  { %v5672_v4 = vmul.f32 0.5, %v5671_v63 }
0x12c8   :  { %v5673_v20 = vsub.f32 1.5, %v5672_v4  ;;  %v5857_v4 = vld [vmem:[#allocation16 + $0x360] sm:$0xff] }
0x12c9   :  { %v8986_v51 = vpop.eup %8985 }
0x12ca   :  { %v5674_v29 = vmul.f32 %v8984_v37, %v5673_v20  ;;  %v5680_v46 = vmul.f32 %v8986_v51, %v5608_v62  ;;  %vm5686_vm4 = vweird.f32 %v8986_v51  ;;  %v5977_v20 = vld [vmem:[#allocation16 + $0x720] sm:$0xff] }
0x12cb   :  { %vm5687_vm6 = vmor %vm5685_vm5, %vm5686_vm4 }
0x12cc   :  { %v5678_v52 = vsel %vm5677_vm3, %v8984_v37, %v5674_v29  ;;  %v5681_v25 = vmul.f32 %v8986_v51, %v5680_v46  ;;  %v5841_v29 = vld [vmem:[#allocation16 + $0x2e0] sm:$0xff] }
0x12cd   :  { %v5701_v9 = vmul.f32 %v5678_v52, %v11630_v58  ;;  %v5702_v15 = vmul.f32 %v5678_v52, %v11633_v34  ;;  %v5969_v46 = vld [vmem:[#allocation16 + $0x6e0] sm:$0xff]  ;;  %v5842_v52 = vld [vmem:[#allocation16 + $0x2e8] sm:$0xff] }
0x12ce   :  { %v5682_v53 = vmul.f32 0.5, %v5681_v25  ;;  %v5961_v25 = vld [vmem:[#allocation16 + $0x6a0] sm:$0xff] }
0x12cf   :  { %v5723_v49 = vmul.f32 %v11606_v48, %v5701_v9  ;;  %v5724_v11 = vmul.f32 %v11608_v33, %v5702_v15  ;;  %v5970_v9 = vld [vmem:[#allocation16 + $0x6e8] sm:$0xff]  ;;  %v5833_v15 = vld [vmem:[#allocation16 + $0x2a0] sm:$0xff] }
0x12d0   :  { %v5683_v61 = vsub.f32 1.5, %v5682_v53  ;;  %v5825_v53 = vld [vmem:[#allocation16 + $0x260] sm:$0xff] }
0x12d1   :  { %v11737_v45 = vadd.f32 %v11610_v26, %v5723_v49  ;;  %v11740_v1 = vadd.f32 %v11612_v42, %v5724_v11  ;;  %v5834_v49 = vld [vmem:[#allocation16 + $0x2a8] sm:$0xff] }
0x12d2   :  { %v5684_v63 = vmul.f32 %v8986_v51, %v5683_v61  ;;  %v5962_v11 = vld [vmem:[#allocation16 + $0x6a8] sm:$0xff]  ;;  %v5953_v61 = vld [vmem:[#allocation16 + $0x660] sm:$0xff] }
0x12d3   :  { %6057 = vmatmul.f32.gmra.mxu0 %v11737_v45  ;;  %6098 = vmatmul.f32.gmra.mxu1 %v11740_v1 }
0x12d4   :  { %6139 = vmatmul.f32.gmra.mxu2 %v11737_v45  ;;  %6180 = vmatmul.f32.gmra.mxu3 %v11740_v1  ;;  %v5688_v58 = vsel %vm5687_vm6, %v8986_v51, %v5684_v63  ;;  %v5978_v51 = vld [vmem:[#allocation16 + $0x728] sm:$0xff] }
0x12d5   :  { %v5703_v34 = vmul.f32 %v5688_v58, %v11642_v14  ;;  %v5704_v37 = vmul.f32 %v5688_v58, %v11645_v18  ;;  %v5865_v14 = vld [vmem:[#allocation16 + $0x3a0] sm:$0xff]  ;;  %v5826_v63 = vld [vmem:[#allocation16 + $0x268] sm:$0xff] }
0x12d6   :  { %v5993_v18 = vld [vmem:[#allocation16 + $0x7a0] sm:$0xff]  ;;  %v5954_v58 = vld [vmem:[#allocation16 + $0x668] sm:$0xff] }
0x12d7   :  { %v5725_v57 = vmul.f32 %v11606_v48, %v5703_v34  ;;  %v5726_v7 = vmul.f32 %v11608_v33, %v5704_v37  ;;  %v5873_v48 = vld [vmem:[#allocation16 + $0x3e0] sm:$0xff] }
0x12d8   :  { %v6001_v33 = vld [vmem:[#allocation16 + $0x7e0] sm:$0xff]  ;;  %6351 = vmatpush.msra.mxu0 %v5873_v48 }
0x12d9   :  { %v11751_v62 = vadd.f32 %v11610_v26, %v5725_v57  ;;  %v11754_v12 = vadd.f32 %v11612_v42, %v5726_v7  ;;  %v5874_v26 = vld [vmem:[#allocation16 + $0x3e8] sm:$0xff]  ;;  %6392 = vmatpush.msra.mxu1 %v6001_v33  ;;  %v5817_v34 = vld [vmem:[#allocation16 + $0x220] sm:$0xff] }
0x12da   :  { %v6002_v42 = vld [vmem:[#allocation16 + $0x7e8] sm:$0xff]  ;;  %6433 = vmatpush.msra.mxu2 %v5874_v26  ;;  %6352 = vmatpush.msra.mxu0 %v5865_v14  ;;  %v5945_v37 = vld [vmem:[#allocation16 + $0x620] sm:$0xff] }
0x12db   :  { %13422 = vst [vmem:[#allocation58_spill] sm:$0xff] %v11751_v62  ;;  %6060 = vmatmul.f32.gmra.mxu0 %v11751_v62  ;;  %6101 = vmatmul.f32.gmra.mxu1 %v11754_v12  ;;  %v5818_v57 = vld [vmem:[#allocation16 + $0x228] sm:$0xff]  ;;  %v5809_v48 = vld [vmem:[#allocation16 + $0x1e0] sm:$0xff] }
0x12dc   :  { %13423 = vst [vmem:[#allocation54_spill] sm:$0xff] %v11754_v12  ;;  %6142 = vmatmul.f32.gmra.mxu2 %v11751_v62  ;;  %6183 = vmatmul.f32.gmra.mxu3 %v11754_v12  ;;  %v5946_v7 = vld [vmem:[#allocation16 + $0x628] sm:$0xff]  ;;  %v5937_v33 = vld [vmem:[#allocation16 + $0x5e0] sm:$0xff] }
0x12dd   :  { %6474 = vmatpush.msra.mxu3 %v6002_v42  ;;  %6393 = vmatpush.msra.mxu1 %v5993_v18  ;;  %v5810_v26 = vld [vmem:[#allocation16 + $0x1e8] sm:$0xff]  ;;  %v5801_v14 = vld [vmem:[#allocation16 + $0x1a0] sm:$0xff] }
0x12de   :  { %6434 = vmatpush.msra.mxu2 %v5866_v0  ;;  %6353 = vmatpush.msra.mxu0 %v5857_v4  ;;  %v5938_v42 = vld [vmem:[#allocation16 + $0x5e8] sm:$0xff]  ;;  %v5929_v18 = vld [vmem:[#allocation16 + $0x5a0] sm:$0xff] }
0x12df   :  { %6475 = vmatpush.msra.mxu3 %v5994_v2  ;;  %6394 = vmatpush.msra.mxu1 %v5985_v60  ;;  %v5802_v0 = vld [vmem:[#allocation16 + $0x1a8] sm:$0xff]  ;;  %v5793_v4 = vld [vmem:[#allocation16 + $0x160] sm:$0xff] }
0x12e0   :  { %6435 = vmatpush.msra.mxu2 %v5858_v31  ;;  %6354 = vmatpush.msra.mxu0 %v5849_v22  ;;  %v5930_v2 = vld [vmem:[#allocation16 + $0x5a8] sm:$0xff]  ;;  %v5921_v60 = vld [vmem:[#allocation16 + $0x560] sm:$0xff] }
0x12e1   :  { %6476 = vmatpush.msra.mxu3 %v5986_v24  ;;  %6395 = vmatpush.msra.mxu1 %v5977_v20  ;;  %v5794_v31 = vld [vmem:[#allocation16 + $0x168] sm:$0xff]  ;;  %v5785_v22 = vld [vmem:[#allocation16 + $0x120] sm:$0xff] }
0x12e2   :  { %6436 = vmatpush.msra.mxu2 %v5850_v6  ;;  %6355 = vmatpush.msra.mxu0 %v5841_v29  ;;  %v5922_v24 = vld [vmem:[#allocation16 + $0x568] sm:$0xff]  ;;  %v5913_v20 = vld [vmem:[#allocation16 + $0x520] sm:$0xff] }
0x12e3   :  { %6203 = vmatmul.f32.vlgmr.msrb.gmra.mxu0 %v11619_v3  ;;  %6244 = vmatmul.f32.vlgmr.msrb.gmra.mxu1 %v11622_v47  ;;  %v5786_v6 = vld [vmem:[#allocation16 + $0x128] sm:$0xff]  ;;  %v5777_v29 = vld [vmem:[#allocation16 + $0xe0] sm:$0xff] }
0x12e4   :  { %6285 = vmatmul.f32.vlgmr.msrb.gmra.mxu2 %v11619_v3  ;;  %6326 = vmatmul.f32.vlgmr.msrb.gmra.mxu3 %v11622_v47 }
0x12e5   :  { %6477 = vmatpush.msra.mxu3 %v5978_v51  ;;  %6396 = vmatpush.msra.mxu1 %v5969_v46  ;;  %v5914_v51 = vld [vmem:[#allocation16 + $0x528] sm:$0xff]  ;;  %v5905_v46 = vld [vmem:[#allocation16 + $0x4e0] sm:$0xff] }
0x12e6   :  { %6437 = vmatpush.msra.mxu2 %v5842_v52  ;;  %6356 = vmatpush.msra.mxu0 %v5833_v15  ;;  %v5778_v52 = vld [vmem:[#allocation16 + $0xe8] sm:$0xff]  ;;  %v5769_v15 = vld [vmem:[#allocation16 + $0xa0] sm:$0xff] }
0x12e7   :  { %6478 = vmatpush.msra.mxu3 %v5970_v9  ;;  %6397 = vmatpush.msra.mxu1 %v5961_v25  ;;  %v5906_v9 = vld [vmem:[#allocation16 + $0x4e8] sm:$0xff]  ;;  %v5897_v25 = vld [vmem:[#allocation16 + $0x4a0] sm:$0xff] }
0x12e8   :  { %6438 = vmatpush.msra.mxu2 %v5834_v49  ;;  %6357 = vmatpush.msra.mxu0 %v5825_v53  ;;  %v5770_v49 = vld [vmem:[#allocation16 + $0xa8] sm:$0xff]  ;;  %v5761_v53 = vld [vmem:[#allocation16 + $0x60] sm:$0xff] }
0x12e9   :  { %6479 = vmatpush.msra.mxu3 %v5962_v11  ;;  %6398 = vmatpush.msra.mxu1 %v5953_v61  ;;  %v5898_v11 = vld [vmem:[#allocation16 + $0x4a8] sm:$0xff]  ;;  %v5889_v61 = vld [vmem:[#allocation16 + $0x460] sm:$0xff] }
0x12ea   :  { %6439 = vmatpush.msra.mxu2 %v5826_v63  ;;  %6358 = vmatpush.msra.mxu0 %v5817_v34  ;;  %v5762_v63 = vld [vmem:[#allocation16 + $0x68] sm:$0xff]  ;;  %v5753_v34 = vld [vmem:[#allocation16 + $0x20] sm:$0xff] }
0x12eb   :  { %6206 = vmatmul.f32.gmra.mxu0 %v11656_v16  ;;  %6247 = vmatmul.f32.gmra.mxu1 %v11659_v5 }
0x12ec   :  { %6288 = vmatmul.f32.gmra.mxu2 %v11656_v16  ;;  %6329 = vmatmul.f32.gmra.mxu3 %v11659_v5 }
0x12ed   :  { %6480 = vmatpush.msra.mxu3 %v5954_v58  ;;  %6399 = vmatpush.msra.mxu1 %v5945_v37  ;;  %v5890_v58 = vld [vmem:[#allocation16 + $0x468] sm:$0xff]  ;;  %v5881_v37 = vld [vmem:[#allocation16 + $0x420] sm:$0xff] }
0x12ee   :  { %6440 = vmatpush.msra.mxu2 %v5818_v57  ;;  %6359 = vmatpush.msra.mxu0 %v5809_v48  ;;  %v5754_v57 = vld [vmem:[#allocation16 + $0x28] sm:$0xff]  ;;  %v11788_v48 = vpop.f32.mrf.mxu0 }
0x12ef   :  { %6481 = vmatpush.msra.mxu3 %v5946_v7  ;;  %6400 = vmatpush.msra.mxu1 %v5937_v33  ;;  %v5882_v7 = vld [vmem:[#allocation16 + $0x428] sm:$0xff]  ;;  %v11790_v33 = vpop.f32.mrf.mxu1 }
0x12f0   :  { %6441 = vmatpush.msra.mxu2 %v5810_v26  ;;  %6360 = vmatpush.msra.mxu0 %v5801_v14  ;;  %v11796_v26 = vpop.f32.mrf.mxu2 }
0x12f1   :  { %6482 = vmatpush.msra.mxu3 %v5938_v42  ;;  %6401 = vmatpush.msra.mxu1 %v5929_v18  ;;  %v11798_v42 = vpop.f32.mrf.mxu3 }
0x12f2   :  { %6442 = vmatpush.msra.mxu2 %v5802_v0  ;;  %6361 = vmatpush.msra.mxu0 %v5793_v4  ;;  %v5875_v0 = vld [vmem:[#allocation16 + $0x3f0] sm:$0xff]  ;;  %v5876_v4 = vld [vmem:[#allocation16 + $0x3f8] sm:$0xff] }
0x12f3   :  { %6209 = vmatmul.f32.gmra.mxu0 %v11673_v23  ;;  %6250 = vmatmul.f32.gmra.mxu1 %v11676_v40 }
0x12f4   :  { %6291 = vmatmul.f32.gmra.mxu2 %v11673_v23  ;;  %6332 = vmatmul.f32.gmra.mxu3 %v11676_v40 }
0x12f5   :  { %6483 = vmatpush.msra.mxu3 %v5930_v2  ;;  %6402 = vmatpush.msra.mxu1 %v5921_v60  ;;  %v6003_v2 = vld [vmem:[#allocation16 + $0x7f0] sm:$0xff]  ;;  %v6004_v60 = vld [vmem:[#allocation16 + $0x7f8] sm:$0xff] }
0x12f6   :  { %6443 = vmatpush.msra.mxu2 %v5794_v31  ;;  %6362 = vmatpush.msra.mxu0 %v5785_v22  ;;  %v11800_v14 = vpop.f32.mrf.mxu0  ;;  %v5867_v31 = vld [vmem:[#allocation16 + $0x3b0] sm:$0xff]  ;;  %v5868_v22 = vld [vmem:[#allocation16 + $0x3b8] sm:$0xff] }
0x12f7   :  { %6484 = vmatpush.msra.mxu3 %v5922_v24  ;;  %6403 = vmatpush.msra.mxu1 %v5913_v20  ;;  %v11802_v18 = vpop.f32.mrf.mxu1  ;;  %v5995_v24 = vld [vmem:[#allocation16 + $0x7b0] sm:$0xff]  ;;  %v5996_v20 = vld [vmem:[#allocation16 + $0x7b8] sm:$0xff] }
0x12f8   :  { %6444 = vmatpush.msra.mxu2 %v5786_v6  ;;  %6363 = vmatpush.msra.mxu0 %v5777_v29  ;;  %v5859_v6 = vld [vmem:[#allocation16 + $0x370] sm:$0xff]  ;;  %v5860_v29 = vld [vmem:[#allocation16 + $0x378] sm:$0xff] }
0x12f9   :  { %6485 = vmatpush.msra.mxu3 %v5914_v51  ;;  %6404 = vmatpush.msra.mxu1 %v5905_v46  ;;  %v5987_v51 = vld [vmem:[#allocation16 + $0x770] sm:$0xff]  ;;  %v5988_v46 = vld [vmem:[#allocation16 + $0x778] sm:$0xff] }
0x12fa   :  { %6445 = vmatpush.msra.mxu2 %v5778_v52  ;;  %6364 = vmatpush.msra.mxu0 %v5769_v15  ;;  %v11808_v52 = vpop.f32.mrf.mxu2  ;;  %v5851_v15 = vld [vmem:[#allocation16 + $0x330] sm:$0xff] }
0x12fb   :  { %6212 = vmatmul.f32.gmra.mxu0 %v11688_v19  ;;  %6253 = vmatmul.f32.gmra.mxu1 %v11691_v8 }
0x12fc   :  { %6294 = vmatmul.f32.gmra.mxu2 %v11688_v19  ;;  %6335 = vmatmul.f32.gmra.mxu3 %v11691_v8 }
0x12fd   :  { %6486 = vmatpush.msra.mxu3 %v5906_v9  ;;  %6405 = vmatpush.msra.mxu1 %v5897_v25  ;;  %v11810_v9 = vpop.f32.mrf.mxu3  ;;  %v5979_v25 = vld [vmem:[#allocation16 + $0x730] sm:$0xff] }
0x12fe   :  { %6446 = vmatpush.msra.mxu2 %v5770_v49  ;;  %6365 = vmatpush.msra.mxu0 %v5761_v53  ;;  %v5852_v53 = vld [vmem:[#allocation16 + $0x338] sm:$0xff] }
0x12ff   :  { %6487 = vmatpush.msra.mxu3 %v5898_v11  ;;  %6406 = vmatpush.msra.mxu1 %v5889_v61  ;;  %v5980_v61 = vld [vmem:[#allocation16 + $0x738] sm:$0xff] }
0x1300   :  { %6447 = vmatpush.msra.mxu2 %v5762_v63  ;;  %6366 = vmatpush.msra.mxu0 %v5753_v34  ;;  %v5843_v63 = vld [vmem:[#allocation16 + $0x2f0] sm:$0xff]  ;;  %v5844_v34 = vld [vmem:[#allocation16 + $0x2f8] sm:$0xff] }
0x1301   :  { %6488 = vmatpush.msra.mxu3 %v5890_v58  ;;  %6407 = vmatpush.msra.mxu1 %v5881_v37  ;;  %v5971_v58 = vld [vmem:[#allocation16 + $0x6f0] sm:$0xff]  ;;  %v5972_v37 = vld [vmem:[#allocation16 + $0x6f8] sm:$0xff] }
0x1302   :  { %6448 = vmatpush.msra.mxu2 %v5754_v57  ;;  %6515 = vmatpush.msrb.mxu0 %v5875_v0  ;;  %v5835_v57 = vld [vmem:[#allocation16 + $0x2b0] sm:$0xff]  ;;  %v5836_v0 = vld [vmem:[#allocation16 + $0x2b8] sm:$0xff] }
0x1303   :  { %6215 = vmatmul.f32.gmra.mxu0 %v11702_v56  ;;  %6256 = vmatmul.f32.gmra.mxu1 %v11705_v36  ;;  %v11812_v49 = vpop.f32.mrf.mxu0  ;;  %v11814_v11 = vpop.f32.mrf.mxu1 }
0x1304   :  { %6297 = vmatmul.f32.gmra.mxu2 %v11702_v56  ;;  %6338 = vmatmul.f32.gmra.mxu3 %v11705_v36 }
0x1305   :  { %6489 = vmatpush.msra.mxu3 %v5882_v7  ;;  %6556 = vmatpush.msrb.mxu1 %v6003_v2  ;;  %v5963_v7 = vld [vmem:[#allocation16 + $0x6b0] sm:$0xff]  ;;  %v5964_v2 = vld [vmem:[#allocation16 + $0x6b8] sm:$0xff] }
0x1306   :  { %6597 = vmatpush.msrb.mxu2 %v5876_v4  ;;  %6516 = vmatpush.msrb.mxu0 %v5867_v31 }
0x1307   :  { %6638 = vmatpush.msrb.mxu3 %v6004_v60  ;;  %6557 = vmatpush.msrb.mxu1 %v5995_v24 }
0x1308   :  { %6598 = vmatpush.msrb.mxu2 %v5868_v22  ;;  %6517 = vmatpush.msrb.mxu0 %v5859_v6  ;;  %v5827_v22 = vld [vmem:[#allocation16 + $0x270] sm:$0xff]  ;;  %v5828_v6 = vld [vmem:[#allocation16 + $0x278] sm:$0xff] }
0x1309   :  { %6639 = vmatpush.msrb.mxu3 %v5996_v20  ;;  %6558 = vmatpush.msrb.mxu1 %v5987_v51  ;;  %v5955_v20 = vld [vmem:[#allocation16 + $0x670] sm:$0xff]  ;;  %v5956_v51 = vld [vmem:[#allocation16 + $0x678] sm:$0xff] }
0x130a   :  { %6599 = vmatpush.msrb.mxu2 %v5860_v29  ;;  %6518 = vmatpush.msrb.mxu0 %v5851_v15  ;;  %v11820_v4 = vpop.f32.mrf.mxu2  ;;  %v11822_v60 = vpop.f32.mrf.mxu3  ;;  %v5819_v29 = vld [vmem:[#allocation16 + $0x230] sm:$0xff]  ;;  %v5820_v15 = vld [vmem:[#allocation16 + $0x238] sm:$0xff] }
0x130b   :  { %6218 = vmatmul.f32.gmra.mxu0 %v11716_v43  ;;  %6259 = vmatmul.f32.gmra.mxu1 %v11719_v41 }
0x130c   :  { %6300 = vmatmul.f32.gmra.mxu2 %v11716_v43  ;;  %6341 = vmatmul.f32.gmra.mxu3 %v11719_v41 }
0x130d   :  { %6640 = vmatpush.msrb.mxu3 %v5988_v46  ;;  %6559 = vmatpush.msrb.mxu1 %v5979_v25  ;;  %v5947_v46 = vld [vmem:[#allocation16 + $0x630] sm:$0xff]  ;;  %v5948_v25 = vld [vmem:[#allocation16 + $0x638] sm:$0xff] }
0x130e   :  { %6600 = vmatpush.msrb.mxu2 %v5852_v53  ;;  %6519 = vmatpush.msrb.mxu0 %v5843_v63  ;;  %v5811_v53 = vld [vmem:[#allocation16 + $0x1f0] sm:$0xff]  ;;  %v5812_v63 = vld [vmem:[#allocation16 + $0x1f8] sm:$0xff] }
0x130f   :  { %6641 = vmatpush.msrb.mxu3 %v5980_v61  ;;  %6560 = vmatpush.msrb.mxu1 %v5971_v58  ;;  %v5939_v61 = vld [vmem:[#allocation16 + $0x5f0] sm:$0xff]  ;;  %v5940_v58 = vld [vmem:[#allocation16 + $0x5f8] sm:$0xff] }
0x1310   :  { %6601 = vmatpush.msrb.mxu2 %v5844_v34  ;;  %6520 = vmatpush.msrb.mxu0 %v5835_v57  ;;  %v11824_v31 = vpop.f32.mrf.mxu0  ;;  %v11826_v24 = vpop.f32.mrf.mxu1  ;;  %v5803_v57 = vld [vmem:[#allocation16 + $0x1b0] sm:$0xff] }
0x1311   :  { %6642 = vmatpush.msrb.mxu3 %v5972_v37  ;;  %6561 = vmatpush.msrb.mxu1 %v5963_v7  ;;  %v5931_v7 = vld [vmem:[#allocation16 + $0x5b0] sm:$0xff] }
0x1312   :  { %6602 = vmatpush.msrb.mxu2 %v5836_v0  ;;  %6521 = vmatpush.msrb.mxu0 %v5827_v22  ;;  %v5804_v0 = vld [vmem:[#allocation16 + $0x1b8] sm:$0xff]  ;;  %v5795_v22 = vld [vmem:[#allocation16 + $0x170] sm:$0xff] }
0x1313   :  { %6221 = vmatmul.f32.gmra.mxu0 %v11737_v45  ;;  %6262 = vmatmul.f32.gmra.mxu1 %v11740_v1 }
0x1314   :  { %6303 = vmatmul.f32.gmra.mxu2 %v11737_v45  ;;  %6344 = vmatmul.f32.gmra.mxu3 %v11740_v1 }
0x1315   :  { %6643 = vmatpush.msrb.mxu3 %v5964_v2  ;;  %6562 = vmatpush.msrb.mxu1 %v5955_v20  ;;  %v5932_v2 = vld [vmem:[#allocation16 + $0x5b8] sm:$0xff]  ;;  %v5923_v20 = vld [vmem:[#allocation16 + $0x570] sm:$0xff] }
0x1316   :  { %6603 = vmatpush.msrb.mxu2 %v5828_v6  ;;  %6522 = vmatpush.msrb.mxu0 %v5819_v29  ;;  %v5796_v29 = vld [vmem:[#allocation16 + $0x178] sm:$0xff] }
0x1317   :  { %6644 = vmatpush.msrb.mxu3 %v5956_v51  ;;  %6563 = vmatpush.msrb.mxu1 %v5947_v46  ;;  %v11832_v34 = vpop.f32.mrf.mxu2  ;;  %v11834_v37 = vpop.f32.mrf.mxu3  ;;  %v5924_v46 = vld [vmem:[#allocation16 + $0x578] sm:$0xff] }
0x1318   :  { %6604 = vmatpush.msrb.mxu2 %v5820_v15  ;;  %6523 = vmatpush.msrb.mxu0 %v5811_v53  ;;  %v5787_v15 = vld [vmem:[#allocation16 + $0x130] sm:$0xff]  ;;  %v5788_v53 = vld [vmem:[#allocation16 + $0x138] sm:$0xff] }
0x1319   :  { %6645 = vmatpush.msrb.mxu3 %v5948_v25  ;;  %6564 = vmatpush.msrb.mxu1 %v5939_v61  ;;  %v11840_v6 = vpop.f32.mrf.mxu0  ;;  %v11842_v51 = vpop.f32.mrf.mxu1  ;;  %v5915_v25 = vld [vmem:[#allocation16 + $0x530] sm:$0xff]  ;;  %v5916_v61 = vld [vmem:[#allocation16 + $0x538] sm:$0xff] }
0x131a   :  { %6605 = vmatpush.msrb.mxu2 %v5812_v63  ;;  %6524 = vmatpush.msrb.mxu0 %v5803_v57  ;;  %v5779_v63 = vld [vmem:[#allocation16 + $0xf0] sm:$0xff]  ;;  %v5780_v57 = vld [vmem:[#allocation16 + $0xf8] sm:$0xff] }
0x131b   :  { %6224 = vmatmul.f32.gmra.mxu0 %v11751_v62  ;;  %6265 = vmatmul.f32.gmra.mxu1 %v11754_v12 }
0x131c   :  { %6306 = vmatmul.f32.gmra.mxu2 %v11751_v62  ;;  %6347 = vmatmul.f32.gmra.mxu3 %v11754_v12 }
0x131d   :  { %6646 = vmatpush.msrb.mxu3 %v5940_v58  ;;  %6565 = vmatpush.msrb.mxu1 %v5931_v7  ;;  %v5907_v58 = vld [vmem:[#allocation16 + $0x4f0] sm:$0xff]  ;;  %v5908_v7 = vld [vmem:[#allocation16 + $0x4f8] sm:$0xff] }
0x131e   :  { %6606 = vmatpush.msrb.mxu2 %v5804_v0  ;;  %6525 = vmatpush.msrb.mxu0 %v5795_v22  ;;  %v5771_v22 = vld [vmem:[#allocation16 + $0xb0] sm:$0xff] }
0x131f   :  { %6647 = vmatpush.msrb.mxu3 %v5932_v2  ;;  %6566 = vmatpush.msrb.mxu1 %v5923_v20  ;;  %v5899_v20 = vld [vmem:[#allocation16 + $0x4b0] sm:$0xff] }
0x1320   :  { %6607 = vmatpush.msrb.mxu2 %v5796_v29  ;;  %6526 = vmatpush.msrb.mxu0 %v5787_v15  ;;  %v11846_v0 = vpop.f32.mrf.mxu2  ;;  %v11848_v2 = vpop.f32.mrf.mxu3  ;;  %v5772_v29 = vld [vmem:[#allocation16 + $0xb8] sm:$0xff]  ;;  %v5763_v15 = vld [vmem:[#allocation16 + $0x70] sm:$0xff] }
0x1321   :  { %6648 = vmatpush.msrb.mxu3 %v5924_v46  ;;  %6567 = vmatpush.msrb.mxu1 %v5915_v25  ;;  %v5900_v46 = vld [vmem:[#allocation16 + $0x4b8] sm:$0xff]  ;;  %v5891_v25 = vld [vmem:[#allocation16 + $0x470] sm:$0xff] }
0x1322   :  { %6608 = vmatpush.msrb.mxu2 %v5788_v53  ;;  %6527 = vmatpush.msrb.mxu0 %v5779_v63  ;;  %v11852_v53 = vpop.f32.mrf.mxu0  ;;  %v5755_v63 = vld [vmem:[#allocation16 + $0x30] sm:$0xff] }
0x1323   :  { %6367 = vmatmul.f32.vlgmr.msra.gmra.mxu0 %v11619_v3  ;;  %6408 = vmatmul.f32.vlgmr.msra.gmra.mxu1 %v11622_v47 }
0x1324   :  { %6449 = vmatmul.f32.vlgmr.msra.gmra.mxu2 %v11619_v3  ;;  %6490 = vmatmul.f32.vlgmr.msra.gmra.mxu3 %v11622_v47 }
0x1325   :  { %6649 = vmatpush.msrb.mxu3 %v5916_v61  ;;  %6568 = vmatpush.msrb.mxu1 %v5907_v58  ;;  %v11854_v61 = vpop.f32.mrf.mxu1  ;;  %v5883_v58 = vld [vmem:[#allocation16 + $0x430] sm:$0xff] }
0x1326   :  { %6609 = vmatpush.msrb.mxu2 %v5780_v57  ;;  %6528 = vmatpush.msrb.mxu0 %v5771_v22  ;;  %v5756_v57 = vld [vmem:[#allocation16 + $0x38] sm:$0xff] }
0x1327   :  { %6650 = vmatpush.msrb.mxu3 %v5908_v7  ;;  %6569 = vmatpush.msrb.mxu1 %v5899_v20  ;;  %v5884_v7 = vld [vmem:[#allocation16 + $0x438] sm:$0xff] }
0x1328   :  { %6610 = vmatpush.msrb.mxu2 %v5772_v29  ;;  %6529 = vmatpush.msrb.mxu0 %v5763_v15  ;;  %v11860_v22 = vpop.f32.mrf.mxu2  ;;  %v11862_v20 = vpop.f32.mrf.mxu3  ;;  %v11871_v29 = vld [vmem:[%s13232_s9] sm:$0xff] }
0x1329   :  { %6651 = vmatpush.msrb.mxu3 %v5900_v46  ;;  %6570 = vmatpush.msrb.mxu1 %v5891_v25  ;;  %v11876_v46 = vperm.slane %v11871_v29, 0  ;;  %v11881_v15 = vperm.slane %v11871_v29, 1 }
0x132a   :  { %6611 = vmatpush.msrb.mxu2 %v5764_v17  ;;  %6530 = vmatpush.msrb.mxu0 %v5755_v63 }
0x132b   :  { %6370 = vmatmul.f32.gmra.mxu0 %v11656_v16  ;;  %6411 = vmatmul.f32.gmra.mxu1 %v11659_v5  ;;  %v6123_v27 = vadd.f32 %v11796_v26, %v11881_v15  ;;  %v6126_v50 = vadd.f32 %v11808_v52, %v11881_v15 }
0x132c   :  { %6452 = vmatmul.f32.gmra.mxu2 %v11656_v16  ;;  %6493 = vmatmul.f32.gmra.mxu3 %v11659_v5 }
0x132d   :  { %6652 = vmatpush.msrb.mxu3 %v5892_v55  ;;  %6571 = vmatpush.msrb.mxu1 %v5883_v58  ;;  %v11926_v52 = vadd.f32 %v11810_v9, %v6126_v50  ;;  %v7317_v9 = vld [vmem:[#allocation17 + $0x1f0] sm:$0xff] }
0x132e   :  { %6612 = vmatpush.msrb.mxu2 %v5756_v57  ;;  %v6041_v57 = vadd.f32 %v11788_v48, %v11876_v46  ;;  %v11902_v48 = vadd.f32 %v11798_v42, %v6123_v27 }
0x132f   :  { %6653 = vmatpush.msrb.mxu3 %v5884_v7  ;;  %7552 = vmatpush.msra.mxu1 %v7317_v9  ;;  %v7345_v9 = vld [vmem:[#allocation17 + $0x2d0] sm:$0xff] }
0x1330   :  { %v11897_v28 = vadd.f32 %v11790_v33, %v6041_v57  ;;  %v6744_v27 = vmul.f32 %v11902_v48, %v11902_v48 }
0x1331   :  { %7634 = vmatpush.msra.mxu3 %v7381_v35  ;;  %v7281_v35 = vld [vmem:[#allocation17 + $0xd0] sm:$0xff] }
0x1332   :  { %v6743_v26 = vmul.f32 %v11897_v28, %v11897_v28 }
0x1333   :  { %6373 = vmatmul.f32.gmra.mxu0 %v11673_v23  ;;  %6414 = vmatmul.f32.gmra.mxu1 %v11676_v40 }
0x1334   :  { %6455 = vmatmul.f32.gmra.mxu2 %v11673_v23  ;;  %6496 = vmatmul.f32.gmra.mxu3 %v11676_v40 }
0x1335   :  { %7635 = vmatpush.msra.mxu3 %v7379_v32 }
0x133b   :  { %6376 = vmatmul.f32.gmra.mxu0 %v11688_v19  ;;  %6417 = vmatmul.f32.gmra.mxu1 %v11691_v8 }
0x133c   :  { %6458 = vmatmul.f32.gmra.mxu2 %v11688_v19  ;;  %6499 = vmatmul.f32.gmra.mxu3 %v11691_v8 }
0x1343   :  { %6379 = vmatmul.f32.gmra.mxu0 %v11702_v56  ;;  %6420 = vmatmul.f32.gmra.mxu1 %v11705_v36 }
0x1344   :  { %6461 = vmatmul.f32.gmra.mxu2 %v11702_v56  ;;  %6502 = vmatmul.f32.gmra.mxu3 %v11705_v36 }
0x134b   :  { %6382 = vmatmul.f32.gmra.mxu0 %v11716_v43  ;;  %6423 = vmatmul.f32.gmra.mxu1 %v11719_v41 }
0x134c   :  { %6464 = vmatmul.f32.gmra.mxu2 %v11716_v43  ;;  %6505 = vmatmul.f32.gmra.mxu3 %v11719_v41 }
0x1350   :  { %v11864_v55 = vpop.f32.mrf.mxu0  ;;  %v11866_v17 = vpop.f32.mrf.mxu1 }
0x1353   :  { %6385 = vmatmul.f32.gmra.mxu0 %v11737_v45  ;;  %6426 = vmatmul.f32.gmra.mxu1 %v11740_v1 }
0x1354   :  { %6467 = vmatmul.f32.gmra.mxu2 %v11737_v45  ;;  %6508 = vmatmul.f32.gmra.mxu3 %v11740_v1 }
0x1357   :  { %v6140_v25 = vpop.f32.mrf.mxu2  ;;  %v6181_v63 = vpop.f32.mrf.mxu3 }
0x1358   :  { %v6141_v58 = vadd.f32 %v6140_v25, %v11881_v15  ;;  %v11886_v7 = vpop.f32.mrf.mxu0  ;;  %v11888_v39 = vpop.f32.mrf.mxu1  ;;  %v6044_v25 = vadd.f32 %v11800_v14, %v11876_v46  ;;  %v6807_v14 = vmul.f32 %v6743_v26, %v11897_v28  ;;  %v6752_v26 = vmul.f32 %v11926_v52, %v11926_v52 }
0x1359   :  { %13424 = vst [vmem:[#allocation57_spill] sm:$0xff] %v11886_v7 }
0x135a   :  { %13425 = vst [vmem:[#allocation33_spill] sm:$0xff] %v11888_v39  ;;  %v11890_v59 = vadd.f32 %v6181_v63, %v6141_v58  ;;  %v11920_v42 = vadd.f32 %v11802_v18, %v6044_v25 }
0x135b   :  { %6388 = vmatmul.f32.gmra.mxu0 %v11751_v62  ;;  %6429 = vmatmul.f32.gmra.mxu1 %v11754_v12 }
0x135c   :  { %13426 = vst [vmem:[#allocation36_spill] sm:$0xff] %v11890_v59  ;;  %6470 = vmatmul.f32.gmra.mxu2 %v11751_v62  ;;  %6511 = vmatmul.f32.gmra.mxu3 %v11754_v12 }
0x135f   :  { %v6143_v63 = vpop.f32.mrf.mxu2  ;;  %v6184_v58 = vpop.f32.mrf.mxu3 }
0x1360   :  { %v6144_v33 = vadd.f32 %v6143_v63, %v11881_v15  ;;  %v11911_v57 = vpop.f32.mrf.mxu0  ;;  %v11913_v21 = vpop.f32.mrf.mxu1  ;;  %v6808_v63 = vmul.f32 %v6744_v27, %v11902_v48  ;;  %v6047_v27 = vadd.f32 %v11812_v49, %v11876_v46  ;;  %v6816_v49 = vmul.f32 %v6752_v26, %v11926_v52  ;;  %v7311_v26 = vld [vmem:[#allocation17 + $0x1c0] sm:$0xff] }
0x1362   :  { %v11915_v10 = vadd.f32 %v6184_v58, %v6144_v33  ;;  %v6751_v58 = vmul.f32 %v11920_v42, %v11920_v42  ;;  %v6871_v33 = vmul.f32 0.044715, %v6807_v14  ;;  %v7315_v14 = vld [vmem:[#allocation17 + $0x1e0] sm:$0xff]  ;;  %v6872_v54 = vmul.f32 0.044715, %v6808_v63 }
0x1363   :  { %6531 = vmatmul.f32.vlgmr.msrb.gmra.mxu0 %v11619_v3  ;;  %6572 = vmatmul.f32.vlgmr.msrb.gmra.mxu1 %v11622_v47  ;;  %v11953_v63 = vadd.f32 %v11814_v11, %v6047_v27  ;;  %v7343_v11 = vld [vmem:[#allocation17 + $0x2c0] sm:$0xff] }
0x1364   :  { %13427 = vst [vmem:[#allocation35_spill] sm:$0xff] %v11915_v10  ;;  %6613 = vmatmul.f32.vlgmr.msrb.gmra.mxu2 %v11619_v3  ;;  %6654 = vmatmul.f32.vlgmr.msrb.gmra.mxu3 %v11622_v47  ;;  %v7285_v3 = vld [vmem:[#allocation17 + $0xf0] sm:$0xff]  ;;  %v6815_v38 = vmul.f32 %v6751_v58, %v11920_v42  ;;  %v6935_v10 = vadd.f32 %v6871_v33, %v11897_v28  ;;  %v7279_v33 = vld [vmem:[#allocation17 + $0xc0] sm:$0xff] }
0x1365   :  { %v7349_v47 = vld [vmem:[#allocation17 + $0x2f0] sm:$0xff]  ;;  %7511 = vmatpush.msra.mxu0 %v7285_v3  ;;  %v6129_v58 = vadd.f32 %v11820_v4, %v11881_v15  ;;  %7553 = vmatpush.msra.mxu1 %v7315_v14  ;;  %v7375_v27 = vld [vmem:[#allocation17 + $0x3c0] sm:$0xff]  ;;  %v6759_v32 = vmul.f32 %v11953_v63, %v11953_v63 }
0x1366   :  { %7593 = vmatpush.msra.mxu2 %v7349_v47  ;;  %v7313_v3 = vld [vmem:[#allocation17 + $0x1d0] sm:$0xff]  ;;  %v6879_v39 = vmul.f32 0.044715, %v6815_v38  ;;  %v6999_v4 = vmul.f32 0.7978846, %v6935_v10  ;;  %v6050_v38 = vadd.f32 %v11824_v31, %v11876_v46  ;;  %v7275_v31 = vld [vmem:[#allocation17 + $0xa0] sm:$0xff] }
0x1367   :  { %v11933_v18 = vpop.f32.mrf.mxu2  ;;  %v11935_v25 = vpop.f32.mrf.mxu3  ;;  %7512 = vmatpush.msra.mxu0 %v7283_v30  ;;  %v7377_v47 = vld [vmem:[#allocation17 + $0x3d0] sm:$0xff]  ;;  %7554 = vmatpush.msra.mxu1 %v7313_v3  ;;  %v6880_v30 = vmul.f32 0.044715, %v6816_v49 }
0x1368   :  { %v11939_v44 = vpop.f32.mrf.mxu0  ;;  %v11941_v50 = vpop.f32.mrf.mxu1  ;;  %7594 = vmatpush.msra.mxu2 %v7347_v13  ;;  %7636 = vmatpush.msra.mxu3 %v7377_v47  ;;  %v11969_v13 = vadd.f32 %v11822_v60, %v6129_v58  ;;  %v7309_v10 = vld [vmem:[#allocation17 + $0x1b0] sm:$0xff]  ;;  %8987 = vtanh.f32 %v6999_v4  ;;  %v11977_v60 = vperm.slane %v11871_v29, 2  ;;  %v7307_v58 = vld [vmem:[#allocation17 + $0x1a0] sm:$0xff] }
0x1369   :  { %7513 = vmatpush.msra.mxu0 %v7281_v35  ;;  %7555 = vmatpush.msra.mxu1 %v7311_v26  ;;  %v7341_v35 = vld [vmem:[#allocation17 + $0x2b0] sm:$0xff]  ;;  %v6944_v47 = vadd.f32 %v6880_v30, %v11926_v52 }
0x136a   :  { %7595 = vmatpush.msra.mxu2 %v7345_v9  ;;  %7637 = vmatpush.msra.mxu3 %v7375_v27  ;;  %v7373_v3 = vld [vmem:[#allocation17 + $0x3b0] sm:$0xff]  ;;  %v6943_v9 = vadd.f32 %v6879_v39, %v11920_v42  ;;  %v6760_v26 = vmul.f32 %v11969_v13, %v11969_v13  ;;  %v7339_v39 = vld [vmem:[#allocation17 + $0x2a0] sm:$0xff] }
0x136b   :  { %6534 = vmatmul.f32.gmra.mxu0 %v11656_v16  ;;  %6575 = vmatmul.f32.gmra.mxu1 %v11659_v5  ;;  %v7273_v27 = vld [vmem:[#allocation17 + $0x90] sm:$0xff] }
0x136c   :  { %6616 = vmatmul.f32.gmra.mxu2 %v11656_v16  ;;  %6657 = vmatmul.f32.gmra.mxu3 %v11659_v5  ;;  %v6936_v16 = vadd.f32 %v6872_v54, %v11902_v48  ;;  %v7277_v54 = vld [vmem:[#allocation17 + $0xb0] sm:$0xff] }
0x136d   :  { %7514 = vmatpush.msra.mxu0 %v7279_v33  ;;  %7596 = vmatpush.msra.mxu2 %v7343_v11  ;;  %v6823_v33 = vmul.f32 %v6759_v32, %v11953_v63  ;;  %v7371_v11 = vld [vmem:[#allocation17 + $0x3a0] sm:$0xff]  ;;  %v7305_v4 = vld [vmem:[#allocation17 + $0x190] sm:$0xff] }
0x136e   :  { %v7000_v49 = vmul.f32 0.7978846, %v6936_v16  ;;  %v11986_v16 = vperm.slane %v11871_v29, 3  ;;  %7556 = vmatpush.msra.mxu1 %v7309_v10  ;;  %7638 = vmatpush.msra.mxu3 %v7373_v3  ;;  %v7337_v29 = vld [vmem:[#allocation17 + $0x290] sm:$0xff]  ;;  %v7007_v10 = vmul.f32 0.7978846, %v6943_v9  ;;  %v6824_v3 = vmul.f32 %v6760_v26, %v11969_v13 }
0x136f   :  { %v11958_v5 = vpop.f32.mrf.mxu2  ;;  %v11960_v59 = vpop.f32.mrf.mxu3  ;;  %7515 = vmatpush.msra.mxu0 %v7277_v54  ;;  %7597 = vmatpush.msra.mxu2 %v7341_v35  ;;  %v7369_v54 = vld [vmem:[#allocation17 + $0x390] sm:$0xff]  ;;  %v7008_v35 = vmul.f32 0.7978846, %v6944_v47  ;;  %v7271_v47 = vld [vmem:[#allocation17 + $0x80] sm:$0xff] }
0x1370   :  { %v11962_v14 = vpop.f32.mrf.mxu0  ;;  %v11964_v7 = vpop.f32.mrf.mxu1  ;;  %8989 = vtanh.f32 %v7000_v49  ;;  %7557 = vmatpush.msra.mxu1 %v7307_v58  ;;  %7639 = vmatpush.msra.mxu3 %v7371_v11  ;;  %v6887_v49 = vmul.f32 0.044715, %v6823_v33  ;;  %v7303_v33 = vld [vmem:[#allocation17 + $0x180] sm:$0xff] }
0x1371   :  { %7516 = vmatpush.msra.mxu0 %v7275_v31  ;;  %7598 = vmatpush.msra.mxu2 %v7339_v39  ;;  %v6287_v31 = vadd.f32 %v11933_v18, %v11986_v16  ;;  %v8988_v58 = vpop.eup %8987  ;;  %v6053_v39 = vadd.f32 %v11840_v6, %v11876_v46  ;;  %v7335_v18 = vld [vmem:[#allocation17 + $0x280] sm:$0xff]  ;;  %8991 = vtanh.f32 %v7007_v10  ;;  %v7301_v6 = vld [vmem:[#allocation17 + $0x170] sm:$0xff] }
0x1372   :  { %7558 = vmatpush.msra.mxu1 %v7305_v4  ;;  %7640 = vmatpush.msra.mxu3 %v7369_v54  ;;  %v7367_v26 = vld [vmem:[#allocation17 + $0x380] sm:$0xff]  ;;  %8993 = vtanh.f32 %v7008_v35  ;;  %v7365_v54 = vld [vmem:[#allocation17 + $0x370] sm:$0xff]  ;;  %v6951_v10 = vadd.f32 %v6887_v49, %v11953_v63 }
0x1373   :  { %6537 = vmatmul.f32.gmra.mxu0 %v11673_v23  ;;  %6578 = vmatmul.f32.gmra.mxu1 %v11676_v40  ;;  %v12021_v4 = vadd.f32 %v11935_v25, %v6287_v31  ;;  %v7267_v35 = vld [vmem:[#allocation17 + $0x60] sm:$0xff]  ;;  %v6679_v31 = vmul.f32 0.5, %v11897_v28  ;;  %v6208_v28 = vadd.f32 %v11939_v44, %v11977_v60 }
0x1374   :  { %6619 = vmatmul.f32.gmra.mxu2 %v11673_v23  ;;  %6660 = vmatmul.f32.gmra.mxu3 %v11676_v40  ;;  %v11989_v23 = vadd.f32 %v11826_v24, %v6050_v38  ;;  %v6132_v40 = vadd.f32 %v11832_v34, %v11881_v15  ;;  %v6205_v24 = vadd.f32 %v11911_v57, %v11977_v60  ;;  %v7299_v25 = vld [vmem:[#allocation17 + $0x160] sm:$0xff] }
0x1375   :  { %7517 = vmatpush.msra.mxu0 %v7273_v27  ;;  %7599 = vmatpush.msra.mxu2 %v7337_v29  ;;  %v7127_v27 = vadd.f32 1.0, %v8988_v58  ;;  %v7333_v29 = vld [vmem:[#allocation17 + $0x270] sm:$0xff]  ;;  %v6135_v58 = vadd.f32 %v11846_v0, %v11881_v15 }
0x1376   :  { %v6767_v9 = vmul.f32 %v11989_v23, %v11989_v23  ;;  %v12009_v57 = vadd.f32 %v11834_v37, %v6132_v40  ;;  %v12016_v11 = vadd.f32 %v11913_v21, %v6205_v24  ;;  %v7269_v37 = vld [vmem:[#allocation17 + $0x70] sm:$0xff]  ;;  %v8990_v40 = vpop.eup %8989  ;;  %7559 = vmatpush.msra.mxu1 %v7303_v33  ;;  %v6888_v21 = vmul.f32 0.044715, %v6824_v3  ;;  %7641 = vmatpush.msra.mxu3 %v7367_v26  ;;  %v7331_v3 = vld [vmem:[#allocation17 + $0x260] sm:$0xff] }
0x1377   :  { %v11993_v30 = vpop.f32.mrf.mxu2  ;;  %v11995_v32 = vpop.f32.mrf.mxu3  ;;  %7518 = vmatpush.msra.mxu0 %v7271_v47  ;;  %7600 = vmatpush.msra.mxu2 %v7335_v18 }
0x1378   :  { %v11999_v38 = vpop.f32.mrf.mxu0  ;;  %v12001_v34 = vpop.f32.mrf.mxu1  ;;  %v6831_v24 = vmul.f32 %v6767_v9, %v11989_v23  ;;  %7560 = vmatpush.msra.mxu1 %v7301_v6  ;;  %v7363_v9 = vld [vmem:[#allocation17 + $0x360] sm:$0xff]  ;;  %v6745_v33 = vmul.f32 %v12016_v11, %v12016_v11  ;;  %7642 = vmatpush.msra.mxu3 %v7365_v54  ;;  %v6746_v6 = vmul.f32 %v12021_v4, %v12021_v4  ;;  %v7297_v54 = vld [vmem:[#allocation17 + $0x150] sm:$0xff] }
0x1379   :  { %7519 = vmatpush.msra.mxu0 %v7269_v37  ;;  %7601 = vmatpush.msra.mxu2 %v7333_v29  ;;  %v8992_v26 = vpop.eup %8991  ;;  %v12046_v37 = vmul.f32 %v7127_v27, %v6679_v31  ;;  %v7265_v27 = vld [vmem:[#allocation17 + $0x50] sm:$0xff]  ;;  %v6952_v31 = vadd.f32 %v6888_v21, %v11969_v13  ;;  %v12069_v21 = vadd.f32 %v11941_v50, %v6208_v28 }
0x137a   :  { %7561 = vmatpush.msra.mxu1 %v7299_v25  ;;  %v8994_v12 = vpop.eup %8993  ;;  %v6895_v44 = vmul.f32 0.044715, %v6831_v24  ;;  %7643 = vmatpush.msra.mxu3 %v7363_v9  ;;  %v7329_v24 = vld [vmem:[#allocation17 + $0x250] sm:$0xff]  ;;  %v6809_v25 = vmul.f32 %v6745_v33, %v12016_v11  ;;  %v7359_v9 = vld [vmem:[#allocation17 + $0x340] sm:$0xff] }
0x137b   :  { %6540 = vmatmul.f32.gmra.mxu0 %v11688_v19  ;;  %6581 = vmatmul.f32.gmra.mxu1 %v11691_v8  ;;  %13428 = vst [vmem:[#allocation37_spill] sm:$0xff] %v12046_v37  ;;  %v12057_v37 = vadd.f32 %v11848_v2, %v6135_v58  ;;  %v7263_v2 = vld [vmem:[#allocation17 + $0x40] sm:$0xff]  ;;  %v7016_v33 = vmul.f32 0.7978846, %v6952_v31  ;;  %v6688_v31 = vmul.f32 0.5, %v11926_v52 }
0x137c   :  { %6622 = vmatmul.f32.gmra.mxu2 %v11688_v19  ;;  %6663 = vmatmul.f32.gmra.mxu3 %v11691_v8  ;;  %v6768_v19 = vmul.f32 %v12009_v57, %v12009_v57  ;;  %v12028_v8 = vadd.f32 %v11842_v51, %v6053_v39  ;;  %v6680_v51 = vmul.f32 0.5, %v11902_v48  ;;  %v7128_v39 = vadd.f32 1.0, %v8990_v40 }
0x137d   :  { %v6290_v48 = vadd.f32 %v11958_v5, %v11986_v16  ;;  %7520 = vmatpush.msra.mxu0 %v7267_v35  ;;  %v7015_v40 = vmul.f32 0.7978846, %v6951_v10  ;;  %7602 = vmatpush.msra.mxu2 %v7331_v3  ;;  %v6056_v5 = vadd.f32 %v11852_v53, %v11876_v46  ;;  %v6138_v10 = vadd.f32 %v11860_v22, %v11881_v15  ;;  %v7295_v53 = vld [vmem:[#allocation17 + $0x140] sm:$0xff] }
0x137e   :  { %v6832_v62 = vmul.f32 %v6768_v19, %v12009_v57  ;;  %v6775_v29 = vmul.f32 %v12028_v8, %v12028_v8  ;;  %v7361_v19 = vld [vmem:[#allocation17 + $0x350] sm:$0xff]  ;;  %v12065_v35 = vmul.f32 %v7128_v39, %v6680_v51  ;;  %v7135_v22 = vadd.f32 1.0, %v8992_v26  ;;  %7562 = vmatpush.msra.mxu1 %v7297_v54  ;;  %v7327_v3 = vld [vmem:[#allocation17 + $0x240] sm:$0xff] }
0x137f   :  { %v12033_v47 = vpop.f32.mrf.mxu2  ;;  %v12035_v49 = vpop.f32.mrf.mxu3  ;;  %v6810_v15 = vmul.f32 %v6746_v6, %v12021_v4  ;;  %v12075_v58 = vadd.f32 %v11960_v59, %v6290_v48  ;;  %7521 = vmatpush.msra.mxu0 %v7265_v27  ;;  %v7136_v51 = vadd.f32 1.0, %v8994_v12  ;;  %8995 = vtanh.f32 %v7015_v40  ;;  %7603 = vmatpush.msra.mxu2 %v7329_v24  ;;  %v7325_v48 = vld [vmem:[#allocation17 + $0x230] sm:$0xff] }
0x1380   :  { %v12042_v18 = vpop.f32.mrf.mxu0  ;;  %v12044_v0 = vpop.f32.mrf.mxu1  ;;  %13429 = vst [vmem:[#allocation46_spill] sm:$0xff] %v12065_v35  ;;  %v6896_v50 = vmul.f32 0.044715, %v6832_v62  ;;  %v6839_v39 = vmul.f32 %v6775_v29, %v12028_v8  ;;  %7644 = vmatpush.msra.mxu3 %v7361_v19  ;;  %v6959_v28 = vadd.f32 %v6895_v44, %v11989_v23  ;;  %v6776_v59 = vmul.f32 %v12057_v37, %v12057_v37  ;;  %v7357_v40 = vld [vmem:[#allocation17 + $0x330] sm:$0xff]  ;;  %v7259_v19 = vld [vmem:[#allocation17 + $0x20] sm:$0xff] }
0x1381   :  { %v12082_v26 = vadd.f32 %v11854_v61, %v6056_v5  ;;  %v12085_v6 = vadd.f32 %v11862_v20, %v6138_v10  ;;  %7522 = vmatpush.msra.mxu0 %v7263_v2  ;;  %7563 = vmatpush.msra.mxu1 %v7295_v53  ;;  %v6687_v29 = vmul.f32 0.5, %v11920_v42  ;;  %v6873_v44 = vmul.f32 0.044715, %v6809_v25  ;;  %v7291_v25 = vld [vmem:[#allocation17 + $0x120] sm:$0xff] }
0x1382   :  { %v6753_v27 = vmul.f32 %v12069_v21, %v12069_v21  ;;  %v6211_v61 = vadd.f32 %v11962_v14, %v11977_v60  ;;  %7604 = vmatpush.msra.mxu2 %v7327_v3  ;;  %7645 = vmatpush.msra.mxu3 %v7359_v9  ;;  %v6874_v5 = vmul.f32 0.044715, %v6810_v15  ;;  %v6754_v10 = vmul.f32 %v12075_v58, %v12075_v58  ;;  %v7323_v3 = vld [vmem:[#allocation17 + $0x220] sm:$0xff] }
0x1383   :  { %6543 = vmatmul.f32.gmra.mxu0 %v11702_v56  ;;  %6584 = vmatmul.f32.gmra.mxu1 %v11705_v36  ;;  %v6293_v42 = vadd.f32 %v11993_v30, %v11986_v16  ;;  %v12105_v24 = vmul.f32 %v7135_v22, %v6687_v29  ;;  %v6903_v14 = vmul.f32 0.044715, %v6839_v39  ;;  %v12107_v2 = vmul.f32 %v7136_v51, %v6688_v31  ;;  %v7355_v9 = vld [vmem:[#allocation17 + $0x320] sm:$0xff]  ;;  %v7353_v29 = vld [vmem:[#allocation17 + $0x310] sm:$0xff] }
0x1384   :  { %6625 = vmatmul.f32.gmra.mxu2 %v11702_v56  ;;  %6666 = vmatmul.f32.gmra.mxu3 %v11705_v36  ;;  %v7261_v56 = vld [vmem:[#allocation17 + $0x30] sm:$0xff]  ;;  %8997 = vtanh.f32 %v7016_v33  ;;  %v6960_v52 = vadd.f32 %v6896_v50, %v12009_v57  ;;  %v6840_v15 = vmul.f32 %v6776_v59, %v12057_v37  ;;  %v6783_v30 = vmul.f32 %v12082_v26, %v12082_v26 }
0x1385   :  { %v7293_v36 = vld [vmem:[#allocation17 + $0x130] sm:$0xff]  ;;  %7523 = vmatpush.msra.mxu0 %v7261_v56  ;;  %7605 = vmatpush.msra.mxu2 %v7325_v48  ;;  %v8996_v53 = vpop.eup %8995  ;;  %v6784_v22 = vmul.f32 %v12085_v6, %v12085_v6  ;;  %v7023_v51 = vmul.f32 0.7978846, %v6959_v28  ;;  %v6937_v39 = vadd.f32 %v6873_v44, %v12016_v11  ;;  %v6817_v50 = vmul.f32 %v6753_v27, %v12069_v21  ;;  %v7287_v44 = vld [vmem:[#allocation17 + $0x100] sm:$0xff] }
0x1386   :  { %7564 = vmatpush.msra.mxu1 %v7293_v36  ;;  %7646 = vmatpush.msra.mxu3 %v7357_v40  ;;  %v12120_v56 = vadd.f32 %v11964_v7, %v6211_v61  ;;  %v7257_v36 = vld [vmem:[#allocation17 + $0x10] sm:$0xff]  ;;  %v6938_v59 = vadd.f32 %v6874_v5, %v12021_v4  ;;  %v6818_v48 = vmul.f32 %v6754_v10, %v12075_v58  ;;  %v6695_v7 = vmul.f32 0.5, %v11953_v63  ;;  %v7319_v63 = vld [vmem:[#allocation17 + $0x200] sm:$0xff] }
0x1387   :  { %v12087_v12 = vpop.f32.mrf.mxu2  ;;  %v12089_v62 = vpop.f32.mrf.mxu3  ;;  %v7289_v33 = vld [vmem:[#allocation17 + $0x110] sm:$0xff]  ;;  %v12127_v40 = vadd.f32 %v11995_v32, %v6293_v42  ;;  %7524 = vmatpush.msra.mxu0 %v7259_v19  ;;  %7606 = vmatpush.msra.mxu2 %v7323_v3  ;;  %v6696_v27 = vmul.f32 0.5, %v11969_v13  ;;  %v7024_v61 = vmul.f32 0.7978846, %v6960_v52  ;;  %v6967_v31 = vadd.f32 %v6903_v14, %v12028_v8 }
0x1388   :  { %v12096_v54 = vpop.f32.mrf.mxu0  ;;  %v12098_v20 = vpop.f32.mrf.mxu1  ;;  %7565 = vmatpush.msra.mxu1 %v7291_v25  ;;  %v7321_v28 = vld [vmem:[#allocation17 + $0x210] sm:$0xff]  ;;  %7647 = vmatpush.msra.mxu3 %v7355_v9  ;;  %v6904_v5 = vmul.f32 0.044715, %v6840_v15  ;;  %v6847_v32 = vmul.f32 %v6783_v30, %v12082_v26  ;;  %v6848_v10 = vmul.f32 %v6784_v22, %v12085_v6  ;;  %v7351_v25 = vld [vmem:[#allocation17 + $0x300] sm:$0xff]  ;;  %8999 = vtanh.f32 %v7023_v51 }
0x1389   :  { %7525 = vmatpush.msra.mxu0 %v7257_v36  ;;  %v7001_v3 = vmul.f32 0.7978846, %v6937_v39  ;;  %v6881_v13 = vmul.f32 0.044715, %v6817_v50  ;;  %v6761_v14 = vmul.f32 %v12120_v56, %v12120_v56  ;;  %v6214_v52 = vadd.f32 %v11999_v38, %v11977_v60  ;;  %7607 = vmatpush.msra.mxu2 %v7321_v28 }
0x138a   :  { %7566 = vmatpush.msra.mxu1 %v7289_v33  ;;  %7648 = vmatpush.msra.mxu3 %v7353_v29  ;;  %v7002_v22 = vmul.f32 0.7978846, %v6938_v59  ;;  %v6882_v9 = vmul.f32 0.044715, %v6818_v48  ;;  %v6762_v51 = vmul.f32 %v12127_v40, %v12127_v40  ;;  %v6296_v39 = vadd.f32 %v12033_v47, %v11986_v16 }
0x138b   :  { %6546 = vmatmul.f32.gmra.mxu0 %v11716_v43  ;;  %6587 = vmatmul.f32.gmra.mxu1 %v11719_v41  ;;  %v12153_v38 = vmul.f32 0.5, %v11989_v23  ;;  %9001 = vtanh.f32 %v7024_v61  ;;  %v7031_v36 = vmul.f32 0.7978846, %v6967_v31  ;;  %v6911_v33 = vmul.f32 0.044715, %v6847_v32 }
0x138c   :  { %6628 = vmatmul.f32.gmra.mxu2 %v11716_v43  ;;  %6669 = vmatmul.f32.gmra.mxu3 %v11719_v41  ;;  %v7255_v43 = vld [vmem:[#allocation17] sm:$0xff]  ;;  %v7143_v41 = vadd.f32 1.0, %v8996_v53  ;;  %v8998_v53 = vpop.eup %8997  ;;  %v6912_v59 = vmul.f32 0.044715, %v6848_v10  ;;  %v6968_v47 = vadd.f32 %v6904_v5, %v12057_v37  ;;  %9003 = vtanh.f32 %v7001_v3 }
0x138d   :  { %7526 = vmatpush.msra.mxu0 %v7255_v43  ;;  %7567 = vmatpush.msra.mxu1 %v7287_v44  ;;  %v7144_v48 = vadd.f32 1.0, %v8998_v53  ;;  %v6825_v28 = vmul.f32 %v6761_v14, %v12120_v56  ;;  %v12160_v29 = vadd.f32 %v12001_v34, %v6214_v52  ;;  %v6945_v23 = vadd.f32 %v6881_v13, %v12069_v21 }
0x138e   :  { %7608 = vmatpush.msra.mxu2 %v7319_v63  ;;  %7649 = vmatpush.msra.mxu3 %v7351_v25  ;;  %v12150_v50 = vmul.f32 %v7143_v41, %v6695_v7  ;;  %v9000_v7 = vpop.eup %8999  ;;  %9005 = vtanh.f32 %v7002_v22  ;;  %v6826_v43 = vmul.f32 %v6762_v51, %v12127_v40  ;;  %v12167_v44 = vadd.f32 %v12035_v49, %v6296_v39 }
0x138f   :  { %v12134_v42 = vpop.f32.mrf.mxu2  ;;  %v12136_v19 = vpop.f32.mrf.mxu3  ;;  %v6946_v41 = vadd.f32 %v6882_v9, %v12075_v58  ;;  %v6059_v61 = vadd.f32 %v11864_v55, %v11876_v46  ;;  %v12173_v34 = vmul.f32 0.5, %v12009_v57  ;;  %9007 = vtanh.f32 %v7031_v36 }
0x1390   :  { %v12142_v15 = vpop.f32.mrf.mxu0  ;;  %v12144_v30 = vpop.f32.mrf.mxu1  ;;  %v12182_v5 = vmul.f32 %v7144_v48, %v6696_v27  ;;  %v7032_v49 = vmul.f32 0.7978846, %v6968_v47  ;;  %v6975_v32 = vadd.f32 %v6911_v33, %v12082_v26  ;;  %v6976_v10 = vadd.f32 %v6912_v59, %v12085_v6  ;;  %v13432_v33 = vld [vmem:[#allocation58_spill] sm:$0xff] }
0x1391   :  { %v9002_v63 = vpop.eup %9001  ;;  %v6889_v55 = vmul.f32 0.044715, %v6825_v28  ;;  %v6769_v57 = vmul.f32 %v12160_v29, %v12160_v29  ;;  %v7009_v3 = vmul.f32 0.7978846, %v6945_v23  ;;  %v6890_v27 = vmul.f32 0.044715, %v6826_v43 }
0x1392   :  { %13430 = vst [vmem:[#allocation67_spill] sm:$0xff] %v12182_v5  ;;  %v6770_v13 = vmul.f32 %v12167_v44, %v12167_v44  ;;  %v6299_v14 = vadd.f32 %v12087_v12, %v11986_v16  ;;  %v7010_v52 = vmul.f32 0.7978846, %v6946_v41  ;;  %v9004_v22 = vpop.eup %9003  ;;  %v12199_v9 = vadd.f32 %v11866_v17, %v6059_v61  ;;  %v13433_v59 = vld [vmem:[#allocation54_spill] sm:$0xff] }
0x1393   :  { %6549 = vmatmul.f32.gmra.mxu0 %v11737_v45  ;;  %6590 = vmatmul.f32.gmra.mxu1 %v11740_v1  ;;  %v7151_v51 = vadd.f32 1.0, %v9000_v7  ;;  %v12205_v39 = vmul.f32 0.5, %v12082_v26  ;;  %v7152_v48 = vadd.f32 1.0, %v9002_v63  ;;  %9009 = vtanh.f32 %v7032_v49 }
0x1394   :  { %6631 = vmatmul.f32.gmra.mxu2 %v11737_v45  ;;  %6672 = vmatmul.f32.gmra.mxu3 %v11740_v1  ;;  %v12176_v45 = vmul.f32 0.5, %v12028_v8  ;;  %v6217_v8 = vadd.f32 %v12042_v18, %v11977_v60  ;;  %v12202_v18 = vmul.f32 0.5, %v12057_v37  ;;  %v9006_v36 = vpop.eup %9005  ;;  %v7039_v12 = vmul.f32 0.7978846, %v6975_v32 }
0x1395   :  { %13431 = vst [vmem:[#allocation28_spill] sm:$0xff] %v12205_v39  ;;  %v7040_v47 = vmul.f32 0.7978846, %v6976_v10  ;;  %v9008_v28 = vpop.eup %9007  ;;  %v6833_v17 = vmul.f32 %v6769_v57, %v12160_v29  ;;  %9011 = vtanh.f32 %v7009_v3  ;;  %v6953_v37 = vadd.f32 %v6889_v55, %v12120_v56 }
0x1396   :  { %v12211_v23 = vadd.f32 %v12044_v0, %v6217_v8  ;;  %v6834_v26 = vmul.f32 %v6770_v13, %v12167_v44  ;;  %v12218_v7 = vadd.f32 %v12089_v62, %v6299_v14  ;;  %9013 = vtanh.f32 %v7010_v52 }
0x1397   :  { %v12178_v1 = vpop.f32.mrf.mxu2  ;;  %v12180_v31 = vpop.f32.mrf.mxu3  ;;  %v6954_v43 = vadd.f32 %v6890_v27, %v12127_v40  ;;  %v6791_v41 = vmul.f32 %v12199_v9, %v12199_v9  ;;  %v7129_v0 = vadd.f32 1.0, %v9004_v22  ;;  %v7130_v61 = vadd.f32 1.0, %v9006_v36 }
0x1398   :  { %v12190_v25 = vpop.f32.mrf.mxu0  ;;  %v12192_v53 = vpop.f32.mrf.mxu1  ;;  %v6220_v49 = vadd.f32 %v12096_v54, %v11977_v60  ;;  %v6681_v32 = vmul.f32 0.5, %v12016_v11  ;;  %v6302_v10 = vadd.f32 %v12134_v42, %v11986_v16  ;;  %v7159_v55 = vadd.f32 1.0, %v9008_v28 }
0x1399   :  { %9015 = vtanh.f32 %v7039_v12  ;;  %v6682_v57 = vmul.f32 0.5, %v12021_v4  ;;  %v6897_v8 = vmul.f32 0.044715, %v6833_v17  ;;  %v6777_v3 = vmul.f32 %v12211_v23, %v12211_v23  ;;  %v9010_v13 = vpop.eup %9009  ;;  %v13436_v17 = vld [vmem:[#allocation37_spill] sm:$0xff] }
0x139a   :  { %v7017_v11 = vmul.f32 0.7978846, %v6953_v37  ;;  %v6898_v14 = vmul.f32 0.044715, %v6834_v26  ;;  %v6778_v42 = vmul.f32 %v12218_v7, %v12218_v7  ;;  %v7018_v52 = vmul.f32 0.7978846, %v6954_v43 }
0x139b   :  { %6552 = vmatmul.f32.gmra.mxu0 %v13432_v33  ;;  %6593 = vmatmul.f32.gmra.mxu1 %v13433_v59  ;;  %9017 = vtanh.f32 %v7040_v47  ;;  %v9012_v22 = vpop.eup %9011  ;;  %v6855_v36 = vmul.f32 %v6791_v41, %v12199_v9  ;;  %v12242_v4 = vmul.f32 %v7129_v0, %v6681_v32  ;;  %v12250_v28 = vadd.f32 %v12136_v19, %v6302_v10 }
0x139c   :  { %6634 = vmatmul.f32.gmra.mxu2 %v13432_v33  ;;  %6675 = vmatmul.f32.gmra.mxu3 %v13433_v59  ;;  %v12244_v33 = vmul.f32 %v7130_v61, %v6682_v57  ;;  %v12247_v59 = vadd.f32 %v12098_v20, %v6220_v49  ;;  %v9014_v12 = vpop.eup %9013  ;;  %v12255_v47 = vmul.f32 %v7151_v51, %v12153_v38  ;;  %v12261_v26 = vmul.f32 0.5, %v12085_v6 }
0x139d   :  { %13434 = vst [vmem:[#allocation68_spill] sm:$0xff] %v12242_v4  ;;  %v12258_v37 = vmul.f32 %v7152_v48, %v12173_v34  ;;  %v6841_v20 = vmul.f32 %v6777_v3, %v12211_v23  ;;  %9019 = vtanh.f32 %v7017_v11  ;;  %v6961_v19 = vadd.f32 %v6897_v8, %v12160_v29  ;;  %v13438_v3 = vld [vmem:[#allocation57_spill] sm:$0xff] }
0x139e   :  { %13435 = vst [vmem:[#allocation69_spill] sm:$0xff] %v12244_v33  ;;  %v12268_v43 = vmul.f32 %v7159_v55, %v12176_v45  ;;  %v6842_v51 = vmul.f32 %v6778_v42, %v12218_v7  ;;  %9021 = vtanh.f32 %v7018_v52  ;;  %v6962_v34 = vadd.f32 %v6898_v14, %v12167_v44 }
0x139f   :  { %v12228_v63 = vpop.f32.mrf.mxu2  ;;  %v12230_v62 = vpop.f32.mrf.mxu3  ;;  %13437 = vst [vmem:[#allocation70_spill] sm:$0xff] %v12261_v26  ;;  %v7160_v6 = vadd.f32 1.0, %v9010_v13  ;;  %v6919_v48 = vmul.f32 0.044715, %v6855_v36  ;;  %v6785_v41 = vmul.f32 %v12247_v59, %v12247_v59  ;;  %v7137_v0 = vadd.f32 1.0, %v9012_v22  ;;  %v7413_v22 = vld [vmem:[#allocation17 + $0x4f0] sm:$0xff] }
0x13a0   :  { %v12235_v27 = vpop.f32.mrf.mxu0  ;;  %v12237_v54 = vpop.f32.mrf.mxu1  ;;  %v7138_v61 = vadd.f32 1.0, %v9014_v12  ;;  %v6786_v32 = vmul.f32 %v12250_v28, %v12250_v28  ;;  %v6223_v45 = vadd.f32 %v12142_v15, %v11977_v60  ;;  %v6689_v57 = vmul.f32 0.5, %v12069_v21  ;;  %v7445_v36 = vld [vmem:[#allocation17 + $0x5f0] sm:$0xff]  ;;  %v13439_v12 = vld [vmem:[#allocation36_spill] sm:$0xff]  ;;  %7675 = vmatpush.msrb.mxu0 %v7413_v22 }
0x13a1   :  { %v9016_v38 = vpop.eup %9015  ;;  %v6690_v8 = vmul.f32 0.5, %v12075_v58  ;;  %v6062_v11 = vadd.f32 %v13438_v3, %v11876_v46  ;;  %v6905_v13 = vmul.f32 0.044715, %v6841_v20  ;;  %v6305_v14 = vadd.f32 %v12178_v1, %v11986_v16  ;;  %7716 = vmatpush.msrb.mxu1 %v7445_v36 }
0x13a2   :  { %v9018_v49 = vpop.eup %9017  ;;  %v7025_v15 = vmul.f32 0.7978846, %v6961_v19  ;;  %v6906_v21 = vmul.f32 0.044715, %v6842_v51  ;;  %v12294_v58 = vadd.f32 1.0, %v9016_v38  ;;  %v6849_v20 = vmul.f32 %v6785_v41, %v12247_v59  ;;  %v7443_v19 = vld [vmem:[#allocation17 + $0x5e0] sm:$0xff] }
0x13a3   :  { %7527 = vmatmul.f32.vlgmr.msra.gmra.mxu0 %v13436_v17  ;;  %7568 = vmatmul.f32.vlgmr.msra.gmra.mxu1 %v12065_v35  ;;  %v9020_v46 = vpop.eup %9019  ;;  %v12297_v1 = vmul.f32 %v7137_v0, %v6689_v57  ;;  %v12299_v3 = vmul.f32 %v7138_v61, %v6690_v8  ;;  %v7411_v35 = vld [vmem:[#allocation17 + $0x4e0] sm:$0xff]  ;;  %v12301_v17 = vadd.f32 1.0, %v9018_v49  ;;  %v6850_v39 = vmul.f32 %v6786_v32, %v12250_v28  ;;  %v13442_v41 = vld [vmem:[#allocation33_spill] sm:$0xff] }
0x13a4   :  { %7609 = vmatmul.f32.vlgmr.msra.gmra.mxu2 %v12242_v4  ;;  %7650 = vmatmul.f32.vlgmr.msra.gmra.mxu3 %v12244_v33  ;;  %v6792_v33 = vmul.f32 %v13439_v12, %v13439_v12  ;;  %v7026_v4 = vmul.f32 0.7978846, %v6962_v34  ;;  %v9022_v26 = vpop.eup %9021  ;;  %v12305_v51 = vadd.f32 %v12144_v30, %v6223_v45  ;;  %v12310_v38 = vmul.f32 0.5, %v12199_v9  ;;  %v7409_v49 = vld [vmem:[#allocation17 + $0x4d0] sm:$0xff] }
0x13a5   :  { %13440 = vst [vmem:[#allocation71_spill] sm:$0xff] %v12297_v1  ;;  %v6983_v34 = vadd.f32 %v6919_v48, %v12199_v9  ;;  %v12314_v0 = vadd.f32 %v13442_v41, %v6062_v11  ;;  %v12317_v61 = vadd.f32 %v12180_v31, %v6305_v14  ;;  %9023 = vtanh.f32 %v7025_v15  ;;  %v7441_v32 = vld [vmem:[#allocation17 + $0x5d0] sm:$0xff]  ;;  %7676 = vmatpush.msrb.mxu0 %v7411_v35  ;;  %v7407_v14 = vld [vmem:[#allocation17 + $0x4c0] sm:$0xff] }
0x13a6   :  { %13441 = vst [vmem:[#allocation72_spill] sm:$0xff] %v12299_v3  ;;  %v6969_v30 = vadd.f32 %v6905_v13, %v12211_v23  ;;  %v6856_v45 = vmul.f32 %v6792_v33, %v13439_v12  ;;  %v6697_v57 = vmul.f32 0.5, %v12120_v56  ;;  %9025 = vtanh.f32 %v7026_v4  ;;  %7717 = vmatpush.msrb.mxu1 %v7443_v19  ;;  %v7439_v15 = vld [vmem:[#allocation17 + $0x5c0] sm:$0xff] }
0x13a7   :  { %v12278_v10 = vpop.f32.mrf.mxu2  ;;  %v12280_v55 = vpop.f32.mrf.mxu3  ;;  %v6970_v9 = vadd.f32 %v6906_v21, %v12218_v7  ;;  %v6913_v31 = vmul.f32 0.044715, %v6849_v20  ;;  %v7145_v48 = vadd.f32 1.0, %v9020_v46  ;;  %v7146_v8 = vadd.f32 1.0, %v9022_v26  ;;  %7677 = vmatpush.msrb.mxu0 %v7409_v49  ;;  %v12344_v26 = vld [vmem:[%s13232_s9] sm:$0xff]  ;;  %v13443_v20 = vld [vmem:[#allocation35_spill] sm:$0xff] }
0x13a8   :  { %v12288_v42 = vpop.f32.mrf.mxu0  ;;  %v12290_v52 = vpop.f32.mrf.mxu1  ;;  %v12326_v11 = vmul.f32 %v7160_v6, %v12202_v18  ;;  %v6914_v13 = vmul.f32 0.044715, %v6850_v39  ;;  %v6793_v22 = vmul.f32 %v12305_v51, %v12305_v51  ;;  %v6226_v56 = vadd.f32 %v12190_v25, %v11977_v60  ;;  %7718 = vmatpush.msrb.mxu1 %v7441_v32 }
0x13a9   :  { %v6698_v35 = vmul.f32 0.5, %v12127_v40  ;;  %v6794_v18 = vmul.f32 %v12317_v61, %v12317_v61  ;;  %v6308_v39 = vadd.f32 %v12228_v63, %v11986_v16  ;;  %v12347_v60 = vperm.slane %v12344_v26, 4  ;;  %7678 = vmatpush.msrb.mxu0 %v7407_v14  ;;  %v7435_v14 = vld [vmem:[#allocation17 + $0x5a0] sm:$0xff] }
0x13aa   :  { %v7033_v40 = vmul.f32 0.7978846, %v6969_v30  ;;  %v6920_v36 = vmul.f32 0.044715, %v6856_v45  ;;  %v6799_v21 = vmul.f32 %v12314_v0, %v12314_v0  ;;  %v7034_v46 = vmul.f32 0.7978846, %v6970_v9  ;;  %7719 = vmatpush.msrb.mxu1 %v7439_v15 }
0x13ab   :  { %7530 = vmatmul.f32.gmra.mxu0 %v12105_v24  ;;  %7571 = vmatmul.f32.gmra.mxu1 %v12107_v2  ;;  %v12355_v16 = vmul.f32 0.7978846, %v6983_v34  ;;  %v9024_v63 = vpop.eup %9023  ;;  %v6800_v19 = vmul.f32 %v13443_v20, %v13443_v20  ;;  %v12359_v41 = vmul.f32 %v7145_v48, %v6697_v57  ;;  %v12361_v49 = vmul.f32 %v7146_v8, %v6698_v35  ;;  %v7405_v30 = vld [vmem:[#allocation17 + $0x4b0] sm:$0xff] }
0x13ac   :  { %7612 = vmatmul.f32.gmra.mxu2 %v12297_v1  ;;  %7653 = vmatmul.f32.gmra.mxu3 %v12299_v3  ;;  %v6977_v32 = vadd.f32 %v6913_v31, %v12247_v59  ;;  %v7437_v45 = vld [vmem:[#allocation17 + $0x5b0] sm:$0xff]  ;;  %v9026_v3 = vpop.eup %9025  ;;  %v6857_v1 = vmul.f32 %v6793_v22, %v12305_v51  ;;  %v12366_v9 = vadd.f32 %v12192_v53, %v6226_v56  ;;  %v12369_v34 = vperm.slane %v12344_v26, 5  ;;  %v7403_v53 = vld [vmem:[#allocation17 + $0x4a0] sm:$0xff] }
0x13ad   :  { %13444 = vst [vmem:[#allocation73_spill] sm:$0xff] %v12359_v41  ;;  %v6978_v57 = vadd.f32 %v6914_v13, %v12250_v28  ;;  %v6858_v48 = vmul.f32 %v6794_v18, %v12317_v61  ;;  %v12376_v31 = vadd.f32 %v12230_v62, %v6308_v39  ;;  %v6369_v8 = vadd.f32 %v12235_v27, %v12347_v60  ;;  %v7401_v18 = vld [vmem:[#allocation17 + $0x490] sm:$0xff] }
0x13ae   :  { %13445 = vst [vmem:[#allocation55_spill] sm:$0xff] %v12361_v49  ;;  %9027 = vtanh.f32 %v7033_v40  ;;  %v6863_v15 = vmul.f32 %v6799_v21, %v12314_v0  ;;  %v6705_v22 = vmul.f32 0.5, %v12160_v29  ;;  %7679 = vmatpush.msrb.mxu0 %v7405_v30  ;;  %7720 = vmatpush.msrb.mxu1 %v7437_v45  ;;  %v6984_v62 = vadd.f32 %v6920_v36, %v13439_v12  ;;  %v7433_v39 = vld [vmem:[#allocation17 + $0x590] sm:$0xff] }
0x13af   :  { %v12332_v4 = vpop.f32.mrf.mxu2  ;;  %v12334_v33 = vpop.f32.mrf.mxu3  ;;  %9029 = vtanh.f32 %v7034_v46  ;;  %v6864_v13 = vmul.f32 %v6800_v19, %v13443_v20  ;;  %v7153_v56 = vadd.f32 1.0, %v9024_v63  ;;  %v7154_v27 = vadd.f32 1.0, %v9026_v3 }
0x13b0   :  { %v12349_v25 = vpop.f32.mrf.mxu0  ;;  %v12351_v6 = vpop.f32.mrf.mxu1  ;;  %v7041_v35 = vmul.f32 0.7978846, %v6977_v32  ;;  %v6801_v40 = vmul.f32 %v12366_v9, %v12366_v9  ;;  %v6451_v21 = vadd.f32 %v12278_v10, %v12369_v34  ;;  %v7042_v30 = vmul.f32 0.7978846, %v6978_v57  ;;  %7680 = vmatpush.msrb.mxu0 %v7403_v53  ;;  %7721 = vmatpush.msrb.mxu1 %v7435_v14 }
0x13b1   :  { %v6922_v36 = vmul.f32 0.044715, %v6858_v48  ;;  %v6802_v3 = vmul.f32 %v12376_v31, %v12376_v31  ;;  %v12397_v63 = vadd.f32 %v12237_v54, %v6369_v8  ;;  %v6706_v10 = vmul.f32 0.5, %v12167_v44 }
0x13b2   :  { %v6927_v32 = vmul.f32 0.044715, %v6863_v15  ;;  %v6372_v45 = vadd.f32 %v12288_v42, %v12347_v60  ;;  %7681 = vmatpush.msrb.mxu0 %v7401_v18  ;;  %7722 = vmatpush.msrb.mxu1 %v7433_v39  ;;  %v12407_v57 = vmul.f32 0.5, %v13439_v12  ;;  %v7048_v48 = vmul.f32 0.7978846, %v6984_v62 }
0x13b3   :  { %7533 = vmatmul.f32.gmra.mxu0 %v12150_v50  ;;  %7574 = vmatmul.f32.gmra.mxu1 %v12182_v5  ;;  %v6928_v14 = vmul.f32 0.044715, %v6864_v13  ;;  %v12409_v54 = vmul.f32 %v7153_v56, %v6705_v22  ;;  %v12411_v8 = vmul.f32 %v7154_v27, %v6706_v10  ;;  %9031 = vtanh.f32 %v7041_v35  ;;  %v7431_v5 = vld [vmem:[#allocation17 + $0x580] sm:$0xff]  ;;  %v7397_v13 = vld [vmem:[#allocation17 + $0x470] sm:$0xff] }
0x13b4   :  { %7615 = vmatmul.f32.gmra.mxu2 %v12359_v41  ;;  %7656 = vmatmul.f32.gmra.mxu3 %v12361_v49  ;;  %v6921_v49 = vmul.f32 0.044715, %v6857_v1  ;;  %v9028_v53 = vpop.eup %9027  ;;  %v7399_v41 = vld [vmem:[#allocation17 + $0x480] sm:$0xff]  ;;  %v6865_v15 = vmul.f32 %v6801_v40, %v12366_v9  ;;  %v12415_v42 = vadd.f32 %v12280_v55, %v6451_v21  ;;  %9033 = vtanh.f32 %v7042_v30  ;;  %v7429_v56 = vld [vmem:[#allocation17 + $0x570] sm:$0xff] }
0x13b5   :  { %13446 = vst [vmem:[#allocation50_spill] sm:$0xff] %v12409_v54  ;;  %v9030_v44 = vpop.eup %9029  ;;  %v6866_v22 = vmul.f32 %v6802_v3, %v12376_v31  ;;  %v6747_v62 = vmul.f32 %v12397_v63, %v12397_v63  ;;  %9035 = vtanh.f32 %v12355_v16  ;;  %v6986_v55 = vadd.f32 %v6922_v36, %v12317_v61  ;;  %7682 = vmatpush.msrb.mxu0 %v7399_v41  ;;  %v7395_v40 = vld [vmem:[#allocation17 + $0x460] sm:$0xff] }
0x13b6   :  { %13447 = vst [vmem:[#allocation59_spill] sm:$0xff] %v12411_v8  ;;  %v6985_v12 = vadd.f32 %v6921_v49, %v12305_v51  ;;  %v12428_v27 = vadd.f32 %v12290_v52, %v6372_v45  ;;  %v6454_v49 = vadd.f32 %v12332_v4, %v12369_v34  ;;  %7723 = vmatpush.msrb.mxu1 %v7431_v5  ;;  %9037 = vtanh.f32 %v7048_v48  ;;  %v7427_v21 = vld [vmem:[#allocation17 + $0x560] sm:$0xff] }
0x13b7   :  { %v12390_v29 = vpop.f32.mrf.mxu2  ;;  %v12392_v46 = vpop.f32.mrf.mxu3  ;;  %v6991_v35 = vadd.f32 %v6927_v32, %v12314_v0  ;;  %v6375_v18 = vadd.f32 %v12349_v25, %v12347_v60  ;;  %v7161_v39 = vadd.f32 1.0, %v9028_v53  ;;  %v7162_v16 = vadd.f32 1.0, %v9030_v44  ;;  %7683 = vmatpush.msrb.mxu0 %v7397_v13  ;;  %v7477_v25 = vld [vmem:[#allocation17 + $0x6f0] sm:$0xff]  ;;  %v7475_v13 = vld [vmem:[#allocation17 + $0x6e0] sm:$0xff] }
0x13b8   :  { %v12399_v1 = vpop.f32.mrf.mxu0  ;;  %v12401_v19 = vpop.f32.mrf.mxu1  ;;  %v6992_v30 = vadd.f32 %v6928_v14, %v13443_v20  ;;  %v6929_v36 = vmul.f32 0.044715, %v6865_v15  ;;  %v6748_v52 = vmul.f32 %v12415_v42, %v12415_v42  ;;  %v6713_v5 = vmul.f32 0.5, %v12211_v23  ;;  %7724 = vmatpush.msrb.mxu1 %v7429_v56  ;;  %7757 = vmatpush.msrb.mxu2 %v7477_v25 }
0x13b9   :  { %v7049_v41 = vmul.f32 0.7978846, %v6985_v12  ;;  %v9032_v10 = vpop.eup %9031  ;;  %v6930_v32 = vmul.f32 0.044715, %v6866_v22  ;;  %v6811_v45 = vmul.f32 %v6747_v62, %v12397_v63  ;;  %v6714_v14 = vmul.f32 0.5, %v12218_v7  ;;  %7684 = vmatpush.msrb.mxu0 %v7395_v40  ;;  %v7391_v40 = vld [vmem:[#allocation17 + $0x440] sm:$0xff] }
0x13ba   :  { %v7050_v44 = vmul.f32 0.7978846, %v6986_v55  ;;  %v9034_v15 = vpop.eup %9033  ;;  %v6755_v23 = vmul.f32 %v12428_v27, %v12428_v27  ;;  %v12452_v12 = vadd.f32 %v12334_v33, %v6454_v49  ;;  %v6457_v22 = vadd.f32 %v12390_v29, %v12369_v34  ;;  %7725 = vmatpush.msrb.mxu1 %v7427_v21  ;;  %v7393_v33 = vld [vmem:[#allocation17 + $0x450] sm:$0xff]  ;;  %7758 = vmatpush.msrb.mxu2 %v7475_v13  ;;  %v7423_v21 = vld [vmem:[#allocation17 + $0x540] sm:$0xff] }
0x13bb   :  { %7536 = vmatmul.f32.gmra.mxu0 %v12255_v47  ;;  %7577 = vmatmul.f32.gmra.mxu1 %v12258_v37  ;;  %v7055_v62 = vmul.f32 0.7978846, %v6991_v35  ;;  %v12456_v56 = vpop.eup %9035  ;;  %v12459_v7 = vadd.f32 %v12351_v6, %v6375_v18  ;;  %v6378_v55 = vadd.f32 %v12399_v1, %v12347_v60  ;;  %v12463_v25 = vmul.f32 %v7161_v39, %v6713_v5  ;;  %v7425_v49 = vld [vmem:[#allocation17 + $0x550] sm:$0xff] }
0x13bc   :  { %7618 = vmatmul.f32.gmra.mxu2 %v12409_v54  ;;  %7659 = vmatmul.f32.gmra.mxu3 %v12411_v8  ;;  %v12465_v8 = vmul.f32 %v7162_v16, %v6714_v14  ;;  %v12467_v29 = vpop.eup %9037  ;;  %v6812_v35 = vmul.f32 %v6748_v52, %v12415_v42  ;;  %9039 = vtanh.f32 %v7049_v41  ;;  %v7056_v6 = vmul.f32 0.7978846, %v6992_v30  ;;  %v7473_v1 = vld [vmem:[#allocation17 + $0x6d0] sm:$0xff]  ;;  %v7471_v41 = vld [vmem:[#allocation17 + $0x6c0] sm:$0xff] }
0x13bd   :  { %13448 = vst [vmem:[#allocation29_spill] sm:$0xff] %v12463_v25  ;;  %v6993_v18 = vadd.f32 %v6929_v36, %v12366_v9  ;;  %v7169_v39 = vadd.f32 1.0, %v9032_v10  ;;  %v7170_v16 = vadd.f32 1.0, %v9034_v15  ;;  %9041 = vtanh.f32 %v7050_v44  ;;  %7685 = vmatpush.msrb.mxu0 %v7393_v33  ;;  %7726 = vmatpush.msrb.mxu1 %v7425_v49  ;;  %v7509_v13 = vld [vmem:[#allocation17 + $0x7f0] sm:$0xff]  ;;  %v13450_v49 = vld [vmem:[#allocation28_spill] sm:$0xff] }
0x13be   :  { %13449 = vst [vmem:[#allocation52_spill] sm:$0xff] %v12465_v8  ;;  %v6994_v52 = vadd.f32 %v6930_v32, %v12376_v31  ;;  %v6875_v5 = vmul.f32 0.044715, %v6811_v45  ;;  %v6819_v14 = vmul.f32 %v6755_v23, %v12428_v27  ;;  %v6756_v30 = vmul.f32 %v12452_v12, %v12452_v12  ;;  %v7389_v15 = vld [vmem:[#allocation17 + $0x430] sm:$0xff]  ;;  %7759 = vmatpush.msrb.mxu2 %v7473_v1 }
0x13bf   :  { %v12438_v3 = vpop.f32.mrf.mxu2  ;;  %v12440_v4 = vpop.f32.mrf.mxu3  ;;  %v12480_v36 = vadd.f32 %v12392_v46, %v6457_v22  ;;  %v6763_v10 = vmul.f32 %v12459_v7, %v12459_v7  ;;  %v12485_v44 = vadd.f32 %v12401_v19, %v6378_v55  ;;  %v6721_v32 = vmul.f32 0.5, %v12247_v59  ;;  %v7421_v23 = vld [vmem:[#allocation17 + $0x530] sm:$0xff]  ;;  %7798 = vmatpush.msrb.mxu3 %v7509_v13  ;;  %7686 = vmatpush.msrb.mxu0 %v7391_v40  ;;  %v7507_v55 = vld [vmem:[#allocation17 + $0x7e0] sm:$0xff] }
0x13c0   :  { %v12444_v48 = vpop.f32.mrf.mxu0  ;;  %v12446_v53 = vpop.f32.mrf.mxu1  ;;  %v6722_v45 = vmul.f32 0.5, %v12250_v28  ;;  %v6876_v46 = vmul.f32 0.044715, %v6812_v35  ;;  %7727 = vmatpush.msrb.mxu1 %v7423_v21  ;;  %v7057_v59 = vmul.f32 0.7978846, %v6993_v18  ;;  %v7469_v28 = vld [vmem:[#allocation17 + $0x6b0] sm:$0xff]  ;;  %9043 = vtanh.f32 %v7055_v62  ;;  %7760 = vmatpush.msrb.mxu2 %v7471_v41 }
0x13c1   :  { %v12505_v13 = vmul.f32 %v7169_v39, %v6721_v32  ;;  %7799 = vmatpush.msrb.mxu3 %v7507_v55  ;;  %v6820_v18 = vmul.f32 %v6756_v30, %v12452_v12  ;;  %v6764_v40 = vmul.f32 %v12480_v36, %v12480_v36  ;;  %7687 = vmatpush.msrb.mxu0 %v7389_v15  ;;  %v7505_v21 = vld [vmem:[#allocation17 + $0x7d0] sm:$0xff]  ;;  %9045 = vtanh.f32 %v7056_v6  ;;  %v7467_v32 = vld [vmem:[#allocation17 + $0x6a0] sm:$0xff] }
0x13c2   :  { %v12507_v54 = vmul.f32 %v7170_v16, %v6722_v45  ;;  %7728 = vmatpush.msrb.mxu1 %v7421_v23  ;;  %v6827_v16 = vmul.f32 %v6763_v10, %v12459_v7  ;;  %v6771_v62 = vmul.f32 %v12485_v44, %v12485_v44  ;;  %7761 = vmatpush.msrb.mxu2 %v7469_v28  ;;  %v7175_v41 = vadd.f32 1.0, %v12456_v56  ;;  %v7503_v45 = vld [vmem:[#allocation17 + $0x7c0] sm:$0xff]  ;;  %v7385_v23 = vld [vmem:[#allocation17 + $0x410] sm:$0xff] }
0x13c3   :  { %7539 = vmatmul.f32.gmra.mxu0 %v12268_v43  ;;  %7580 = vmatmul.f32.gmra.mxu1 %v12326_v11  ;;  %13453 = vst [vmem:[#allocation53_spill] sm:$0xff] %v12505_v13  ;;  %v6940_v30 = vadd.f32 %v6876_v46, %v12415_v42  ;;  %v7176_v10 = vadd.f32 1.0, %v12467_v29  ;;  %9047 = vtanh.f32 %v7057_v59  ;;  %v6729_v6 = vmul.f32 0.5, %v12305_v51  ;;  %v7417_v46 = vld [vmem:[#allocation17 + $0x510] sm:$0xff] }
0x13c4   :  { %7621 = vmatmul.f32.gmra.mxu2 %v12463_v25  ;;  %7662 = vmatmul.f32.gmra.mxu3 %v12465_v8  ;;  %v12495_v8 = vmul.f32 %v12294_v58, %v13450_v49  ;;  %v13451_v25 = vld [vmem:[#allocation70_spill] sm:$0xff]  ;;  %13454 = vst [vmem:[#allocation39_spill] sm:$0xff] %v12507_v54  ;;  %v7058_v58 = vmul.f32 0.7978846, %v6994_v52  ;;  %v9040_v49 = vpop.eup %9039  ;;  %v6460_v52 = vadd.f32 %v12438_v3, %v12369_v34  ;;  %v6884_v56 = vmul.f32 0.044715, %v6820_v18 }
0x13c5   :  { %v12499_v19 = vmul.f32 %v12301_v17, %v13451_v25  ;;  %v6939_v17 = vadd.f32 %v6875_v5, %v12397_v63  ;;  %v6883_v25 = vmul.f32 0.044715, %v6819_v14  ;;  %v9042_v39 = vpop.eup %9041  ;;  %v7387_v5 = vld [vmem:[#allocation17 + $0x420] sm:$0xff]  ;;  %7800 = vmatpush.msrb.mxu3 %v7505_v21  ;;  %v6381_v3 = vadd.f32 %v12444_v48, %v12347_v60  ;;  %v7465_v59 = vld [vmem:[#allocation17 + $0x690] sm:$0xff]  ;;  %7762 = vmatpush.msrb.mxu2 %v7467_v32 }
0x13c6   :  { %v7419_v14 = vld [vmem:[#allocation17 + $0x520] sm:$0xff]  ;;  %v7177_v15 = vadd.f32 1.0, %v9040_v49  ;;  %9049 = vtanh.f32 %v7058_v58  ;;  %v6828_v29 = vmul.f32 %v6764_v40, %v12480_v36  ;;  %7688 = vmatpush.msrb.mxu0 %v7387_v5  ;;  %v7501_v55 = vld [vmem:[#allocation17 + $0x7b0] sm:$0xff]  ;;  %v9044_v21 = vpop.eup %9043  ;;  %v12532_v51 = vadd.f32 %v12440_v4, %v6460_v52 }
0x13c7   :  { %v12489_v22 = vpop.f32.mrf.mxu2  ;;  %v12491_v33 = vpop.f32.mrf.mxu3  ;;  %13452 = vst [vmem:[#allocation60_spill] sm:$0xff] %v12499_v19  ;;  %v7003_v28 = vmul.f32 0.7978846, %v6939_v17  ;;  %7729 = vmatpush.msrb.mxu1 %v7419_v14  ;;  %v6947_v48 = vadd.f32 %v6883_v25, %v12428_v27  ;;  %v7178_v58 = vadd.f32 1.0, %v9042_v39  ;;  %v7383_v49 = vld [vmem:[#allocation17 + $0x400] sm:$0xff]  ;;  %7801 = vmatpush.msrb.mxu3 %v7503_v45  ;;  %v12539_v5 = vmul.f32 %v7175_v41, %v12310_v38 }
0x13c8   :  { %v12501_v1 = vpop.f32.mrf.mxu0  ;;  %v12503_v35 = vpop.f32.mrf.mxu1  ;;  %v7004_v17 = vmul.f32 0.7978846, %v6940_v30  ;;  %7689 = vmatpush.msrb.mxu0 %v7385_v23  ;;  %v7463_v25 = vld [vmem:[#allocation17 + $0x680] sm:$0xff]  ;;  %v12542_v4 = vadd.f32 %v12446_v53, %v6381_v3  ;;  %v12549_v14 = vmul.f32 %v7176_v10, %v12407_v57  ;;  %v12551_v30 = vmul.f32 %v7177_v15, %v6729_v6  ;;  %7763 = vmatpush.msrb.mxu2 %v7465_v59  ;;  %v7461_v6 = vld [vmem:[#allocation17 + $0x670] sm:$0xff] }
0x13c9   :  { %7730 = vmatpush.msrb.mxu1 %v7417_v46  ;;  %v6730_v38 = vmul.f32 0.5, %v12317_v61  ;;  %7802 = vmatpush.msrb.mxu3 %v7501_v55  ;;  %9051 = vtanh.f32 %v7003_v28  ;;  %v6892_v32 = vmul.f32 0.044715, %v6828_v29  ;;  %v7011_v53 = vmul.f32 0.7978846, %v6947_v48  ;;  %v7497_v61 = vld [vmem:[#allocation17 + $0x790] sm:$0xff] }
0x13ca   :  { %7690 = vmatpush.msrb.mxu0 %v7383_v49  ;;  %v6948_v45 = vadd.f32 %v6884_v56, %v12452_v12  ;;  %v6772_v57 = vmul.f32 %v12532_v51, %v12532_v51  ;;  %7764 = vmatpush.msrb.mxu2 %v7463_v25  ;;  %9053 = vtanh.f32 %v7004_v17  ;;  %v6779_v46 = vmul.f32 %v12542_v4, %v12542_v4  ;;  %v7495_v59 = vld [vmem:[#allocation17 + $0x780] sm:$0xff]  ;;  %v7457_v49 = vld [vmem:[#allocation17 + $0x650] sm:$0xff] }
0x13cb   :  { %7542 = vmatmul.f32.gmra.mxu0 %v12495_v8  ;;  %7583 = vmatmul.f32.gmra.mxu1 %v12499_v19  ;;  %v7415_v19 = vld [vmem:[#allocation17 + $0x500] sm:$0xff]  ;;  %v12557_v10 = vmul.f32 %v7178_v58, %v6730_v38  ;;  %v7183_v28 = vadd.f32 1.0, %v9044_v21  ;;  %9055 = vtanh.f32 %v7011_v53  ;;  %v6463_v58 = vadd.f32 %v12489_v22, %v12369_v34  ;;  %v7493_v17 = vld [vmem:[#allocation17 + $0x770] sm:$0xff] }
0x13cc   :  { %7624 = vmatmul.f32.gmra.mxu2 %v12505_v13  ;;  %7665 = vmatmul.f32.gmra.mxu3 %v12507_v54  ;;  %v6891_v13 = vmul.f32 0.044715, %v6827_v16  ;;  %v6835_v54 = vmul.f32 %v6771_v62, %v12485_v44  ;;  %v7499_v16 = vld [vmem:[#allocation17 + $0x7a0] sm:$0xff]  ;;  %v9046_v62 = vpop.eup %9045  ;;  %v7012_v48 = vmul.f32 0.7978846, %v6948_v45  ;;  %v6738_v53 = vmul.f32 0.5, %v12376_v31 }
0x13cd   :  { %v9048_v41 = vpop.eup %9047  ;;  %7731 = vmatpush.msrb.mxu1 %v7415_v19  ;;  %7803 = vmatpush.msrb.mxu3 %v7499_v16  ;;  %v6735_v19 = vmul.f32 0.5, %v12314_v0  ;;  %v7184_v56 = vadd.f32 1.0, %v9046_v62  ;;  %v6956_v0 = vadd.f32 %v6892_v32, %v12480_v36  ;;  %v6843_v32 = vmul.f32 %v6779_v46, %v12542_v4  ;;  %v7455_v46 = vld [vmem:[#allocation17 + $0x640] sm:$0xff] }
0x13ce   :  { %v9050_v3 = vpop.eup %9049  ;;  %v6899_v23 = vmul.f32 0.044715, %v6835_v54  ;;  %v6955_v15 = vadd.f32 %v6891_v13, %v12459_v7  ;;  %v6736_v54 = vmul.f32 0.5, %v13443_v20  ;;  %v7185_v29 = vadd.f32 1.0, %v9048_v41  ;;  %v7459_v13 = vld [vmem:[#allocation17 + $0x660] sm:$0xff]  ;;  %7765 = vmatpush.msrb.mxu2 %v7461_v6 }
0x13cf   :  { %v12534_v18 = vpop.f32.mrf.mxu2  ;;  %v12536_v40 = vpop.f32.mrf.mxu3  ;;  %v7186_v55 = vadd.f32 1.0, %v9050_v3  ;;  %7804 = vmatpush.msrb.mxu3 %v7497_v61  ;;  %v6836_v20 = vmul.f32 %v6772_v57, %v12532_v51  ;;  %v6737_v41 = vmul.f32 0.5, %v12366_v9  ;;  %v6384_v22 = vadd.f32 %v12501_v1, %v12347_v60 }
0x13d0   :  { %v12544_v39 = vpop.f32.mrf.mxu0  ;;  %v12546_v52 = vpop.f32.mrf.mxu1  ;;  %v7019_v25 = vmul.f32 0.7978846, %v6955_v15  ;;  %v6963_v21 = vadd.f32 %v6899_v23, %v12485_v44  ;;  %7766 = vmatpush.msrb.mxu2 %v7459_v13  ;;  %v12586_v23 = vmul.f32 %v7183_v28, %v6735_v19  ;;  %v12588_v57 = vmul.f32 %v7184_v56, %v6736_v54  ;;  %v7491_v13 = vld [vmem:[#allocation17 + $0x760] sm:$0xff] }
0x13d1   :  { %v9052_v16 = vpop.eup %9051  ;;  %7805 = vmatpush.msrb.mxu3 %v7495_v59  ;;  %v12590_v61 = vmul.f32 %v7185_v29, %v6737_v41  ;;  %v12592_v9 = vmul.f32 %v7186_v55, %v6738_v53  ;;  %9057 = vtanh.f32 %v7012_v48  ;;  %v7020_v31 = vmul.f32 0.7978846, %v6956_v0  ;;  %v7489_v55 = vld [vmem:[#allocation17 + $0x750] sm:$0xff] }
0x13d2   :  { %v9054_v6 = vpop.eup %9053  ;;  %7767 = vmatpush.msrb.mxu2 %v7457_v49  ;;  %v6900_v15 = vmul.f32 0.044715, %v6836_v20  ;;  %v12595_v1 = vadd.f32 %v12491_v33, %v6463_v58  ;;  %9059 = vtanh.f32 %v7019_v25  ;;  %v7027_v19 = vmul.f32 0.7978846, %v6963_v21  ;;  %v7453_v33 = vld [vmem:[#allocation17 + $0x630] sm:$0xff]  ;;  %v7451_v49 = vld [vmem:[#allocation17 + $0x620] sm:$0xff] }
0x13d3   :  { %7545 = vmatmul.f32.gmra.mxu0 %v12539_v5  ;;  %7586 = vmatmul.f32.gmra.mxu1 %v12549_v14  ;;  %13455 = vst [vmem:[#allocation63_spill] sm:$0xff] %v12592_v9  ;;  %v9056_v28 = vpop.eup %9055  ;;  %v7131_v54 = vadd.f32 1.0, %v9052_v16  ;;  %v7132_v56 = vadd.f32 1.0, %v9054_v6  ;;  %v6907_v29 = vmul.f32 0.044715, %v6843_v32  ;;  %v12600_v59 = vadd.f32 %v12503_v35, %v6384_v22 }
0x13d4   :  { %7627 = vmatmul.f32.gmra.mxu2 %v12551_v30  ;;  %7668 = vmatmul.f32.gmra.mxu3 %v12557_v10  ;;  %v6683_v48 = vmul.f32 0.5, %v12397_v63  ;;  %v6466_v0 = vadd.f32 %v12534_v18, %v12369_v34  ;;  %v12608_v20 = vperm.slane %v12344_v26, 6  ;;  %9061 = vtanh.f32 %v7020_v31 }
0x13d5   :  { %7806 = vmatpush.msrb.mxu3 %v7493_v17  ;;  %7768 = vmatpush.msrb.mxu2 %v7455_v46  ;;  %v6684_v35 = vmul.f32 0.5, %v12415_v42  ;;  %v6780_v58 = vmul.f32 %v12595_v1, %v12595_v1  ;;  %v7487_v17 = vld [vmem:[#allocation17 + $0x740] sm:$0xff]  ;;  %9063 = vtanh.f32 %v7027_v19  ;;  %v6964_v25 = vadd.f32 %v6900_v15, %v12532_v51 }
0x13d6   :  { %v6691_v16 = vmul.f32 0.5, %v12428_v27  ;;  %v7139_v41 = vadd.f32 1.0, %v9056_v28  ;;  %v6692_v53 = vmul.f32 0.5, %v12452_v12  ;;  %v12620_v32 = vmul.f32 %v7131_v54, %v6683_v48  ;;  %v7449_v28 = vld [vmem:[#allocation17 + $0x610] sm:$0xff] }
0x13d7   :  { %v12573_v62 = vpop.f32.mrf.mxu2  ;;  %v12575_v38 = vpop.f32.mrf.mxu3  ;;  %7807 = vmatpush.msrb.mxu3 %v7491_v13  ;;  %7769 = vmatpush.msrb.mxu2 %v7453_v33  ;;  %v12622_v22 = vmul.f32 %v7132_v56, %v6684_v35  ;;  %v6787_v6 = vmul.f32 %v12600_v59, %v12600_v59  ;;  %v6971_v46 = vadd.f32 %v6907_v29, %v12542_v4  ;;  %v6699_v19 = vmul.f32 0.5, %v12459_v7  ;;  %v7485_v54 = vld [vmem:[#allocation17 + $0x730] sm:$0xff]  ;;  %v7447_v35 = vld [vmem:[#allocation17 + $0x600] sm:$0xff] }
0x13d8   :  { %v12582_v45 = vpop.f32.mrf.mxu0  ;;  %v12584_v3 = vpop.f32.mrf.mxu1  ;;  %v12628_v13 = vadd.f32 %v12536_v40, %v6466_v0  ;;  %v6387_v27 = vadd.f32 %v12544_v39, %v12347_v60  ;;  %v6844_v56 = vmul.f32 %v6780_v58, %v12595_v1  ;;  %v6700_v33 = vmul.f32 0.5, %v12480_v36 }
0x13d9   :  { %v9058_v63 = vpop.eup %9057  ;;  %7808 = vmatpush.msrb.mxu3 %v7489_v55  ;;  %7770 = vmatpush.msrb.mxu2 %v7451_v49  ;;  %v6707_v29 = vmul.f32 0.5, %v12485_v44  ;;  %v7028_v55 = vmul.f32 0.7978846, %v6964_v25  ;;  %v12641_v39 = vmul.f32 %v7139_v41, %v6691_v16  ;;  %v7483_v49 = vld [vmem:[#allocation17 + $0x720] sm:$0xff]  ;;  %v6851_v58 = vmul.f32 %v6787_v6, %v12600_v59  ;;  %v7481_v6 = vld [vmem:[#allocation17 + $0x710] sm:$0xff] }
0x13da   :  { %v9060_v42 = vpop.eup %9059  ;;  %v7140_v7 = vadd.f32 1.0, %v9058_v63  ;;  %v6469_v36 = vadd.f32 %v12573_v62, %v12369_v34  ;;  %v12647_v44 = vperm.slane %v12344_v26, 7  ;;  %v7035_v25 = vmul.f32 0.7978846, %v6971_v46 }
0x13db   :  { %7548 = vmatmul.f32.gmra.mxu0 %v12586_v23  ;;  %7589 = vmatmul.f32.gmra.mxu1 %v12588_v57  ;;  %v9062_v40 = vpop.eup %9061  ;;  %v7147_v0 = vadd.f32 1.0, %v9060_v42  ;;  %v6788_v16 = vmul.f32 %v12628_v13, %v12628_v13  ;;  %v12652_v63 = vadd.f32 %v12546_v52, %v6387_v27  ;;  %v12657_v42 = vmul.f32 0.5, %v12532_v51  ;;  %v7479_v51 = vld [vmem:[#allocation17 + $0x700] sm:$0xff] }
0x13dc   :  { %7630 = vmatmul.f32.gmra.mxu2 %v12590_v61  ;;  %7671 = vmatmul.f32.gmra.mxu3 %v12592_v9  ;;  %v6908_v62 = vmul.f32 0.044715, %v6844_v56  ;;  %9065 = vtanh.f32 %v7028_v55  ;;  %v12660_v26 = vmul.f32 0.5, %v12542_v4  ;;  %v12663_v27 = vmul.f32 %v7140_v7, %v6692_v53  ;;  %v7286_v4 = vld [vmem:[#allocation17 + $0xf8] sm:$0xff] }
0x13dd   :  { %7809 = vmatpush.msrb.mxu3 %v7487_v17  ;;  %v9064_v17 = vpop.eup %9063  ;;  %7771 = vmatpush.msrb.mxu2 %v7449_v28  ;;  %v12668_v56 = vadd.f32 %v12575_v38, %v6469_v36  ;;  %9067 = vtanh.f32 %v7035_v25  ;;  %v6795_v53 = vmul.f32 %v12652_v63, %v12652_v63  ;;  %v6390_v38 = vadd.f32 %v12582_v45, %v12347_v60  ;;  %v7284_v36 = vld [vmem:[#allocation17 + $0xe8] sm:$0xff]  ;;  %v7310_v9 = vld [vmem:[#allocation17 + $0x1b8] sm:$0xff] }
0x13de   :  { %v7155_v28 = vadd.f32 1.0, %v9064_v17  ;;  %7839 = vmatpush.msra.mxu0 %v7286_v4  ;;  %v7316_v25 = vld [vmem:[#allocation17 + $0x1e8] sm:$0xff]  ;;  %v12690_v60 = vmul.f32 0.5, %v12595_v1 }
0x13df   :  { %v12614_v21 = vpop.f32.mrf.mxu2  ;;  %v12616_v18 = vpop.f32.mrf.mxu3  ;;  %7810 = vmatpush.msrb.mxu3 %v7485_v54  ;;  %7772 = vmatpush.msrb.mxu2 %v7447_v35  ;;  %v6915_v54 = vmul.f32 0.044715, %v6851_v58  ;;  %v6972_v58 = vadd.f32 %v6908_v62, %v12595_v1  ;;  %v6859_v1 = vmul.f32 %v6795_v53, %v12652_v63 }
0x13e0   :  { %v6532_v31 = vpop.f32.mrf.mxu0  ;;  %v6573_v15 = vpop.f32.mrf.mxu1  ;;  %7840 = vmatpush.msra.mxu0 %v7284_v36 }
0x13e1   :  { %v6533_v12 = vadd.f32 %v6532_v31, %v12608_v20  ;;  %v7148_v31 = vadd.f32 1.0, %v9062_v40  ;;  %7811 = vmatpush.msrb.mxu3 %v7483_v49  ;;  %v7318_v49 = vld [vmem:[#allocation17 + $0x1f8] sm:$0xff] }
0x13e2   :  { %7880 = vmatpush.msra.mxu1 %v7318_v49  ;;  %v9066_v45 = vpop.eup %9065  ;;  %v7036_v49 = vmul.f32 0.7978846, %v6972_v58 }
0x13e3   :  { %v12637_v48 = vadd.f32 %v6573_v15, %v6533_v12  ;;  %7691 = vmatmul.f32.vlgmr.msrb.gmra.mxu0 %v12620_v32  ;;  %7732 = vmatmul.f32.vlgmr.msrb.gmra.mxu1 %v12622_v22  ;;  %v12665_v12 = vmul.f32 %v7147_v0, %v6699_v19  ;;  %v12679_v17 = vmul.f32 %v7148_v31, %v6700_v33  ;;  %v7282_v31 = vld [vmem:[#allocation17 + $0xd8] sm:$0xff] }
0x13e4   :  { %7812 = vmatpush.msrb.mxu3 %v7481_v6  ;;  %v6796_v33 = vmul.f32 %v12668_v56, %v12668_v56  ;;  %7881 = vmatpush.msra.mxu1 %v7316_v25 }
0x13e5   :  { %v6749_v41 = vmul.f32 %v12637_v48, %v12637_v48  ;;  %13456 = vst [vmem:[#allocation65_spill] sm:$0xff] %v12679_v17  ;;  %7841 = vmatpush.msra.mxu0 %v7282_v31 }
0x13e6   :  { %7813 = vmatpush.msrb.mxu3 %v7479_v51 }
0x13e7   :  { %v6813_v15 = vmul.f32 %v6749_v41, %v12637_v48  ;;  %v6614_v46 = vpop.f32.mrf.mxu2  ;;  %v6655_v52 = vpop.f32.mrf.mxu3  ;;  %v6852_v41 = vmul.f32 %v6788_v16, %v12628_v13 }
0x13e8   :  { %v6615_v55 = vadd.f32 %v6614_v46, %v12647_v44  ;;  %v6535_v40 = vpop.f32.mrf.mxu0  ;;  %v6576_v35 = vpop.f32.mrf.mxu1  ;;  %v7314_v46 = vld [vmem:[#allocation17 + $0x1d8] sm:$0xff] }
0x13e9   :  { %v6877_v19 = vmul.f32 0.044715, %v6813_v15  ;;  %v6536_v7 = vadd.f32 %v6535_v40, %v12608_v20  ;;  %v12687_v15 = vmul.f32 %v7155_v28, %v6707_v29  ;;  %v6979_v29 = vadd.f32 %v6915_v54, %v12600_v59  ;;  %v9068_v40 = vpop.eup %9067  ;;  %7882 = vmatpush.msra.mxu1 %v7314_v46  ;;  %v7278_v46 = vld [vmem:[#allocation17 + $0xb8] sm:$0xff] }
0x13ea   :  { %v12677_v0 = vadd.f32 %v6655_v52, %v6615_v55  ;;  %v12697_v52 = vmul.f32 0.5, %v12600_v59  ;;  %v6916_v28 = vmul.f32 0.044715, %v6852_v41  ;;  %v12708_v59 = vmul.f32 0.5, %v12628_v13 }
0x13eb   :  { %v6941_v16 = vadd.f32 %v6877_v19, %v12637_v48  ;;  %v12683_v6 = vadd.f32 %v6576_v35, %v6536_v7  ;;  %7694 = vmatmul.f32.gmra.mxu0 %v12641_v39  ;;  %7735 = vmatmul.f32.gmra.mxu1 %v12663_v27  ;;  %13457 = vst [vmem:[#allocation61_spill] sm:$0xff] %v12687_v15  ;;  %v7280_v19 = vld [vmem:[#allocation17 + $0xc8] sm:$0xff]  ;;  %v7043_v31 = vmul.f32 0.7978846, %v6979_v29 }
0x13ec   :  { %v6750_v62 = vmul.f32 %v12677_v0, %v12677_v0  ;;  %v12704_v35 = vadd.f32 %v12584_v3, %v6390_v38  ;;  %v7312_v7 = vld [vmem:[#allocation17 + $0x1c8] sm:$0xff]  ;;  %v6472_v54 = vadd.f32 %v12614_v21, %v12369_v34  ;;  %v12713_v3 = vadd.f32 1.0, %v9066_v45  ;;  %7842 = vmatpush.msra.mxu0 %v7280_v19 }
0x13ed   :  { %v7005_v51 = vmul.f32 0.7978846, %v6941_v16  ;;  %v6757_v55 = vmul.f32 %v12683_v6, %v12683_v6  ;;  %v6860_v38 = vmul.f32 %v6796_v33, %v12668_v56  ;;  %7883 = vmatpush.msra.mxu1 %v7312_v7  ;;  %v6923_v34 = vmul.f32 0.044715, %v6859_v1  ;;  %v7276_v19 = vld [vmem:[#allocation17 + $0xa8] sm:$0xff] }
0x13ee   :  { %v6814_v4 = vmul.f32 %v6750_v62, %v12677_v0  ;;  %v6803_v45 = vmul.f32 %v12704_v35, %v12704_v35  ;;  %7843 = vmatpush.msra.mxu0 %v7278_v46  ;;  %v7308_v29 = vld [vmem:[#allocation17 + $0x1a8] sm:$0xff]  ;;  %v12725_v7 = vadd.f32 %v12616_v18, %v6472_v54  ;;  %v7306_v18 = vld [vmem:[#allocation17 + $0x198] sm:$0xff] }
0x13ef   :  { %9069 = vtanh.f32 %v7005_v51  ;;  %v6821_v41 = vmul.f32 %v6757_v55, %v12683_v6  ;;  %v6617_v53 = vpop.f32.mrf.mxu2  ;;  %v6658_v36 = vpop.f32.mrf.mxu3  ;;  %v6980_v55 = vadd.f32 %v6916_v28, %v12628_v13  ;;  %7884 = vmatpush.msra.mxu1 %v7310_v9  ;;  %v6924_v28 = vmul.f32 0.044715, %v6860_v38  ;;  %v7274_v9 = vld [vmem:[#allocation17 + $0x98] sm:$0xff]  ;;  %v7304_v46 = vld [vmem:[#allocation17 + $0x188] sm:$0xff] }
0x13f0   :  { %v6878_v58 = vmul.f32 0.044715, %v6814_v4  ;;  %v6618_v25 = vadd.f32 %v6617_v53, %v12647_v44  ;;  %v6538_v16 = vpop.f32.mrf.mxu0  ;;  %v6579_v62 = vpop.f32.mrf.mxu1  ;;  %v7163_v53 = vadd.f32 1.0, %v9068_v40  ;;  %9071 = vtanh.f32 %v7036_v49  ;;  %7844 = vmatpush.msra.mxu0 %v7276_v19 }
0x13f1   :  { %v6885_v21 = vmul.f32 0.044715, %v6821_v41  ;;  %v6539_v51 = vadd.f32 %v6538_v16, %v12608_v20  ;;  %9073 = vtanh.f32 %v7043_v31  ;;  %7885 = vmatpush.msra.mxu1 %v7308_v29  ;;  %v6987_v16 = vadd.f32 %v6923_v34, %v12652_v63  ;;  %v7272_v31 = vld [vmem:[#allocation17 + $0x88] sm:$0xff] }
0x13f2   :  { %v6942_v33 = vadd.f32 %v6878_v58, %v12677_v0  ;;  %v12722_v4 = vadd.f32 %v6658_v36, %v6618_v25  ;;  %v7044_v25 = vmul.f32 0.7978846, %v6980_v55  ;;  %v6685_v49 = vmul.f32 0.5, %v12637_v48  ;;  %7845 = vmatpush.msra.mxu0 %v7274_v9 }
0x13f3   :  { %v12727_v1 = vadd.f32 %v6579_v62, %v6539_v51  ;;  %7697 = vmatmul.f32.gmra.mxu0 %v12665_v12  ;;  %7738 = vmatmul.f32.gmra.mxu1 %v12679_v17  ;;  %v6949_v13 = vadd.f32 %v6885_v21, %v12683_v6  ;;  %v6867_v21 = vmul.f32 %v6803_v45, %v12704_v35  ;;  %v7270_v45 = vld [vmem:[#allocation17 + $0x78] sm:$0xff] }
0x13f4   :  { %v7006_v41 = vmul.f32 0.7978846, %v6942_v33  ;;  %v6758_v40 = vmul.f32 %v12722_v4, %v12722_v4  ;;  %7886 = vmatpush.msra.mxu1 %v7306_v18  ;;  %v6804_v51 = vmul.f32 %v12725_v7, %v12725_v7  ;;  %7846 = vmatpush.msra.mxu0 %v7272_v31  ;;  %v7051_v31 = vmul.f32 0.7978846, %v6987_v16 }
0x13f5   :  { %v9070_v54 = vpop.eup %9069  ;;  %v6765_v36 = vmul.f32 %v12727_v1, %v12727_v1  ;;  %v7013_v58 = vmul.f32 0.7978846, %v6949_v13 }
0x13f6   :  { %v7133_v38 = vadd.f32 1.0, %v9070_v54  ;;  %9075 = vtanh.f32 %v7006_v41  ;;  %v6822_v62 = vmul.f32 %v6758_v40, %v12722_v4  ;;  %7887 = vmatpush.msra.mxu1 %v7304_v46  ;;  %v6988_v40 = vadd.f32 %v6924_v28, %v12668_v56  ;;  %v9072_v9 = vpop.eup %9071  ;;  %7847 = vmatpush.msra.mxu0 %v7270_v45  ;;  %v7268_v46 = vld [vmem:[#allocation17 + $0x68] sm:$0xff] }
0x13f7   :  { %v6829_v33 = vmul.f32 %v6765_v36, %v12727_v1  ;;  %v6620_v55 = vpop.f32.mrf.mxu2  ;;  %v6661_v19 = vpop.f32.mrf.mxu3  ;;  %9077 = vtanh.f32 %v7013_v58  ;;  %v12750_v36 = vmul.f32 %v12713_v3, %v12657_v42  ;;  %v7302_v58 = vld [vmem:[#allocation17 + $0x178] sm:$0xff] }
0x13f8   :  { %v12743_v34 = vmul.f32 %v7133_v38, %v6685_v49  ;;  %v6886_v48 = vmul.f32 0.044715, %v6822_v62  ;;  %v6621_v29 = vadd.f32 %v6620_v55, %v12647_v44  ;;  %v6541_v13 = vpop.f32.mrf.mxu0  ;;  %v6582_v41 = vpop.f32.mrf.mxu1  ;;  %9079 = vtanh.f32 %v7044_v25  ;;  %v7300_v25 = vld [vmem:[#allocation17 + $0x168] sm:$0xff]  ;;  %7888 = vmatpush.msra.mxu1 %v7302_v58  ;;  %7848 = vmatpush.msra.mxu0 %v7268_v46 }
0x13f9   :  { %v6893_v18 = vmul.f32 0.044715, %v6829_v33  ;;  %v6542_v54 = vadd.f32 %v6541_v13, %v12608_v20  ;;  %13459 = vst [vmem:[#allocation64_spill] sm:$0xff] %v12750_v36  ;;  %v9074_v49 = vpop.eup %9073  ;;  %v12756_v62 = vmul.f32 %v7163_v53, %v12660_v26  ;;  %v6931_v33 = vmul.f32 0.044715, %v6867_v21  ;;  %v7266_v21 = vld [vmem:[#allocation17 + $0x58] sm:$0xff] }
0x13fa   :  { %13458 = vst [vmem:[#allocation62_spill] sm:$0xff] %v12743_v34  ;;  %v12752_v38 = vadd.f32 %v6661_v19, %v6621_v29  ;;  %7773 = vmatmul.f32.vlgmr.msrb.gmra.mxu2 %v12743_v34  ;;  %v6950_v28 = vadd.f32 %v6886_v48, %v12722_v4  ;;  %v6868_v55 = vmul.f32 %v6804_v51, %v12725_v7  ;;  %v7164_v53 = vadd.f32 1.0, %v9072_v9  ;;  %v7350_v34 = vld [vmem:[#allocation17 + $0x2f8] sm:$0xff] }
0x13fb   :  { %v12760_v42 = vadd.f32 %v6582_v41, %v6542_v54  ;;  %7700 = vmatmul.f32.gmra.mxu0 %v12687_v15  ;;  %7741 = vmatmul.f32.gmra.mxu1 %v12750_v36  ;;  %v6957_v3 = vadd.f32 %v6893_v18, %v12727_v1  ;;  %v7052_v48 = vmul.f32 0.7978846, %v6988_v40  ;;  %v6686_v29 = vmul.f32 0.5, %v12677_v0  ;;  %v7298_v18 = vld [vmem:[#allocation17 + $0x158] sm:$0xff]  ;;  %v7264_v40 = vld [vmem:[#allocation17 + $0x48] sm:$0xff] }
0x13fc   :  { %v9076_v19 = vpop.eup %9075  ;;  %v6766_v26 = vmul.f32 %v12752_v38, %v12752_v38  ;;  %v7014_v16 = vmul.f32 0.7978846, %v6950_v28  ;;  %v6693_v36 = vmul.f32 0.5, %v12683_v6  ;;  %7889 = vmatpush.msra.mxu1 %v7300_v25  ;;  %7849 = vmatpush.msra.mxu0 %v7266_v21  ;;  %v6932_v58 = vmul.f32 0.044715, %v6868_v55 }
0x13fd   :  { %v9078_v51 = vpop.eup %9077  ;;  %v7134_v13 = vadd.f32 1.0, %v9076_v19  ;;  %v6773_v41 = vmul.f32 %v12760_v42, %v12760_v42  ;;  %v7021_v45 = vmul.f32 0.7978846, %v6957_v3  ;;  %v7296_v3 = vld [vmem:[#allocation17 + $0x148] sm:$0xff]  ;;  %v6995_v55 = vadd.f32 %v6931_v33, %v12704_v35  ;;  %7921 = vmatpush.msra.mxu2 %v7350_v34 }
0x13fe   :  { %v6830_v54 = vmul.f32 %v6766_v26, %v12752_v38  ;;  %v7141_v15 = vadd.f32 1.0, %v9078_v51  ;;  %9081 = vtanh.f32 %v7014_v16  ;;  %v9080_v9 = vpop.eup %9079  ;;  %7890 = vmatpush.msra.mxu1 %v7298_v18  ;;  %7850 = vmatpush.msra.mxu0 %v7264_v40  ;;  %v7348_v33 = vld [vmem:[#allocation17 + $0x2e8] sm:$0xff]  ;;  %v6996_v34 = vadd.f32 %v6932_v58, %v12725_v7  ;;  %v7258_v58 = vld [vmem:[#allocation17 + $0x18] sm:$0xff] }
0x13ff   :  { %v12772_v28 = vmul.f32 %v7134_v13, %v6686_v29  ;;  %v6837_v0 = vmul.f32 %v6773_v41, %v12760_v42  ;;  %v6623_v46 = vpop.f32.mrf.mxu2  ;;  %v6664_v19 = vpop.f32.mrf.mxu3  ;;  %9083 = vtanh.f32 %v7021_v45  ;;  %v12782_v29 = vmul.f32 %v7164_v53, %v12690_v60  ;;  %v7262_v41 = vld [vmem:[#allocation17 + $0x38] sm:$0xff]  ;;  %v7292_v53 = vld [vmem:[#allocation17 + $0x128] sm:$0xff]  ;;  %7922 = vmatpush.msra.mxu2 %v7348_v33 }
0x1400   :  { %v6894_v17 = vmul.f32 0.044715, %v6830_v54  ;;  %v6624_v26 = vadd.f32 %v6623_v46, %v12647_v44  ;;  %v6544_v6 = vpop.f32.mrf.mxu0  ;;  %v6585_v51 = vpop.f32.mrf.mxu1  ;;  %v12776_v16 = vmul.f32 %v7141_v15, %v6693_v36  ;;  %v12784_v13 = vadd.f32 1.0, %v9074_v49  ;;  %v7294_v45 = vld [vmem:[#allocation17 + $0x138] sm:$0xff]  ;;  %7891 = vmatpush.msra.mxu1 %v7296_v3  ;;  %v7260_v49 = vld [vmem:[#allocation17 + $0x28] sm:$0xff]  ;;  %7851 = vmatpush.msra.mxu0 %v7262_v41 }
0x1401   :  { %v6901_v25 = vmul.f32 0.044715, %v6837_v0  ;;  %v6545_v21 = vadd.f32 %v6544_v6, %v12608_v20  ;;  %7814 = vmatmul.f32.vlgmr.msrb.gmra.mxu3 %v12772_v28  ;;  %13460 = vst [vmem:[#allocation66_spill] sm:$0xff] %v12782_v29  ;;  %v7172_v15 = vadd.f32 1.0, %v9080_v9  ;;  %9085 = vtanh.f32 %v7051_v31  ;;  %v7346_v46 = vld [vmem:[#allocation17 + $0x2d8] sm:$0xff] }
0x1402   :  { %v12786_v54 = vadd.f32 %v6664_v19, %v6624_v26  ;;  %7776 = vmatmul.f32.gmra.mxu2 %v12776_v16  ;;  %v6958_v36 = vadd.f32 %v6894_v17, %v12752_v38  ;;  %9087 = vtanh.f32 %v7052_v48  ;;  %v6694_v31 = vmul.f32 0.5, %v12722_v4  ;;  %7892 = vmatpush.msra.mxu1 %v7294_v45  ;;  %v7290_v6 = vld [vmem:[#allocation17 + $0x118] sm:$0xff] }
0x1403   :  { %v12790_v18 = vadd.f32 %v6585_v51, %v6545_v21  ;;  %7703 = vmatmul.f32.gmra.mxu0 %v12756_v62  ;;  %7744 = vmatmul.f32.gmra.mxu1 %v12782_v29  ;;  %v6965_v60 = vadd.f32 %v6901_v25, %v12760_v42  ;;  %v7059_v0 = vmul.f32 0.7978846, %v6995_v55  ;;  %v7382_v51 = vld [vmem:[#allocation17 + $0x3f8] sm:$0xff]  ;;  %v6701_v21 = vmul.f32 0.5, %v12727_v1  ;;  %v7344_v55 = vld [vmem:[#allocation17 + $0x2c8] sm:$0xff] }
0x1404   :  { %v9082_v40 = vpop.eup %9081  ;;  %v6774_v17 = vmul.f32 %v12786_v54, %v12786_v54  ;;  %v7022_v9 = vmul.f32 0.7978846, %v6958_v36  ;;  %7852 = vmatpush.msra.mxu0 %v7260_v49  ;;  %7893 = vmatpush.msra.mxu1 %v7292_v53  ;;  %v7060_v33 = vmul.f32 0.7978846, %v6996_v34  ;;  %v12813_v34 = vmul.f32 %v12784_v13, %v12697_v52  ;;  %v7340_v13 = vld [vmem:[#allocation17 + $0x2a8] sm:$0xff] }
0x1405   :  { %v9084_v19 = vpop.eup %9083  ;;  %v6781_v3 = vmul.f32 %v12790_v18, %v12790_v18  ;;  %v7142_v48 = vadd.f32 1.0, %v9082_v40  ;;  %v7029_v26 = vmul.f32 0.7978846, %v6965_v60  ;;  %7923 = vmatpush.msra.mxu2 %v7346_v46  ;;  %7962 = vmatpush.msra.mxu3 %v7382_v51  ;;  %v7256_v60 = vld [vmem:[#allocation17 + $0x8] sm:$0xff]  ;;  %v12816_v46 = vmul.f32 %v7172_v15, %v12708_v59 }
0x1406   :  { %v6838_v25 = vmul.f32 %v6774_v17, %v12786_v54  ;;  %v7149_v4 = vadd.f32 1.0, %v9084_v19  ;;  %9089 = vtanh.f32 %v7022_v9  ;;  %7853 = vmatpush.msra.mxu0 %v7258_v58  ;;  %7894 = vmatpush.msra.mxu1 %v7290_v6  ;;  %v7380_v6 = vld [vmem:[#allocation17 + $0x3e8] sm:$0xff]  ;;  %v6731_v52 = vmul.f32 0.5, %v12652_v63 }
0x1407   :  { %v6845_v41 = vmul.f32 %v6781_v3, %v12790_v18  ;;  %v6626_v45 = vpop.f32.mrf.mxu2  ;;  %v6667_v36 = vpop.f32.mrf.mxu3  ;;  %v12804_v29 = vmul.f32 %v7142_v48, %v6694_v31  ;;  %9091 = vtanh.f32 %v7029_v26  ;;  %7924 = vmatpush.msra.mxu2 %v7344_v55  ;;  %v7288_v48 = vld [vmem:[#allocation17 + $0x108] sm:$0xff]  ;;  %v7342_v26 = vld [vmem:[#allocation17 + $0x2b8] sm:$0xff]  ;;  %v6702_v63 = vmul.f32 0.5, %v12752_v38  ;;  %7963 = vmatpush.msra.mxu3 %v7380_v6 }
0x1408   :  { %v9086_v40 = vpop.eup %9085  ;;  %v6902_v17 = vmul.f32 0.044715, %v6838_v25  ;;  %v6627_v1 = vadd.f32 %v6626_v45, %v12647_v44  ;;  %v6547_v19 = vpop.f32.mrf.mxu0  ;;  %v12807_v49 = vmul.f32 %v7149_v4, %v6701_v21  ;;  %9093 = vtanh.f32 %v7059_v0  ;;  %7854 = vmatpush.msra.mxu0 %v7256_v60  ;;  %7895 = vmatpush.msra.mxu1 %v7288_v48  ;;  %v7376_v38 = vld [vmem:[#allocation17 + $0x3c8] sm:$0xff] }
0x1409   :  { %v6588_v9 = vpop.f32.mrf.mxu1  ;;  %v9088_v53 = vpop.eup %9087  ;;  %v6909_v3 = vmul.f32 0.044715, %v6845_v41  ;;  %v6548_v31 = vadd.f32 %v6547_v19, %v12608_v20  ;;  %7817 = vmatmul.f32.gmra.mxu3 %v12804_v29  ;;  %9095 = vtanh.f32 %v7060_v33  ;;  %v7179_v4 = vadd.f32 1.0, %v9086_v40  ;;  %7925 = vmatpush.msra.mxu2 %v7342_v26  ;;  %v7378_v41 = vld [vmem:[#allocation17 + $0x3d8] sm:$0xff] }
0x140a   :  { %v12818_v51 = vadd.f32 %v6667_v36, %v6627_v1  ;;  %7779 = vmatmul.f32.gmra.mxu2 %v12807_v49  ;;  %v6966_v58 = vadd.f32 %v6902_v17, %v12786_v54  ;;  %v7180_v0 = vadd.f32 1.0, %v9088_v53  ;;  %v7338_v33 = vld [vmem:[#allocation17 + $0x298] sm:$0xff]  ;;  %v6709_v19 = vmul.f32 0.5, %v12760_v42  ;;  %7964 = vmatpush.msra.mxu3 %v7378_v41  ;;  %v7336_v41 = vld [vmem:[#allocation17 + $0x288] sm:$0xff] }
0x140b   :  { %v12822_v25 = vadd.f32 %v6588_v9, %v6548_v31  ;;  %7706 = vmatmul.f32.gmra.mxu0 %v12813_v34  ;;  %7747 = vmatmul.f32.gmra.mxu1 %v12816_v46  ;;  %v6973_v59 = vadd.f32 %v6909_v3, %v12790_v18  ;;  %v6732_v48 = vmul.f32 0.5, %v12668_v56 }
0x140c   :  { %v9090_v15 = vpop.eup %9089  ;;  %v6782_v21 = vmul.f32 %v12818_v51, %v12818_v51  ;;  %v7030_v55 = vmul.f32 0.7978846, %v6966_v58  ;;  %7926 = vmatpush.msra.mxu2 %v7340_v13  ;;  %7965 = vmatpush.msra.mxu3 %v7376_v38  ;;  %v6710_v38 = vmul.f32 0.5, %v12786_v54  ;;  %v6740_v54 = vmul.f32 0.5, %v12725_v7  ;;  %v7330_v7 = vld [vmem:[#allocation17 + $0x258] sm:$0xff] }
0x140d   :  { %v9092_v45 = vpop.eup %9091  ;;  %v6789_v36 = vmul.f32 %v12822_v25, %v12822_v25  ;;  %v7150_v60 = vadd.f32 1.0, %v9090_v15  ;;  %v7037_v17 = vmul.f32 0.7978846, %v6973_v59  ;;  %v12846_v56 = vmul.f32 %v7180_v0, %v6732_v48  ;;  %v7334_v0 = vld [vmem:[#allocation17 + $0x278] sm:$0xff] }
0x140e   :  { %v6846_v1 = vmul.f32 %v6782_v21, %v12818_v51  ;;  %v7157_v40 = vadd.f32 1.0, %v9092_v45  ;;  %9097 = vtanh.f32 %v7030_v55  ;;  %v9094_v26 = vpop.eup %9093  ;;  %7927 = vmatpush.msra.mxu2 %v7338_v33  ;;  %v12844_v45 = vmul.f32 %v7179_v4, %v6731_v52  ;;  %v7372_v33 = vld [vmem:[#allocation17 + $0x3a8] sm:$0xff] }
0x140f   :  { %v6853_v9 = vmul.f32 %v6789_v36, %v12822_v25  ;;  %v6629_v53 = vpop.f32.mrf.mxu2  ;;  %v6670_v3 = vpop.f32.mrf.mxu3  ;;  %v12836_v31 = vmul.f32 %v7150_v60, %v6702_v63  ;;  %9099 = vtanh.f32 %v7037_v17  ;;  %13461 = vst [vmem:[#allocation27_spill] sm:$0xff] %v12846_v56  ;;  %v7374_v36 = vld [vmem:[#allocation17 + $0x3b8] sm:$0xff]  ;;  %v6739_v52 = vmul.f32 0.5, %v12704_v35 }
0x1410   :  { %v6910_v58 = vmul.f32 0.044715, %v6846_v1  ;;  %v6630_v6 = vadd.f32 %v6629_v53, %v12647_v44  ;;  %v6550_v59 = vpop.f32.mrf.mxu0  ;;  %v12840_v15 = vmul.f32 %v7157_v40, %v6709_v19  ;;  %v9096_v13 = vpop.eup %9095  ;;  %v7187_v40 = vadd.f32 1.0, %v9094_v26  ;;  %7928 = vmatpush.msra.mxu2 %v7336_v41  ;;  %7966 = vmatpush.msra.mxu3 %v7374_v36 }
0x1411   :  { %v6591_v42 = vpop.f32.mrf.mxu1  ;;  %v6917_v21 = vmul.f32 0.044715, %v6853_v9  ;;  %v6551_v55 = vadd.f32 %v6550_v59, %v12608_v20  ;;  %7820 = vmatmul.f32.gmra.mxu3 %v12836_v31  ;;  %v7188_v9 = vadd.f32 1.0, %v9096_v13  ;;  %v7370_v59 = vld [vmem:[#allocation17 + $0x398] sm:$0xff] }
0x1412   :  { %v12848_v63 = vadd.f32 %v6670_v3, %v6630_v6  ;;  %7782 = vmatmul.f32.gmra.mxu2 %v12840_v15  ;;  %v6974_v60 = vadd.f32 %v6910_v58, %v12818_v51  ;;  %v7332_v6 = vld [vmem:[#allocation17 + $0x268] sm:$0xff]  ;;  %7967 = vmatpush.msra.mxu3 %v7372_v33 }
0x1413   :  { %v12852_v17 = vadd.f32 %v6591_v42, %v6551_v55  ;;  %7709 = vmatmul.f32.gmra.mxu0 %v12844_v45  ;;  %7750 = vmatmul.f32.gmra.mxu1 %v12846_v56  ;;  %v6981_v4 = vadd.f32 %v6917_v21, %v12822_v25  ;;  %v6717_v21 = vmul.f32 0.5, %v12790_v18 }
0x1414   :  { %v9098_v1 = vpop.eup %9097  ;;  %v6790_v19 = vmul.f32 %v12848_v63, %v12848_v63  ;;  %v7038_v53 = vmul.f32 0.7978846, %v6974_v60  ;;  %7929 = vmatpush.msra.mxu2 %v7334_v0  ;;  %v7368_v60 = vld [vmem:[#allocation17 + $0x388] sm:$0xff]  ;;  %7968 = vmatpush.msra.mxu3 %v7370_v59 }
0x1415   :  { %v9100_v3 = vpop.eup %9099  ;;  %v6797_v48 = vmul.f32 %v12852_v17, %v12852_v17  ;;  %v7158_v35 = vadd.f32 1.0, %v9098_v1  ;;  %v7045_v58 = vmul.f32 0.7978846, %v6981_v4 }
0x1416   :  { %v6854_v42 = vmul.f32 %v6790_v19, %v12848_v63  ;;  %v7165_v55 = vadd.f32 1.0, %v9100_v3  ;;  %9101 = vtanh.f32 %v7038_v53  ;;  %7930 = vmatpush.msra.mxu2 %v7332_v6  ;;  %v12874_v53 = vmul.f32 %v7187_v40, %v6739_v52  ;;  %7969 = vmatpush.msra.mxu3 %v7368_v60  ;;  %v7328_v52 = vld [vmem:[#allocation17 + $0x248] sm:$0xff] }
0x1417   :  { %v6861_v26 = vmul.f32 %v6797_v48, %v12852_v17  ;;  %v6632_v13 = vpop.f32.mrf.mxu2  ;;  %v6673_v41 = vpop.f32.mrf.mxu3  ;;  %v12866_v36 = vmul.f32 %v7158_v35, %v6710_v38  ;;  %9103 = vtanh.f32 %v7045_v58  ;;  %v12876_v3 = vmul.f32 %v7188_v9, %v6740_v54  ;;  %v7366_v48 = vld [vmem:[#allocation17 + $0x378] sm:$0xff]  ;;  %v7364_v40 = vld [vmem:[#allocation17 + $0x368] sm:$0xff] }
0x1418   :  { %v6918_v4 = vmul.f32 0.044715, %v6854_v42  ;;  %v6633_v1 = vadd.f32 %v6632_v13, %v12647_v44  ;;  %v6553_v19 = vpop.f32.mrf.mxu0  ;;  %v12870_v18 = vmul.f32 %v7165_v55, %v6717_v21  ;;  %7931 = vmatpush.msra.mxu2 %v7330_v7  ;;  %7970 = vmatpush.msra.mxu3 %v7366_v48  ;;  %v6718_v21 = vmul.f32 0.5, %v12818_v51  ;;  %v7326_v13 = vld [vmem:[#allocation17 + $0x238] sm:$0xff] }
0x1419   :  { %v6594_v56 = vpop.f32.mrf.mxu1  ;;  %v6925_v0 = vmul.f32 0.044715, %v6861_v26  ;;  %v6554_v33 = vadd.f32 %v6553_v19, %v12608_v20  ;;  %7823 = vmatmul.f32.gmra.mxu3 %v12866_v36  ;;  %v6725_v60 = vmul.f32 0.5, %v12822_v25 }
0x141a   :  { %v12878_v38 = vadd.f32 %v6673_v41, %v6633_v1  ;;  %7785 = vmatmul.f32.gmra.mxu2 %v12870_v18  ;;  %v6982_v35 = vadd.f32 %v6918_v4, %v12848_v63  ;;  %v7362_v41 = vld [vmem:[#allocation17 + $0x358] sm:$0xff]  ;;  %7971 = vmatpush.msra.mxu3 %v7364_v40  ;;  %v7324_v40 = vld [vmem:[#allocation17 + $0x228] sm:$0xff] }
0x141b   :  { %v12882_v58 = vadd.f32 %v6594_v56, %v6554_v33  ;;  %7712 = vmatmul.f32.gmra.mxu0 %v12874_v53  ;;  %7753 = vmatmul.f32.gmra.mxu1 %v12876_v3  ;;  %v6989_v20 = vadd.f32 %v6925_v0, %v12852_v17  ;;  %v7360_v33 = vld [vmem:[#allocation17 + $0x348] sm:$0xff] }
0x141c   :  { %v9102_v9 = vpop.eup %9101  ;;  %v6798_v6 = vmul.f32 %v12878_v38, %v12878_v38  ;;  %v7046_v59 = vmul.f32 0.7978846, %v6982_v35  ;;  %7932 = vmatpush.msra.mxu2 %v7328_v52  ;;  %7972 = vmatpush.msra.mxu3 %v7362_v41 }
0x141d   :  { %v9104_v42 = vpop.eup %9103  ;;  %v6805_v56 = vmul.f32 %v12882_v58, %v12882_v58  ;;  %v7166_v55 = vadd.f32 1.0, %v9102_v9  ;;  %v7053_v26 = vmul.f32 0.7978846, %v6989_v20  ;;  %v7358_v9 = vld [vmem:[#allocation17 + $0x338] sm:$0xff] }
0x141e   :  { %v6862_v54 = vmul.f32 %v6798_v6, %v12878_v38  ;;  %v7173_v4 = vadd.f32 1.0, %v9104_v42  ;;  %9105 = vtanh.f32 %v7046_v59  ;;  %7933 = vmatpush.msra.mxu2 %v7326_v13  ;;  %v7322_v59 = vld [vmem:[#allocation17 + $0x218] sm:$0xff]  ;;  %7973 = vmatpush.msra.mxu3 %v7360_v33  ;;  %v13462_v42 = vld [vmem:[#allocation37_spill] sm:$0xff] }
0x141f   :  { %v6869_v1 = vmul.f32 %v6805_v56, %v12882_v58  ;;  %v6635_v19 = vpop.f32.mrf.mxu2  ;;  %v12895_v0 = vmul.f32 %v7166_v55, %v6718_v21  ;;  %9107 = vtanh.f32 %v7053_v26  ;;  %v6676_v52 = vpop.f32.mrf.mxu3  ;;  %v13463_v56 = vld [vmem:[#allocation46_spill] sm:$0xff]  ;;  %v7356_v55 = vld [vmem:[#allocation17 + $0x328] sm:$0xff] }
0x1420   :  { %v6926_v51 = vmul.f32 0.044715, %v6862_v54  ;;  %v6636_v7 = vadd.f32 %v6635_v19, %v12647_v44  ;;  %v12898_v48 = vpop.f32.mrf.mxu0  ;;  %v12902_v20 = vmul.f32 %v7173_v4, %v6725_v60  ;;  %v7414_v26 = vld [vmem:[#allocation17 + $0x4f8] sm:$0xff]  ;;  %7934 = vmatpush.msra.mxu2 %v7324_v40  ;;  %7974 = vmatpush.msra.mxu3 %v7358_v9  ;;  %v7352_v40 = vld [vmem:[#allocation17 + $0x308] sm:$0xff] }
0x1421   :  { %v12900_v35 = vpop.f32.mrf.mxu1  ;;  %v6933_v25 = vmul.f32 0.044715, %v6869_v1  ;;  %7826 = vmatmul.f32.gmra.mxu3 %v12895_v0  ;;  %v7446_v13 = vld [vmem:[#allocation17 + $0x5f8] sm:$0xff]  ;;  %v6726_v1 = vmul.f32 0.5, %v12848_v63  ;;  %8003 = vmatpush.msrb.mxu0 %v7414_v26 }
0x1422   :  { %v12905_v6 = vadd.f32 %v6676_v52, %v6636_v7  ;;  %7788 = vmatmul.f32.gmra.mxu2 %v12902_v20  ;;  %v6990_v44 = vadd.f32 %v6926_v51, %v12878_v38  ;;  %v7320_v51 = vld [vmem:[#allocation17 + $0x208] sm:$0xff]  ;;  %v7354_v7 = vld [vmem:[#allocation17 + $0x318] sm:$0xff]  ;;  %8044 = vmatpush.msrb.mxu1 %v7446_v13  ;;  %v6733_v52 = vmul.f32 0.5, %v12852_v17 }
0x1423   :  { %7855 = vmatmul.f32.vlgmr.msra.gmra.mxu0 %v13462_v42  ;;  %7896 = vmatmul.f32.vlgmr.msra.gmra.mxu1 %v13463_v56  ;;  %v6997_v21 = vadd.f32 %v6933_v25, %v12882_v58  ;;  %v7410_v26 = vld [vmem:[#allocation17 + $0x4d8] sm:$0xff] }
0x1424   :  { %v9106_v41 = vpop.eup %9105  ;;  %v6806_v54 = vmul.f32 %v12905_v6, %v12905_v6  ;;  %v7054_v60 = vmul.f32 0.7978846, %v6990_v44  ;;  %7935 = vmatpush.msra.mxu2 %v7322_v59  ;;  %7975 = vmatpush.msra.mxu3 %v7356_v55  ;;  %v7412_v59 = vld [vmem:[#allocation17 + $0x4e8] sm:$0xff]  ;;  %v7442_v13 = vld [vmem:[#allocation17 + $0x5d8] sm:$0xff] }
0x1425   :  { %v9108_v4 = vpop.eup %9107  ;;  %v7174_v19 = vadd.f32 1.0, %v9106_v41  ;;  %v7061_v33 = vmul.f32 0.7978846, %v6997_v21  ;;  %v7444_v55 = vld [vmem:[#allocation17 + $0x5e8] sm:$0xff]  ;;  %8004 = vmatpush.msrb.mxu0 %v7412_v59  ;;  %v7402_v59 = vld [vmem:[#allocation17 + $0x498] sm:$0xff] }
0x1426   :  { %v6870_v25 = vmul.f32 %v6806_v54, %v12905_v6  ;;  %v7181_v42 = vadd.f32 1.0, %v9108_v4  ;;  %9109 = vtanh.f32 %v7054_v60  ;;  %7936 = vmatpush.msra.mxu2 %v7320_v51  ;;  %7976 = vmatpush.msra.mxu3 %v7354_v7  ;;  %v6734_v4 = vmul.f32 0.5, %v12878_v38  ;;  %v7438_v38 = vld [vmem:[#allocation17 + $0x5b8] sm:$0xff] }
0x1427   :  { %v12917_v44 = vmul.f32 %v7174_v19, %v6726_v1  ;;  %9111 = vtanh.f32 %v7061_v33  ;;  %8045 = vmatpush.msrb.mxu1 %v7444_v55  ;;  %v7408_v19 = vld [vmem:[#allocation17 + $0x4c8] sm:$0xff]  ;;  %v6741_v51 = vmul.f32 0.5, %v12882_v58  ;;  %8005 = vmatpush.msrb.mxu0 %v7410_v26  ;;  %v12946_v26 = vpop.f32.mrf.mxu3 }
0x1428   :  { %v6934_v9 = vmul.f32 0.044715, %v6870_v25  ;;  %v12919_v63 = vpop.f32.mrf.mxu0  ;;  %v12923_v21 = vmul.f32 %v7181_v42, %v6733_v52  ;;  %7977 = vmatpush.msra.mxu3 %v7352_v40  ;;  %v7440_v33 = vld [vmem:[#allocation17 + $0x5c8] sm:$0xff]  ;;  %v7406_v25 = vld [vmem:[#allocation17 + $0x4b8] sm:$0xff] }
0x1429   :  { %v12921_v56 = vpop.f32.mrf.mxu1  ;;  %7829 = vmatmul.f32.gmra.mxu3 %v12917_v44  ;;  %8046 = vmatpush.msrb.mxu1 %v7442_v13  ;;  %v7404_v58 = vld [vmem:[#allocation17 + $0x4a8] sm:$0xff]  ;;  %v6742_v13 = vmul.f32 0.5, %v12905_v6 }
0x142a   :  { %7791 = vmatmul.f32.gmra.mxu2 %v12923_v21  ;;  %v6998_v17 = vadd.f32 %v6934_v9, %v12905_v6  ;;  %8006 = vmatpush.msrb.mxu0 %v7408_v19  ;;  %v13466_v9 = vld [vmem:[#allocation67_spill] sm:$0xff]  ;;  %v7430_v6 = vld [vmem:[#allocation17 + $0x578] sm:$0xff] }
0x142b   :  { %7858 = vmatmul.f32.gmra.mxu0 %v12105_v24  ;;  %7899 = vmatmul.f32.gmra.mxu1 %v12107_v2  ;;  %v12932_v24 = vpop.f32.mrf.mxu2 }
0x142c   :  { %v9110_v41 = vpop.eup %9109  ;;  %v7062_v54 = vmul.f32 0.7978846, %v6998_v17  ;;  %8047 = vmatpush.msrb.mxu1 %v7440_v33  ;;  %8007 = vmatpush.msrb.mxu0 %v7406_v25  ;;  %v7436_v17 = vld [vmem:[#allocation17 + $0x5a8] sm:$0xff] }
0x142d   :  { %v9112_v60 = vpop.eup %9111  ;;  %v7182_v1 = vadd.f32 1.0, %v9110_v41  ;;  %v7396_v25 = vld [vmem:[#allocation17 + $0x468] sm:$0xff] }
0x142e   :  { %v7189_v7 = vadd.f32 1.0, %v9112_v60  ;;  %9113 = vtanh.f32 %v7062_v54  ;;  %8048 = vmatpush.msrb.mxu1 %v7438_v38  ;;  %8008 = vmatpush.msrb.mxu0 %v7404_v58  ;;  %v7434_v54 = vld [vmem:[#allocation17 + $0x598] sm:$0xff]  ;;  %v7400_v60 = vld [vmem:[#allocation17 + $0x488] sm:$0xff] }
0x142f   :  { %v12934_v2 = vmul.f32 %v7182_v1, %v6734_v4  ;;  %v7432_v1 = vld [vmem:[#allocation17 + $0x588] sm:$0xff]  ;;  %v7478_v58 = vld [vmem:[#allocation17 + $0x6f8] sm:$0xff] }
0x1430   :  { %v12936_v52 = vpop.f32.mrf.mxu0  ;;  %v12940_v40 = vmul.f32 %v7189_v7, %v6741_v51  ;;  %8049 = vmatpush.msrb.mxu1 %v7436_v17  ;;  %8009 = vmatpush.msrb.mxu0 %v7402_v59  ;;  %v7398_v51 = vld [vmem:[#allocation17 + $0x478] sm:$0xff]  ;;  %v13468_v7 = vld [vmem:[#allocation68_spill] sm:$0xff] }
0x1431   :  { %13464 = vst [vmem:[#allocation58_spill] sm:$0xff] %v12934_v2  ;;  %v12938_v42 = vpop.f32.mrf.mxu1  ;;  %7832 = vmatmul.f32.gmra.mxu3 %v12934_v2  ;;  %v7428_v38 = vld [vmem:[#allocation17 + $0x568] sm:$0xff]  ;;  %v7426_v17 = vld [vmem:[#allocation17 + $0x558] sm:$0xff]  ;;  %8085 = vmatpush.msrb.mxu2 %v7478_v58  ;;  %v13479_v2 = vld [vmem:[#allocation29_spill] sm:$0xff] }
0x1432   :  { %13465 = vst [vmem:[#allocation54_spill] sm:$0xff] %v12940_v40  ;;  %7794 = vmatmul.f32.gmra.mxu2 %v12940_v40  ;;  %8050 = vmatpush.msrb.mxu1 %v7434_v54  ;;  %v7476_v59 = vld [vmem:[#allocation17 + $0x6e8] sm:$0xff]  ;;  %v7510_v58 = vld [vmem:[#allocation17 + $0x7f8] sm:$0xff] }
0x1433   :  { %7861 = vmatmul.f32.gmra.mxu0 %v12150_v50  ;;  %7902 = vmatmul.f32.gmra.mxu1 %v13466_v9  ;;  %v12955_v33 = vpop.f32.mrf.mxu2  ;;  %v7394_v9 = vld [vmem:[#allocation17 + $0x458] sm:$0xff]  ;;  %v7424_v54 = vld [vmem:[#allocation17 + $0x548] sm:$0xff] }
0x1434   :  { %v9114_v55 = vpop.eup %9113  ;;  %8010 = vmatpush.msrb.mxu0 %v7400_v60  ;;  %8051 = vmatpush.msrb.mxu1 %v7432_v1  ;;  %v7390_v60 = vld [vmem:[#allocation17 + $0x438] sm:$0xff]  ;;  %v13470_v1 = vld [vmem:[#allocation71_spill] sm:$0xff] }
0x1435   :  { %v7190_v41 = vadd.f32 1.0, %v9114_v55  ;;  %v12961_v55 = vpop.f32.mrf.mxu3  ;;  %8086 = vmatpush.msrb.mxu2 %v7476_v59  ;;  %8126 = vmatpush.msrb.mxu3 %v7510_v58  ;;  %v7508_v59 = vld [vmem:[#allocation17 + $0x7e8] sm:$0xff]  ;;  %v13472_v58 = vld [vmem:[#allocation73_spill] sm:$0xff] }
0x1436   :  { %8011 = vmatpush.msrb.mxu0 %v7398_v51  ;;  %8052 = vmatpush.msrb.mxu1 %v7430_v6  ;;  %v7474_v51 = vld [vmem:[#allocation17 + $0x6d8] sm:$0xff] }
0x1437   :  { %v12949_v4 = vmul.f32 %v7190_v41, %v6742_v13  ;;  %v7392_v13 = vld [vmem:[#allocation17 + $0x448] sm:$0xff]  ;;  %8087 = vmatpush.msrb.mxu2 %v7474_v51  ;;  %8127 = vmatpush.msrb.mxu3 %v7508_v59 }
0x1438   :  { %v12951_v50 = vpop.f32.mrf.mxu0  ;;  %8012 = vmatpush.msrb.mxu0 %v7396_v25  ;;  %8053 = vmatpush.msrb.mxu1 %v7428_v38  ;;  %v7388_v25 = vld [vmem:[#allocation17 + $0x428] sm:$0xff] }
0x1439   :  { %13467 = vst [vmem:[#allocation57_spill] sm:$0xff] %v12949_v4  ;;  %v12953_v19 = vpop.f32.mrf.mxu1  ;;  %7835 = vmatmul.f32.gmra.mxu3 %v12949_v4  ;;  %v7472_v38 = vld [vmem:[#allocation17 + $0x6c8] sm:$0xff]  ;;  %v13474_v4 = vld [vmem:[#allocation55_spill] sm:$0xff] }
0x143a   :  { %7937 = vmatmul.f32.vlgmr.msra.gmra.mxu2 %v13468_v7  ;;  %8013 = vmatpush.msrb.mxu0 %v7394_v9  ;;  %v7422_v7 = vld [vmem:[#allocation17 + $0x538] sm:$0xff]  ;;  %v7420_v9 = vld [vmem:[#allocation17 + $0x528] sm:$0xff] }
0x143b   :  { %7864 = vmatmul.f32.gmra.mxu0 %v12255_v47  ;;  %7905 = vmatmul.f32.gmra.mxu1 %v12258_v37  ;;  %v13469_v37 = vld [vmem:[#allocation69_spill] sm:$0xff]  ;;  %v12969_v6 = vpop.f32.mrf.mxu2  ;;  %v7416_v51 = vld [vmem:[#allocation17 + $0x508] sm:$0xff] }
0x143c   :  { %8054 = vmatpush.msrb.mxu1 %v7426_v17  ;;  %8014 = vmatpush.msrb.mxu0 %v7392_v13  ;;  %v7386_v17 = vld [vmem:[#allocation17 + $0x418] sm:$0xff] }
0x143d   :  { %v7470_v13 = vld [vmem:[#allocation17 + $0x6b8] sm:$0xff]  ;;  %8088 = vmatpush.msrb.mxu2 %v7472_v38  ;;  %v13473_v38 = vld [vmem:[#allocation60_spill] sm:$0xff] }
0x143e   :  { %8055 = vmatpush.msrb.mxu1 %v7424_v54  ;;  %8015 = vmatpush.msrb.mxu0 %v7390_v60  ;;  %v12977_v54 = vpop.f32.mrf.mxu3  ;;  %v13471_v60 = vld [vmem:[#allocation72_spill] sm:$0xff] }
0x143f   :  { %8089 = vmatpush.msrb.mxu2 %v7470_v13  ;;  %v7502_v13 = vld [vmem:[#allocation17 + $0x7b8] sm:$0xff] }
0x1440   :  { %v12963_v41 = vpop.f32.mrf.mxu0  ;;  %8056 = vmatpush.msrb.mxu1 %v7422_v7  ;;  %8016 = vmatpush.msrb.mxu0 %v7388_v25  ;;  %v7468_v7 = vld [vmem:[#allocation17 + $0x6a8] sm:$0xff]  ;;  %v7506_v25 = vld [vmem:[#allocation17 + $0x7d8] sm:$0xff] }
0x1441   :  { %v12965_v47 = vpop.f32.mrf.mxu1  ;;  %7978 = vmatmul.f32.vlgmr.msra.gmra.mxu3 %v13469_v37  ;;  %v7418_v37 = vld [vmem:[#allocation17 + $0x518] sm:$0xff]  ;;  %8090 = vmatpush.msrb.mxu2 %v7468_v7  ;;  %v7460_v7 = vld [vmem:[#allocation17 + $0x668] sm:$0xff] }
0x1442   :  { %7940 = vmatmul.f32.gmra.mxu2 %v13470_v1  ;;  %8057 = vmatpush.msrb.mxu1 %v7420_v9  ;;  %v7384_v1 = vld [vmem:[#allocation17 + $0x408] sm:$0xff]  ;;  %v7466_v9 = vld [vmem:[#allocation17 + $0x698] sm:$0xff] }
0x1443   :  { %7867 = vmatmul.f32.gmra.mxu0 %v12268_v43  ;;  %7908 = vmatmul.f32.gmra.mxu1 %v12326_v11  ;;  %v12983_v59 = vpop.f32.mrf.mxu2 }
0x1444   :  { %8017 = vmatpush.msrb.mxu0 %v7386_v17  ;;  %8058 = vmatpush.msrb.mxu1 %v7418_v37  ;;  %v7504_v17 = vld [vmem:[#allocation17 + $0x7c8] sm:$0xff] }
0x1445   :  { %8128 = vmatpush.msrb.mxu3 %v7506_v25  ;;  %8091 = vmatpush.msrb.mxu2 %v7466_v9  ;;  %v7498_v25 = vld [vmem:[#allocation17 + $0x798] sm:$0xff] }
0x1446   :  { %8018 = vmatpush.msrb.mxu0 %v7384_v1  ;;  %8059 = vmatpush.msrb.mxu1 %v7416_v51  ;;  %v7500_v1 = vld [vmem:[#allocation17 + $0x7a8] sm:$0xff]  ;;  %v13475_v51 = vld [vmem:[#allocation50_spill] sm:$0xff] }
0x1447   :  { %8129 = vmatpush.msrb.mxu3 %v7504_v17  ;;  %v7458_v9 = vld [vmem:[#allocation17 + $0x658] sm:$0xff]  ;;  %v7496_v17 = vld [vmem:[#allocation17 + $0x788] sm:$0xff] }
0x1448   :  { %v12973_v43 = vpop.f32.mrf.mxu0 }
0x1449   :  { %v12975_v11 = vpop.f32.mrf.mxu1  ;;  %7981 = vmatmul.f32.gmra.mxu3 %v13471_v60  ;;  %v7464_v60 = vld [vmem:[#allocation17 + $0x688] sm:$0xff] }
0x144a   :  { %7943 = vmatmul.f32.gmra.mxu2 %v13472_v58  ;;  %8130 = vmatpush.msrb.mxu3 %v7502_v13 }
0x144b   :  { %7870 = vmatmul.f32.gmra.mxu0 %v12495_v8  ;;  %7911 = vmatmul.f32.gmra.mxu1 %v13473_v38  ;;  %v7462_v8 = vld [vmem:[#allocation17 + $0x678] sm:$0xff]  ;;  %v12991_v38 = vpop.f32.mrf.mxu3 }
0x144c   :  { %8092 = vmatpush.msrb.mxu2 %v7464_v60  ;;  %8131 = vmatpush.msrb.mxu3 %v7500_v1  ;;  %v7494_v60 = vld [vmem:[#allocation17 + $0x778] sm:$0xff] }
0x144d   :  { %v7490_v1 = vld [vmem:[#allocation17 + $0x758] sm:$0xff] }
0x144e   :  { %8093 = vmatpush.msrb.mxu2 %v7462_v8  ;;  %8132 = vmatpush.msrb.mxu3 %v7498_v25  ;;  %v7454_v8 = vld [vmem:[#allocation17 + $0x638] sm:$0xff]  ;;  %v7452_v25 = vld [vmem:[#allocation17 + $0x628] sm:$0xff] }
0x1450   :  { %v12985_v58 = vpop.f32.mrf.mxu0  ;;  %8094 = vmatpush.msrb.mxu2 %v7460_v7  ;;  %8133 = vmatpush.msrb.mxu3 %v7496_v17  ;;  %v7486_v17 = vld [vmem:[#allocation17 + $0x738] sm:$0xff] }
0x1451   :  { %v12987_v37 = vpop.f32.mrf.mxu1  ;;  %7984 = vmatmul.f32.gmra.mxu3 %v13474_v4  ;;  %v12995_v4 = vpop.f32.mrf.mxu2 }
0x1452   :  { %7946 = vmatmul.f32.gmra.mxu2 %v13475_v51  ;;  %v7492_v51 = vld [vmem:[#allocation17 + $0x768] sm:$0xff]  ;;  %8134 = vmatpush.msrb.mxu3 %v7494_v60 }
0x1453   :  { %7873 = vmatmul.f32.gmra.mxu0 %v12539_v5  ;;  %7914 = vmatmul.f32.gmra.mxu1 %v12549_v14  ;;  %v13478_v5 = vld [vmem:[#allocation59_spill] sm:$0xff]  ;;  %v7456_v14 = vld [vmem:[#allocation17 + $0x648] sm:$0xff]  ;;  %v13005_v7 = vpop.f32.mrf.mxu3 }
0x1454   :  { %8095 = vmatpush.msrb.mxu2 %v7458_v9  ;;  %8135 = vmatpush.msrb.mxu3 %v7492_v51  ;;  %v7488_v9 = vld [vmem:[#allocation17 + $0x748] sm:$0xff]  ;;  %v7482_v51 = vld [vmem:[#allocation17 + $0x718] sm:$0xff] }
0x1455   :  { %v7484_v60 = vld [vmem:[#allocation17 + $0x728] sm:$0xff] }
0x1456   :  { %8096 = vmatpush.msrb.mxu2 %v7456_v14  ;;  %8136 = vmatpush.msrb.mxu3 %v7490_v1  ;;  %v7448_v14 = vld [vmem:[#allocation17 + $0x608] sm:$0xff] }
0x1458   :  { %v12997_v40 = vpop.f32.mrf.mxu0  ;;  %8097 = vmatpush.msrb.mxu2 %v7454_v8  ;;  %8137 = vmatpush.msrb.mxu3 %v7488_v9  ;;  %v7480_v8 = vld [vmem:[#allocation17 + $0x708] sm:$0xff] }
0x1459   :  { %13476 = vst [vmem:[#allocation36_spill] sm:$0xff] %v12997_v40  ;;  %v12999_v13 = vpop.f32.mrf.mxu1  ;;  %7987 = vmatmul.f32.gmra.mxu3 %v13478_v5  ;;  %v13481_v40 = vld [vmem:[#allocation53_spill] sm:$0xff] }
0x145a   :  { %13477 = vst [vmem:[#allocation33_spill] sm:$0xff] %v12999_v13  ;;  %7949 = vmatmul.f32.gmra.mxu2 %v13479_v2  ;;  %v13007_v2 = vpop.f32.mrf.mxu2  ;;  %8138 = vmatpush.msrb.mxu3 %v7486_v17 }
0x145b   :  { %7876 = vmatmul.f32.gmra.mxu0 %v12586_v23  ;;  %7917 = vmatmul.f32.gmra.mxu1 %v12588_v57  ;;  %v13480_v23 = vld [vmem:[#allocation52_spill] sm:$0xff]  ;;  %v7450_v57 = vld [vmem:[#allocation17 + $0x618] sm:$0xff]  ;;  %v13013_v1 = vpop.f32.mrf.mxu3 }
0x145c   :  { %8098 = vmatpush.msrb.mxu2 %v7452_v25  ;;  %8139 = vmatpush.msrb.mxu3 %v7484_v60 }
0x145e   :  { %8099 = vmatpush.msrb.mxu2 %v7450_v57  ;;  %8140 = vmatpush.msrb.mxu3 %v7482_v51  ;;  %v13483_v57 = vld [vmem:[#allocation65_spill] sm:$0xff]  ;;  %v13484_v51 = vld [vmem:[#allocation63_spill] sm:$0xff] }
0x1460   :  { %v7692_v5 = vpop.f32.mrf.mxu0  ;;  %8100 = vmatpush.msrb.mxu2 %v7448_v14  ;;  %8141 = vmatpush.msrb.mxu3 %v7480_v8  ;;  %v13486_v8 = vld [vmem:[#allocation61_spill] sm:$0xff] }
0x1461   :  { %v7733_v13 = vpop.f32.mrf.mxu1  ;;  %7990 = vmatmul.f32.gmra.mxu3 %v13480_v23  ;;  %v13482_v23 = vld [vmem:[#allocation39_spill] sm:$0xff] }
0x1462   :  { %7952 = vmatmul.f32.gmra.mxu2 %v13481_v40  ;;  %v13017_v40 = vpop.f32.mrf.mxu2 }
0x1463   :  { %8019 = vmatmul.f32.vlgmr.msrb.gmra.mxu0 %v12620_v32  ;;  %8060 = vmatmul.f32.vlgmr.msrb.gmra.mxu1 %v12622_v22  ;;  %v13022_v17 = vpop.f32.mrf.mxu3 }
0x1468   :  { %v7695_v25 = vpop.f32.mrf.mxu0 }
0x1469   :  { %v7736_v9 = vpop.f32.mrf.mxu1  ;;  %7993 = vmatmul.f32.gmra.mxu3 %v13482_v23 }
0x146a   :  { %7955 = vmatmul.f32.gmra.mxu2 %v12551_v30  ;;  %v7570_v30 = vadd.f32 %v12900_v35, %v12898_v48  ;;  %v13029_v60 = vpop.f32.mrf.mxu2  ;;  %v7573_v48 = vadd.f32 %v12921_v56, %v12919_v63 }
0x146b   :  { %8022 = vmatmul.f32.gmra.mxu0 %v12641_v39  ;;  %8063 = vmatmul.f32.gmra.mxu1 %v12663_v27  ;;  %v13039_v23 = vpop.f32.mrf.mxu3 }
0x146c   :  { %v7611_v39 = vadd.f32 %v12932_v24, %v7570_v30 }
0x1470   :  { %v7698_v32 = vpop.f32.mrf.mxu0 }
0x1471   :  { %v7739_v22 = vpop.f32.mrf.mxu1  ;;  %7996 = vmatmul.f32.gmra.mxu3 %v12557_v10  ;;  %v13485_v10 = vld [vmem:[#allocation62_spill] sm:$0xff] }
0x1472   :  { %7958 = vmatmul.f32.gmra.mxu2 %v12590_v61  ;;  %v7652_v61 = vadd.f32 %v12946_v26, %v7611_v39  ;;  %v13053_v26 = vld [vmem:[%s13234_s11] sm:$0x3]  ;;  %s9429_s11 = smov [#allocation19]  }
0x1473   :  { %8025 = vmatmul.f32.gmra.mxu0 %v12665_v12  ;;  %8066 = vmatmul.f32.gmra.mxu1 %v13483_v57  ;;  %v13487_v12 = vld [vmem:[#allocation64_spill] sm:$0xff]  ;;  %v7614_v57 = vadd.f32 %v12955_v33, %v7573_v48  ;;  %v13488_v33 = vld [vmem:[#allocation66_spill] sm:$0xff]  ;;  %s8225_s1 = sshll.u32 %s9429_s11, 4  ;;  %s8226_s1 = int_to_ptr.vmem [resolvable:$true] %s8225_s1 }
0x1474   :  { %v7693_v35 = vadd.f32 %v7692_v5, %v7652_v61 }
0x1475   :  { %v7655_v63 = vadd.f32 %v12961_v55, %v7614_v57 }
0x1477   :  { %v7696_v39 = vadd.f32 %v7695_v25, %v7655_v63  ;;  %v7579_v25 = vadd.f32 %v12953_v19, %v12951_v50  ;;  %v13491_v19 = vld [vmem:[#allocation27_spill] sm:$0xff] }
0x1478   :  { %v7701_v27 = vpop.f32.mrf.mxu0 }
0x1479   :  { %v13032_v14 = vpop.f32.mrf.mxu1  ;;  %7999 = vmatmul.f32.gmra.mxu3 %v13484_v51  ;;  %v7620_v63 = vadd.f32 %v12983_v59, %v7579_v25 }
0x147a   :  { %8101 = vmatmul.f32.vlgmr.msrb.gmra.mxu2 %v13485_v10  ;;  %v7734_v10 = vadd.f32 %v7733_v13, %v7693_v35  ;;  %v7576_v13 = vadd.f32 %v12938_v42, %v12936_v52 }
0x147b   :  { %8028 = vmatmul.f32.gmra.mxu0 %v13486_v8  ;;  %8069 = vmatmul.f32.gmra.mxu1 %v13487_v12  ;;  %v13489_v12 = vld [vmem:[#allocation41_spill] sm:$0xff] }
0x147c   :  { %v7617_v8 = vadd.f32 %v12969_v6, %v7576_v13 }
0x147d   :  { %v7774_v24 = vpop.f32.mrf.mxu2 }
0x147e   :  { %v7775_v56 = vadd.f32 %v7774_v24, %v7734_v10  ;;  %v7658_v52 = vadd.f32 %v12977_v54, %v7617_v8 }
0x1480   :  { %v13044_v30 = vpop.f32.mrf.mxu0  ;;  %v7699_v57 = vadd.f32 %v7698_v32, %v7658_v52  ;;  %v7582_v32 = vadd.f32 %v12965_v47, %v12963_v41 }
0x1481   :  { %v13046_v51 = vpop.f32.mrf.mxu1  ;;  %8142 = vmatmul.f32.vlgmr.msrb.gmra.mxu3 %v12772_v28 }
0x1482   :  { %8104 = vmatmul.f32.gmra.mxu2 %v12776_v16  ;;  %v13061_v16 = vperm.slane %v13053_v26, 0 }
0x1483   :  { %8031 = vmatmul.f32.gmra.mxu0 %v12756_v62  ;;  %8072 = vmatmul.f32.gmra.mxu1 %v13488_v33  ;;  %v7737_v62 = vadd.f32 %v7736_v9, %v7696_v39  ;;  %v7740_v33 = vadd.f32 %v7739_v22, %v7699_v57  ;;  %v7623_v39 = vadd.f32 %v12995_v4, %v7582_v32 }
0x1484   :  { %v7815_v5 = vpop.f32.mrf.mxu3 }
0x1485   :  { %v7816_v28 = vadd.f32 %v7815_v5, %v7775_v56  ;;  %v7777_v61 = vpop.f32.mrf.mxu2  ;;  %v7664_v41 = vadd.f32 %v13005_v7, %v7623_v39 }
0x1486   :  { %v7778_v42 = vadd.f32 %v7777_v61, %v7737_v62 }
0x1487   :  { %v8167_v48 = vadd.f32 %v7816_v28, %v13489_v12 }
0x1488   :  { %v13065_v55 = vpop.f32.mrf.mxu0 }
0x1489   :  { %v13067_v35 = vpop.f32.mrf.mxu1  ;;  %v8189_v24 = vadd.f32 %v13061_v16, %v8167_v48  ;;  %8145 = vmatmul.f32.gmra.mxu3 %v12804_v29  ;;  %v13490_v29 = vld [vmem:[#allocation40_spill] sm:$0xff]  ;;  %v13493_v48 = vld [vmem:[#allocation45_spill] sm:$0xff] }
0x148a   :  { %8107 = vmatmul.f32.gmra.mxu2 %v12807_v49 }
0x148b   :  { %8205 = vst [vmem:[#allocation19] sm:$0xff] %v8189_v24  ;;  %8034 = vmatmul.f32.gmra.mxu0 %v12813_v34  ;;  %8075 = vmatmul.f32.gmra.mxu1 %v12816_v46  ;;  %v7661_v46 = vadd.f32 %v12991_v38, %v7620_v63 }
0x148c   :  { %v7818_v6 = vpop.f32.mrf.mxu3 }
0x148d   :  { %v7819_v9 = vadd.f32 %v7818_v6, %v7778_v42  ;;  %v7780_v10 = vpop.f32.mrf.mxu2  ;;  %v7702_v5 = vadd.f32 %v7701_v27, %v7661_v46  ;;  %v7585_v27 = vadd.f32 %v12975_v11, %v12973_v43  ;;  %v13494_v6 = vld [vmem:[#allocation49_spill] sm:$0xff]  ;;  %v13498_v46 = vld [vmem:[#allocation58_spill] sm:$0xff] }
0x148e   :  { %v7781_v50 = vadd.f32 %v7780_v10, %v7740_v33  ;;  %v13497_v33 = vld [vmem:[#allocation44_spill] sm:$0xff] }
0x148f   :  { %v8169_v56 = vadd.f32 %v7819_v9, %v13490_v29  ;;  %v7743_v38 = vadd.f32 %v13032_v14, %v7702_v5  ;;  %v7705_v14 = vadd.f32 %v13044_v30, %v7664_v41  ;;  %v13496_v9 = vld [vmem:[#allocation33_spill] sm:$0xff] }
0x1490   :  { %v13079_v49 = vpop.f32.mrf.mxu0 }
0x1491   :  { %v13081_v54 = vpop.f32.mrf.mxu1  ;;  %v8191_v34 = vadd.f32 %v13061_v16, %v8169_v56  ;;  %8148 = vmatmul.f32.gmra.mxu3 %v12836_v31  ;;  %v13492_v31 = vld [vmem:[#allocation51_spill] sm:$0xff]  ;;  %v7746_v7 = vadd.f32 %v13046_v51, %v7705_v14 }
0x1492   :  { %8110 = vmatmul.f32.gmra.mxu2 %v12840_v15 }
0x1493   :  { %8207 = vst [vmem:[#allocation19 + $0x10] sm:$0xff] %v8191_v34  ;;  %8037 = vmatmul.f32.gmra.mxu0 %v12844_v45  ;;  %8078 = vmatmul.f32.gmra.mxu1 %v13491_v19 }
0x1494   :  { %v7821_v59 = vpop.f32.mrf.mxu3 }
0x1495   :  { %v7822_v22 = vadd.f32 %v7821_v59, %v7781_v50  ;;  %v7783_v13 = vpop.f32.mrf.mxu2  ;;  %v13499_v50 = vld [vmem:[#allocation54_spill] sm:$0xff] }
0x1496   :  { %v7784_v47 = vadd.f32 %v7783_v13, %v7743_v38  ;;  %v13500_v13 = vld [vmem:[#allocation31_spill] sm:$0xff] }
0x1497   :  { %v8171_v28 = vadd.f32 %v7822_v22, %v13492_v31 }
0x1498   :  { %v7713_v15 = vpop.f32.mrf.mxu0 }
0x1499   :  { %v13093_v61 = vpop.f32.mrf.mxu1  ;;  %v8193_v45 = vadd.f32 %v13061_v16, %v8171_v28  ;;  %8151 = vmatmul.f32.gmra.mxu3 %v12866_v36  ;;  %v7626_v36 = vadd.f32 %v13007_v2, %v7585_v27  ;;  %v7588_v2 = vadd.f32 %v12987_v37, %v12985_v58  ;;  %v13501_v28 = vld [vmem:[#allocation57_spill] sm:$0xff] }
0x149a   :  { %8113 = vmatmul.f32.gmra.mxu2 %v12870_v18 }
0x149b   :  { %8209 = vst [vmem:[#allocation19 + $0x20] sm:$0xff] %v8193_v45  ;;  %8040 = vmatmul.f32.gmra.mxu0 %v12874_v53  ;;  %8081 = vmatmul.f32.gmra.mxu1 %v12876_v3  ;;  %v7667_v43 = vadd.f32 %v13013_v1, %v7626_v36  ;;  %v7629_v42 = vadd.f32 %v13017_v40, %v7588_v2  ;;  %v13495_v40 = vld [vmem:[#allocation36_spill] sm:$0xff] }
0x149c   :  { %v7824_v4 = vpop.f32.mrf.mxu3  ;;  %v7591_v10 = vadd.f32 %v13496_v9, %v13495_v40 }
0x149d   :  { %v7825_v8 = vadd.f32 %v7824_v4, %v7784_v47  ;;  %v7786_v12 = vpop.f32.mrf.mxu2  ;;  %v7708_v24 = vadd.f32 %v13065_v55, %v7667_v43  ;;  %v7670_v58 = vadd.f32 %v13022_v17, %v7629_v42  ;;  %v13502_v4 = vld [vmem:[#allocation34_spill] sm:$0xff] }
0x149e   :  { %v7787_v11 = vadd.f32 %v7786_v12, %v7746_v7  ;;  %v7632_v56 = vadd.f32 %v13029_v60, %v7591_v10 }
0x149f   :  { %v8173_v18 = vadd.f32 %v7825_v8, %v13493_v48  ;;  %v7711_v63 = vadd.f32 %v13079_v49, %v7670_v58 }
0x14a0   :  { %v13107_v62 = vpop.f32.mrf.mxu0  ;;  %v7673_v19 = vadd.f32 %v13039_v23, %v7632_v56 }
0x14a1   :  { %v8195_v53 = vadd.f32 %v13061_v16, %v8173_v18  ;;  %8154 = vmatmul.f32.gmra.mxu3 %v12895_v0  ;;  %v13112_v3 = vpop.f32.mrf.mxu1 }
0x14a2   :  { %8116 = vmatmul.f32.gmra.mxu2 %v12902_v20  ;;  %v7749_v20 = vadd.f32 %v13067_v35, %v7708_v24  ;;  %v7714_v32 = vadd.f32 %v7713_v15, %v7673_v19  ;;  %v7898_v9 = vadd.f32 %v13112_v3, %v13107_v62  ;;  %v13183_v62 = vperm.slane %v13053_v26, 1 }
0x14a3   :  { %8211 = vst [vmem:[#allocation19 + $0x30] sm:$0xff] %v8195_v53 }
0x14a4   :  { %v7827_v30 = vpop.f32.mrf.mxu3  ;;  %v7755_v31 = vadd.f32 %v13093_v61, %v7714_v32 }
0x14a5   :  { %v7828_v52 = vadd.f32 %v7827_v30, %v7787_v11  ;;  %v7789_v51 = vpop.f32.mrf.mxu2 }
0x14a6   :  { %v7790_v37 = vadd.f32 %v7789_v51, %v7749_v20 }
0x14a7   :  { %v8175_v0 = vadd.f32 %v7828_v52, %v13494_v6 }
0x14a8   :  { %v13121_v25 = vpop.f32.mrf.mxu0 }
0x14a9   :  { %v8197_v1 = vadd.f32 %v13061_v16, %v8175_v0  ;;  %8157 = vmatmul.f32.gmra.mxu3 %v12917_v44  ;;  %v13128_v55 = vpop.f32.mrf.mxu1 }
0x14aa   :  { %8119 = vmatmul.f32.gmra.mxu2 %v12923_v21  ;;  %v7752_v21 = vadd.f32 %v13081_v54, %v7711_v63 }
0x14ab   :  { %8213 = vst [vmem:[#allocation19 + $0x40] sm:$0xff] %v8197_v1 }
0x14ac   :  { %v7830_v57 = vpop.f32.mrf.mxu3 }
0x14ad   :  { %v7831_v29 = vadd.f32 %v7830_v57, %v7790_v37  ;;  %v7792_v35 = vpop.f32.mrf.mxu2 }
0x14ae   :  { %v7793_v49 = vadd.f32 %v7792_v35, %v7752_v21 }
0x14af   :  { %v8177_v44 = vadd.f32 %v7831_v29, %v13497_v33 }
0x14b0   :  { %v13135_v34 = vpop.f32.mrf.mxu0 }
0x14b1   :  { %v8199_v17 = vadd.f32 %v13061_v16, %v8177_v44  ;;  %8160 = vmatmul.f32.gmra.mxu3 %v13498_v46  ;;  %v7903_v22 = vpop.f32.mrf.mxu1  ;;  %v7901_v44 = vadd.f32 %v13128_v55, %v13121_v25 }
0x14b2   :  { %8122 = vmatmul.f32.gmra.mxu2 %v13499_v50 }
0x14b3   :  { %8215 = vst [vmem:[#allocation19 + $0x50] sm:$0xff] %v8199_v17 }
0x14b4   :  { %v7833_v59 = vpop.f32.mrf.mxu3 }
0x14b5   :  { %v7834_v5 = vadd.f32 %v7833_v59, %v7793_v49  ;;  %v7795_v60 = vpop.f32.mrf.mxu2 }
0x14b6   :  { %v7796_v45 = vadd.f32 %v7795_v60, %v7755_v31  ;;  %v7904_v60 = vadd.f32 %v7903_v22, %v13135_v34 }
0x14b7   :  { %v8179_v39 = vadd.f32 %v7834_v5, %v13500_v13  ;;  %v13503_v13 = vld [vmem:[#allocation38_spill] sm:$0xff] }
0x14b8   :  { %v13146_v38 = vpop.f32.mrf.mxu0 }
0x14b9   :  { %v8201_v54 = vadd.f32 %v13061_v16, %v8179_v39  ;;  %8163 = vmatmul.f32.gmra.mxu3 %v13501_v28  ;;  %v7906_v27 = vpop.f32.mrf.mxu1 }
0x14ba   :  { %v7907_v26 = vadd.f32 %v7906_v27, %v13146_v38 }
0x14bb   :  { %8217 = vst [vmem:[#allocation19 + $0x60] sm:$0xff] %v8201_v54 }
0x14bc   :  { %v7836_v23 = vpop.f32.mrf.mxu3 }
0x14bd   :  { %v7837_v41 = vadd.f32 %v7836_v23, %v7796_v45  ;;  %v7938_v47 = vpop.f32.mrf.mxu2 }
0x14be   :  { %v7939_v10 = vadd.f32 %v7938_v47, %v7898_v9 }
0x14bf   :  { %v8181_v15 = vadd.f32 %v7837_v41, %v13502_v4 }
0x14c0   :  { %v13150_v8 = vpop.f32.mrf.mxu0 }
0x14c1   :  { %v8203_v14 = vadd.f32 %v13061_v16, %v8181_v15  ;;  %v13152_v36 = vpop.f32.mrf.mxu1  ;;  %v13504_v15 = vld [vmem:[#allocation48_spill] sm:$0xff] }
0x14c3   :  { %8219 = vst [vmem:[#allocation19 + $0x70] sm:$0xff] %v8203_v14 }
0x14c4   :  { %v7979_v61 = vpop.f32.mrf.mxu3 }
0x14c5   :  { %v7941_v12 = vpop.f32.mrf.mxu2  ;;  %v7980_v63 = vadd.f32 %v7979_v61, %v7939_v10  ;;  %v7910_v10 = vadd.f32 %v13152_v36, %v13150_v8 }
0x14c6   :  { %v7942_v17 = vadd.f32 %v7941_v12, %v7901_v44 }
0x14c8   :  { %v13154_v7 = vpop.f32.mrf.mxu0 }
0x14c9   :  { %v13156_v53 = vpop.f32.mrf.mxu1 }
0x14cc   :  { %v7982_v48 = vpop.f32.mrf.mxu3 }
0x14cd   :  { %v7944_v18 = vpop.f32.mrf.mxu2  ;;  %v7983_v50 = vadd.f32 %v7982_v48, %v7942_v17 }
0x14ce   :  { %v7945_v31 = vadd.f32 %v7944_v18, %v7904_v60 }
0x14d0   :  { %v13158_v30 = vpop.f32.mrf.mxu0 }
0x14d1   :  { %v13160_v16 = vpop.f32.mrf.mxu1 }
0x14d4   :  { %v7985_v43 = vpop.f32.mrf.mxu3 }
0x14d5   :  { %v7947_v11 = vpop.f32.mrf.mxu2  ;;  %v7986_v28 = vadd.f32 %v7985_v43, %v7945_v31  ;;  %v7916_v31 = vadd.f32 %v13160_v16, %v13158_v30  ;;  %v13508_v16 = vld [vmem:[#allocation30_spill] sm:$0xff] }
0x14d6   :  { %v7948_v34 = vadd.f32 %v7947_v11, %v7907_v26 }
0x14d8   :  { %v13162_v52 = vpop.f32.mrf.mxu0 }
0x14d9   :  { %v13166_v6 = vpop.f32.mrf.mxu1 }
0x14da   :  { %v7919_v30 = vadd.f32 %v13166_v6, %v13162_v52 }
0x14dc   :  { %v7988_v2 = vpop.f32.mrf.mxu3 }
0x14dd   :  { %v7950_v24 = vpop.f32.mrf.mxu2  ;;  %v7989_v48 = vadd.f32 %v7988_v2, %v7948_v34 }
0x14de   :  { %v7951_v27 = vadd.f32 %v7950_v24, %v7910_v10 }
0x14e0   :  { %v8020_v0 = vpop.f32.mrf.mxu0 }
0x14e1   :  { %v8061_v58 = vpop.f32.mrf.mxu1  ;;  %v8021_v56 = vadd.f32 %v8020_v0, %v7980_v63  ;;  %v13505_v63 = vld [vmem:[#allocation43_spill] sm:$0xff] }
0x14e3   :  { %v8062_v46 = vadd.f32 %v8061_v58, %v8021_v56 }
0x14e4   :  { %v7991_v51 = vpop.f32.mrf.mxu3 }
0x14e5   :  { %v13164_v42 = vpop.f32.mrf.mxu2 }
0x14e8   :  { %v8023_v40 = vpop.f32.mrf.mxu0 }
0x14e9   :  { %v8064_v29 = vpop.f32.mrf.mxu1  ;;  %v8024_v59 = vadd.f32 %v8023_v40, %v7983_v50 }
0x14eb   :  { %v8065_v54 = vadd.f32 %v8064_v29, %v8024_v59 }
0x14ec   :  { %v13168_v20 = vpop.f32.mrf.mxu3 }
0x14ed   :  { %v13170_v1 = vpop.f32.mrf.mxu2 }
0x14f0   :  { %v8026_v21 = vpop.f32.mrf.mxu0 }
0x14f1   :  { %v8067_v5 = vpop.f32.mrf.mxu1  ;;  %v8027_v41 = vadd.f32 %v8026_v21, %v7986_v28 }
0x14f3   :  { %v8068_v22 = vadd.f32 %v8067_v5, %v8027_v41 }
0x14f4   :  { %v13172_v37 = vpop.f32.mrf.mxu3 }
0x14f5   :  { %v13174_v57 = vpop.f32.mrf.mxu2 }
0x14f8   :  { %v8029_v55 = vpop.f32.mrf.mxu0 }
0x14f9   :  { %v8070_v61 = vpop.f32.mrf.mxu1  ;;  %v8030_v58 = vadd.f32 %v8029_v55, %v7989_v48 }
0x14fb   :  { %v8071_v29 = vadd.f32 %v8070_v61, %v8030_v58 }
0x14fc   :  { %v13178_v35 = vpop.f32.mrf.mxu3 }
0x14fd   :  { %v8102_v33 = vpop.f32.mrf.mxu2 }
0x14fe   :  { %v8103_v19 = vadd.f32 %v8102_v33, %v8062_v46  ;;  %v7992_v33 = vadd.f32 %v7991_v51, %v7951_v27 }
0x1500   :  { %v8032_v0 = vpop.f32.mrf.mxu0 }
0x1501   :  { %v8073_v56 = vpop.f32.mrf.mxu1  ;;  %v8033_v21 = vadd.f32 %v8032_v0, %v7992_v33 }
0x1503   :  { %v8074_v24 = vadd.f32 %v8073_v56, %v8033_v21 }
0x1504   :  { %v8143_v49 = vpop.f32.mrf.mxu3 }
0x1505   :  { %v8144_v32 = vadd.f32 %v8143_v49, %v8103_v19  ;;  %v8105_v3 = vpop.f32.mrf.mxu2  ;;  %v7913_v19 = vadd.f32 %v13156_v53, %v13154_v7  ;;  %v13506_v49 = vld [vmem:[#allocation47_spill] sm:$0xff]  ;;  %v13507_v7 = vld [vmem:[#allocation42_spill] sm:$0xff] }
0x1506   :  { %v8106_v45 = vadd.f32 %v8105_v3, %v8065_v54 }
0x1507   :  { %v8168_v39 = vadd.f32 %v8144_v32, %v13503_v13  ;;  %v7954_v36 = vadd.f32 %v13164_v42, %v7913_v19  ;;  %v7957_v42 = vadd.f32 %v13170_v1, %v7916_v31 }
0x1508   :  { %v8035_v50 = vpop.f32.mrf.mxu0 }
0x1509   :  { %v8190_v25 = vadd.f32 %v13183_v62, %v8168_v39  ;;  %v7995_v32 = vadd.f32 %v13168_v20, %v7954_v36  ;;  %v8076_v3 = vpop.f32.mrf.mxu1  ;;  %v7998_v20 = vadd.f32 %v13172_v37, %v7957_v42 }
0x150b   :  { %8206 = vst [vmem:[#allocation19 + $0x8] sm:$0xff] %v8190_v25  ;;  %v8036_v60 = vadd.f32 %v8035_v50, %v7995_v32 }
0x150c   :  { %v8146_v23 = vpop.f32.mrf.mxu3 }
0x150d   :  { %v8147_v47 = vadd.f32 %v8146_v23, %v8106_v45  ;;  %v8108_v4 = vpop.f32.mrf.mxu2  ;;  %v8077_v25 = vadd.f32 %v8076_v3, %v8036_v60 }
0x150e   :  { %v8109_v18 = vadd.f32 %v8108_v4, %v8068_v22 }
0x150f   :  { %v8170_v14 = vadd.f32 %v8147_v47, %v13504_v15  ;;  %v7960_v15 = vadd.f32 %v13174_v57, %v7919_v30 }
0x1510   :  { %v8038_v54 = vpop.f32.mrf.mxu0 }
0x1511   :  { %v8192_v12 = vadd.f32 %v13183_v62, %v8170_v14  ;;  %v8039_v23 = vadd.f32 %v8038_v54, %v7998_v20  ;;  %v8079_v47 = vpop.f32.mrf.mxu1  ;;  %v8001_v37 = vadd.f32 %v13178_v35, %v7960_v15  ;;  %v13510_v35 = vld [vmem:[#allocation56_spill] sm:$0xff] }
0x1513   :  { %8208 = vst [vmem:[#allocation19 + $0x18] sm:$0xff] %v8192_v12  ;;  %v8080_v1 = vadd.f32 %v8079_v47, %v8039_v23 }
0x1514   :  { %v8149_v43 = vpop.f32.mrf.mxu3 }
0x1515   :  { %v8150_v40 = vadd.f32 %v8149_v43, %v8109_v18  ;;  %v8111_v9 = vpop.f32.mrf.mxu2  ;;  %v13509_v18 = vld [vmem:[#allocation32_spill] sm:$0xff] }
0x1516   :  { %v8112_v2 = vadd.f32 %v8111_v9, %v8071_v29 }
0x1517   :  { %v8172_v38 = vadd.f32 %v8150_v40, %v13505_v63 }
0x1518   :  { %v8041_v61 = vpop.f32.mrf.mxu0 }
0x1519   :  { %v8194_v11 = vadd.f32 %v13183_v62, %v8172_v38  ;;  %v8042_v12 = vadd.f32 %v8041_v61, %v8001_v37  ;;  %v8082_v43 = vpop.f32.mrf.mxu1 }
0x151b   :  { %8210 = vst [vmem:[#allocation19 + $0x28] sm:$0xff] %v8194_v11  ;;  %v8083_v52 = vadd.f32 %v8082_v43, %v8042_v12 }
0x151c   :  { %v8152_v44 = vpop.f32.mrf.mxu3 }
0x151d   :  { %v8153_v17 = vadd.f32 %v8152_v44, %v8112_v2  ;;  %v8114_v46 = vpop.f32.mrf.mxu2 }
0x151e   :  { %v8115_v51 = vadd.f32 %v8114_v46, %v8074_v24 }
0x151f   :  { %v8174_v8 = vadd.f32 %v8153_v17, %v13506_v49 }
0x1521   :  { %v8196_v59 = vadd.f32 %v13183_v62, %v8174_v8 }
0x1523   :  { %8212 = vst [vmem:[#allocation19 + $0x38] sm:$0xff] %v8196_v59 }
0x1524   :  { %v8155_v5 = vpop.f32.mrf.mxu3 }
0x1525   :  { %v8156_v13 = vadd.f32 %v8155_v5, %v8115_v51  ;;  %v8117_v39 = vpop.f32.mrf.mxu2 }
0x1526   :  { %v8118_v28 = vadd.f32 %v8117_v39, %v8077_v25 }
0x1527   :  { %v8176_v53 = vadd.f32 %v8156_v13, %v13507_v7 }
0x1529   :  { %v8198_v55 = vadd.f32 %v13183_v62, %v8176_v53 }
0x152b   :  { %8214 = vst [vmem:[#allocation19 + $0x48] sm:$0xff] %v8198_v55 }
0x152c   :  { %v8158_v45 = vpop.f32.mrf.mxu3 }
0x152d   :  { %v8159_v41 = vadd.f32 %v8158_v45, %v8118_v28  ;;  %v8120_v4 = vpop.f32.mrf.mxu2 }
0x152e   :  { %v8121_v34 = vadd.f32 %v8120_v4, %v8080_v1 }
0x152f   :  { %v8178_v26 = vadd.f32 %v8159_v41, %v13508_v16 }
0x1531   :  { %v8200_v14 = vadd.f32 %v13183_v62, %v8178_v26 }
0x1533   :  { %8216 = vst [vmem:[#allocation19 + $0x58] sm:$0xff] %v8200_v14 }
0x1534   :  { %v8161_v22 = vpop.f32.mrf.mxu3 }
0x1535   :  { %v8162_v48 = vadd.f32 %v8161_v22, %v8121_v34  ;;  %v8123_v58 = vpop.f32.mrf.mxu2 }
0x1536   :  { %v8124_v57 = vadd.f32 %v8123_v58, %v8083_v52 }
0x1537   :  { %v8180_v0 = vadd.f32 %v8162_v48, %v13509_v18 }
0x1539   :  { %v8202_v6 = vadd.f32 %v13183_v62, %v8180_v0 }
0x153b   :  { %8218 = vst [vmem:[#allocation19 + $0x68] sm:$0xff] %v8202_v6 }
0x153c   :  { %v8164_v40 = vpop.f32.mrf.mxu3 }
0x153d   :  { %v8165_v9 = vadd.f32 %v8164_v40, %v8124_v57 }
0x153f   :  { %v8182_v10 = vadd.f32 %v8165_v9, %v13510_v35 }
0x1541   :  { %v8204_v63 = vadd.f32 %v13183_v62, %v8182_v10 }
0x1543   :  { %8220 = vst [vmem:[#allocation19 + $0x78] sm:$0xff] %v8204_v63 }
0x1544   :  { %8233 = dma.vmem_to_hbm [thread:$0]  %s8226_s1, 2048, %s8228_s18, [#allocation4], %s9417_s30, %s9417_s30, %s9418_s7  }
0x1545   :  { %9408 = dma.done.wait [#allocation4], 2048  }
0x1546   :  { %9409 = vsyncadd [#allocation4], 4294965248 }
0x1547   :  { %8238 = vsyncpa [#allocation3], 1 }
0x1548   :  { %8239 = vsyncpa [#allocation6], 1 }
0x1549   :  { %8240 = vsyncpa [#allocation9], 1 }
0x154a   :  { %8241 = vsyncpa [#allocation12], 1 }
0x154b   :  { %8242 = vsyncpa [#allocation15], 1 }
0x154c   :  { %8243 = vsyncpa [#allocation18], 1 }
0x154d   :  { %8244 = vsyncpa [#allocation4], 1 }

</bundles_post_ra>
